<compile_context>
chip_gen: v7x
topology: tpu7x:2x2x1
jax: 0.10.0
libtpu: 0.0.40
codegen_flags: <defaults>
</compile_context>

<pallas_src>
import functools

import jax
import jax.numpy as jnp
from jax.experimental import pallas as pl
from jax.experimental.pallas import tpu as pltpu


def _round_up(x, m):
    return (x + m - 1) // m * m


def _bilstm_kernel(threshold,
                   xf_ref, xb_ref, lens_ref, w_ref, b_ref, wl_ref, bl_ref,
                   scores_ref, preds_ref,
                   xh_f, xh_b, h_f, h_b, c_f, c_b):
    tb = pl.program_id(0)
    NT = pl.num_programs(0)
    TB = xf_ref.shape[0]
    Ep = xf_ref.shape[2]
    H = h_f.shape[1]

    @pl.when(tb == 0)
    def _():
        xh_f[...] = jnp.zeros_like(xh_f)
        xh_b[...] = jnp.zeros_like(xh_b)
        h_f[...] = jnp.zeros_like(h_f)
        h_b[...] = jnp.zeros_like(h_b)
        c_f[...] = jnp.zeros_like(c_f)
        c_b[...] = jnp.zeros_like(c_b)

    lens = lens_ref[...]            # (B, 1) int32, loaded once per grid step
    bias_f = b_ref[0]               # (1, 4H) f32
    bias_b = b_ref[1]
    w_fwd = w_ref.at[0]             # (Ep+H, 4H) bf16 ref views (fused [W_ih^T; W_hh^T])
    w_bwd = w_ref.at[1]

    def cell(x_t, xh, h, c, w, bias, t_glob):
        """One LSTM cell update for one direction at global time t_glob."""
        # Fused LHS: columns [0:Ep) hold x_t (bf16), columns [Ep:Ep+H) hold bf16(h).
        xh[:, 0:Ep] = x_t
        gates = jnp.dot(xh[...], w[...],
                        preferred_element_type=jnp.float32) + bias       # (B, 4H) f32
        i_g = jax.nn.sigmoid(gates[:, 0:H])
        f_g = jax.nn.sigmoid(gates[:, H:2 * H])
        g_g = jnp.tanh(gates[:, 2 * H:3 * H])
        o_g = jax.nn.sigmoid(gates[:, 3 * H:4 * H])
        c_new = f_g * c[...] + i_g * g_g
        h_new = o_g * jnp.tanh(c_new)
        valid = t_glob < lens                                            # (B, 1) bool
        c[...] = jnp.where(valid, c_new, c[...])
        h_upd = jnp.where(valid, h_new, h[...])
        h[...] = h_upd                                                   # f32 state
        xh[:, Ep:Ep + H] = h_upd.astype(xh.dtype)                        # bf16 copy for MXU

    def step(i, carry):
        # Forward direction consumes global time tb*TB + i; backward consumes the
        # mirrored time from the reversed block (NT-1-tb), row TB-1-i.
        cell(xf_ref[i], xh_f, h_f, c_f, w_fwd, bias_f, tb * TB + i)
        j = TB - 1 - i
        cell(xb_ref[j], xh_b, h_b, c_b, w_bwd, bias_b, (NT - 1 - tb) * TB + j)
        return carry

    jax.lax.fori_loop(0, TB, step, 0, unroll=True)

    @pl.when(tb == NT - 1)
    def _():
        # Split linear head: avoids the lane-concat of [h_f, h_b].
        scores = (jnp.dot(h_f[...], wl_ref[0], preferred_element_type=jnp.float32)
                  + jnp.dot(h_b[...], wl_ref[1], preferred_element_type=jnp.float32)
                  + bl_ref[...])
        scores_ref[...] = scores
        preds_ref[...] = (jax.nn.sigmoid(scores) > threshold).astype(jnp.int32)


def bilstm_forward(padded_captions_bte, seq_lens, params, threshold=0.5, time_block=32):
    """padded_captions_bte: [B, T, E] float32 (batch-first, like the torch module)."""
    B, T, E = padded_captions_bte.shape
    H = params["whh_f"].shape[0]
    C = params["wlin"].shape[1]

    Ep = _round_up(E, 128)                 # lane-aligned embedding dim
    B_pad = _round_up(max(B, 8), 8)        # sublane-aligned batch
    TB = max(1, min(int(time_block), T))   # timesteps per grid step
    NT = (T + TB - 1) // TB
    T_pad = NT * TB

    # --- layout plumbing (zero-padded, bf16 weights/activations) -------------------
    x = jnp.zeros((T_pad, B_pad, Ep), jnp.float32)
    x = x.at[:T, :B, :E].set(
        jnp.transpose(padded_captions_bte, (1, 0, 2)).astype(jnp.float32))
    x = x.astype(jnp.bfloat16)                                           # [T_pad, B_pad, Ep]

    lens = jnp.zeros((B_pad, 1), jnp.int32)
    lens = lens.at[:B, 0].set(seq_lens.astype(jnp.int32).reshape(-1))    # pad rows: len=0

    def fused_w(wih, whh):     # [W_ih^T (E->Ep zero-padded) ; W_hh^T]  -> (Ep+H, 4H)
        w = jnp.zeros((Ep + H, 4 * H), jnp.float32)
        w = w.at[:E].set(wih).at[Ep:Ep + H].set(whh)
        return w

    w = jnp.stack([fused_w(params["wih_f"], params["whh_f"]),
                   fused_w(params["wih_b"], params["whh_b"])]).astype(jnp.bfloat16)
    b = jnp.stack([params["b_f"], params["b_b"]]).astype(jnp.float32)    # (2, 1, 4H)
    wl = jnp.stack([params["wlin"][:H], params["wlin"][H:]]).astype(jnp.bfloat16)  # (2, H, C)
    bl = params["blin"].astype(jnp.float32)                              # (1, C)

    grid_spec = pltpu.PrefetchScalarGridSpec(
        num_scalar_prefetch=0,
        grid=(NT,),
        in_specs=[
            pl.BlockSpec((TB, B_pad, Ep), lambda t: (t, 0, 0)),             # x, fwd order
            pl.BlockSpec((TB, B_pad, Ep), lambda t: (NT - 1 - t, 0, 0)),    # x, reversed blocks
            pl.BlockSpec((B_pad, 1), lambda t: (0, 0)),                     # seq lens
            pl.BlockSpec((2, Ep + H, 4 * H), lambda t: (0, 0, 0)),          # fused LSTM weights
            pl.BlockSpec((2, 1, 4 * H), lambda t: (0, 0, 0)),               # LSTM biases
            pl.BlockSpec((2, H, C), lambda t: (0, 0, 0)),                   # split linear W^T
            pl.BlockSpec((1, C), lambda t: (0, 0)),                         # linear bias
        ],
        out_specs=[
            pl.BlockSpec((B_pad, C), lambda t: (0, 0)),
            pl.BlockSpec((B_pad, C), lambda t: (0, 0)),
        ],
        scratch_shapes=[
            pltpu.VMEM((B_pad, Ep + H), jnp.bfloat16),   # [x, h] fused LHS, fwd
            pltpu.VMEM((B_pad, Ep + H), jnp.bfloat16),   # [x, h] fused LHS, bwd
            pltpu.VMEM((B_pad, H), jnp.float32),         # h fwd (f32 state)
            pltpu.VMEM((B_pad, H), jnp.float32),         # h bwd
            pltpu.VMEM((B_pad, H), jnp.float32),         # c fwd
            pltpu.VMEM((B_pad, H), jnp.float32),         # c bwd
        ],
    )

    scores_pad, preds_pad = pl.pallas_call(
        functools.partial(_bilstm_kernel, threshold),
        out_shape=[jax.ShapeDtypeStruct((B_pad, C), jnp.float32),
                   jax.ShapeDtypeStruct((B_pad, C), jnp.int32)],
        grid_spec=grid_spec,
        compiler_params=pltpu.CompilerParams(
            dimension_semantics=("arbitrary",),          # sequential recurrence over time
            vmem_limit_bytes=32 * 1024 * 1024),
    )(x, x, lens, w, b, wl, bl)

    preds = preds_pad[:B].astype(jnp.bool_)
    return preds, scores_pad[:B]


def bilstm_ref(padded_captions_bte, seq_lens, params, threshold=0.5, mirror_bf16=True):
    """Pure-JAX reference.

    mirror_bf16=True mirrors the kernel's numerics (bf16 weights/x/h-feedback with f32
    accumulation) for a tight comparison; mirror_bf16=False is the plain f32 module.
    """
    rd = (lambda a: a.astype(jnp.bfloat16).astype(jnp.float32)) if mirror_bf16 else (lambda a: a)
    x_tbe = rd(jnp.transpose(padded_captions_bte, (1, 0, 2)).astype(jnp.float32))
    T, B, E = x_tbe.shape
    H = params["whh_f"].shape[0]
    lens = seq_lens.reshape(B, 1)
    wih_f, whh_f = rd(params["wih_f"]), rd(params["whh_f"])
    wih_b, whh_b = rd(params["wih_b"]), rd(params["whh_b"])
    wlin = rd(params["wlin"])

    def cell(x_t, h, c, wih, whh, b):
        gates = x_t @ wih + rd(h) @ whh + b
        i = jax.nn.sigmoid(gates[:, :H])
        f = jax.nn.sigmoid(gates[:, H:2 * H])
        g = jnp.tanh(gates[:, 2 * H:3 * H])
        o = jax.nn.sigmoid(gates[:, 3 * H:])
        c_new = f * c + i * g
        return o * jnp.tanh(c_new), c_new

    h_f = jnp.zeros((B, H), jnp.float32); c_f = jnp.zeros((B, H), jnp.float32)
    for t in range(T):
        hn, cn = cell(x_tbe[t], h_f, c_f, wih_f, whh_f, params["b_f"])
        m = t < lens
        h_f = jnp.where(m, hn, h_f); c_f = jnp.where(m, cn, c_f)
    h_b = jnp.zeros((B, H), jnp.float32); c_b = jnp.zeros((B, H), jnp.float32)
    for t in range(T - 1, -1, -1):
        hn, cn = cell(x_tbe[t], h_b, c_b, wih_b, whh_b, params["b_b"])
        m = t < lens
        h_b = jnp.where(m, hn, h_b); c_b = jnp.where(m, cn, c_b)
    scores = jnp.concatenate([h_f, h_b], axis=1) @ wlin + params["blin"]
    preds = jax.nn.sigmoid(scores) > threshold
    return preds, scores


if __name__ == "__main__":
    # Small shapes consistent with the module defaults.
    classes = ["c0", "c1", "c2", "c3", "c4", "c5"]
    C = len(classes)
    E = 100          # embeddings_dim (module default)
    H = 128          # hidden_size (module default)
    threshold = 0.5
    B = 4
    caption_lens = [8, 5, 3, 6]
    T = max(caption_lens)

    key = jax.random.PRNGKey(0)
    keys = jax.random.split(key, 16)

    lstm_bound = 1.0 / float(jnp.sqrt(H))
    lin_bound = 1.0 / float(jnp.sqrt(2 * H))

    def u(k, shape, bound):
        return jax.random.uniform(k, shape, jnp.float32, -bound, bound)

    params = {
        # forward direction (pre-transposed), torch gate order i,f,g,o
        "wih_f": u(keys[0], (E, 4 * H), lstm_bound),
        "whh_f": u(keys[1], (H, 4 * H), lstm_bound),
        "b_f": u(keys[2], (1, 4 * H), lstm_bound) + u(keys[3], (1, 4 * H), lstm_bound),
        # backward direction
        "wih_b": u(keys[4], (E, 4 * H), lstm_bound),
        "whh_b": u(keys[5], (H, 4 * H), lstm_bound),
        "b_b": u(keys[6], (1, 4 * H), lstm_bound) + u(keys[7], (1, 4 * H), lstm_bound),
        # linear head
        "wlin": u(keys[8], (2 * H, C), lin_bound),
        "blin": u(keys[9], (1, C), lin_bound),
    }

    # Variable-length captions padded batch-first, like the torch forward does before
    # pack_padded_sequence.  (images are accepted but unused by the module.)
    cap_key = keys[10]
    captions = []
    for L in caption_lens:
        cap_key, sub = jax.random.split(cap_key)
        captions.append(jax.random.normal(sub, (L, E), jnp.float32))
    padded = jnp.zeros((B, T, E), jnp.float32)
    for i, cap in enumerate(captions):
        padded = padded.at[i, :cap.shape[0]].set(cap)
    seq_lens = jnp.array(caption_lens, dtype=jnp.int32)

    preds, scores = bilstm_forward(padded, seq_lens, params, threshold)
    jax.block_until_ready((preds, scores))

    preds_ref, scores_ref = bilstm_ref(padded, seq_lens, params, threshold, mirror_bf16=True)
    _, scores_f32 = bilstm_ref(padded, seq_lens, params, threshold, mirror_bf16=False)

    assert scores.shape == (B, C) and preds.shape == (B, C)
    assert preds.dtype == jnp.bool_
    assert jnp.allclose(scores, scores_ref, atol=1e-2, rtol=1e-2)
    assert bool(jnp.all(preds == preds_ref))
    # sanity vs the plain-f32 module semantics (difference = bf16 weight/act quantization)
    assert jnp.allclose(scores, scores_f32, atol=7e-2, rtol=0.0)

    print("KERNEL_OK")
</pallas_src>

<mosaic_0001>
module attributes {stable_mosaic.version = 11 : i64} {
  func.func @_bilstm_kernel(%arg0: i32, %arg1: memref<8x8x128xbf16, #tpu.memory_space<vmem>>, %arg2: memref<8x8x128xbf16, #tpu.memory_space<vmem>>, %arg3: memref<8x1xi32, #tpu.memory_space<vmem>>, %arg4: memref<2x256x512xbf16, #tpu.memory_space<vmem>>, %arg5: memref<2x1x512xf32, #tpu.memory_space<vmem>>, %arg6: memref<2x128x6xbf16, #tpu.memory_space<vmem>>, %arg7: memref<1x6xf32, #tpu.memory_space<vmem>>, %arg8: memref<8x6xf32, #tpu.memory_space<vmem>>, %arg9: memref<8x6xi32, #tpu.memory_space<vmem>>, %arg10: memref<8x256xbf16, #tpu.memory_space<vmem>>, %arg11: memref<8x256xbf16, #tpu.memory_space<vmem>>, %arg12: memref<8x128xf32, #tpu.memory_space<vmem>>, %arg13: memref<8x128xf32, #tpu.memory_space<vmem>>, %arg14: memref<8x128xf32, #tpu.memory_space<vmem>>, %arg15: memref<8x128xf32, #tpu.memory_space<vmem>>) attributes {dimension_semantics = [#tpu.dimension_semantics<arbitrary>], iteration_bounds = array<i64: 1>, scalar_prefetch = 0 : i64, scratch_operands = 6 : i64, tpu.core_type = #tpu.core_type<tc>, window_params = [{transform_indices = @transform_0, window_bounds = array<i64: 8, 8, 128>}, {transform_indices = @transform_1, window_bounds = array<i64: 8, 8, 128>}, {pipeline_mode = #tpu.pipeline_mode<synchronous>, transform_indices = @transform_2, window_bounds = array<i64: 8, 1>}, {pipeline_mode = #tpu.pipeline_mode<synchronous>, transform_indices = @transform_3, window_bounds = array<i64: 2, 256, 512>}, {pipeline_mode = #tpu.pipeline_mode<synchronous>, transform_indices = @transform_4, window_bounds = array<i64: 2, 1, 512>}, {pipeline_mode = #tpu.pipeline_mode<synchronous>, transform_indices = @transform_5, window_bounds = array<i64: 2, 128, 6>}, {pipeline_mode = #tpu.pipeline_mode<synchronous>, transform_indices = @transform_6, window_bounds = array<i64: 1, 6>}, {pipeline_mode = #tpu.pipeline_mode<synchronous>, transform_indices = @transform_7, window_bounds = array<i64: 8, 6>}, {pipeline_mode = #tpu.pipeline_mode<synchronous>, transform_indices = @transform_8, window_bounds = array<i64: 8, 6>}]} {
    %c0_i32 = arith.constant 0 : i32
    %0 = arith.cmpi eq, %arg0, %c0_i32 : i32
    %1 = arith.extui %0 : i1 to i32
    %c0_i32_0 = arith.constant 0 : i32
    %2 = arith.cmpi ne, %1, %c0_i32_0 : i32
    scf.if %2 {
      %cst_426 = arith.constant 0.000000e+00 : bf16
      %875 = vector.broadcast %cst_426 : bf16 to vector<8x256xbf16>
      %c0_427 = arith.constant 0 : index
      %c0_428 = arith.constant 0 : index
      %876 = vector.load %arg10[%c0_427, %c0_428] : memref<8x256xbf16, #tpu.memory_space<vmem>>, vector<8x256xbf16>
      tpu.vector_store %arg10[%c0_427, %c0_428], %875 {strides = array<i32>} : memref<8x256xbf16, #tpu.memory_space<vmem>>, vector<8x256xbf16>,
      %cst_429 = arith.constant 0.000000e+00 : bf16
      %877 = vector.broadcast %cst_429 : bf16 to vector<8x256xbf16>
      %c0_430 = arith.constant 0 : index
      %c0_431 = arith.constant 0 : index
      %878 = vector.load %arg11[%c0_430, %c0_431] : memref<8x256xbf16, #tpu.memory_space<vmem>>, vector<8x256xbf16>
      tpu.vector_store %arg11[%c0_430, %c0_431], %877 {strides = array<i32>} : memref<8x256xbf16, #tpu.memory_space<vmem>>, vector<8x256xbf16>,
      %cst_432 = arith.constant 0.000000e+00 : f32
      %879 = vector.broadcast %cst_432 : f32 to vector<8x128xf32>
      %c0_433 = arith.constant 0 : index
      %c0_434 = arith.constant 0 : index
      %880 = vector.load %arg12[%c0_433, %c0_434] : memref<8x128xf32, #tpu.memory_space<vmem>>, vector<8x128xf32>
      tpu.vector_store %arg12[%c0_433, %c0_434], %879 {strides = array<i32>} : memref<8x128xf32, #tpu.memory_space<vmem>>, vector<8x128xf32>,
      %cst_435 = arith.constant 0.000000e+00 : f32
      %881 = vector.broadcast %cst_435 : f32 to vector<8x128xf32>
      %c0_436 = arith.constant 0 : index
      %c0_437 = arith.constant 0 : index
      %882 = vector.load %arg13[%c0_436, %c0_437] : memref<8x128xf32, #tpu.memory_space<vmem>>, vector<8x128xf32>
      tpu.vector_store %arg13[%c0_436, %c0_437], %881 {strides = array<i32>} : memref<8x128xf32, #tpu.memory_space<vmem>>, vector<8x128xf32>,
      %cst_438 = arith.constant 0.000000e+00 : f32
      %883 = vector.broadcast %cst_438 : f32 to vector<8x128xf32>
      %c0_439 = arith.constant 0 : index
      %c0_440 = arith.constant 0 : index
      %884 = vector.load %arg14[%c0_439, %c0_440] : memref<8x128xf32, #tpu.memory_space<vmem>>, vector<8x128xf32>
      tpu.vector_store %arg14[%c0_439, %c0_440], %883 {strides = array<i32>} : memref<8x128xf32, #tpu.memory_space<vmem>>, vector<8x128xf32>,
      %cst_441 = arith.constant 0.000000e+00 : f32
      %885 = vector.broadcast %cst_441 : f32 to vector<8x128xf32>
      %c0_442 = arith.constant 0 : index
      %c0_443 = arith.constant 0 : index
      %886 = vector.load %arg15[%c0_442, %c0_443] : memref<8x128xf32, #tpu.memory_space<vmem>>, vector<8x128xf32>
      tpu.vector_store %arg15[%c0_442, %c0_443], %885 {strides = array<i32>} : memref<8x128xf32, #tpu.memory_space<vmem>>, vector<8x128xf32>,
    } else {
    }
    %c0 = arith.constant 0 : index
    %c0_1 = arith.constant 0 : index
    %3 = vector.load %arg3[%c0, %c0_1] : memref<8x1xi32, #tpu.memory_space<vmem>>, vector<8x1xi32>
    %c0_2 = arith.constant 0 : index
    %c0_3 = arith.constant 0 : index
    %c0_4 = arith.constant 0 : index
    %4 = vector.load %arg5[%c0_2, %c0_3, %c0_4] : memref<2x1x512xf32, #tpu.memory_space<vmem>>, vector<1x1x512xf32>
    %5 = vector.shape_cast %4 : vector<1x1x512xf32> to vector<1x512xf32>
    %c1 = arith.constant 1 : index
    %c0_5 = arith.constant 0 : index
    %c0_6 = arith.constant 0 : index
    %6 = vector.load %arg5[%c1, %c0_5, %c0_6] : memref<2x1x512xf32, #tpu.memory_space<vmem>>, vector<1x1x512xf32>
    %7 = vector.shape_cast %6 : vector<1x1x512xf32> to vector<1x512xf32>
    %c0_i32_7 = arith.constant 0 : i32
    %c1_i32 = arith.constant 1 : i32
    %c0_i32_8 = arith.constant 0 : i32
    %8 = arith.index_cast %c0_i32_8 : i32 to index
    %c0_9 = arith.constant 0 : index
    %c0_10 = arith.constant 0 : index
    %9 = vector.load %arg1[%8, %c0_9, %c0_10] : memref<8x8x128xbf16, #tpu.memory_space<vmem>>, vector<1x8x128xbf16>
    %10 = vector.shape_cast %9 : vector<1x8x128xbf16> to vector<8x128xbf16>
    %c8_i32 = arith.constant 8 : i32
    %11 = arith.muli %arg0, %c8_i32 : i32
    %12 = arith.addi %11, %c0_i32_8 : i32
    %c0_11 = arith.constant 0 : index
    %c0_12 = arith.constant 0 : index
    %13 = vector.load %arg10[%c0_11, %c0_12] : memref<8x256xbf16, #tpu.memory_space<vmem>>, vector<8x128xbf16>
    tpu.vector_store %arg10[%c0_11, %c0_12], %10 {strides = array<i32>} : memref<8x256xbf16, #tpu.memory_space<vmem>>, vector<8x128xbf16>,
    %c0_13 = arith.constant 0 : index
    %c0_14 = arith.constant 0 : index
    %14 = vector.load %arg10[%c0_13, %c0_14] : memref<8x256xbf16, #tpu.memory_space<vmem>>, vector<8x256xbf16>
    %15 = arith.index_cast %c0_i32_7 : i32 to index
    %c0_15 = arith.constant 0 : index
    %c0_16 = arith.constant 0 : index
    %16 = vector.load %arg4[%15, %c0_15, %c0_16] : memref<2x256x512xbf16, #tpu.memory_space<vmem>>, vector<1x256x512xbf16>
    %17 = vector.shape_cast %16 : vector<1x256x512xbf16> to vector<256x512xbf16>
    %cst = arith.constant dense<0.000000e+00> : vector<8x512xf32>
    %18 = tpu.matmul %14, %17, %cst {dimension_numbers = #tpu.dot_dimension_numbers<[1], [0], [0], [1], [0, 0, 1, 1], [], []>} : vector<8x256xbf16>, vector<256x512xbf16>, vector<8x512xf32> -> vector<8x512xf32>
    %19 = vector.broadcast %5 : vector<1x512xf32> to vector<8x512xf32>
    %20 = arith.addf %18, %19 : vector<8x512xf32>
    %21 = vector.extract_strided_slice %20 {offsets = [0, 0], sizes = [8, 128], strides = [1, 1]} : vector<8x512xf32> to vector<8x128xf32>
    %22 = arith.negf %21 : vector<8x128xf32>
    %23 = math.exp %22 : vector<8x128xf32>
    %cst_17 = arith.constant 1.000000e+00 : f32
    %24 = vector.broadcast %cst_17 : f32 to vector<8x128xf32>
    %25 = arith.addf %24, %23 : vector<8x128xf32>
    %26 = arith.divf %24, %25 : vector<8x128xf32>
    %27 = vector.extract_strided_slice %20 {offsets = [0, 128], sizes = [8, 128], strides = [1, 1]} : vector<8x512xf32> to vector<8x128xf32>
    %28 = arith.negf %27 : vector<8x128xf32>
    %29 = math.exp %28 : vector<8x128xf32>
    %cst_18 = arith.constant 1.000000e+00 : f32
    %30 = vector.broadcast %cst_18 : f32 to vector<8x128xf32>
    %31 = arith.addf %30, %29 : vector<8x128xf32>
    %32 = arith.divf %30, %31 : vector<8x128xf32>
    %33 = vector.extract_strided_slice %20 {offsets = [0, 256], sizes = [8, 128], strides = [1, 1]} : vector<8x512xf32> to vector<8x128xf32>
    %34 = math.tanh %33 : vector<8x128xf32>
    %35 = vector.extract_strided_slice %20 {offsets = [0, 384], sizes = [8, 128], strides = [1, 1]} : vector<8x512xf32> to vector<8x128xf32>
    %36 = arith.negf %35 : vector<8x128xf32>
    %37 = math.exp %36 : vector<8x128xf32>
    %cst_19 = arith.constant 1.000000e+00 : f32
    %38 = vector.broadcast %cst_19 : f32 to vector<8x128xf32>
    %39 = arith.addf %38, %37 : vector<8x128xf32>
    %40 = arith.divf %38, %39 : vector<8x128xf32>
    %c0_20 = arith.constant 0 : index
    %c0_21 = arith.constant 0 : index
    %41 = vector.load %arg14[%c0_20, %c0_21] : memref<8x128xf32, #tpu.memory_space<vmem>>, vector<8x128xf32>
    %42 = arith.mulf %32, %41 : vector<8x128xf32>
    %43 = arith.mulf %26, %34 : vector<8x128xf32>
    %44 = arith.addf %42, %43 : vector<8x128xf32>
    %45 = math.tanh %44 : vector<8x128xf32>
    %46 = arith.mulf %40, %45 : vector<8x128xf32>
    %47 = vector.broadcast %12 : i32 to vector<8x1xi32>
    %48 = arith.cmpi slt, %47, %3 : vector<8x1xi32>
    %c0_22 = arith.constant 0 : index
    %c0_23 = arith.constant 0 : index
    %49 = vector.load %arg14[%c0_22, %c0_23] : memref<8x128xf32, #tpu.memory_space<vmem>>, vector<8x128xf32>
    %50 = vector.shape_cast %48 : vector<8x1xi1> to vector<8x1xi1>
    %51 = vector.broadcast %50 : vector<8x1xi1> to vector<8x128xi1>
    %52 = arith.select %51, %44, %49 : vector<8x128xi1>, vector<8x128xf32>
    %c0_24 = arith.constant 0 : index
    %c0_25 = arith.constant 0 : index
    %53 = vector.load %arg14[%c0_24, %c0_25] : memref<8x128xf32, #tpu.memory_space<vmem>>, vector<8x128xf32>
    tpu.vector_store %arg14[%c0_24, %c0_25], %52 {strides = array<i32>} : memref<8x128xf32, #tpu.memory_space<vmem>>, vector<8x128xf32>,
    %c0_26 = arith.constant 0 : index
    %c0_27 = arith.constant 0 : index
    %54 = vector.load %arg12[%c0_26, %c0_27] : memref<8x128xf32, #tpu.memory_space<vmem>>, vector<8x128xf32>
    %55 = vector.shape_cast %48 : vector<8x1xi1> to vector<8x1xi1>
    %56 = vector.broadcast %55 : vector<8x1xi1> to vector<8x128xi1>
    %57 = arith.select %56, %46, %54 : vector<8x128xi1>, vector<8x128xf32>
    %c0_28 = arith.constant 0 : index
    %c0_29 = arith.constant 0 : index
    %58 = vector.load %arg12[%c0_28, %c0_29] : memref<8x128xf32, #tpu.memory_space<vmem>>, vector<8x128xf32>
    tpu.vector_store %arg12[%c0_28, %c0_29], %57 {strides = array<i32>} : memref<8x128xf32, #tpu.memory_space<vmem>>, vector<8x128xf32>,
    %59 = arith.truncf %57 : vector<8x128xf32> to vector<8x128xbf16>
    %c0_30 = arith.constant 0 : index
    %c128 = arith.constant 128 : index
    %60 = vector.load %arg10[%c0_30, %c128] : memref<8x256xbf16, #tpu.memory_space<vmem>>, vector<8x128xbf16>
    tpu.vector_store %arg10[%c0_30, %c128], %59 {strides = array<i32>} : memref<8x256xbf16, #tpu.memory_space<vmem>>, vector<8x128xbf16>,
    %c7_i32 = arith.constant 7 : i32
    %61 = arith.subi %c7_i32, %c0_i32_8 : i32
    %62 = arith.index_cast %61 : i32 to index
    %c0_31 = arith.constant 0 : index
    %c0_32 = arith.constant 0 : index
    %63 = vector.load %arg2[%62, %c0_31, %c0_32] : memref<8x8x128xbf16, #tpu.memory_space<vmem>>, vector<1x8x128xbf16>
    %64 = vector.shape_cast %63 : vector<1x8x128xbf16> to vector<8x128xbf16>
    %c0_i32_33 = arith.constant 0 : i32
    %65 = arith.subi %c0_i32_33, %arg0 : i32
    %c8_i32_34 = arith.constant 8 : i32
    %66 = arith.muli %65, %c8_i32_34 : i32
    %67 = arith.addi %66, %61 : i32
    %c0_35 = arith.constant 0 : index
    %c0_36 = arith.constant 0 : index
    %68 = vector.load %arg11[%c0_35, %c0_36] : memref<8x256xbf16, #tpu.memory_space<vmem>>, vector<8x128xbf16>
    tpu.vector_store %arg11[%c0_35, %c0_36], %64 {strides = array<i32>} : memref<8x256xbf16, #tpu.memory_space<vmem>>, vector<8x128xbf16>,
    %c0_37 = arith.constant 0 : index
    %c0_38 = arith.constant 0 : index
    %69 = vector.load %arg11[%c0_37, %c0_38] : memref<8x256xbf16, #tpu.memory_space<vmem>>, vector<8x256xbf16>
    %70 = arith.index_cast %c1_i32 : i32 to index
    %c0_39 = arith.constant 0 : index
    %c0_40 = arith.constant 0 : index
    %71 = vector.load %arg4[%70, %c0_39, %c0_40] : memref<2x256x512xbf16, #tpu.memory_space<vmem>>, vector<1x256x512xbf16>
    %72 = vector.shape_cast %71 : vector<1x256x512xbf16> to vector<256x512xbf16>
    %cst_41 = arith.constant dense<0.000000e+00> : vector<8x512xf32>
    %73 = tpu.matmul %69, %72, %cst_41 {dimension_numbers = #tpu.dot_dimension_numbers<[1], [0], [0], [1], [0, 0, 1, 1], [], []>} : vector<8x256xbf16>, vector<256x512xbf16>, vector<8x512xf32> -> vector<8x512xf32>
    %74 = vector.broadcast %7 : vector<1x512xf32> to vector<8x512xf32>
    %75 = arith.addf %73, %74 : vector<8x512xf32>
    %76 = vector.extract_strided_slice %75 {offsets = [0, 0], sizes = [8, 128], strides = [1, 1]} : vector<8x512xf32> to vector<8x128xf32>
    %77 = arith.negf %76 : vector<8x128xf32>
    %78 = math.exp %77 : vector<8x128xf32>
    %cst_42 = arith.constant 1.000000e+00 : f32
    %79 = vector.broadcast %cst_42 : f32 to vector<8x128xf32>
    %80 = arith.addf %79, %78 : vector<8x128xf32>
    %81 = arith.divf %79, %80 : vector<8x128xf32>
    %82 = vector.extract_strided_slice %75 {offsets = [0, 128], sizes = [8, 128], strides = [1, 1]} : vector<8x512xf32> to vector<8x128xf32>
    %83 = arith.negf %82 : vector<8x128xf32>
    %84 = math.exp %83 : vector<8x128xf32>
    %cst_43 = arith.constant 1.000000e+00 : f32
    %85 = vector.broadcast %cst_43 : f32 to vector<8x128xf32>
    %86 = arith.addf %85, %84 : vector<8x128xf32>
    %87 = arith.divf %85, %86 : vector<8x128xf32>
    %88 = vector.extract_strided_slice %75 {offsets = [0, 256], sizes = [8, 128], strides = [1, 1]} : vector<8x512xf32> to vector<8x128xf32>
    %89 = math.tanh %88 : vector<8x128xf32>
    %90 = vector.extract_strided_slice %75 {offsets = [0, 384], sizes = [8, 128], strides = [1, 1]} : vector<8x512xf32> to vector<8x128xf32>
    %91 = arith.negf %90 : vector<8x128xf32>
    %92 = math.exp %91 : vector<8x128xf32>
    %cst_44 = arith.constant 1.000000e+00 : f32
    %93 = vector.broadcast %cst_44 : f32 to vector<8x128xf32>
    %94 = arith.addf %93, %92 : vector<8x128xf32>
    %95 = arith.divf %93, %94 : vector<8x128xf32>
    %c0_45 = arith.constant 0 : index
    %c0_46 = arith.constant 0 : index
    %96 = vector.load %arg15[%c0_45, %c0_46] : memref<8x128xf32, #tpu.memory_space<vmem>>, vector<8x128xf32>
    %97 = arith.mulf %87, %96 : vector<8x128xf32>
    %98 = arith.mulf %81, %89 : vector<8x128xf32>
    %99 = arith.addf %97, %98 : vector<8x128xf32>
    %100 = math.tanh %99 : vector<8x128xf32>
    %101 = arith.mulf %95, %100 : vector<8x128xf32>
    %102 = vector.broadcast %67 : i32 to vector<8x1xi32>
    %103 = arith.cmpi slt, %102, %3 : vector<8x1xi32>
    %c0_47 = arith.constant 0 : index
    %c0_48 = arith.constant 0 : index
    %104 = vector.load %arg15[%c0_47, %c0_48] : memref<8x128xf32, #tpu.memory_space<vmem>>, vector<8x128xf32>
    %105 = vector.shape_cast %103 : vector<8x1xi1> to vector<8x1xi1>
    %106 = vector.broadcast %105 : vector<8x1xi1> to vector<8x128xi1>
    %107 = arith.select %106, %99, %104 : vector<8x128xi1>, vector<8x128xf32>
    %c0_49 = arith.constant 0 : index
    %c0_50 = arith.constant 0 : index
    %108 = vector.load %arg15[%c0_49, %c0_50] : memref<8x128xf32, #tpu.memory_space<vmem>>, vector<8x128xf32>
    tpu.vector_store %arg15[%c0_49, %c0_50], %107 {strides = array<i32>} : memref<8x128xf32, #tpu.memory_space<vmem>>, vector<8x128xf32>,
    %c0_51 = arith.constant 0 : index
    %c0_52 = arith.constant 0 : index
    %109 = vector.load %arg13[%c0_51, %c0_52] : memref<8x128xf32, #tpu.memory_space<vmem>>, vector<8x128xf32>
    %110 = vector.shape_cast %103 : vector<8x1xi1> to vector<8x1xi1>
    %111 = vector.broadcast %110 : vector<8x1xi1> to vector<8x128xi1>
    %112 = arith.select %111, %101, %109 : vector<8x128xi1>, vector<8x128xf32>
    %c0_53 = arith.constant 0 : index
    %c0_54 = arith.constant 0 : index
    %113 = vector.load %arg13[%c0_53, %c0_54] : memref<8x128xf32, #tpu.memory_space<vmem>>, vector<8x128xf32>
    tpu.vector_store %arg13[%c0_53, %c0_54], %112 {strides = array<i32>} : memref<8x128xf32, #tpu.memory_space<vmem>>, vector<8x128xf32>,
    %114 = arith.truncf %112 : vector<8x128xf32> to vector<8x128xbf16>
    %c0_55 = arith.constant 0 : index
    %c128_56 = arith.constant 128 : index
    %115 = vector.load %arg11[%c0_55, %c128_56] : memref<8x256xbf16, #tpu.memory_space<vmem>>, vector<8x128xbf16>
    tpu.vector_store %arg11[%c0_55, %c128_56], %114 {strides = array<i32>} : memref<8x256xbf16, #tpu.memory_space<vmem>>, vector<8x128xbf16>,
    %c1_i32_57 = arith.constant 1 : i32
    %116 = arith.index_cast %c1_i32_57 : i32 to index
    %c0_58 = arith.constant 0 : index
    %c0_59 = arith.constant 0 : index
    %117 = vector.load %arg1[%116, %c0_58, %c0_59] : memref<8x8x128xbf16, #tpu.memory_space<vmem>>, vector<1x8x128xbf16>
    %118 = vector.shape_cast %117 : vector<1x8x128xbf16> to vector<8x128xbf16>
    %c8_i32_60 = arith.constant 8 : i32
    %119 = arith.muli %arg0, %c8_i32_60 : i32
    %120 = arith.addi %119, %c1_i32_57 : i32
    %c0_61 = arith.constant 0 : index
    %c0_62 = arith.constant 0 : index
    %121 = vector.load %arg10[%c0_61, %c0_62] : memref<8x256xbf16, #tpu.memory_space<vmem>>, vector<8x128xbf16>
    tpu.vector_store %arg10[%c0_61, %c0_62], %118 {strides = array<i32>} : memref<8x256xbf16, #tpu.memory_space<vmem>>, vector<8x128xbf16>,
    %c0_63 = arith.constant 0 : index
    %c0_64 = arith.constant 0 : index
    %122 = vector.load %arg10[%c0_63, %c0_64] : memref<8x256xbf16, #tpu.memory_space<vmem>>, vector<8x256xbf16>
    %123 = arith.index_cast %c0_i32_7 : i32 to index
    %c0_65 = arith.constant 0 : index
    %c0_66 = arith.constant 0 : index
    %124 = vector.load %arg4[%123, %c0_65, %c0_66] : memref<2x256x512xbf16, #tpu.memory_space<vmem>>, vector<1x256x512xbf16>
    %125 = vector.shape_cast %124 : vector<1x256x512xbf16> to vector<256x512xbf16>
    %cst_67 = arith.constant dense<0.000000e+00> : vector<8x512xf32>
    %126 = tpu.matmul %122, %125, %cst_67 {dimension_numbers = #tpu.dot_dimension_numbers<[1], [0], [0], [1], [0, 0, 1, 1], [], []>} : vector<8x256xbf16>, vector<256x512xbf16>, vector<8x512xf32> -> vector<8x512xf32>
    %127 = vector.broadcast %5 : vector<1x512xf32> to vector<8x512xf32>
    %128 = arith.addf %126, %127 : vector<8x512xf32>
    %129 = vector.extract_strided_slice %128 {offsets = [0, 0], sizes = [8, 128], strides = [1, 1]} : vector<8x512xf32> to vector<8x128xf32>
    %130 = arith.negf %129 : vector<8x128xf32>
    %131 = math.exp %130 : vector<8x128xf32>
    %cst_68 = arith.constant 1.000000e+00 : f32
    %132 = vector.broadcast %cst_68 : f32 to vector<8x128xf32>
    %133 = arith.addf %132, %131 : vector<8x128xf32>
    %134 = arith.divf %132, %133 : vector<8x128xf32>
    %135 = vector.extract_strided_slice %128 {offsets = [0, 128], sizes = [8, 128], strides = [1, 1]} : vector<8x512xf32> to vector<8x128xf32>
    %136 = arith.negf %135 : vector<8x128xf32>
    %137 = math.exp %136 : vector<8x128xf32>
    %cst_69 = arith.constant 1.000000e+00 : f32
    %138 = vector.broadcast %cst_69 : f32 to vector<8x128xf32>
    %139 = arith.addf %138, %137 : vector<8x128xf32>
    %140 = arith.divf %138, %139 : vector<8x128xf32>
    %141 = vector.extract_strided_slice %128 {offsets = [0, 256], sizes = [8, 128], strides = [1, 1]} : vector<8x512xf32> to vector<8x128xf32>
    %142 = math.tanh %141 : vector<8x128xf32>
    %143 = vector.extract_strided_slice %128 {offsets = [0, 384], sizes = [8, 128], strides = [1, 1]} : vector<8x512xf32> to vector<8x128xf32>
    %144 = arith.negf %143 : vector<8x128xf32>
    %145 = math.exp %144 : vector<8x128xf32>
    %cst_70 = arith.constant 1.000000e+00 : f32
    %146 = vector.broadcast %cst_70 : f32 to vector<8x128xf32>
    %147 = arith.addf %146, %145 : vector<8x128xf32>
    %148 = arith.divf %146, %147 : vector<8x128xf32>
    %c0_71 = arith.constant 0 : index
    %c0_72 = arith.constant 0 : index
    %149 = vector.load %arg14[%c0_71, %c0_72] : memref<8x128xf32, #tpu.memory_space<vmem>>, vector<8x128xf32>
    %150 = arith.mulf %140, %149 : vector<8x128xf32>
    %151 = arith.mulf %134, %142 : vector<8x128xf32>
    %152 = arith.addf %150, %151 : vector<8x128xf32>
    %153 = math.tanh %152 : vector<8x128xf32>
    %154 = arith.mulf %148, %153 : vector<8x128xf32>
    %155 = vector.broadcast %120 : i32 to vector<8x1xi32>
    %156 = arith.cmpi slt, %155, %3 : vector<8x1xi32>
    %c0_73 = arith.constant 0 : index
    %c0_74 = arith.constant 0 : index
    %157 = vector.load %arg14[%c0_73, %c0_74] : memref<8x128xf32, #tpu.memory_space<vmem>>, vector<8x128xf32>
    %158 = vector.shape_cast %156 : vector<8x1xi1> to vector<8x1xi1>
    %159 = vector.broadcast %158 : vector<8x1xi1> to vector<8x128xi1>
    %160 = arith.select %159, %152, %157 : vector<8x128xi1>, vector<8x128xf32>
    %c0_75 = arith.constant 0 : index
    %c0_76 = arith.constant 0 : index
    %161 = vector.load %arg14[%c0_75, %c0_76] : memref<8x128xf32, #tpu.memory_space<vmem>>, vector<8x128xf32>
    tpu.vector_store %arg14[%c0_75, %c0_76], %160 {strides = array<i32>} : memref<8x128xf32, #tpu.memory_space<vmem>>, vector<8x128xf32>,
    %c0_77 = arith.constant 0 : index
    %c0_78 = arith.constant 0 : index
    %162 = vector.load %arg12[%c0_77, %c0_78] : memref<8x128xf32, #tpu.memory_space<vmem>>, vector<8x128xf32>
    %163 = vector.shape_cast %156 : vector<8x1xi1> to vector<8x1xi1>
    %164 = vector.broadcast %163 : vector<8x1xi1> to vector<8x128xi1>
    %165 = arith.select %164, %154, %162 : vector<8x128xi1>, vector<8x128xf32>
    %c0_79 = arith.constant 0 : index
    %c0_80 = arith.constant 0 : index
    %166 = vector.load %arg12[%c0_79, %c0_80] : memref<8x128xf32, #tpu.memory_space<vmem>>, vector<8x128xf32>
    tpu.vector_store %arg12[%c0_79, %c0_80], %165 {strides = array<i32>} : memref<8x128xf32, #tpu.memory_space<vmem>>, vector<8x128xf32>,
    %167 = arith.truncf %165 : vector<8x128xf32> to vector<8x128xbf16>
    %c0_81 = arith.constant 0 : index
    %c128_82 = arith.constant 128 : index
    %168 = vector.load %arg10[%c0_81, %c128_82] : memref<8x256xbf16, #tpu.memory_space<vmem>>, vector<8x128xbf16>
    tpu.vector_store %arg10[%c0_81, %c128_82], %167 {strides = array<i32>} : memref<8x256xbf16, #tpu.memory_space<vmem>>, vector<8x128xbf16>,
    %c7_i32_83 = arith.constant 7 : i32
    %169 = arith.subi %c7_i32_83, %c1_i32_57 : i32
    %170 = arith.index_cast %169 : i32 to index
    %c0_84 = arith.constant 0 : index
    %c0_85 = arith.constant 0 : index
    %171 = vector.load %arg2[%170, %c0_84, %c0_85] : memref<8x8x128xbf16, #tpu.memory_space<vmem>>, vector<1x8x128xbf16>
    %172 = vector.shape_cast %171 : vector<1x8x128xbf16> to vector<8x128xbf16>
    %c0_i32_86 = arith.constant 0 : i32
    %173 = arith.subi %c0_i32_86, %arg0 : i32
    %c8_i32_87 = arith.constant 8 : i32
    %174 = arith.muli %173, %c8_i32_87 : i32
    %175 = arith.addi %174, %169 : i32
    %c0_88 = arith.constant 0 : index
    %c0_89 = arith.constant 0 : index
    %176 = vector.load %arg11[%c0_88, %c0_89] : memref<8x256xbf16, #tpu.memory_space<vmem>>, vector<8x128xbf16>
    tpu.vector_store %arg11[%c0_88, %c0_89], %172 {strides = array<i32>} : memref<8x256xbf16, #tpu.memory_space<vmem>>, vector<8x128xbf16>,
    %c0_90 = arith.constant 0 : index
    %c0_91 = arith.constant 0 : index
    %177 = vector.load %arg11[%c0_90, %c0_91] : memref<8x256xbf16, #tpu.memory_space<vmem>>, vector<8x256xbf16>
    %178 = arith.index_cast %c1_i32 : i32 to index
    %c0_92 = arith.constant 0 : index
    %c0_93 = arith.constant 0 : index
    %179 = vector.load %arg4[%178, %c0_92, %c0_93] : memref<2x256x512xbf16, #tpu.memory_space<vmem>>, vector<1x256x512xbf16>
    %180 = vector.shape_cast %179 : vector<1x256x512xbf16> to vector<256x512xbf16>
    %cst_94 = arith.constant dense<0.000000e+00> : vector<8x512xf32>
    %181 = tpu.matmul %177, %180, %cst_94 {dimension_numbers = #tpu.dot_dimension_numbers<[1], [0], [0], [1], [0, 0, 1, 1], [], []>} : vector<8x256xbf16>, vector<256x512xbf16>, vector<8x512xf32> -> vector<8x512xf32>
    %182 = vector.broadcast %7 : vector<1x512xf32> to vector<8x512xf32>
    %183 = arith.addf %181, %182 : vector<8x512xf32>
    %184 = vector.extract_strided_slice %183 {offsets = [0, 0], sizes = [8, 128], strides = [1, 1]} : vector<8x512xf32> to vector<8x128xf32>
    %185 = arith.negf %184 : vector<8x128xf32>
    %186 = math.exp %185 : vector<8x128xf32>
    %cst_95 = arith.constant 1.000000e+00 : f32
    %187 = vector.broadcast %cst_95 : f32 to vector<8x128xf32>
    %188 = arith.addf %187, %186 : vector<8x128xf32>
    %189 = arith.divf %187, %188 : vector<8x128xf32>
    %190 = vector.extract_strided_slice %183 {offsets = [0, 128], sizes = [8, 128], strides = [1, 1]} : vector<8x512xf32> to vector<8x128xf32>
    %191 = arith.negf %190 : vector<8x128xf32>
    %192 = math.exp %191 : vector<8x128xf32>
    %cst_96 = arith.constant 1.000000e+00 : f32
    %193 = vector.broadcast %cst_96 : f32 to vector<8x128xf32>
    %194 = arith.addf %193, %192 : vector<8x128xf32>
    %195 = arith.divf %193, %194 : vector<8x128xf32>
    %196 = vector.extract_strided_slice %183 {offsets = [0, 256], sizes = [8, 128], strides = [1, 1]} : vector<8x512xf32> to vector<8x128xf32>
    %197 = math.tanh %196 : vector<8x128xf32>
    %198 = vector.extract_strided_slice %183 {offsets = [0, 384], sizes = [8, 128], strides = [1, 1]} : vector<8x512xf32> to vector<8x128xf32>
    %199 = arith.negf %198 : vector<8x128xf32>
    %200 = math.exp %199 : vector<8x128xf32>
    %cst_97 = arith.constant 1.000000e+00 : f32
    %201 = vector.broadcast %cst_97 : f32 to vector<8x128xf32>
    %202 = arith.addf %201, %200 : vector<8x128xf32>
    %203 = arith.divf %201, %202 : vector<8x128xf32>
    %c0_98 = arith.constant 0 : index
    %c0_99 = arith.constant 0 : index
    %204 = vector.load %arg15[%c0_98, %c0_99] : memref<8x128xf32, #tpu.memory_space<vmem>>, vector<8x128xf32>
    %205 = arith.mulf %195, %204 : vector<8x128xf32>
    %206 = arith.mulf %189, %197 : vector<8x128xf32>
    %207 = arith.addf %205, %206 : vector<8x128xf32>
    %208 = math.tanh %207 : vector<8x128xf32>
    %209 = arith.mulf %203, %208 : vector<8x128xf32>
    %210 = vector.broadcast %175 : i32 to vector<8x1xi32>
    %211 = arith.cmpi slt, %210, %3 : vector<8x1xi32>
    %c0_100 = arith.constant 0 : index
    %c0_101 = arith.constant 0 : index
    %212 = vector.load %arg15[%c0_100, %c0_101] : memref<8x128xf32, #tpu.memory_space<vmem>>, vector<8x128xf32>
    %213 = vector.shape_cast %211 : vector<8x1xi1> to vector<8x1xi1>
    %214 = vector.broadcast %213 : vector<8x1xi1> to vector<8x128xi1>
    %215 = arith.select %214, %207, %212 : vector<8x128xi1>, vector<8x128xf32>
    %c0_102 = arith.constant 0 : index
    %c0_103 = arith.constant 0 : index
    %216 = vector.load %arg15[%c0_102, %c0_103] : memref<8x128xf32, #tpu.memory_space<vmem>>, vector<8x128xf32>
    tpu.vector_store %arg15[%c0_102, %c0_103], %215 {strides = array<i32>} : memref<8x128xf32, #tpu.memory_space<vmem>>, vector<8x128xf32>,
    %c0_104 = arith.constant 0 : index
    %c0_105 = arith.constant 0 : index
    %217 = vector.load %arg13[%c0_104, %c0_105] : memref<8x128xf32, #tpu.memory_space<vmem>>, vector<8x128xf32>
    %218 = vector.shape_cast %211 : vector<8x1xi1> to vector<8x1xi1>
    %219 = vector.broadcast %218 : vector<8x1xi1> to vector<8x128xi1>
    %220 = arith.select %219, %209, %217 : vector<8x128xi1>, vector<8x128xf32>
    %c0_106 = arith.constant 0 : index
    %c0_107 = arith.constant 0 : index
    %221 = vector.load %arg13[%c0_106, %c0_107] : memref<8x128xf32, #tpu.memory_space<vmem>>, vector<8x128xf32>
    tpu.vector_store %arg13[%c0_106, %c0_107], %220 {strides = array<i32>} : memref<8x128xf32, #tpu.memory_space<vmem>>, vector<8x128xf32>,
    %222 = arith.truncf %220 : vector<8x128xf32> to vector<8x128xbf16>
    %c0_108 = arith.constant 0 : index
    %c128_109 = arith.constant 128 : index
    %223 = vector.load %arg11[%c0_108, %c128_109] : memref<8x256xbf16, #tpu.memory_space<vmem>>, vector<8x128xbf16>
    tpu.vector_store %arg11[%c0_108, %c128_109], %222 {strides = array<i32>} : memref<8x256xbf16, #tpu.memory_space<vmem>>, vector<8x128xbf16>,
    %c2_i32 = arith.constant 2 : i32
    %224 = arith.index_cast %c2_i32 : i32 to index
    %c0_110 = arith.constant 0 : index
    %c0_111 = arith.constant 0 : index
    %225 = vector.load %arg1[%224, %c0_110, %c0_111] : memref<8x8x128xbf16, #tpu.memory_space<vmem>>, vector<1x8x128xbf16>
    %226 = vector.shape_cast %225 : vector<1x8x128xbf16> to vector<8x128xbf16>
    %c8_i32_112 = arith.constant 8 : i32
    %227 = arith.muli %arg0, %c8_i32_112 : i32
    %228 = arith.addi %227, %c2_i32 : i32
    %c0_113 = arith.constant 0 : index
    %c0_114 = arith.constant 0 : index
    %229 = vector.load %arg10[%c0_113, %c0_114] : memref<8x256xbf16, #tpu.memory_space<vmem>>, vector<8x128xbf16>
    tpu.vector_store %arg10[%c0_113, %c0_114], %226 {strides = array<i32>} : memref<8x256xbf16, #tpu.memory_space<vmem>>, vector<8x128xbf16>,
    %c0_115 = arith.constant 0 : index
    %c0_116 = arith.constant 0 : index
    %230 = vector.load %arg10[%c0_115, %c0_116] : memref<8x256xbf16, #tpu.memory_space<vmem>>, vector<8x256xbf16>
    %231 = arith.index_cast %c0_i32_7 : i32 to index
    %c0_117 = arith.constant 0 : index
    %c0_118 = arith.constant 0 : index
    %232 = vector.load %arg4[%231, %c0_117, %c0_118] : memref<2x256x512xbf16, #tpu.memory_space<vmem>>, vector<1x256x512xbf16>
    %233 = vector.shape_cast %232 : vector<1x256x512xbf16> to vector<256x512xbf16>
    %cst_119 = arith.constant dense<0.000000e+00> : vector<8x512xf32>
    %234 = tpu.matmul %230, %233, %cst_119 {dimension_numbers = #tpu.dot_dimension_numbers<[1], [0], [0], [1], [0, 0, 1, 1], [], []>} : vector<8x256xbf16>, vector<256x512xbf16>, vector<8x512xf32> -> vector<8x512xf32>
    %235 = vector.broadcast %5 : vector<1x512xf32> to vector<8x512xf32>
    %236 = arith.addf %234, %235 : vector<8x512xf32>
    %237 = vector.extract_strided_slice %236 {offsets = [0, 0], sizes = [8, 128], strides = [1, 1]} : vector<8x512xf32> to vector<8x128xf32>
    %238 = arith.negf %237 : vector<8x128xf32>
    %239 = math.exp %238 : vector<8x128xf32>
    %cst_120 = arith.constant 1.000000e+00 : f32
    %240 = vector.broadcast %cst_120 : f32 to vector<8x128xf32>
    %241 = arith.addf %240, %239 : vector<8x128xf32>
    %242 = arith.divf %240, %241 : vector<8x128xf32>
    %243 = vector.extract_strided_slice %236 {offsets = [0, 128], sizes = [8, 128], strides = [1, 1]} : vector<8x512xf32> to vector<8x128xf32>
    %244 = arith.negf %243 : vector<8x128xf32>
    %245 = math.exp %244 : vector<8x128xf32>
    %cst_121 = arith.constant 1.000000e+00 : f32
    %246 = vector.broadcast %cst_121 : f32 to vector<8x128xf32>
    %247 = arith.addf %246, %245 : vector<8x128xf32>
    %248 = arith.divf %246, %247 : vector<8x128xf32>
    %249 = vector.extract_strided_slice %236 {offsets = [0, 256], sizes = [8, 128], strides = [1, 1]} : vector<8x512xf32> to vector<8x128xf32>
    %250 = math.tanh %249 : vector<8x128xf32>
    %251 = vector.extract_strided_slice %236 {offsets = [0, 384], sizes = [8, 128], strides = [1, 1]} : vector<8x512xf32> to vector<8x128xf32>
    %252 = arith.negf %251 : vector<8x128xf32>
    %253 = math.exp %252 : vector<8x128xf32>
    %cst_122 = arith.constant 1.000000e+00 : f32
    %254 = vector.broadcast %cst_122 : f32 to vector<8x128xf32>
    %255 = arith.addf %254, %253 : vector<8x128xf32>
    %256 = arith.divf %254, %255 : vector<8x128xf32>
    %c0_123 = arith.constant 0 : index
    %c0_124 = arith.constant 0 : index
    %257 = vector.load %arg14[%c0_123, %c0_124] : memref<8x128xf32, #tpu.memory_space<vmem>>, vector<8x128xf32>
    %258 = arith.mulf %248, %257 : vector<8x128xf32>
    %259 = arith.mulf %242, %250 : vector<8x128xf32>
    %260 = arith.addf %258, %259 : vector<8x128xf32>
    %261 = math.tanh %260 : vector<8x128xf32>
    %262 = arith.mulf %256, %261 : vector<8x128xf32>
    %263 = vector.broadcast %228 : i32 to vector<8x1xi32>
    %264 = arith.cmpi slt, %263, %3 : vector<8x1xi32>
    %c0_125 = arith.constant 0 : index
    %c0_126 = arith.constant 0 : index
    %265 = vector.load %arg14[%c0_125, %c0_126] : memref<8x128xf32, #tpu.memory_space<vmem>>, vector<8x128xf32>
    %266 = vector.shape_cast %264 : vector<8x1xi1> to vector<8x1xi1>
    %267 = vector.broadcast %266 : vector<8x1xi1> to vector<8x128xi1>
    %268 = arith.select %267, %260, %265 : vector<8x128xi1>, vector<8x128xf32>
    %c0_127 = arith.constant 0 : index
    %c0_128 = arith.constant 0 : index
    %269 = vector.load %arg14[%c0_127, %c0_128] : memref<8x128xf32, #tpu.memory_space<vmem>>, vector<8x128xf32>
    tpu.vector_store %arg14[%c0_127, %c0_128], %268 {strides = array<i32>} : memref<8x128xf32, #tpu.memory_space<vmem>>, vector<8x128xf32>,
    %c0_129 = arith.constant 0 : index
    %c0_130 = arith.constant 0 : index
    %270 = vector.load %arg12[%c0_129, %c0_130] : memref<8x128xf32, #tpu.memory_space<vmem>>, vector<8x128xf32>
    %271 = vector.shape_cast %264 : vector<8x1xi1> to vector<8x1xi1>
    %272 = vector.broadcast %271 : vector<8x1xi1> to vector<8x128xi1>
    %273 = arith.select %272, %262, %270 : vector<8x128xi1>, vector<8x128xf32>
    %c0_131 = arith.constant 0 : index
    %c0_132 = arith.constant 0 : index
    %274 = vector.load %arg12[%c0_131, %c0_132] : memref<8x128xf32, #tpu.memory_space<vmem>>, vector<8x128xf32>
    tpu.vector_store %arg12[%c0_131, %c0_132], %273 {strides = array<i32>} : memref<8x128xf32, #tpu.memory_space<vmem>>, vector<8x128xf32>,
    %275 = arith.truncf %273 : vector<8x128xf32> to vector<8x128xbf16>
    %c0_133 = arith.constant 0 : index
    %c128_134 = arith.constant 128 : index
    %276 = vector.load %arg10[%c0_133, %c128_134] : memref<8x256xbf16, #tpu.memory_space<vmem>>, vector<8x128xbf16>
    tpu.vector_store %arg10[%c0_133, %c128_134], %275 {strides = array<i32>} : memref<8x256xbf16, #tpu.memory_space<vmem>>, vector<8x128xbf16>,
    %c7_i32_135 = arith.constant 7 : i32
    %277 = arith.subi %c7_i32_135, %c2_i32 : i32
    %278 = arith.index_cast %277 : i32 to index
    %c0_136 = arith.constant 0 : index
    %c0_137 = arith.constant 0 : index
    %279 = vector.load %arg2[%278, %c0_136, %c0_137] : memref<8x8x128xbf16, #tpu.memory_space<vmem>>, vector<1x8x128xbf16>
    %280 = vector.shape_cast %279 : vector<1x8x128xbf16> to vector<8x128xbf16>
    %c0_i32_138 = arith.constant 0 : i32
    %281 = arith.subi %c0_i32_138, %arg0 : i32
    %c8_i32_139 = arith.constant 8 : i32
    %282 = arith.muli %281, %c8_i32_139 : i32
    %283 = arith.addi %282, %277 : i32
    %c0_140 = arith.constant 0 : index
    %c0_141 = arith.constant 0 : index
    %284 = vector.load %arg11[%c0_140, %c0_141] : memref<8x256xbf16, #tpu.memory_space<vmem>>, vector<8x128xbf16>
    tpu.vector_store %arg11[%c0_140, %c0_141], %280 {strides = array<i32>} : memref<8x256xbf16, #tpu.memory_space<vmem>>, vector<8x128xbf16>,
    %c0_142 = arith.constant 0 : index
    %c0_143 = arith.constant 0 : index
    %285 = vector.load %arg11[%c0_142, %c0_143] : memref<8x256xbf16, #tpu.memory_space<vmem>>, vector<8x256xbf16>
    %286 = arith.index_cast %c1_i32 : i32 to index
    %c0_144 = arith.constant 0 : index
    %c0_145 = arith.constant 0 : index
    %287 = vector.load %arg4[%286, %c0_144, %c0_145] : memref<2x256x512xbf16, #tpu.memory_space<vmem>>, vector<1x256x512xbf16>
    %288 = vector.shape_cast %287 : vector<1x256x512xbf16> to vector<256x512xbf16>
    %cst_146 = arith.constant dense<0.000000e+00> : vector<8x512xf32>
    %289 = tpu.matmul %285, %288, %cst_146 {dimension_numbers = #tpu.dot_dimension_numbers<[1], [0], [0], [1], [0, 0, 1, 1], [], []>} : vector<8x256xbf16>, vector<256x512xbf16>, vector<8x512xf32> -> vector<8x512xf32>
    %290 = vector.broadcast %7 : vector<1x512xf32> to vector<8x512xf32>
    %291 = arith.addf %289, %290 : vector<8x512xf32>
    %292 = vector.extract_strided_slice %291 {offsets = [0, 0], sizes = [8, 128], strides = [1, 1]} : vector<8x512xf32> to vector<8x128xf32>
    %293 = arith.negf %292 : vector<8x128xf32>
    %294 = math.exp %293 : vector<8x128xf32>
    %cst_147 = arith.constant 1.000000e+00 : f32
    %295 = vector.broadcast %cst_147 : f32 to vector<8x128xf32>
    %296 = arith.addf %295, %294 : vector<8x128xf32>
    %297 = arith.divf %295, %296 : vector<8x128xf32>
    %298 = vector.extract_strided_slice %291 {offsets = [0, 128], sizes = [8, 128], strides = [1, 1]} : vector<8x512xf32> to vector<8x128xf32>
    %299 = arith.negf %298 : vector<8x128xf32>
    %300 = math.exp %299 : vector<8x128xf32>
    %cst_148 = arith.constant 1.000000e+00 : f32
    %301 = vector.broadcast %cst_148 : f32 to vector<8x128xf32>
    %302 = arith.addf %301, %300 : vector<8x128xf32>
    %303 = arith.divf %301, %302 : vector<8x128xf32>
    %304 = vector.extract_strided_slice %291 {offsets = [0, 256], sizes = [8, 128], strides = [1, 1]} : vector<8x512xf32> to vector<8x128xf32>
    %305 = math.tanh %304 : vector<8x128xf32>
    %306 = vector.extract_strided_slice %291 {offsets = [0, 384], sizes = [8, 128], strides = [1, 1]} : vector<8x512xf32> to vector<8x128xf32>
    %307 = arith.negf %306 : vector<8x128xf32>
    %308 = math.exp %307 : vector<8x128xf32>
    %cst_149 = arith.constant 1.000000e+00 : f32
    %309 = vector.broadcast %cst_149 : f32 to vector<8x128xf32>
    %310 = arith.addf %309, %308 : vector<8x128xf32>
    %311 = arith.divf %309, %310 : vector<8x128xf32>
    %c0_150 = arith.constant 0 : index
    %c0_151 = arith.constant 0 : index
    %312 = vector.load %arg15[%c0_150, %c0_151] : memref<8x128xf32, #tpu.memory_space<vmem>>, vector<8x128xf32>
    %313 = arith.mulf %303, %312 : vector<8x128xf32>
    %314 = arith.mulf %297, %305 : vector<8x128xf32>
    %315 = arith.addf %313, %314 : vector<8x128xf32>
    %316 = math.tanh %315 : vector<8x128xf32>
    %317 = arith.mulf %311, %316 : vector<8x128xf32>
    %318 = vector.broadcast %283 : i32 to vector<8x1xi32>
    %319 = arith.cmpi slt, %318, %3 : vector<8x1xi32>
    %c0_152 = arith.constant 0 : index
    %c0_153 = arith.constant 0 : index
    %320 = vector.load %arg15[%c0_152, %c0_153] : memref<8x128xf32, #tpu.memory_space<vmem>>, vector<8x128xf32>
    %321 = vector.shape_cast %319 : vector<8x1xi1> to vector<8x1xi1>
    %322 = vector.broadcast %321 : vector<8x1xi1> to vector<8x128xi1>
    %323 = arith.select %322, %315, %320 : vector<8x128xi1>, vector<8x128xf32>
    %c0_154 = arith.constant 0 : index
    %c0_155 = arith.constant 0 : index
    %324 = vector.load %arg15[%c0_154, %c0_155] : memref<8x128xf32, #tpu.memory_space<vmem>>, vector<8x128xf32>
    tpu.vector_store %arg15[%c0_154, %c0_155], %323 {strides = array<i32>} : memref<8x128xf32, #tpu.memory_space<vmem>>, vector<8x128xf32>,
    %c0_156 = arith.constant 0 : index
    %c0_157 = arith.constant 0 : index
    %325 = vector.load %arg13[%c0_156, %c0_157] : memref<8x128xf32, #tpu.memory_space<vmem>>, vector<8x128xf32>
    %326 = vector.shape_cast %319 : vector<8x1xi1> to vector<8x1xi1>
    %327 = vector.broadcast %326 : vector<8x1xi1> to vector<8x128xi1>
    %328 = arith.select %327, %317, %325 : vector<8x128xi1>, vector<8x128xf32>
    %c0_158 = arith.constant 0 : index
    %c0_159 = arith.constant 0 : index
    %329 = vector.load %arg13[%c0_158, %c0_159] : memref<8x128xf32, #tpu.memory_space<vmem>>, vector<8x128xf32>
    tpu.vector_store %arg13[%c0_158, %c0_159], %328 {strides = array<i32>} : memref<8x128xf32, #tpu.memory_space<vmem>>, vector<8x128xf32>,
    %330 = arith.truncf %328 : vector<8x128xf32> to vector<8x128xbf16>
    %c0_160 = arith.constant 0 : index
    %c128_161 = arith.constant 128 : index
    %331 = vector.load %arg11[%c0_160, %c128_161] : memref<8x256xbf16, #tpu.memory_space<vmem>>, vector<8x128xbf16>
    tpu.vector_store %arg11[%c0_160, %c128_161], %330 {strides = array<i32>} : memref<8x256xbf16, #tpu.memory_space<vmem>>, vector<8x128xbf16>,
    %c3_i32 = arith.constant 3 : i32
    %332 = arith.index_cast %c3_i32 : i32 to index
    %c0_162 = arith.constant 0 : index
    %c0_163 = arith.constant 0 : index
    %333 = vector.load %arg1[%332, %c0_162, %c0_163] : memref<8x8x128xbf16, #tpu.memory_space<vmem>>, vector<1x8x128xbf16>
    %334 = vector.shape_cast %333 : vector<1x8x128xbf16> to vector<8x128xbf16>
    %c8_i32_164 = arith.constant 8 : i32
    %335 = arith.muli %arg0, %c8_i32_164 : i32
    %336 = arith.addi %335, %c3_i32 : i32
    %c0_165 = arith.constant 0 : index
    %c0_166 = arith.constant 0 : index
    %337 = vector.load %arg10[%c0_165, %c0_166] : memref<8x256xbf16, #tpu.memory_space<vmem>>, vector<8x128xbf16>
    tpu.vector_store %arg10[%c0_165, %c0_166], %334 {strides = array<i32>} : memref<8x256xbf16, #tpu.memory_space<vmem>>, vector<8x128xbf16>,
    %c0_167 = arith.constant 0 : index
    %c0_168 = arith.constant 0 : index
    %338 = vector.load %arg10[%c0_167, %c0_168] : memref<8x256xbf16, #tpu.memory_space<vmem>>, vector<8x256xbf16>
    %339 = arith.index_cast %c0_i32_7 : i32 to index
    %c0_169 = arith.constant 0 : index
    %c0_170 = arith.constant 0 : index
    %340 = vector.load %arg4[%339, %c0_169, %c0_170] : memref<2x256x512xbf16, #tpu.memory_space<vmem>>, vector<1x256x512xbf16>
    %341 = vector.shape_cast %340 : vector<1x256x512xbf16> to vector<256x512xbf16>
    %cst_171 = arith.constant dense<0.000000e+00> : vector<8x512xf32>
    %342 = tpu.matmul %338, %341, %cst_171 {dimension_numbers = #tpu.dot_dimension_numbers<[1], [0], [0], [1], [0, 0, 1, 1], [], []>} : vector<8x256xbf16>, vector<256x512xbf16>, vector<8x512xf32> -> vector<8x512xf32>
    %343 = vector.broadcast %5 : vector<1x512xf32> to vector<8x512xf32>
    %344 = arith.addf %342, %343 : vector<8x512xf32>
    %345 = vector.extract_strided_slice %344 {offsets = [0, 0], sizes = [8, 128], strides = [1, 1]} : vector<8x512xf32> to vector<8x128xf32>
    %346 = arith.negf %345 : vector<8x128xf32>
    %347 = math.exp %346 : vector<8x128xf32>
    %cst_172 = arith.constant 1.000000e+00 : f32
    %348 = vector.broadcast %cst_172 : f32 to vector<8x128xf32>
    %349 = arith.addf %348, %347 : vector<8x128xf32>
    %350 = arith.divf %348, %349 : vector<8x128xf32>
    %351 = vector.extract_strided_slice %344 {offsets = [0, 128], sizes = [8, 128], strides = [1, 1]} : vector<8x512xf32> to vector<8x128xf32>
    %352 = arith.negf %351 : vector<8x128xf32>
    %353 = math.exp %352 : vector<8x128xf32>
    %cst_173 = arith.constant 1.000000e+00 : f32
    %354 = vector.broadcast %cst_173 : f32 to vector<8x128xf32>
    %355 = arith.addf %354, %353 : vector<8x128xf32>
    %356 = arith.divf %354, %355 : vector<8x128xf32>
    %357 = vector.extract_strided_slice %344 {offsets = [0, 256], sizes = [8, 128], strides = [1, 1]} : vector<8x512xf32> to vector<8x128xf32>
    %358 = math.tanh %357 : vector<8x128xf32>
    %359 = vector.extract_strided_slice %344 {offsets = [0, 384], sizes = [8, 128], strides = [1, 1]} : vector<8x512xf32> to vector<8x128xf32>
    %360 = arith.negf %359 : vector<8x128xf32>
    %361 = math.exp %360 : vector<8x128xf32>
    %cst_174 = arith.constant 1.000000e+00 : f32
    %362 = vector.broadcast %cst_174 : f32 to vector<8x128xf32>
    %363 = arith.addf %362, %361 : vector<8x128xf32>
    %364 = arith.divf %362, %363 : vector<8x128xf32>
    %c0_175 = arith.constant 0 : index
    %c0_176 = arith.constant 0 : index
    %365 = vector.load %arg14[%c0_175, %c0_176] : memref<8x128xf32, #tpu.memory_space<vmem>>, vector<8x128xf32>
    %366 = arith.mulf %356, %365 : vector<8x128xf32>
    %367 = arith.mulf %350, %358 : vector<8x128xf32>
    %368 = arith.addf %366, %367 : vector<8x128xf32>
    %369 = math.tanh %368 : vector<8x128xf32>
    %370 = arith.mulf %364, %369 : vector<8x128xf32>
    %371 = vector.broadcast %336 : i32 to vector<8x1xi32>
    %372 = arith.cmpi slt, %371, %3 : vector<8x1xi32>
    %c0_177 = arith.constant 0 : index
    %c0_178 = arith.constant 0 : index
    %373 = vector.load %arg14[%c0_177, %c0_178] : memref<8x128xf32, #tpu.memory_space<vmem>>, vector<8x128xf32>
    %374 = vector.shape_cast %372 : vector<8x1xi1> to vector<8x1xi1>
    %375 = vector.broadcast %374 : vector<8x1xi1> to vector<8x128xi1>
    %376 = arith.select %375, %368, %373 : vector<8x128xi1>, vector<8x128xf32>
    %c0_179 = arith.constant 0 : index
    %c0_180 = arith.constant 0 : index
    %377 = vector.load %arg14[%c0_179, %c0_180] : memref<8x128xf32, #tpu.memory_space<vmem>>, vector<8x128xf32>
    tpu.vector_store %arg14[%c0_179, %c0_180], %376 {strides = array<i32>} : memref<8x128xf32, #tpu.memory_space<vmem>>, vector<8x128xf32>,
    %c0_181 = arith.constant 0 : index
    %c0_182 = arith.constant 0 : index
    %378 = vector.load %arg12[%c0_181, %c0_182] : memref<8x128xf32, #tpu.memory_space<vmem>>, vector<8x128xf32>
    %379 = vector.shape_cast %372 : vector<8x1xi1> to vector<8x1xi1>
    %380 = vector.broadcast %379 : vector<8x1xi1> to vector<8x128xi1>
    %381 = arith.select %380, %370, %378 : vector<8x128xi1>, vector<8x128xf32>
    %c0_183 = arith.constant 0 : index
    %c0_184 = arith.constant 0 : index
    %382 = vector.load %arg12[%c0_183, %c0_184] : memref<8x128xf32, #tpu.memory_space<vmem>>, vector<8x128xf32>
    tpu.vector_store %arg12[%c0_183, %c0_184], %381 {strides = array<i32>} : memref<8x128xf32, #tpu.memory_space<vmem>>, vector<8x128xf32>,
    %383 = arith.truncf %381 : vector<8x128xf32> to vector<8x128xbf16>
    %c0_185 = arith.constant 0 : index
    %c128_186 = arith.constant 128 : index
    %384 = vector.load %arg10[%c0_185, %c128_186] : memref<8x256xbf16, #tpu.memory_space<vmem>>, vector<8x128xbf16>
    tpu.vector_store %arg10[%c0_185, %c128_186], %383 {strides = array<i32>} : memref<8x256xbf16, #tpu.memory_space<vmem>>, vector<8x128xbf16>,
    %c7_i32_187 = arith.constant 7 : i32
    %385 = arith.subi %c7_i32_187, %c3_i32 : i32
    %386 = arith.index_cast %385 : i32 to index
    %c0_188 = arith.constant 0 : index
    %c0_189 = arith.constant 0 : index
    %387 = vector.load %arg2[%386, %c0_188, %c0_189] : memref<8x8x128xbf16, #tpu.memory_space<vmem>>, vector<1x8x128xbf16>
    %388 = vector.shape_cast %387 : vector<1x8x128xbf16> to vector<8x128xbf16>
    %c0_i32_190 = arith.constant 0 : i32
    %389 = arith.subi %c0_i32_190, %arg0 : i32
    %c8_i32_191 = arith.constant 8 : i32
    %390 = arith.muli %389, %c8_i32_191 : i32
    %391 = arith.addi %390, %385 : i32
    %c0_192 = arith.constant 0 : index
    %c0_193 = arith.constant 0 : index
    %392 = vector.load %arg11[%c0_192, %c0_193] : memref<8x256xbf16, #tpu.memory_space<vmem>>, vector<8x128xbf16>
    tpu.vector_store %arg11[%c0_192, %c0_193], %388 {strides = array<i32>} : memref<8x256xbf16, #tpu.memory_space<vmem>>, vector<8x128xbf16>,
    %c0_194 = arith.constant 0 : index
    %c0_195 = arith.constant 0 : index
    %393 = vector.load %arg11[%c0_194, %c0_195] : memref<8x256xbf16, #tpu.memory_space<vmem>>, vector<8x256xbf16>
    %394 = arith.index_cast %c1_i32 : i32 to index
    %c0_196 = arith.constant 0 : index
    %c0_197 = arith.constant 0 : index
    %395 = vector.load %arg4[%394, %c0_196, %c0_197] : memref<2x256x512xbf16, #tpu.memory_space<vmem>>, vector<1x256x512xbf16>
    %396 = vector.shape_cast %395 : vector<1x256x512xbf16> to vector<256x512xbf16>
    %cst_198 = arith.constant dense<0.000000e+00> : vector<8x512xf32>
    %397 = tpu.matmul %393, %396, %cst_198 {dimension_numbers = #tpu.dot_dimension_numbers<[1], [0], [0], [1], [0, 0, 1, 1], [], []>} : vector<8x256xbf16>, vector<256x512xbf16>, vector<8x512xf32> -> vector<8x512xf32>
    %398 = vector.broadcast %7 : vector<1x512xf32> to vector<8x512xf32>
    %399 = arith.addf %397, %398 : vector<8x512xf32>
    %400 = vector.extract_strided_slice %399 {offsets = [0, 0], sizes = [8, 128], strides = [1, 1]} : vector<8x512xf32> to vector<8x128xf32>
    %401 = arith.negf %400 : vector<8x128xf32>
    %402 = math.exp %401 : vector<8x128xf32>
    %cst_199 = arith.constant 1.000000e+00 : f32
    %403 = vector.broadcast %cst_199 : f32 to vector<8x128xf32>
    %404 = arith.addf %403, %402 : vector<8x128xf32>
    %405 = arith.divf %403, %404 : vector<8x128xf32>
    %406 = vector.extract_strided_slice %399 {offsets = [0, 128], sizes = [8, 128], strides = [1, 1]} : vector<8x512xf32> to vector<8x128xf32>
    %407 = arith.negf %406 : vector<8x128xf32>
    %408 = math.exp %407 : vector<8x128xf32>
    %cst_200 = arith.constant 1.000000e+00 : f32
    %409 = vector.broadcast %cst_200 : f32 to vector<8x128xf32>
    %410 = arith.addf %409, %408 : vector<8x128xf32>
    %411 = arith.divf %409, %410 : vector<8x128xf32>
    %412 = vector.extract_strided_slice %399 {offsets = [0, 256], sizes = [8, 128], strides = [1, 1]} : vector<8x512xf32> to vector<8x128xf32>
    %413 = math.tanh %412 : vector<8x128xf32>
    %414 = vector.extract_strided_slice %399 {offsets = [0, 384], sizes = [8, 128], strides = [1, 1]} : vector<8x512xf32> to vector<8x128xf32>
    %415 = arith.negf %414 : vector<8x128xf32>
    %416 = math.exp %415 : vector<8x128xf32>
    %cst_201 = arith.constant 1.000000e+00 : f32
    %417 = vector.broadcast %cst_201 : f32 to vector<8x128xf32>
    %418 = arith.addf %417, %416 : vector<8x128xf32>
    %419 = arith.divf %417, %418 : vector<8x128xf32>
    %c0_202 = arith.constant 0 : index
    %c0_203 = arith.constant 0 : index
    %420 = vector.load %arg15[%c0_202, %c0_203] : memref<8x128xf32, #tpu.memory_space<vmem>>, vector<8x128xf32>
    %421 = arith.mulf %411, %420 : vector<8x128xf32>
    %422 = arith.mulf %405, %413 : vector<8x128xf32>
    %423 = arith.addf %421, %422 : vector<8x128xf32>
    %424 = math.tanh %423 : vector<8x128xf32>
    %425 = arith.mulf %419, %424 : vector<8x128xf32>
    %426 = vector.broadcast %391 : i32 to vector<8x1xi32>
    %427 = arith.cmpi slt, %426, %3 : vector<8x1xi32>
    %c0_204 = arith.constant 0 : index
    %c0_205 = arith.constant 0 : index
    %428 = vector.load %arg15[%c0_204, %c0_205] : memref<8x128xf32, #tpu.memory_space<vmem>>, vector<8x128xf32>
    %429 = vector.shape_cast %427 : vector<8x1xi1> to vector<8x1xi1>
    %430 = vector.broadcast %429 : vector<8x1xi1> to vector<8x128xi1>
    %431 = arith.select %430, %423, %428 : vector<8x128xi1>, vector<8x128xf32>
    %c0_206 = arith.constant 0 : index
    %c0_207 = arith.constant 0 : index
    %432 = vector.load %arg15[%c0_206, %c0_207] : memref<8x128xf32, #tpu.memory_space<vmem>>, vector<8x128xf32>
    tpu.vector_store %arg15[%c0_206, %c0_207], %431 {strides = array<i32>} : memref<8x128xf32, #tpu.memory_space<vmem>>, vector<8x128xf32>,
    %c0_208 = arith.constant 0 : index
    %c0_209 = arith.constant 0 : index
    %433 = vector.load %arg13[%c0_208, %c0_209] : memref<8x128xf32, #tpu.memory_space<vmem>>, vector<8x128xf32>
    %434 = vector.shape_cast %427 : vector<8x1xi1> to vector<8x1xi1>
    %435 = vector.broadcast %434 : vector<8x1xi1> to vector<8x128xi1>
    %436 = arith.select %435, %425, %433 : vector<8x128xi1>, vector<8x128xf32>
    %c0_210 = arith.constant 0 : index
    %c0_211 = arith.constant 0 : index
    %437 = vector.load %arg13[%c0_210, %c0_211] : memref<8x128xf32, #tpu.memory_space<vmem>>, vector<8x128xf32>
    tpu.vector_store %arg13[%c0_210, %c0_211], %436 {strides = array<i32>} : memref<8x128xf32, #tpu.memory_space<vmem>>, vector<8x128xf32>,
    %438 = arith.truncf %436 : vector<8x128xf32> to vector<8x128xbf16>
    %c0_212 = arith.constant 0 : index
    %c128_213 = arith.constant 128 : index
    %439 = vector.load %arg11[%c0_212, %c128_213] : memref<8x256xbf16, #tpu.memory_space<vmem>>, vector<8x128xbf16>
    tpu.vector_store %arg11[%c0_212, %c128_213], %438 {strides = array<i32>} : memref<8x256xbf16, #tpu.memory_space<vmem>>, vector<8x128xbf16>,
    %c4_i32 = arith.constant 4 : i32
    %440 = arith.index_cast %c4_i32 : i32 to index
    %c0_214 = arith.constant 0 : index
    %c0_215 = arith.constant 0 : index
    %441 = vector.load %arg1[%440, %c0_214, %c0_215] : memref<8x8x128xbf16, #tpu.memory_space<vmem>>, vector<1x8x128xbf16>
    %442 = vector.shape_cast %441 : vector<1x8x128xbf16> to vector<8x128xbf16>
    %c8_i32_216 = arith.constant 8 : i32
    %443 = arith.muli %arg0, %c8_i32_216 : i32
    %444 = arith.addi %443, %c4_i32 : i32
    %c0_217 = arith.constant 0 : index
    %c0_218 = arith.constant 0 : index
    %445 = vector.load %arg10[%c0_217, %c0_218] : memref<8x256xbf16, #tpu.memory_space<vmem>>, vector<8x128xbf16>
    tpu.vector_store %arg10[%c0_217, %c0_218], %442 {strides = array<i32>} : memref<8x256xbf16, #tpu.memory_space<vmem>>, vector<8x128xbf16>,
    %c0_219 = arith.constant 0 : index
    %c0_220 = arith.constant 0 : index
    %446 = vector.load %arg10[%c0_219, %c0_220] : memref<8x256xbf16, #tpu.memory_space<vmem>>, vector<8x256xbf16>
    %447 = arith.index_cast %c0_i32_7 : i32 to index
    %c0_221 = arith.constant 0 : index
    %c0_222 = arith.constant 0 : index
    %448 = vector.load %arg4[%447, %c0_221, %c0_222] : memref<2x256x512xbf16, #tpu.memory_space<vmem>>, vector<1x256x512xbf16>
    %449 = vector.shape_cast %448 : vector<1x256x512xbf16> to vector<256x512xbf16>
    %cst_223 = arith.constant dense<0.000000e+00> : vector<8x512xf32>
    %450 = tpu.matmul %446, %449, %cst_223 {dimension_numbers = #tpu.dot_dimension_numbers<[1], [0], [0], [1], [0, 0, 1, 1], [], []>} : vector<8x256xbf16>, vector<256x512xbf16>, vector<8x512xf32> -> vector<8x512xf32>
    %451 = vector.broadcast %5 : vector<1x512xf32> to vector<8x512xf32>
    %452 = arith.addf %450, %451 : vector<8x512xf32>
    %453 = vector.extract_strided_slice %452 {offsets = [0, 0], sizes = [8, 128], strides = [1, 1]} : vector<8x512xf32> to vector<8x128xf32>
    %454 = arith.negf %453 : vector<8x128xf32>
    %455 = math.exp %454 : vector<8x128xf32>
    %cst_224 = arith.constant 1.000000e+00 : f32
    %456 = vector.broadcast %cst_224 : f32 to vector<8x128xf32>
    %457 = arith.addf %456, %455 : vector<8x128xf32>
    %458 = arith.divf %456, %457 : vector<8x128xf32>
    %459 = vector.extract_strided_slice %452 {offsets = [0, 128], sizes = [8, 128], strides = [1, 1]} : vector<8x512xf32> to vector<8x128xf32>
    %460 = arith.negf %459 : vector<8x128xf32>
    %461 = math.exp %460 : vector<8x128xf32>
    %cst_225 = arith.constant 1.000000e+00 : f32
    %462 = vector.broadcast %cst_225 : f32 to vector<8x128xf32>
    %463 = arith.addf %462, %461 : vector<8x128xf32>
    %464 = arith.divf %462, %463 : vector<8x128xf32>
    %465 = vector.extract_strided_slice %452 {offsets = [0, 256], sizes = [8, 128], strides = [1, 1]} : vector<8x512xf32> to vector<8x128xf32>
    %466 = math.tanh %465 : vector<8x128xf32>
    %467 = vector.extract_strided_slice %452 {offsets = [0, 384], sizes = [8, 128], strides = [1, 1]} : vector<8x512xf32> to vector<8x128xf32>
    %468 = arith.negf %467 : vector<8x128xf32>
    %469 = math.exp %468 : vector<8x128xf32>
    %cst_226 = arith.constant 1.000000e+00 : f32
    %470 = vector.broadcast %cst_226 : f32 to vector<8x128xf32>
    %471 = arith.addf %470, %469 : vector<8x128xf32>
    %472 = arith.divf %470, %471 : vector<8x128xf32>
    %c0_227 = arith.constant 0 : index
    %c0_228 = arith.constant 0 : index
    %473 = vector.load %arg14[%c0_227, %c0_228] : memref<8x128xf32, #tpu.memory_space<vmem>>, vector<8x128xf32>
    %474 = arith.mulf %464, %473 : vector<8x128xf32>
    %475 = arith.mulf %458, %466 : vector<8x128xf32>
    %476 = arith.addf %474, %475 : vector<8x128xf32>
    %477 = math.tanh %476 : vector<8x128xf32>
    %478 = arith.mulf %472, %477 : vector<8x128xf32>
    %479 = vector.broadcast %444 : i32 to vector<8x1xi32>
    %480 = arith.cmpi slt, %479, %3 : vector<8x1xi32>
    %c0_229 = arith.constant 0 : index
    %c0_230 = arith.constant 0 : index
    %481 = vector.load %arg14[%c0_229, %c0_230] : memref<8x128xf32, #tpu.memory_space<vmem>>, vector<8x128xf32>
    %482 = vector.shape_cast %480 : vector<8x1xi1> to vector<8x1xi1>
    %483 = vector.broadcast %482 : vector<8x1xi1> to vector<8x128xi1>
    %484 = arith.select %483, %476, %481 : vector<8x128xi1>, vector<8x128xf32>
    %c0_231 = arith.constant 0 : index
    %c0_232 = arith.constant 0 : index
    %485 = vector.load %arg14[%c0_231, %c0_232] : memref<8x128xf32, #tpu.memory_space<vmem>>, vector<8x128xf32>
    tpu.vector_store %arg14[%c0_231, %c0_232], %484 {strides = array<i32>} : memref<8x128xf32, #tpu.memory_space<vmem>>, vector<8x128xf32>,
    %c0_233 = arith.constant 0 : index
    %c0_234 = arith.constant 0 : index
    %486 = vector.load %arg12[%c0_233, %c0_234] : memref<8x128xf32, #tpu.memory_space<vmem>>, vector<8x128xf32>
    %487 = vector.shape_cast %480 : vector<8x1xi1> to vector<8x1xi1>
    %488 = vector.broadcast %487 : vector<8x1xi1> to vector<8x128xi1>
    %489 = arith.select %488, %478, %486 : vector<8x128xi1>, vector<8x128xf32>
    %c0_235 = arith.constant 0 : index
    %c0_236 = arith.constant 0 : index
    %490 = vector.load %arg12[%c0_235, %c0_236] : memref<8x128xf32, #tpu.memory_space<vmem>>, vector<8x128xf32>
    tpu.vector_store %arg12[%c0_235, %c0_236], %489 {strides = array<i32>} : memref<8x128xf32, #tpu.memory_space<vmem>>, vector<8x128xf32>,
    %491 = arith.truncf %489 : vector<8x128xf32> to vector<8x128xbf16>
    %c0_237 = arith.constant 0 : index
    %c128_238 = arith.constant 128 : index
    %492 = vector.load %arg10[%c0_237, %c128_238] : memref<8x256xbf16, #tpu.memory_space<vmem>>, vector<8x128xbf16>
    tpu.vector_store %arg10[%c0_237, %c128_238], %491 {strides = array<i32>} : memref<8x256xbf16, #tpu.memory_space<vmem>>, vector<8x128xbf16>,
    %c7_i32_239 = arith.constant 7 : i32
    %493 = arith.subi %c7_i32_239, %c4_i32 : i32
    %494 = arith.index_cast %493 : i32 to index
    %c0_240 = arith.constant 0 : index
    %c0_241 = arith.constant 0 : index
    %495 = vector.load %arg2[%494, %c0_240, %c0_241] : memref<8x8x128xbf16, #tpu.memory_space<vmem>>, vector<1x8x128xbf16>
    %496 = vector.shape_cast %495 : vector<1x8x128xbf16> to vector<8x128xbf16>
    %c0_i32_242 = arith.constant 0 : i32
    %497 = arith.subi %c0_i32_242, %arg0 : i32
    %c8_i32_243 = arith.constant 8 : i32
    %498 = arith.muli %497, %c8_i32_243 : i32
    %499 = arith.addi %498, %493 : i32
    %c0_244 = arith.constant 0 : index
    %c0_245 = arith.constant 0 : index
    %500 = vector.load %arg11[%c0_244, %c0_245] : memref<8x256xbf16, #tpu.memory_space<vmem>>, vector<8x128xbf16>
    tpu.vector_store %arg11[%c0_244, %c0_245], %496 {strides = array<i32>} : memref<8x256xbf16, #tpu.memory_space<vmem>>, vector<8x128xbf16>,
    %c0_246 = arith.constant 0 : index
    %c0_247 = arith.constant 0 : index
    %501 = vector.load %arg11[%c0_246, %c0_247] : memref<8x256xbf16, #tpu.memory_space<vmem>>, vector<8x256xbf16>
    %502 = arith.index_cast %c1_i32 : i32 to index
    %c0_248 = arith.constant 0 : index
    %c0_249 = arith.constant 0 : index
    %503 = vector.load %arg4[%502, %c0_248, %c0_249] : memref<2x256x512xbf16, #tpu.memory_space<vmem>>, vector<1x256x512xbf16>
    %504 = vector.shape_cast %503 : vector<1x256x512xbf16> to vector<256x512xbf16>
    %cst_250 = arith.constant dense<0.000000e+00> : vector<8x512xf32>
    %505 = tpu.matmul %501, %504, %cst_250 {dimension_numbers = #tpu.dot_dimension_numbers<[1], [0], [0], [1], [0, 0, 1, 1], [], []>} : vector<8x256xbf16>, vector<256x512xbf16>, vector<8x512xf32> -> vector<8x512xf32>
    %506 = vector.broadcast %7 : vector<1x512xf32> to vector<8x512xf32>
    %507 = arith.addf %505, %506 : vector<8x512xf32>
    %508 = vector.extract_strided_slice %507 {offsets = [0, 0], sizes = [8, 128], strides = [1, 1]} : vector<8x512xf32> to vector<8x128xf32>
    %509 = arith.negf %508 : vector<8x128xf32>
    %510 = math.exp %509 : vector<8x128xf32>
    %cst_251 = arith.constant 1.000000e+00 : f32
    %511 = vector.broadcast %cst_251 : f32 to vector<8x128xf32>
    %512 = arith.addf %511, %510 : vector<8x128xf32>
    %513 = arith.divf %511, %512 : vector<8x128xf32>
    %514 = vector.extract_strided_slice %507 {offsets = [0, 128], sizes = [8, 128], strides = [1, 1]} : vector<8x512xf32> to vector<8x128xf32>
    %515 = arith.negf %514 : vector<8x128xf32>
    %516 = math.exp %515 : vector<8x128xf32>
    %cst_252 = arith.constant 1.000000e+00 : f32
    %517 = vector.broadcast %cst_252 : f32 to vector<8x128xf32>
    %518 = arith.addf %517, %516 : vector<8x128xf32>
    %519 = arith.divf %517, %518 : vector<8x128xf32>
    %520 = vector.extract_strided_slice %507 {offsets = [0, 256], sizes = [8, 128], strides = [1, 1]} : vector<8x512xf32> to vector<8x128xf32>
    %521 = math.tanh %520 : vector<8x128xf32>
    %522 = vector.extract_strided_slice %507 {offsets = [0, 384], sizes = [8, 128], strides = [1, 1]} : vector<8x512xf32> to vector<8x128xf32>
    %523 = arith.negf %522 : vector<8x128xf32>
    %524 = math.exp %523 : vector<8x128xf32>
    %cst_253 = arith.constant 1.000000e+00 : f32
    %525 = vector.broadcast %cst_253 : f32 to vector<8x128xf32>
    %526 = arith.addf %525, %524 : vector<8x128xf32>
    %527 = arith.divf %525, %526 : vector<8x128xf32>
    %c0_254 = arith.constant 0 : index
    %c0_255 = arith.constant 0 : index
    %528 = vector.load %arg15[%c0_254, %c0_255] : memref<8x128xf32, #tpu.memory_space<vmem>>, vector<8x128xf32>
    %529 = arith.mulf %519, %528 : vector<8x128xf32>
    %530 = arith.mulf %513, %521 : vector<8x128xf32>
    %531 = arith.addf %529, %530 : vector<8x128xf32>
    %532 = math.tanh %531 : vector<8x128xf32>
    %533 = arith.mulf %527, %532 : vector<8x128xf32>
    %534 = vector.broadcast %499 : i32 to vector<8x1xi32>
    %535 = arith.cmpi slt, %534, %3 : vector<8x1xi32>
    %c0_256 = arith.constant 0 : index
    %c0_257 = arith.constant 0 : index
    %536 = vector.load %arg15[%c0_256, %c0_257] : memref<8x128xf32, #tpu.memory_space<vmem>>, vector<8x128xf32>
    %537 = vector.shape_cast %535 : vector<8x1xi1> to vector<8x1xi1>
    %538 = vector.broadcast %537 : vector<8x1xi1> to vector<8x128xi1>
    %539 = arith.select %538, %531, %536 : vector<8x128xi1>, vector<8x128xf32>
    %c0_258 = arith.constant 0 : index
    %c0_259 = arith.constant 0 : index
    %540 = vector.load %arg15[%c0_258, %c0_259] : memref<8x128xf32, #tpu.memory_space<vmem>>, vector<8x128xf32>
    tpu.vector_store %arg15[%c0_258, %c0_259], %539 {strides = array<i32>} : memref<8x128xf32, #tpu.memory_space<vmem>>, vector<8x128xf32>,
    %c0_260 = arith.constant 0 : index
    %c0_261 = arith.constant 0 : index
    %541 = vector.load %arg13[%c0_260, %c0_261] : memref<8x128xf32, #tpu.memory_space<vmem>>, vector<8x128xf32>
    %542 = vector.shape_cast %535 : vector<8x1xi1> to vector<8x1xi1>
    %543 = vector.broadcast %542 : vector<8x1xi1> to vector<8x128xi1>
    %544 = arith.select %543, %533, %541 : vector<8x128xi1>, vector<8x128xf32>
    %c0_262 = arith.constant 0 : index
    %c0_263 = arith.constant 0 : index
    %545 = vector.load %arg13[%c0_262, %c0_263] : memref<8x128xf32, #tpu.memory_space<vmem>>, vector<8x128xf32>
    tpu.vector_store %arg13[%c0_262, %c0_263], %544 {strides = array<i32>} : memref<8x128xf32, #tpu.memory_space<vmem>>, vector<8x128xf32>,
    %546 = arith.truncf %544 : vector<8x128xf32> to vector<8x128xbf16>
    %c0_264 = arith.constant 0 : index
    %c128_265 = arith.constant 128 : index
    %547 = vector.load %arg11[%c0_264, %c128_265] : memref<8x256xbf16, #tpu.memory_space<vmem>>, vector<8x128xbf16>
    tpu.vector_store %arg11[%c0_264, %c128_265], %546 {strides = array<i32>} : memref<8x256xbf16, #tpu.memory_space<vmem>>, vector<8x128xbf16>,
    %c5_i32 = arith.constant 5 : i32
    %548 = arith.index_cast %c5_i32 : i32 to index
    %c0_266 = arith.constant 0 : index
    %c0_267 = arith.constant 0 : index
    %549 = vector.load %arg1[%548, %c0_266, %c0_267] : memref<8x8x128xbf16, #tpu.memory_space<vmem>>, vector<1x8x128xbf16>
    %550 = vector.shape_cast %549 : vector<1x8x128xbf16> to vector<8x128xbf16>
    %c8_i32_268 = arith.constant 8 : i32
    %551 = arith.muli %arg0, %c8_i32_268 : i32
    %552 = arith.addi %551, %c5_i32 : i32
    %c0_269 = arith.constant 0 : index
    %c0_270 = arith.constant 0 : index
    %553 = vector.load %arg10[%c0_269, %c0_270] : memref<8x256xbf16, #tpu.memory_space<vmem>>, vector<8x128xbf16>
    tpu.vector_store %arg10[%c0_269, %c0_270], %550 {strides = array<i32>} : memref<8x256xbf16, #tpu.memory_space<vmem>>, vector<8x128xbf16>,
    %c0_271 = arith.constant 0 : index
    %c0_272 = arith.constant 0 : index
    %554 = vector.load %arg10[%c0_271, %c0_272] : memref<8x256xbf16, #tpu.memory_space<vmem>>, vector<8x256xbf16>
    %555 = arith.index_cast %c0_i32_7 : i32 to index
    %c0_273 = arith.constant 0 : index
    %c0_274 = arith.constant 0 : index
    %556 = vector.load %arg4[%555, %c0_273, %c0_274] : memref<2x256x512xbf16, #tpu.memory_space<vmem>>, vector<1x256x512xbf16>
    %557 = vector.shape_cast %556 : vector<1x256x512xbf16> to vector<256x512xbf16>
    %cst_275 = arith.constant dense<0.000000e+00> : vector<8x512xf32>
    %558 = tpu.matmul %554, %557, %cst_275 {dimension_numbers = #tpu.dot_dimension_numbers<[1], [0], [0], [1], [0, 0, 1, 1], [], []>} : vector<8x256xbf16>, vector<256x512xbf16>, vector<8x512xf32> -> vector<8x512xf32>
    %559 = vector.broadcast %5 : vector<1x512xf32> to vector<8x512xf32>
    %560 = arith.addf %558, %559 : vector<8x512xf32>
    %561 = vector.extract_strided_slice %560 {offsets = [0, 0], sizes = [8, 128], strides = [1, 1]} : vector<8x512xf32> to vector<8x128xf32>
    %562 = arith.negf %561 : vector<8x128xf32>
    %563 = math.exp %562 : vector<8x128xf32>
    %cst_276 = arith.constant 1.000000e+00 : f32
    %564 = vector.broadcast %cst_276 : f32 to vector<8x128xf32>
    %565 = arith.addf %564, %563 : vector<8x128xf32>
    %566 = arith.divf %564, %565 : vector<8x128xf32>
    %567 = vector.extract_strided_slice %560 {offsets = [0, 128], sizes = [8, 128], strides = [1, 1]} : vector<8x512xf32> to vector<8x128xf32>
    %568 = arith.negf %567 : vector<8x128xf32>
    %569 = math.exp %568 : vector<8x128xf32>
    %cst_277 = arith.constant 1.000000e+00 : f32
    %570 = vector.broadcast %cst_277 : f32 to vector<8x128xf32>
    %571 = arith.addf %570, %569 : vector<8x128xf32>
    %572 = arith.divf %570, %571 : vector<8x128xf32>
    %573 = vector.extract_strided_slice %560 {offsets = [0, 256], sizes = [8, 128], strides = [1, 1]} : vector<8x512xf32> to vector<8x128xf32>
    %574 = math.tanh %573 : vector<8x128xf32>
    %575 = vector.extract_strided_slice %560 {offsets = [0, 384], sizes = [8, 128], strides = [1, 1]} : vector<8x512xf32> to vector<8x128xf32>
    %576 = arith.negf %575 : vector<8x128xf32>
    %577 = math.exp %576 : vector<8x128xf32>
    %cst_278 = arith.constant 1.000000e+00 : f32
    %578 = vector.broadcast %cst_278 : f32 to vector<8x128xf32>
    %579 = arith.addf %578, %577 : vector<8x128xf32>
    %580 = arith.divf %578, %579 : vector<8x128xf32>
    %c0_279 = arith.constant 0 : index
    %c0_280 = arith.constant 0 : index
    %581 = vector.load %arg14[%c0_279, %c0_280] : memref<8x128xf32, #tpu.memory_space<vmem>>, vector<8x128xf32>
    %582 = arith.mulf %572, %581 : vector<8x128xf32>
    %583 = arith.mulf %566, %574 : vector<8x128xf32>
    %584 = arith.addf %582, %583 : vector<8x128xf32>
    %585 = math.tanh %584 : vector<8x128xf32>
    %586 = arith.mulf %580, %585 : vector<8x128xf32>
    %587 = vector.broadcast %552 : i32 to vector<8x1xi32>
    %588 = arith.cmpi slt, %587, %3 : vector<8x1xi32>
    %c0_281 = arith.constant 0 : index
    %c0_282 = arith.constant 0 : index
    %589 = vector.load %arg14[%c0_281, %c0_282] : memref<8x128xf32, #tpu.memory_space<vmem>>, vector<8x128xf32>
    %590 = vector.shape_cast %588 : vector<8x1xi1> to vector<8x1xi1>
    %591 = vector.broadcast %590 : vector<8x1xi1> to vector<8x128xi1>
    %592 = arith.select %591, %584, %589 : vector<8x128xi1>, vector<8x128xf32>
    %c0_283 = arith.constant 0 : index
    %c0_284 = arith.constant 0 : index
    %593 = vector.load %arg14[%c0_283, %c0_284] : memref<8x128xf32, #tpu.memory_space<vmem>>, vector<8x128xf32>
    tpu.vector_store %arg14[%c0_283, %c0_284], %592 {strides = array<i32>} : memref<8x128xf32, #tpu.memory_space<vmem>>, vector<8x128xf32>,
    %c0_285 = arith.constant 0 : index
    %c0_286 = arith.constant 0 : index
    %594 = vector.load %arg12[%c0_285, %c0_286] : memref<8x128xf32, #tpu.memory_space<vmem>>, vector<8x128xf32>
    %595 = vector.shape_cast %588 : vector<8x1xi1> to vector<8x1xi1>
    %596 = vector.broadcast %595 : vector<8x1xi1> to vector<8x128xi1>
    %597 = arith.select %596, %586, %594 : vector<8x128xi1>, vector<8x128xf32>
    %c0_287 = arith.constant 0 : index
    %c0_288 = arith.constant 0 : index
    %598 = vector.load %arg12[%c0_287, %c0_288] : memref<8x128xf32, #tpu.memory_space<vmem>>, vector<8x128xf32>
    tpu.vector_store %arg12[%c0_287, %c0_288], %597 {strides = array<i32>} : memref<8x128xf32, #tpu.memory_space<vmem>>, vector<8x128xf32>,
    %599 = arith.truncf %597 : vector<8x128xf32> to vector<8x128xbf16>
    %c0_289 = arith.constant 0 : index
    %c128_290 = arith.constant 128 : index
    %600 = vector.load %arg10[%c0_289, %c128_290] : memref<8x256xbf16, #tpu.memory_space<vmem>>, vector<8x128xbf16>
    tpu.vector_store %arg10[%c0_289, %c128_290], %599 {strides = array<i32>} : memref<8x256xbf16, #tpu.memory_space<vmem>>, vector<8x128xbf16>,
    %c7_i32_291 = arith.constant 7 : i32
    %601 = arith.subi %c7_i32_291, %c5_i32 : i32
    %602 = arith.index_cast %601 : i32 to index
    %c0_292 = arith.constant 0 : index
    %c0_293 = arith.constant 0 : index
    %603 = vector.load %arg2[%602, %c0_292, %c0_293] : memref<8x8x128xbf16, #tpu.memory_space<vmem>>, vector<1x8x128xbf16>
    %604 = vector.shape_cast %603 : vector<1x8x128xbf16> to vector<8x128xbf16>
    %c0_i32_294 = arith.constant 0 : i32
    %605 = arith.subi %c0_i32_294, %arg0 : i32
    %c8_i32_295 = arith.constant 8 : i32
    %606 = arith.muli %605, %c8_i32_295 : i32
    %607 = arith.addi %606, %601 : i32
    %c0_296 = arith.constant 0 : index
    %c0_297 = arith.constant 0 : index
    %608 = vector.load %arg11[%c0_296, %c0_297] : memref<8x256xbf16, #tpu.memory_space<vmem>>, vector<8x128xbf16>
    tpu.vector_store %arg11[%c0_296, %c0_297], %604 {strides = array<i32>} : memref<8x256xbf16, #tpu.memory_space<vmem>>, vector<8x128xbf16>,
    %c0_298 = arith.constant 0 : index
    %c0_299 = arith.constant 0 : index
    %609 = vector.load %arg11[%c0_298, %c0_299] : memref<8x256xbf16, #tpu.memory_space<vmem>>, vector<8x256xbf16>
    %610 = arith.index_cast %c1_i32 : i32 to index
    %c0_300 = arith.constant 0 : index
    %c0_301 = arith.constant 0 : index
    %611 = vector.load %arg4[%610, %c0_300, %c0_301] : memref<2x256x512xbf16, #tpu.memory_space<vmem>>, vector<1x256x512xbf16>
    %612 = vector.shape_cast %611 : vector<1x256x512xbf16> to vector<256x512xbf16>
    %cst_302 = arith.constant dense<0.000000e+00> : vector<8x512xf32>
    %613 = tpu.matmul %609, %612, %cst_302 {dimension_numbers = #tpu.dot_dimension_numbers<[1], [0], [0], [1], [0, 0, 1, 1], [], []>} : vector<8x256xbf16>, vector<256x512xbf16>, vector<8x512xf32> -> vector<8x512xf32>
    %614 = vector.broadcast %7 : vector<1x512xf32> to vector<8x512xf32>
    %615 = arith.addf %613, %614 : vector<8x512xf32>
    %616 = vector.extract_strided_slice %615 {offsets = [0, 0], sizes = [8, 128], strides = [1, 1]} : vector<8x512xf32> to vector<8x128xf32>
    %617 = arith.negf %616 : vector<8x128xf32>
    %618 = math.exp %617 : vector<8x128xf32>
    %cst_303 = arith.constant 1.000000e+00 : f32
    %619 = vector.broadcast %cst_303 : f32 to vector<8x128xf32>
    %620 = arith.addf %619, %618 : vector<8x128xf32>
    %621 = arith.divf %619, %620 : vector<8x128xf32>
    %622 = vector.extract_strided_slice %615 {offsets = [0, 128], sizes = [8, 128], strides = [1, 1]} : vector<8x512xf32> to vector<8x128xf32>
    %623 = arith.negf %622 : vector<8x128xf32>
    %624 = math.exp %623 : vector<8x128xf32>
    %cst_304 = arith.constant 1.000000e+00 : f32
    %625 = vector.broadcast %cst_304 : f32 to vector<8x128xf32>
    %626 = arith.addf %625, %624 : vector<8x128xf32>
    %627 = arith.divf %625, %626 : vector<8x128xf32>
    %628 = vector.extract_strided_slice %615 {offsets = [0, 256], sizes = [8, 128], strides = [1, 1]} : vector<8x512xf32> to vector<8x128xf32>
    %629 = math.tanh %628 : vector<8x128xf32>
    %630 = vector.extract_strided_slice %615 {offsets = [0, 384], sizes = [8, 128], strides = [1, 1]} : vector<8x512xf32> to vector<8x128xf32>
    %631 = arith.negf %630 : vector<8x128xf32>
    %632 = math.exp %631 : vector<8x128xf32>
    %cst_305 = arith.constant 1.000000e+00 : f32
    %633 = vector.broadcast %cst_305 : f32 to vector<8x128xf32>
    %634 = arith.addf %633, %632 : vector<8x128xf32>
    %635 = arith.divf %633, %634 : vector<8x128xf32>
    %c0_306 = arith.constant 0 : index
    %c0_307 = arith.constant 0 : index
    %636 = vector.load %arg15[%c0_306, %c0_307] : memref<8x128xf32, #tpu.memory_space<vmem>>, vector<8x128xf32>
    %637 = arith.mulf %627, %636 : vector<8x128xf32>
    %638 = arith.mulf %621, %629 : vector<8x128xf32>
    %639 = arith.addf %637, %638 : vector<8x128xf32>
    %640 = math.tanh %639 : vector<8x128xf32>
    %641 = arith.mulf %635, %640 : vector<8x128xf32>
    %642 = vector.broadcast %607 : i32 to vector<8x1xi32>
    %643 = arith.cmpi slt, %642, %3 : vector<8x1xi32>
    %c0_308 = arith.constant 0 : index
    %c0_309 = arith.constant 0 : index
    %644 = vector.load %arg15[%c0_308, %c0_309] : memref<8x128xf32, #tpu.memory_space<vmem>>, vector<8x128xf32>
    %645 = vector.shape_cast %643 : vector<8x1xi1> to vector<8x1xi1>
    %646 = vector.broadcast %645 : vector<8x1xi1> to vector<8x128xi1>
    %647 = arith.select %646, %639, %644 : vector<8x128xi1>, vector<8x128xf32>
    %c0_310 = arith.constant 0 : index
    %c0_311 = arith.constant 0 : index
    %648 = vector.load %arg15[%c0_310, %c0_311] : memref<8x128xf32, #tpu.memory_space<vmem>>, vector<8x128xf32>
    tpu.vector_store %arg15[%c0_310, %c0_311], %647 {strides = array<i32>} : memref<8x128xf32, #tpu.memory_space<vmem>>, vector<8x128xf32>,
    %c0_312 = arith.constant 0 : index
    %c0_313 = arith.constant 0 : index
    %649 = vector.load %arg13[%c0_312, %c0_313] : memref<8x128xf32, #tpu.memory_space<vmem>>, vector<8x128xf32>
    %650 = vector.shape_cast %643 : vector<8x1xi1> to vector<8x1xi1>
    %651 = vector.broadcast %650 : vector<8x1xi1> to vector<8x128xi1>
    %652 = arith.select %651, %641, %649 : vector<8x128xi1>, vector<8x128xf32>
    %c0_314 = arith.constant 0 : index
    %c0_315 = arith.constant 0 : index
    %653 = vector.load %arg13[%c0_314, %c0_315] : memref<8x128xf32, #tpu.memory_space<vmem>>, vector<8x128xf32>
    tpu.vector_store %arg13[%c0_314, %c0_315], %652 {strides = array<i32>} : memref<8x128xf32, #tpu.memory_space<vmem>>, vector<8x128xf32>,
    %654 = arith.truncf %652 : vector<8x128xf32> to vector<8x128xbf16>
    %c0_316 = arith.constant 0 : index
    %c128_317 = arith.constant 128 : index
    %655 = vector.load %arg11[%c0_316, %c128_317] : memref<8x256xbf16, #tpu.memory_space<vmem>>, vector<8x128xbf16>
    tpu.vector_store %arg11[%c0_316, %c128_317], %654 {strides = array<i32>} : memref<8x256xbf16, #tpu.memory_space<vmem>>, vector<8x128xbf16>,
    %c6_i32 = arith.constant 6 : i32
    %656 = arith.index_cast %c6_i32 : i32 to index
    %c0_318 = arith.constant 0 : index
    %c0_319 = arith.constant 0 : index
    %657 = vector.load %arg1[%656, %c0_318, %c0_319] : memref<8x8x128xbf16, #tpu.memory_space<vmem>>, vector<1x8x128xbf16>
    %658 = vector.shape_cast %657 : vector<1x8x128xbf16> to vector<8x128xbf16>
    %c8_i32_320 = arith.constant 8 : i32
    %659 = arith.muli %arg0, %c8_i32_320 : i32
    %660 = arith.addi %659, %c6_i32 : i32
    %c0_321 = arith.constant 0 : index
    %c0_322 = arith.constant 0 : index
    %661 = vector.load %arg10[%c0_321, %c0_322] : memref<8x256xbf16, #tpu.memory_space<vmem>>, vector<8x128xbf16>
    tpu.vector_store %arg10[%c0_321, %c0_322], %658 {strides = array<i32>} : memref<8x256xbf16, #tpu.memory_space<vmem>>, vector<8x128xbf16>,
    %c0_323 = arith.constant 0 : index
    %c0_324 = arith.constant 0 : index
    %662 = vector.load %arg10[%c0_323, %c0_324] : memref<8x256xbf16, #tpu.memory_space<vmem>>, vector<8x256xbf16>
    %663 = arith.index_cast %c0_i32_7 : i32 to index
    %c0_325 = arith.constant 0 : index
    %c0_326 = arith.constant 0 : index
    %664 = vector.load %arg4[%663, %c0_325, %c0_326] : memref<2x256x512xbf16, #tpu.memory_space<vmem>>, vector<1x256x512xbf16>
    %665 = vector.shape_cast %664 : vector<1x256x512xbf16> to vector<256x512xbf16>
    %cst_327 = arith.constant dense<0.000000e+00> : vector<8x512xf32>
    %666 = tpu.matmul %662, %665, %cst_327 {dimension_numbers = #tpu.dot_dimension_numbers<[1], [0], [0], [1], [0, 0, 1, 1], [], []>} : vector<8x256xbf16>, vector<256x512xbf16>, vector<8x512xf32> -> vector<8x512xf32>
    %667 = vector.broadcast %5 : vector<1x512xf32> to vector<8x512xf32>
    %668 = arith.addf %666, %667 : vector<8x512xf32>
    %669 = vector.extract_strided_slice %668 {offsets = [0, 0], sizes = [8, 128], strides = [1, 1]} : vector<8x512xf32> to vector<8x128xf32>
    %670 = arith.negf %669 : vector<8x128xf32>
    %671 = math.exp %670 : vector<8x128xf32>
    %cst_328 = arith.constant 1.000000e+00 : f32
    %672 = vector.broadcast %cst_328 : f32 to vector<8x128xf32>
    %673 = arith.addf %672, %671 : vector<8x128xf32>
    %674 = arith.divf %672, %673 : vector<8x128xf32>
    %675 = vector.extract_strided_slice %668 {offsets = [0, 128], sizes = [8, 128], strides = [1, 1]} : vector<8x512xf32> to vector<8x128xf32>
    %676 = arith.negf %675 : vector<8x128xf32>
    %677 = math.exp %676 : vector<8x128xf32>
    %cst_329 = arith.constant 1.000000e+00 : f32
    %678 = vector.broadcast %cst_329 : f32 to vector<8x128xf32>
    %679 = arith.addf %678, %677 : vector<8x128xf32>
    %680 = arith.divf %678, %679 : vector<8x128xf32>
    %681 = vector.extract_strided_slice %668 {offsets = [0, 256], sizes = [8, 128], strides = [1, 1]} : vector<8x512xf32> to vector<8x128xf32>
    %682 = math.tanh %681 : vector<8x128xf32>
    %683 = vector.extract_strided_slice %668 {offsets = [0, 384], sizes = [8, 128], strides = [1, 1]} : vector<8x512xf32> to vector<8x128xf32>
    %684 = arith.negf %683 : vector<8x128xf32>
    %685 = math.exp %684 : vector<8x128xf32>
    %cst_330 = arith.constant 1.000000e+00 : f32
    %686 = vector.broadcast %cst_330 : f32 to vector<8x128xf32>
    %687 = arith.addf %686, %685 : vector<8x128xf32>
    %688 = arith.divf %686, %687 : vector<8x128xf32>
    %c0_331 = arith.constant 0 : index
    %c0_332 = arith.constant 0 : index
    %689 = vector.load %arg14[%c0_331, %c0_332] : memref<8x128xf32, #tpu.memory_space<vmem>>, vector<8x128xf32>
    %690 = arith.mulf %680, %689 : vector<8x128xf32>
    %691 = arith.mulf %674, %682 : vector<8x128xf32>
    %692 = arith.addf %690, %691 : vector<8x128xf32>
    %693 = math.tanh %692 : vector<8x128xf32>
    %694 = arith.mulf %688, %693 : vector<8x128xf32>
    %695 = vector.broadcast %660 : i32 to vector<8x1xi32>
    %696 = arith.cmpi slt, %695, %3 : vector<8x1xi32>
    %c0_333 = arith.constant 0 : index
    %c0_334 = arith.constant 0 : index
    %697 = vector.load %arg14[%c0_333, %c0_334] : memref<8x128xf32, #tpu.memory_space<vmem>>, vector<8x128xf32>
    %698 = vector.shape_cast %696 : vector<8x1xi1> to vector<8x1xi1>
    %699 = vector.broadcast %698 : vector<8x1xi1> to vector<8x128xi1>
    %700 = arith.select %699, %692, %697 : vector<8x128xi1>, vector<8x128xf32>
    %c0_335 = arith.constant 0 : index
    %c0_336 = arith.constant 0 : index
    %701 = vector.load %arg14[%c0_335, %c0_336] : memref<8x128xf32, #tpu.memory_space<vmem>>, vector<8x128xf32>
    tpu.vector_store %arg14[%c0_335, %c0_336], %700 {strides = array<i32>} : memref<8x128xf32, #tpu.memory_space<vmem>>, vector<8x128xf32>,
    %c0_337 = arith.constant 0 : index
    %c0_338 = arith.constant 0 : index
    %702 = vector.load %arg12[%c0_337, %c0_338] : memref<8x128xf32, #tpu.memory_space<vmem>>, vector<8x128xf32>
    %703 = vector.shape_cast %696 : vector<8x1xi1> to vector<8x1xi1>
    %704 = vector.broadcast %703 : vector<8x1xi1> to vector<8x128xi1>
    %705 = arith.select %704, %694, %702 : vector<8x128xi1>, vector<8x128xf32>
    %c0_339 = arith.constant 0 : index
    %c0_340 = arith.constant 0 : index
    %706 = vector.load %arg12[%c0_339, %c0_340] : memref<8x128xf32, #tpu.memory_space<vmem>>, vector<8x128xf32>
    tpu.vector_store %arg12[%c0_339, %c0_340], %705 {strides = array<i32>} : memref<8x128xf32, #tpu.memory_space<vmem>>, vector<8x128xf32>,
    %707 = arith.truncf %705 : vector<8x128xf32> to vector<8x128xbf16>
    %c0_341 = arith.constant 0 : index
    %c128_342 = arith.constant 128 : index
    %708 = vector.load %arg10[%c0_341, %c128_342] : memref<8x256xbf16, #tpu.memory_space<vmem>>, vector<8x128xbf16>
    tpu.vector_store %arg10[%c0_341, %c128_342], %707 {strides = array<i32>} : memref<8x256xbf16, #tpu.memory_space<vmem>>, vector<8x128xbf16>,
    %c7_i32_343 = arith.constant 7 : i32
    %709 = arith.subi %c7_i32_343, %c6_i32 : i32
    %710 = arith.index_cast %709 : i32 to index
    %c0_344 = arith.constant 0 : index
    %c0_345 = arith.constant 0 : index
    %711 = vector.load %arg2[%710, %c0_344, %c0_345] : memref<8x8x128xbf16, #tpu.memory_space<vmem>>, vector<1x8x128xbf16>
    %712 = vector.shape_cast %711 : vector<1x8x128xbf16> to vector<8x128xbf16>
    %c0_i32_346 = arith.constant 0 : i32
    %713 = arith.subi %c0_i32_346, %arg0 : i32
    %c8_i32_347 = arith.constant 8 : i32
    %714 = arith.muli %713, %c8_i32_347 : i32
    %715 = arith.addi %714, %709 : i32
    %c0_348 = arith.constant 0 : index
    %c0_349 = arith.constant 0 : index
    %716 = vector.load %arg11[%c0_348, %c0_349] : memref<8x256xbf16, #tpu.memory_space<vmem>>, vector<8x128xbf16>
    tpu.vector_store %arg11[%c0_348, %c0_349], %712 {strides = array<i32>} : memref<8x256xbf16, #tpu.memory_space<vmem>>, vector<8x128xbf16>,
    %c0_350 = arith.constant 0 : index
    %c0_351 = arith.constant 0 : index
    %717 = vector.load %arg11[%c0_350, %c0_351] : memref<8x256xbf16, #tpu.memory_space<vmem>>, vector<8x256xbf16>
    %718 = arith.index_cast %c1_i32 : i32 to index
    %c0_352 = arith.constant 0 : index
    %c0_353 = arith.constant 0 : index
    %719 = vector.load %arg4[%718, %c0_352, %c0_353] : memref<2x256x512xbf16, #tpu.memory_space<vmem>>, vector<1x256x512xbf16>
    %720 = vector.shape_cast %719 : vector<1x256x512xbf16> to vector<256x512xbf16>
    %cst_354 = arith.constant dense<0.000000e+00> : vector<8x512xf32>
    %721 = tpu.matmul %717, %720, %cst_354 {dimension_numbers = #tpu.dot_dimension_numbers<[1], [0], [0], [1], [0, 0, 1, 1], [], []>} : vector<8x256xbf16>, vector<256x512xbf16>, vector<8x512xf32> -> vector<8x512xf32>
    %722 = vector.broadcast %7 : vector<1x512xf32> to vector<8x512xf32>
    %723 = arith.addf %721, %722 : vector<8x512xf32>
    %724 = vector.extract_strided_slice %723 {offsets = [0, 0], sizes = [8, 128], strides = [1, 1]} : vector<8x512xf32> to vector<8x128xf32>
    %725 = arith.negf %724 : vector<8x128xf32>
    %726 = math.exp %725 : vector<8x128xf32>
    %cst_355 = arith.constant 1.000000e+00 : f32
    %727 = vector.broadcast %cst_355 : f32 to vector<8x128xf32>
    %728 = arith.addf %727, %726 : vector<8x128xf32>
    %729 = arith.divf %727, %728 : vector<8x128xf32>
    %730 = vector.extract_strided_slice %723 {offsets = [0, 128], sizes = [8, 128], strides = [1, 1]} : vector<8x512xf32> to vector<8x128xf32>
    %731 = arith.negf %730 : vector<8x128xf32>
    %732 = math.exp %731 : vector<8x128xf32>
    %cst_356 = arith.constant 1.000000e+00 : f32
    %733 = vector.broadcast %cst_356 : f32 to vector<8x128xf32>
    %734 = arith.addf %733, %732 : vector<8x128xf32>
    %735 = arith.divf %733, %734 : vector<8x128xf32>
    %736 = vector.extract_strided_slice %723 {offsets = [0, 256], sizes = [8, 128], strides = [1, 1]} : vector<8x512xf32> to vector<8x128xf32>
    %737 = math.tanh %736 : vector<8x128xf32>
    %738 = vector.extract_strided_slice %723 {offsets = [0, 384], sizes = [8, 128], strides = [1, 1]} : vector<8x512xf32> to vector<8x128xf32>
    %739 = arith.negf %738 : vector<8x128xf32>
    %740 = math.exp %739 : vector<8x128xf32>
    %cst_357 = arith.constant 1.000000e+00 : f32
    %741 = vector.broadcast %cst_357 : f32 to vector<8x128xf32>
    %742 = arith.addf %741, %740 : vector<8x128xf32>
    %743 = arith.divf %741, %742 : vector<8x128xf32>
    %c0_358 = arith.constant 0 : index
    %c0_359 = arith.constant 0 : index
    %744 = vector.load %arg15[%c0_358, %c0_359] : memref<8x128xf32, #tpu.memory_space<vmem>>, vector<8x128xf32>
    %745 = arith.mulf %735, %744 : vector<8x128xf32>
    %746 = arith.mulf %729, %737 : vector<8x128xf32>
    %747 = arith.addf %745, %746 : vector<8x128xf32>
    %748 = math.tanh %747 : vector<8x128xf32>
    %749 = arith.mulf %743, %748 : vector<8x128xf32>
    %750 = vector.broadcast %715 : i32 to vector<8x1xi32>
    %751 = arith.cmpi slt, %750, %3 : vector<8x1xi32>
    %c0_360 = arith.constant 0 : index
    %c0_361 = arith.constant 0 : index
    %752 = vector.load %arg15[%c0_360, %c0_361] : memref<8x128xf32, #tpu.memory_space<vmem>>, vector<8x128xf32>
    %753 = vector.shape_cast %751 : vector<8x1xi1> to vector<8x1xi1>
    %754 = vector.broadcast %753 : vector<8x1xi1> to vector<8x128xi1>
    %755 = arith.select %754, %747, %752 : vector<8x128xi1>, vector<8x128xf32>
    %c0_362 = arith.constant 0 : index
    %c0_363 = arith.constant 0 : index
    %756 = vector.load %arg15[%c0_362, %c0_363] : memref<8x128xf32, #tpu.memory_space<vmem>>, vector<8x128xf32>
    tpu.vector_store %arg15[%c0_362, %c0_363], %755 {strides = array<i32>} : memref<8x128xf32, #tpu.memory_space<vmem>>, vector<8x128xf32>,
    %c0_364 = arith.constant 0 : index
    %c0_365 = arith.constant 0 : index
    %757 = vector.load %arg13[%c0_364, %c0_365] : memref<8x128xf32, #tpu.memory_space<vmem>>, vector<8x128xf32>
    %758 = vector.shape_cast %751 : vector<8x1xi1> to vector<8x1xi1>
    %759 = vector.broadcast %758 : vector<8x1xi1> to vector<8x128xi1>
    %760 = arith.select %759, %749, %757 : vector<8x128xi1>, vector<8x128xf32>
    %c0_366 = arith.constant 0 : index
    %c0_367 = arith.constant 0 : index
    %761 = vector.load %arg13[%c0_366, %c0_367] : memref<8x128xf32, #tpu.memory_space<vmem>>, vector<8x128xf32>
    tpu.vector_store %arg13[%c0_366, %c0_367], %760 {strides = array<i32>} : memref<8x128xf32, #tpu.memory_space<vmem>>, vector<8x128xf32>,
    %762 = arith.truncf %760 : vector<8x128xf32> to vector<8x128xbf16>
    %c0_368 = arith.constant 0 : index
    %c128_369 = arith.constant 128 : index
    %763 = vector.load %arg11[%c0_368, %c128_369] : memref<8x256xbf16, #tpu.memory_space<vmem>>, vector<8x128xbf16>
    tpu.vector_store %arg11[%c0_368, %c128_369], %762 {strides = array<i32>} : memref<8x256xbf16, #tpu.memory_space<vmem>>, vector<8x128xbf16>,
    %c7_i32_370 = arith.constant 7 : i32
    %764 = arith.index_cast %c7_i32_370 : i32 to index
    %c0_371 = arith.constant 0 : index
    %c0_372 = arith.constant 0 : index
    %765 = vector.load %arg1[%764, %c0_371, %c0_372] : memref<8x8x128xbf16, #tpu.memory_space<vmem>>, vector<1x8x128xbf16>
    %766 = vector.shape_cast %765 : vector<1x8x128xbf16> to vector<8x128xbf16>
    %c8_i32_373 = arith.constant 8 : i32
    %767 = arith.muli %arg0, %c8_i32_373 : i32
    %768 = arith.addi %767, %c7_i32_370 : i32
    %c0_374 = arith.constant 0 : index
    %c0_375 = arith.constant 0 : index
    %769 = vector.load %arg10[%c0_374, %c0_375] : memref<8x256xbf16, #tpu.memory_space<vmem>>, vector<8x128xbf16>
    tpu.vector_store %arg10[%c0_374, %c0_375], %766 {strides = array<i32>} : memref<8x256xbf16, #tpu.memory_space<vmem>>, vector<8x128xbf16>,
    %c0_376 = arith.constant 0 : index
    %c0_377 = arith.constant 0 : index
    %770 = vector.load %arg10[%c0_376, %c0_377] : memref<8x256xbf16, #tpu.memory_space<vmem>>, vector<8x256xbf16>
    %771 = arith.index_cast %c0_i32_7 : i32 to index
    %c0_378 = arith.constant 0 : index
    %c0_379 = arith.constant 0 : index
    %772 = vector.load %arg4[%771, %c0_378, %c0_379] : memref<2x256x512xbf16, #tpu.memory_space<vmem>>, vector<1x256x512xbf16>
    %773 = vector.shape_cast %772 : vector<1x256x512xbf16> to vector<256x512xbf16>
    %cst_380 = arith.constant dense<0.000000e+00> : vector<8x512xf32>
    %774 = tpu.matmul %770, %773, %cst_380 {dimension_numbers = #tpu.dot_dimension_numbers<[1], [0], [0], [1], [0, 0, 1, 1], [], []>} : vector<8x256xbf16>, vector<256x512xbf16>, vector<8x512xf32> -> vector<8x512xf32>
    %775 = vector.broadcast %5 : vector<1x512xf32> to vector<8x512xf32>
    %776 = arith.addf %774, %775 : vector<8x512xf32>
    %777 = vector.extract_strided_slice %776 {offsets = [0, 0], sizes = [8, 128], strides = [1, 1]} : vector<8x512xf32> to vector<8x128xf32>
    %778 = arith.negf %777 : vector<8x128xf32>
    %779 = math.exp %778 : vector<8x128xf32>
    %cst_381 = arith.constant 1.000000e+00 : f32
    %780 = vector.broadcast %cst_381 : f32 to vector<8x128xf32>
    %781 = arith.addf %780, %779 : vector<8x128xf32>
    %782 = arith.divf %780, %781 : vector<8x128xf32>
    %783 = vector.extract_strided_slice %776 {offsets = [0, 128], sizes = [8, 128], strides = [1, 1]} : vector<8x512xf32> to vector<8x128xf32>
    %784 = arith.negf %783 : vector<8x128xf32>
    %785 = math.exp %784 : vector<8x128xf32>
    %cst_382 = arith.constant 1.000000e+00 : f32
    %786 = vector.broadcast %cst_382 : f32 to vector<8x128xf32>
    %787 = arith.addf %786, %785 : vector<8x128xf32>
    %788 = arith.divf %786, %787 : vector<8x128xf32>
    %789 = vector.extract_strided_slice %776 {offsets = [0, 256], sizes = [8, 128], strides = [1, 1]} : vector<8x512xf32> to vector<8x128xf32>
    %790 = math.tanh %789 : vector<8x128xf32>
    %791 = vector.extract_strided_slice %776 {offsets = [0, 384], sizes = [8, 128], strides = [1, 1]} : vector<8x512xf32> to vector<8x128xf32>
    %792 = arith.negf %791 : vector<8x128xf32>
    %793 = math.exp %792 : vector<8x128xf32>
    %cst_383 = arith.constant 1.000000e+00 : f32
    %794 = vector.broadcast %cst_383 : f32 to vector<8x128xf32>
    %795 = arith.addf %794, %793 : vector<8x128xf32>
    %796 = arith.divf %794, %795 : vector<8x128xf32>
    %c0_384 = arith.constant 0 : index
    %c0_385 = arith.constant 0 : index
    %797 = vector.load %arg14[%c0_384, %c0_385] : memref<8x128xf32, #tpu.memory_space<vmem>>, vector<8x128xf32>
    %798 = arith.mulf %788, %797 : vector<8x128xf32>
    %799 = arith.mulf %782, %790 : vector<8x128xf32>
    %800 = arith.addf %798, %799 : vector<8x128xf32>
    %801 = math.tanh %800 : vector<8x128xf32>
    %802 = arith.mulf %796, %801 : vector<8x128xf32>
    %803 = vector.broadcast %768 : i32 to vector<8x1xi32>
    %804 = arith.cmpi slt, %803, %3 : vector<8x1xi32>
    %c0_386 = arith.constant 0 : index
    %c0_387 = arith.constant 0 : index
    %805 = vector.load %arg14[%c0_386, %c0_387] : memref<8x128xf32, #tpu.memory_space<vmem>>, vector<8x128xf32>
    %806 = vector.shape_cast %804 : vector<8x1xi1> to vector<8x1xi1>
    %807 = vector.broadcast %806 : vector<8x1xi1> to vector<8x128xi1>
    %808 = arith.select %807, %800, %805 : vector<8x128xi1>, vector<8x128xf32>
    %c0_388 = arith.constant 0 : index
    %c0_389 = arith.constant 0 : index
    %809 = vector.load %arg14[%c0_388, %c0_389] : memref<8x128xf32, #tpu.memory_space<vmem>>, vector<8x128xf32>
    tpu.vector_store %arg14[%c0_388, %c0_389], %808 {strides = array<i32>} : memref<8x128xf32, #tpu.memory_space<vmem>>, vector<8x128xf32>,
    %c0_390 = arith.constant 0 : index
    %c0_391 = arith.constant 0 : index
    %810 = vector.load %arg12[%c0_390, %c0_391] : memref<8x128xf32, #tpu.memory_space<vmem>>, vector<8x128xf32>
    %811 = vector.shape_cast %804 : vector<8x1xi1> to vector<8x1xi1>
    %812 = vector.broadcast %811 : vector<8x1xi1> to vector<8x128xi1>
    %813 = arith.select %812, %802, %810 : vector<8x128xi1>, vector<8x128xf32>
    %c0_392 = arith.constant 0 : index
    %c0_393 = arith.constant 0 : index
    %814 = vector.load %arg12[%c0_392, %c0_393] : memref<8x128xf32, #tpu.memory_space<vmem>>, vector<8x128xf32>
    tpu.vector_store %arg12[%c0_392, %c0_393], %813 {strides = array<i32>} : memref<8x128xf32, #tpu.memory_space<vmem>>, vector<8x128xf32>,
    %815 = arith.truncf %813 : vector<8x128xf32> to vector<8x128xbf16>
    %c0_394 = arith.constant 0 : index
    %c128_395 = arith.constant 128 : index
    %816 = vector.load %arg10[%c0_394, %c128_395] : memref<8x256xbf16, #tpu.memory_space<vmem>>, vector<8x128xbf16>
    tpu.vector_store %arg10[%c0_394, %c128_395], %815 {strides = array<i32>} : memref<8x256xbf16, #tpu.memory_space<vmem>>, vector<8x128xbf16>,
    %c7_i32_396 = arith.constant 7 : i32
    %817 = arith.subi %c7_i32_396, %c7_i32_370 : i32
    %818 = arith.index_cast %817 : i32 to index
    %c0_397 = arith.constant 0 : index
    %c0_398 = arith.constant 0 : index
    %819 = vector.load %arg2[%818, %c0_397, %c0_398] : memref<8x8x128xbf16, #tpu.memory_space<vmem>>, vector<1x8x128xbf16>
    %820 = vector.shape_cast %819 : vector<1x8x128xbf16> to vector<8x128xbf16>
    %c0_i32_399 = arith.constant 0 : i32
    %821 = arith.subi %c0_i32_399, %arg0 : i32
    %c8_i32_400 = arith.constant 8 : i32
    %822 = arith.muli %821, %c8_i32_400 : i32
    %823 = arith.addi %822, %817 : i32
    %c0_401 = arith.constant 0 : index
    %c0_402 = arith.constant 0 : index
    %824 = vector.load %arg11[%c0_401, %c0_402] : memref<8x256xbf16, #tpu.memory_space<vmem>>, vector<8x128xbf16>
    tpu.vector_store %arg11[%c0_401, %c0_402], %820 {strides = array<i32>} : memref<8x256xbf16, #tpu.memory_space<vmem>>, vector<8x128xbf16>,
    %c0_403 = arith.constant 0 : index
    %c0_404 = arith.constant 0 : index
    %825 = vector.load %arg11[%c0_403, %c0_404] : memref<8x256xbf16, #tpu.memory_space<vmem>>, vector<8x256xbf16>
    %826 = arith.index_cast %c1_i32 : i32 to index
    %c0_405 = arith.constant 0 : index
    %c0_406 = arith.constant 0 : index
    %827 = vector.load %arg4[%826, %c0_405, %c0_406] : memref<2x256x512xbf16, #tpu.memory_space<vmem>>, vector<1x256x512xbf16>
    %828 = vector.shape_cast %827 : vector<1x256x512xbf16> to vector<256x512xbf16>
    %cst_407 = arith.constant dense<0.000000e+00> : vector<8x512xf32>
    %829 = tpu.matmul %825, %828, %cst_407 {dimension_numbers = #tpu.dot_dimension_numbers<[1], [0], [0], [1], [0, 0, 1, 1], [], []>} : vector<8x256xbf16>, vector<256x512xbf16>, vector<8x512xf32> -> vector<8x512xf32>
    %830 = vector.broadcast %7 : vector<1x512xf32> to vector<8x512xf32>
    %831 = arith.addf %829, %830 : vector<8x512xf32>
    %832 = vector.extract_strided_slice %831 {offsets = [0, 0], sizes = [8, 128], strides = [1, 1]} : vector<8x512xf32> to vector<8x128xf32>
    %833 = arith.negf %832 : vector<8x128xf32>
    %834 = math.exp %833 : vector<8x128xf32>
    %cst_408 = arith.constant 1.000000e+00 : f32
    %835 = vector.broadcast %cst_408 : f32 to vector<8x128xf32>
    %836 = arith.addf %835, %834 : vector<8x128xf32>
    %837 = arith.divf %835, %836 : vector<8x128xf32>
    %838 = vector.extract_strided_slice %831 {offsets = [0, 128], sizes = [8, 128], strides = [1, 1]} : vector<8x512xf32> to vector<8x128xf32>
    %839 = arith.negf %838 : vector<8x128xf32>
    %840 = math.exp %839 : vector<8x128xf32>
    %cst_409 = arith.constant 1.000000e+00 : f32
    %841 = vector.broadcast %cst_409 : f32 to vector<8x128xf32>
    %842 = arith.addf %841, %840 : vector<8x128xf32>
    %843 = arith.divf %841, %842 : vector<8x128xf32>
    %844 = vector.extract_strided_slice %831 {offsets = [0, 256], sizes = [8, 128], strides = [1, 1]} : vector<8x512xf32> to vector<8x128xf32>
    %845 = math.tanh %844 : vector<8x128xf32>
    %846 = vector.extract_strided_slice %831 {offsets = [0, 384], sizes = [8, 128], strides = [1, 1]} : vector<8x512xf32> to vector<8x128xf32>
    %847 = arith.negf %846 : vector<8x128xf32>
    %848 = math.exp %847 : vector<8x128xf32>
    %cst_410 = arith.constant 1.000000e+00 : f32
    %849 = vector.broadcast %cst_410 : f32 to vector<8x128xf32>
    %850 = arith.addf %849, %848 : vector<8x128xf32>
    %851 = arith.divf %849, %850 : vector<8x128xf32>
    %c0_411 = arith.constant 0 : index
    %c0_412 = arith.constant 0 : index
    %852 = vector.load %arg15[%c0_411, %c0_412] : memref<8x128xf32, #tpu.memory_space<vmem>>, vector<8x128xf32>
    %853 = arith.mulf %843, %852 : vector<8x128xf32>
    %854 = arith.mulf %837, %845 : vector<8x128xf32>
    %855 = arith.addf %853, %854 : vector<8x128xf32>
    %856 = math.tanh %855 : vector<8x128xf32>
    %857 = arith.mulf %851, %856 : vector<8x128xf32>
    %858 = vector.broadcast %823 : i32 to vector<8x1xi32>
    %859 = arith.cmpi slt, %858, %3 : vector<8x1xi32>
    %c0_413 = arith.constant 0 : index
    %c0_414 = arith.constant 0 : index
    %860 = vector.load %arg15[%c0_413, %c0_414] : memref<8x128xf32, #tpu.memory_space<vmem>>, vector<8x128xf32>
    %861 = vector.shape_cast %859 : vector<8x1xi1> to vector<8x1xi1>
    %862 = vector.broadcast %861 : vector<8x1xi1> to vector<8x128xi1>
    %863 = arith.select %862, %855, %860 : vector<8x128xi1>, vector<8x128xf32>
    %c0_415 = arith.constant 0 : index
    %c0_416 = arith.constant 0 : index
    %864 = vector.load %arg15[%c0_415, %c0_416] : memref<8x128xf32, #tpu.memory_space<vmem>>, vector<8x128xf32>
    tpu.vector_store %arg15[%c0_415, %c0_416], %863 {strides = array<i32>} : memref<8x128xf32, #tpu.memory_space<vmem>>, vector<8x128xf32>,
    %c0_417 = arith.constant 0 : index
    %c0_418 = arith.constant 0 : index
    %865 = vector.load %arg13[%c0_417, %c0_418] : memref<8x128xf32, #tpu.memory_space<vmem>>, vector<8x128xf32>
    %866 = vector.shape_cast %859 : vector<8x1xi1> to vector<8x1xi1>
    %867 = vector.broadcast %866 : vector<8x1xi1> to vector<8x128xi1>
    %868 = arith.select %867, %857, %865 : vector<8x128xi1>, vector<8x128xf32>
    %c0_419 = arith.constant 0 : index
    %c0_420 = arith.constant 0 : index
    %869 = vector.load %arg13[%c0_419, %c0_420] : memref<8x128xf32, #tpu.memory_space<vmem>>, vector<8x128xf32>
    tpu.vector_store %arg13[%c0_419, %c0_420], %868 {strides = array<i32>} : memref<8x128xf32, #tpu.memory_space<vmem>>, vector<8x128xf32>,
    %870 = arith.truncf %868 : vector<8x128xf32> to vector<8x128xbf16>
    %c0_421 = arith.constant 0 : index
    %c128_422 = arith.constant 128 : index
    %871 = vector.load %arg11[%c0_421, %c128_422] : memref<8x256xbf16, #tpu.memory_space<vmem>>, vector<8x128xbf16>
    tpu.vector_store %arg11[%c0_421, %c128_422], %870 {strides = array<i32>} : memref<8x256xbf16, #tpu.memory_space<vmem>>, vector<8x128xbf16>,
    %c8_i32_423 = arith.constant 8 : i32
    %c0_i32_424 = arith.constant 0 : i32
    %872 = arith.cmpi eq, %arg0, %c0_i32_424 : i32
    %873 = arith.extui %872 : i1 to i32
    %c0_i32_425 = arith.constant 0 : i32
    %874 = arith.cmpi ne, %873, %c0_i32_425 : i32
    scf.if %874 {
      %c0_426 = arith.constant 0 : index
      %c0_427 = arith.constant 0 : index
      %875 = vector.load %arg12[%c0_426, %c0_427] : memref<8x128xf32, #tpu.memory_space<vmem>>, vector<8x128xf32>
      %c0_428 = arith.constant 0 : index
      %c0_429 = arith.constant 0 : index
      %c0_430 = arith.constant 0 : index
      %876 = vector.load %arg6[%c0_428, %c0_429, %c0_430] : memref<2x128x6xbf16, #tpu.memory_space<vmem>>, vector<1x128x6xbf16>
      %877 = vector.shape_cast %876 : vector<1x128x6xbf16> to vector<128x6xbf16>
      %cst_431 = arith.constant dense<0.000000e+00> : vector<8x6xf32>
      %878 = tpu.matmul %875, %877, %cst_431 {dimension_numbers = #tpu.dot_dimension_numbers<[1], [0], [0], [1], [0, 0, 1, 1], [], []>} : vector<8x128xf32>, vector<128x6xbf16>, vector<8x6xf32> -> vector<8x6xf32>
      %c0_432 = arith.constant 0 : index
      %c0_433 = arith.constant 0 : index
      %879 = vector.load %arg13[%c0_432, %c0_433] : memref<8x128xf32, #tpu.memory_space<vmem>>, vector<8x128xf32>
      %c1_434 = arith.constant 1 : index
      %c0_435 = arith.constant 0 : index
      %c0_436 = arith.constant 0 : index
      %880 = vector.load %arg6[%c1_434, %c0_435, %c0_436] : memref<2x128x6xbf16, #tpu.memory_space<vmem>>, vector<1x128x6xbf16>
      %881 = vector.shape_cast %880 : vector<1x128x6xbf16> to vector<128x6xbf16>
      %cst_437 = arith.constant dense<0.000000e+00> : vector<8x6xf32>
      %882 = tpu.matmul %879, %881, %cst_437 {dimension_numbers = #tpu.dot_dimension_numbers<[1], [0], [0], [1], [0, 0, 1, 1], [], []>} : vector<8x128xf32>, vector<128x6xbf16>, vector<8x6xf32> -> vector<8x6xf32>
      %883 = arith.addf %878, %882 : vector<8x6xf32>
      %c0_438 = arith.constant 0 : index
      %c0_439 = arith.constant 0 : index
      %884 = vector.load %arg7[%c0_438, %c0_439] : memref<1x6xf32, #tpu.memory_space<vmem>>, vector<1x6xf32>
      %885 = vector.broadcast %884 : vector<1x6xf32> to vector<8x6xf32>
      %886 = arith.addf %883, %885 : vector<8x6xf32>
      %c0_440 = arith.constant 0 : index
      %c0_441 = arith.constant 0 : index
      %887 = vector.load %arg8[%c0_440, %c0_441] : memref<8x6xf32, #tpu.memory_space<vmem>>, vector<8x6xf32>
      tpu.vector_store %arg8[%c0_440, %c0_441], %886 {strides = array<i32>} : memref<8x6xf32, #tpu.memory_space<vmem>>, vector<8x6xf32>,
      %888 = arith.negf %886 : vector<8x6xf32>
      %889 = math.exp %888 : vector<8x6xf32>
      %cst_442 = arith.constant 1.000000e+00 : f32
      %890 = vector.broadcast %cst_442 : f32 to vector<8x6xf32>
      %891 = arith.addf %890, %889 : vector<8x6xf32>
      %892 = arith.divf %890, %891 : vector<8x6xf32>
      %cst_443 = arith.constant 5.000000e-01 : f32
      %893 = vector.broadcast %cst_443 : f32 to vector<8x6xf32>
      %894 = arith.cmpf ogt, %892, %893 : vector<8x6xf32>
      %895 = arith.extui %894 : vector<8x6xi1> to vector<8x6xi32>
      %c0_444 = arith.constant 0 : index
      %c0_445 = arith.constant 0 : index
      %896 = vector.load %arg9[%c0_444, %c0_445] : memref<8x6xi32, #tpu.memory_space<vmem>>, vector<8x6xi32>
      tpu.vector_store %arg9[%c0_444, %c0_445], %895 {strides = array<i32>} : memref<8x6xi32, #tpu.memory_space<vmem>>, vector<8x6xi32>,
    } else {
    }
    return
  }
  func.func @transform_0(%arg0: i32) -> (i32, i32, i32) {
    %c0_i32 = arith.constant 0 : i32
    %c0_i32_0 = arith.constant 0 : i32
    %c0_i32_1 = arith.constant 0 : i32
    return %arg0, %c0_i32, %c0_i32_0 : i32, i32, i32
  }
  func.func @transform_1(%arg0: i32) -> (i32, i32, i32) {
    %c0_i32 = arith.constant 0 : i32
    %0 = arith.subi %c0_i32, %arg0 : i32
    %c0_i32_0 = arith.constant 0 : i32
    %c0_i32_1 = arith.constant 0 : i32
    %c0_i32_2 = arith.constant 0 : i32
    return %0, %c0_i32_0, %c0_i32_1 : i32, i32, i32
  }
  func.func @transform_2(%arg0: i32) -> (i32, i32) {
    %c0_i32 = arith.constant 0 : i32
    %c0_i32_0 = arith.constant 0 : i32
    %c0_i32_1 = arith.constant 0 : i32
    return %c0_i32, %c0_i32_0 : i32, i32
  }
  func.func @transform_3(%arg0: i32) -> (i32, i32, i32) {
    %c0_i32 = arith.constant 0 : i32
    %c0_i32_0 = arith.constant 0 : i32
    %c0_i32_1 = arith.constant 0 : i32
    %c0_i32_2 = arith.constant 0 : i32
    return %c0_i32, %c0_i32_0, %c0_i32_1 : i32, i32, i32
  }
  func.func @transform_4(%arg0: i32) -> (i32, i32, i32) {
    %c0_i32 = arith.constant 0 : i32
    %c0_i32_0 = arith.constant 0 : i32
    %c0_i32_1 = arith.constant 0 : i32
    %c0_i32_2 = arith.constant 0 : i32
    return %c0_i32, %c0_i32_0, %c0_i32_1 : i32, i32, i32
  }
  func.func @transform_5(%arg0: i32) -> (i32, i32, i32) {
    %c0_i32 = arith.constant 0 : i32
    %c0_i32_0 = arith.constant 0 : i32
    %c0_i32_1 = arith.constant 0 : i32
    %c0_i32_2 = arith.constant 0 : i32
    return %c0_i32, %c0_i32_0, %c0_i32_1 : i32, i32, i32
  }
  func.func @transform_6(%arg0: i32) -> (i32, i32) {
    %c0_i32 = arith.constant 0 : i32
    %c0_i32_0 = arith.constant 0 : i32
    %c0_i32_1 = arith.constant 0 : i32
    return %c0_i32, %c0_i32_0 : i32, i32
  }
  func.func @transform_7(%arg0: i32) -> (i32, i32) {
    %c0_i32 = arith.constant 0 : i32
    %c0_i32_0 = arith.constant 0 : i32
    %c0_i32_1 = arith.constant 0 : i32
    return %c0_i32, %c0_i32_0 : i32, i32
  }
  func.func @transform_8(%arg0: i32) -> (i32, i32) {
    %c0_i32 = arith.constant 0 : i32
    %c0_i32_0 = arith.constant 0 : i32
    %c0_i32_1 = arith.constant 0 : i32
    return %c0_i32, %c0_i32_0 : i32, i32
  }
}

</mosaic_0001>

<bundles_post_ra>
// kernel: tpu_custom_call.1
= control target key start
LH: loop header
LB: loop body
LE: loop exit
PB: predicated region body
PF: predicated region fallthrough
CT: control target
= control target key end

     0   :  { %14 = vsyncpa [#allocation9], 0  ;;  %s13216_s0 = inlined_call_operand.vmem [shape: bf16[8,8,128], index: 0, kind: input, shape index: {}]   ;;  %s13217_s1 = inlined_call_operand.vmem [shape: bf16[8,8,128], index: 1, kind: input, shape index: {}]   ;;  %s13218_s2 = inlined_call_operand.vmem [shape: s32[8,1], index: 2, kind: input, shape index: {}]   ;;  %s13219_s3 = inlined_call_operand.hbm [shape: bf16[2,256,512], index: 3, kind: input, shape index: {}]   ;;  %s13220_s4 = inlined_call_operand.vmem [shape: f32[2,1,512], index: 4, kind: input, shape index: {}]   ;;  %s13221_s5 = inlined_call_operand.vmem [shape: bf16[2,128,6], index: 5, kind: input, shape index: {}]   ;;  %s13222_s6 = inlined_call_operand.vmem [shape: f32[1,6], index: 6, kind: input, shape index: {}]   ;;  %s13223_s7 = inlined_call_operand.hbm [shape: f32[8,6], index: 7, kind: output, shape index: {0}]   ;;  %s13224_s8 = inlined_call_operand.hbm [shape: s32[8,6], index: 8, kind: output, shape index: {1}]  }
   0x1   :  { %15 = vsyncpa [#allocation10], 0 }
   0x2   :  { %16 = vsyncpa [#allocation13], 0  ;;  %s11182_s27 = smov [#allocation8]   ;;  %s11110_s9 = scalar_lea.hbm %s13219_s3, 16384 }
   0x3   :  { %s36_s28 = sshll.u32 %s11182_s27, 4  ;;  %p11111_p0 = scmp.ne.s32.totalorder %s13219_s3, %s11110_s9  ;;  %s37_s28 = int_to_ptr.vmem [resolvable:$true] %s36_s28 }
   0x4   :  { %p11114_p1 = scmp.lt.u32.totalorder %s11110_s9, %s13219_s3 }
   0x6   :  { %p11116_p2 = pnand %p11114_p1, %p11111_p0 }
   0x8   :  { %11119 = shalt.err (!%p11116_p2)
}
   0x9   :  { %s11120_s14 = scalar_lea.vmem %s37_s28, 16384  ;;  %p11125_p4 = scmp.lt.s32.totalorder %s37_s28, %s37_s28 }
   0xa   :  { %p11121_p3 = scmp.ne.s32.totalorder %s37_s28, %s11120_s14  ;;  %p11126_p5 = scmp.lt.s32.totalorder %s11120_s14, %s11120_s14 }
   0xc   :  { %p11127_p6 = por %p11126_p5, %p11125_p4 }
   0xe   :  { %p11128_p7 = pnand %p11127_p6, %p11121_p3 }
  0x10   :  { %11131 = shalt.err (!%p11128_p7)
}
  0x11   :  { %s11183_s15 = smov 256   ;;  %s11184_s16 = smov 16  }
  0x12   :  { %42 = dma.hbm_to_vmem [thread:$0]  %s13219_s3, 16384, %s37_s28, [#allocation9], %s11183_s15, %s11183_s15, %s11184_s16  }
  0x13   :  { %11176 = dma.done.wait [#allocation9], 16384  }
  0x14   :  { %11177 = vsyncadd [#allocation9], 4294950912  ;;  %v13225_v0 = vmov 0   ;;  %v9894_v1 = vld [vmem:[#allocation8 + $0x4] ss:$16 sps:$4 sm:$0xff]   ;;  %s11188_s13 = smov [#allocation11]  }
  0x15   :  { %71 = vst [vmem:[#allocation2] sm:$0xff] %v13225_v0  ;;  %72 = vst [vmem:[#allocation3] sm:$0xff] %v13225_v0  ;;  %9892 = vset.pattern.permute.xlu0 %v13225_v0  ;;  %9893 = vset.pattern.permute.xlu1 %v13225_v0  ;;  %v9896_v2 = vld [vmem:[#allocation8] ss:$16 sps:$4 sm:$0xff]   ;;  %v9897_v3 = vld [vmem:[#allocation8 + $0x24] ss:$16 sps:$4 sm:$0xff]  }
  0x16   :  { %497 = vmatprep.subr.bf16.mxu0 %v9894_v1  ;;  %v9899_v4 = vld [vmem:[#allocation8 + $0x20] ss:$16 sps:$4 sm:$0xff]   ;;  %v9900_v5 = vld [vmem:[#allocation8 + $0x44] ss:$16 sps:$4 sm:$0xff]   ;;  %v9905_v6 = vld [vmem:[#allocation8 + $0xc] ss:$16 sps:$4 sm:$0xff]  }
  0x17   :  { %498 = vmatpush1.bf16.msra.mxu0 %v9896_v2  ;;  %v9908_v7 = vld [vmem:[#allocation8 + $0x8] ss:$16 sps:$4 sm:$0xff]   ;;  %v9902_v8 = vld [vmem:[#allocation8 + $0x40] ss:$16 sps:$4 sm:$0xff]   ;;  %538 = vmatprep.subr.bf16.mxu1 %v9905_v6  ;;  %v9903_v9 = vld [vmem:[#allocation8 + $0x64] ss:$16 sps:$4 sm:$0xff]  }
  0x18   :  { %499 = vmatprep.subr.bf16.mxu0 %v9897_v3  ;;  %539 = vmatpush1.bf16.msra.mxu1 %v9908_v7  ;;  %v9911_v10 = vld [vmem:[#allocation8 + $0x2c] ss:$16 sps:$4 sm:$0xff]   ;;  %v9914_v11 = vld [vmem:[#allocation8 + $0x28] ss:$16 sps:$4 sm:$0xff]   ;;  %v9907_v12 = vld [vmem:[#allocation8 + $0x60] ss:$16 sps:$4 sm:$0xff]  }
  0x19   :  { %540 = vmatprep.subr.bf16.mxu1 %v9911_v10  ;;  %v9909_v13 = vld [vmem:[#allocation8 + $0x84] ss:$16 sps:$4 sm:$0xff]   ;;  %v9917_v14 = vld [vmem:[#allocation8 + $0x4c] ss:$16 sps:$4 sm:$0xff]   ;;  %v9920_v15 = vld [vmem:[#allocation8 + $0x48] ss:$16 sps:$4 sm:$0xff]  }
  0x1a   :  { %v9923_v16 = vld [vmem:[#allocation8 + $0x6c] ss:$16 sps:$4 sm:$0xff]   ;;  %v9913_v17 = vld [vmem:[#allocation8 + $0x80] ss:$16 sps:$4 sm:$0xff]   ;;  %v9915_v18 = vld [vmem:[#allocation8 + $0xa4] ss:$16 sps:$4 sm:$0xff]  }
  0x1b   :  { %500 = vmatpush1.bf16.msra.mxu0 %v9899_v4  ;;  %v9926_v19 = vld [vmem:[#allocation8 + $0x68] ss:$16 sps:$4 sm:$0xff]   ;;  %v9929_v20 = vld [vmem:[#allocation8 + $0x8c] ss:$16 sps:$4 sm:$0xff]   ;;  %v9919_v21 = vld [vmem:[#allocation8 + $0xa0] ss:$16 sps:$4 sm:$0xff]  }
  0x1c   :  { %501 = vmatprep.subr.bf16.mxu0 %v9900_v5  ;;  %541 = vmatpush1.bf16.msra.mxu1 %v9914_v11  ;;  %v9921_v22 = vld [vmem:[#allocation8 + $0xc4] ss:$16 sps:$4 sm:$0xff]   ;;  %v9932_v23 = vld [vmem:[#allocation8 + $0x88] ss:$16 sps:$4 sm:$0xff]   ;;  %v9935_v24 = vld [vmem:[#allocation8 + $0xac] ss:$16 sps:$4 sm:$0xff]  }
  0x1d   :  { %542 = vmatprep.subr.bf16.mxu1 %v9917_v14  ;;  %v9925_v25 = vld [vmem:[#allocation8 + $0xc0] ss:$16 sps:$4 sm:$0xff]   ;;  %v9927_v26 = vld [vmem:[#allocation8 + $0xe4] ss:$16 sps:$4 sm:$0xff]   ;;  %v9938_v27 = vld [vmem:[#allocation8 + $0xa8] ss:$16 sps:$4 sm:$0xff]  }
  0x1e   :  { %v9941_v28 = vld [vmem:[#allocation8 + $0xcc] ss:$16 sps:$4 sm:$0xff]   ;;  %v9931_v29 = vld [vmem:[#allocation8 + $0xe0] ss:$16 sps:$4 sm:$0xff]   ;;  %v9933_v30 = vld [vmem:[#allocation8 + $0x104] ss:$16 sps:$4 sm:$0xff]  }
  0x1f   :  { %502 = vmatpush1.bf16.msra.mxu0 %v9902_v8  ;;  %v9944_v31 = vld [vmem:[#allocation8 + $0xc8] ss:$16 sps:$4 sm:$0xff]   ;;  %v9947_v32 = vld [vmem:[#allocation8 + $0xec] ss:$16 sps:$4 sm:$0xff]   ;;  %v9937_v33 = vld [vmem:[#allocation8 + $0x100] ss:$16 sps:$4 sm:$0xff]  }
  0x20   :  { %503 = vmatprep.subr.bf16.mxu0 %v9903_v9  ;;  %543 = vmatpush1.bf16.msra.mxu1 %v9920_v15  ;;  %v9939_v34 = vld [vmem:[#allocation8 + $0x124] ss:$16 sps:$4 sm:$0xff]   ;;  %v9950_v35 = vld [vmem:[#allocation8 + $0xe8] ss:$16 sps:$4 sm:$0xff]   ;;  %v9953_v36 = vld [vmem:[#allocation8 + $0x10c] ss:$16 sps:$4 sm:$0xff]  }
  0x21   :  { %544 = vmatprep.subr.bf16.mxu1 %v9923_v16  ;;  %v9943_v37 = vld [vmem:[#allocation8 + $0x120] ss:$16 sps:$4 sm:$0xff]   ;;  %v9945_v38 = vld [vmem:[#allocation8 + $0x144] ss:$16 sps:$4 sm:$0xff]   ;;  %v9956_v39 = vld [vmem:[#allocation8 + $0x108] ss:$16 sps:$4 sm:$0xff]  }
  0x22   :  { %v9959_v40 = vld [vmem:[#allocation8 + $0x12c] ss:$16 sps:$4 sm:$0xff]   ;;  %v9949_v41 = vld [vmem:[#allocation8 + $0x140] ss:$16 sps:$4 sm:$0xff]   ;;  %v9951_v43 = vld [vmem:[#allocation8 + $0x164] ss:$16 sps:$4 sm:$0xff]  }
  0x23   :  { %504 = vmatpush1.bf16.msra.mxu0 %v9907_v12  ;;  %v81_v42 = vld [vmem:[%s13216_s0] sm:$0xf]  ;;  %v9962_v44 = vld [vmem:[#allocation8 + $0x128] ss:$16 sps:$4 sm:$0xff]   ;;  %v9965_v45 = vld [vmem:[#allocation8 + $0x14c] ss:$16 sps:$4 sm:$0xff]  }
  0x24   :  { %505 = vmatprep.subr.bf16.mxu0 %v9909_v13  ;;  %545 = vmatpush1.bf16.msra.mxu1 %v9926_v19  ;;  %83 = vst [vmem:[#allocation2] sm:$0xf] %v81_v42  ;;  %v9955_v46 = vld [vmem:[#allocation8 + $0x160] ss:$16 sps:$4 sm:$0xff]   ;;  %v9957_v47 = vld [vmem:[#allocation8 + $0x184] ss:$16 sps:$4 sm:$0xff]  }
  0x25   :  { %546 = vmatprep.subr.bf16.mxu1 %v9929_v20  ;;  %v9968_v48 = vld [vmem:[#allocation8 + $0x148] ss:$16 sps:$4 sm:$0xff]   ;;  %v9971_v49 = vld [vmem:[#allocation8 + $0x16c] ss:$16 sps:$4 sm:$0xff]   ;;  %v9961_v51 = vld [vmem:[#allocation8 + $0x180] ss:$16 sps:$4 sm:$0xff]  }
  0x26   :  { %v9963_v53 = vld [vmem:[#allocation8 + $0x1a4] ss:$16 sps:$4 sm:$0xff]   ;;  %v9974_v54 = vld [vmem:[#allocation8 + $0x168] ss:$16 sps:$4 sm:$0xff]   ;;  %v9977_v55 = vld [vmem:[#allocation8 + $0x18c] ss:$16 sps:$4 sm:$0xff]  }
  0x27   :  { %506 = vmatpush1.bf16.msra.mxu0 %v9913_v17  ;;  %v9967_v56 = vld [vmem:[#allocation8 + $0x1a0] ss:$16 sps:$4 sm:$0xff]   ;;  %v9969_v57 = vld [vmem:[#allocation8 + $0x1c4] ss:$16 sps:$4 sm:$0xff]   ;;  %v9980_v58 = vld [vmem:[#allocation8 + $0x188] ss:$16 sps:$4 sm:$0xff]  }
  0x28   :  { %507 = vmatprep.subr.bf16.mxu0 %v9915_v18  ;;  %547 = vmatpush1.bf16.msra.mxu1 %v9932_v23  ;;  %v9983_v59 = vld [vmem:[#allocation8 + $0x1ac] ss:$16 sps:$4 sm:$0xff]   ;;  %v9973_v60 = vld [vmem:[#allocation8 + $0x1c0] ss:$16 sps:$4 sm:$0xff]   ;;  %v9975_v61 = vld [vmem:[#allocation8 + $0x1e4] ss:$16 sps:$4 sm:$0xff]  }
  0x29   :  { %548 = vmatprep.subr.bf16.mxu1 %v9935_v24  ;;  %v9988_v62 = vld [vmem:[#allocation8 + $0x1a8] ss:$16 sps:$4 sm:$0xff]   ;;  %v9989_v63 = vld [vmem:[#allocation8 + $0x1cc] ss:$16 sps:$4 sm:$0xff]   ;;  %v9979_v1 = vld [vmem:[#allocation8 + $0x1e0] ss:$16 sps:$4 sm:$0xff]  }
  0x2a   :  { %v9987_v2 = vld [vmem:[#allocation8 + $0x204] ss:$16 sps:$4 sm:$0xff]   ;;  %v9994_v3 = vld [vmem:[#allocation8 + $0x1c8] ss:$16 sps:$4 sm:$0xff]   ;;  %v9995_v4 = vld [vmem:[#allocation8 + $0x1ec] ss:$16 sps:$4 sm:$0xff]  }
  0x2b   :  { %508 = vmatpush1.bf16.msra.mxu0 %v9919_v21  ;;  %v84_v50 = vld [vmem:[#allocation2] sm:$0xff]  ;;  %v10000_v8 = vld [vmem:[#allocation8 + $0x1e8] ss:$16 sps:$4 sm:$0xff]   ;;  %v10006_v9 = vld [vmem:[#allocation8 + $0x20c] ss:$16 sps:$4 sm:$0xff]   ;;  %s8630_s14 = sshll.u32 %s11188_s13, 4  ;;  %s8631_s14 = int_to_ptr.vmem [resolvable:$true] %s8630_s14 }
  0x2c   :  { %509 = vmatprep.subr.bf16.mxu0 %v9921_v22  ;;  %549 = vmatpush1.bf16.msra.mxu1 %v9938_v27  ;;  %v8661_v52 = vcombine.high %v84_v50, %v84_v50  ;;  %v8660_v5 = vcombine.low %v84_v50, %v84_v50  ;;  %v9985_v6 = vld [vmem:[#allocation8 + $0x200] ss:$16 sps:$4 sm:$0xff]   ;;  %v9993_v7 = vld [vmem:[#allocation8 + $0x224] ss:$16 sps:$4 sm:$0xff]   ;;  %v10004_v12 = vld [vmem:[#allocation8 + $0x208] ss:$16 sps:$4 sm:$0xff]   ;;  %p11137_p9 = scmp.lt.s32.totalorder %s8631_s14, %s8631_s14 }
  0x2d   :  { %550 = vmatprep.subr.bf16.mxu1 %v9941_v28  ;;  %v9991_v10 = vld [vmem:[#allocation8 + $0x220] ss:$16 sps:$4 sm:$0xff]   ;;  %v9999_v11 = vld [vmem:[#allocation8 + $0x244] ss:$16 sps:$4 sm:$0xff]   ;;  %v10012_v13 = vld [vmem:[#allocation8 + $0x22c] ss:$16 sps:$4 sm:$0xff]  }
  0x2e   :  { %529 = vmatprep.mubr.bf16.mxu0 %v8661_v52  ;;  %570 = vmatprep.mubr.bf16.mxu1 %v8661_v52  ;;  %v9997_v14 = vld [vmem:[#allocation8 + $0x240] ss:$16 sps:$4 sm:$0xff]   ;;  %v10003_v15 = vld [vmem:[#allocation8 + $0x264] ss:$16 sps:$4 sm:$0xff]   ;;  %v10010_v16 = vld [vmem:[#allocation8 + $0x228] ss:$16 sps:$4 sm:$0xff]  }
  0x2f   :  { %510 = vmatpush1.bf16.msra.mxu0 %v9925_v25  ;;  %v10018_v17 = vld [vmem:[#allocation8 + $0x24c] ss:$16 sps:$4 sm:$0xff]   ;;  %v10001_v18 = vld [vmem:[#allocation8 + $0x260] ss:$16 sps:$4 sm:$0xff]   ;;  %v10009_v19 = vld [vmem:[#allocation8 + $0x284] ss:$16 sps:$4 sm:$0xff]  }
  0x30   :  { %511 = vmatprep.subr.bf16.mxu0 %v9927_v26  ;;  %551 = vmatpush1.bf16.msra.mxu1 %v9944_v31  ;;  %v10016_v20 = vld [vmem:[#allocation8 + $0x248] ss:$16 sps:$4 sm:$0xff]   ;;  %v10024_v21 = vld [vmem:[#allocation8 + $0x26c] ss:$16 sps:$4 sm:$0xff]   ;;  %v10007_v22 = vld [vmem:[#allocation8 + $0x280] ss:$16 sps:$4 sm:$0xff]  }
  0x31   :  { %552 = vmatprep.subr.bf16.mxu1 %v9947_v32  ;;  %v10015_v23 = vld [vmem:[#allocation8 + $0x2a4] ss:$16 sps:$4 sm:$0xff]   ;;  %v10022_v24 = vld [vmem:[#allocation8 + $0x268] ss:$16 sps:$4 sm:$0xff]   ;;  %v10030_v25 = vld [vmem:[#allocation8 + $0x28c] ss:$16 sps:$4 sm:$0xff]  }
  0x32   :  { %v8730_v26 = vld [vmem:[%s13217_s1 + $0x1c] sm:$0xf]  ;;  %v10013_v27 = vld [vmem:[#allocation8 + $0x2a0] ss:$16 sps:$4 sm:$0xff]   ;;  %v10021_v28 = vld [vmem:[#allocation8 + $0x2c4] ss:$16 sps:$4 sm:$0xff]  }
  0x33   :  { %512 = vmatpush1.bf16.msra.mxu0 %v9931_v29  ;;  %623 = vst [vmem:[#allocation3] sm:$0xf] %v8730_v26  ;;  %v10028_v29 = vld [vmem:[#allocation8 + $0x288] ss:$16 sps:$4 sm:$0xff]   ;;  %v10019_v31 = vld [vmem:[#allocation8 + $0x2c0] ss:$16 sps:$4 sm:$0xff]  }
  0x34   :  { %513 = vmatprep.subr.bf16.mxu0 %v9933_v30  ;;  %553 = vmatpush1.bf16.msra.mxu1 %v9950_v35  ;;  %v10036_v30 = vld [vmem:[#allocation8 + $0x2ac] ss:$16 sps:$4 sm:$0xff]   ;;  %v10027_v32 = vld [vmem:[#allocation8 + $0x2e4] ss:$16 sps:$4 sm:$0xff]   ;;  %s11132_s15 = scalar_lea.vmem %s8631_s14, 128 }
  0x35   :  { %554 = vmatprep.subr.bf16.mxu1 %v9953_v36  ;;  %v10042_v35 = vld [vmem:[#allocation8 + $0x2cc] ss:$16 sps:$4 sm:$0xff]   ;;  %v10045_v50 = vld [vmem:[#allocation8 + $0x344] ss:$16 sps:$4 sm:$0xff]   ;;  %p11133_p8 = scmp.ne.s32.totalorder %s8631_s14, %s11132_s15  ;;  %p11138_p10 = scmp.lt.s32.totalorder %s11132_s15, %s11132_s15 }
  0x36   :  { %v10060_v52 = vld [vmem:[#allocation8 + $0x32c] ss:$16 sps:$4 sm:$0xff]  }
  0x37   :  { %514 = vmatpush1.bf16.msra.mxu0 %v9937_v33  ;;  %v11260_v33 = vld [vmem:[%s13218_s2] sm:$0xff]  ;;  %v11022_v26 = vld [vmem:[#allocation8 + $0x2c] ss:$16 sps:$4 sm:$0xff]   ;;  %p11139_p11 = por %p11138_p10, %p11137_p9 }
  0x38   :  { %515 = vmatprep.subr.bf16.mxu0 %v9939_v34  ;;  %555 = vmatpush1.bf16.msra.mxu1 %v9956_v39  ;;  %v10034_v34 = vld [vmem:[#allocation8 + $0x2a8] ss:$16 sps:$4 sm:$0xff]   ;;  %vm8729_vm0 = vcmp.gt.s32.totalorder %v11260_v33, 0  ;;  %vm8800_vm1 = vcmp.gt.s32.totalorder %v11260_v33, 7  ;;  %vm9013_vm2 = vcmp.gt.s32.totalorder %v11260_v33, 2  ;;  %vm9155_vm3 = vcmp.gt.s32.totalorder %v11260_v33, 3 }
  0x39   :  { %556 = vmatprep.subr.bf16.mxu1 %v9959_v40  ;;  %v11264_v36 = vsel %vm8729_vm0, 1, %v13225_v0  ;;  %v10040_v39 = vld [vmem:[#allocation8 + $0x2c8] ss:$16 sps:$4 sm:$0xff]   ;;  %vm9226_vm4 = vcmp.gt.s32.totalorder %v11260_v33, 4  ;;  %vm9084_vm5 = vcmp.gt.s32.totalorder %v11260_v33, 5  ;;  %vm8942_vm6 = vcmp.gt.s32.totalorder %v11260_v33, 6  ;;  %p11140_p12 = pnand %p11139_p11, %p11133_p8 }
  0x3a   :  { %608 = vperm.xlu0 %9892, %v11264_v36   ;;  %v11268_v40 = vld [vmem:[#allocation3] sm:$0xff]  ;;  %v11029_v33 = vld [vmem:[#allocation8 + $0x84] ss:$16 sps:$4 sm:$0xff]  }
  0x3b   :  { %516 = vmatpush1.bf16.msra.mxu0 %v9943_v37  ;;  %v10025_v37 = vld [vmem:[#allocation8 + $0x2e0] ss:$16 sps:$4 sm:$0xff]   ;;  %v8732_v42 = vcombine.high %v11268_v40, %v11268_v40 }
  0x3c   :  { %517 = vmatprep.subr.bf16.mxu0 %v9945_v38  ;;  %557 = vmatpush1.bf16.msra.mxu1 %v9962_v44  ;;  %v10033_v38 = vld [vmem:[#allocation8 + $0x304] ss:$16 sps:$4 sm:$0xff]   ;;  %v10031_v44 = vld [vmem:[#allocation8 + $0x300] ss:$16 sps:$4 sm:$0xff]  }
  0x3d   :  { %558 = vmatprep.subr.bf16.mxu1 %v9965_v45  ;;  %v10039_v45 = vld [vmem:[#allocation8 + $0x324] ss:$16 sps:$4 sm:$0xff]  }
  0x3f   :  { %518 = vmatpush1.bf16.msra.mxu0 %v9949_v41  ;;  %v10048_v41 = vld [vmem:[#allocation8 + $0x2ec] ss:$16 sps:$4 sm:$0xff]  }
  0x40   :  { %519 = vmatprep.subr.bf16.mxu0 %v9951_v43  ;;  %559 = vmatpush1.bf16.msra.mxu1 %v9968_v48  ;;  %v11273_v43 = vsel %vm8800_vm1, 1, %v13225_v0  ;;  %v11278_v48 = vsel %vm9013_vm2, 1, %v13225_v0 }
  0x41   :  { %560 = vmatprep.subr.bf16.mxu1 %v9971_v49  ;;  %1149 = vperm.xlu0 %9892, %v11273_v43   ;;  %v10037_v49 = vld [vmem:[#allocation8 + $0x320] ss:$16 sps:$4 sm:$0xff]  }
  0x43   :  { %520 = vmatpush1.bf16.msra.mxu0 %v9955_v46  ;;  %v10046_v46 = vld [vmem:[#allocation8 + $0x2e8] ss:$16 sps:$4 sm:$0xff]  }
  0x44   :  { %521 = vmatprep.subr.bf16.mxu0 %v9957_v47  ;;  %561 = vmatpush1.bf16.msra.mxu1 %v9974_v54  ;;  %v10054_v47 = vld [vmem:[#allocation8 + $0x30c] ss:$16 sps:$4 sm:$0xff]   ;;  %v10043_v54 = vld [vmem:[#allocation8 + $0x340] ss:$16 sps:$4 sm:$0xff]  }
  0x45   :  { %562 = vmatprep.subr.bf16.mxu1 %v9977_v55  ;;  %2700 = vperm.xlu0 %9892, %v11278_v48   ;;  %v10051_v55 = vld [vmem:[#allocation8 + $0x364] ss:$16 sps:$4 sm:$0xff]  }
  0x47   :  { %522 = vmatpush1.bf16.msra.mxu0 %v9961_v51  ;;  %v10052_v51 = vld [vmem:[#allocation8 + $0x308] ss:$16 sps:$4 sm:$0xff]  }
  0x48   :  { %523 = vmatprep.subr.bf16.mxu0 %v9963_v53  ;;  %563 = vmatpush1.bf16.msra.mxu1 %v9980_v58  ;;  %v11283_v53 = vsel %vm9155_vm3, 1, %v13225_v0  ;;  %v11288_v58 = vsel %vm9226_vm4, 1, %v13225_v0 }
  0x49   :  { %564 = vmatprep.subr.bf16.mxu1 %v9983_v59  ;;  %3734 = vperm.xlu0 %9892, %v11283_v53   ;;  %v10049_v59 = vld [vmem:[#allocation8 + $0x360] ss:$16 sps:$4 sm:$0xff]  }
  0x4b   :  { %524 = vmatpush1.bf16.msra.mxu0 %v9967_v56  ;;  %v10058_v56 = vld [vmem:[#allocation8 + $0x328] ss:$16 sps:$4 sm:$0xff]  }
  0x4c   :  { %525 = vmatprep.subr.bf16.mxu0 %v9969_v57  ;;  %565 = vmatpush1.bf16.msra.mxu1 %v9988_v62  ;;  %v10066_v57 = vld [vmem:[#allocation8 + $0x34c] ss:$16 sps:$4 sm:$0xff]  }
  0x4d   :  { %566 = vmatprep.subr.bf16.mxu1 %v9989_v63  ;;  %4768 = vperm.xlu0 %9892, %v11288_v58   ;;  %v10072_v62 = vld [vmem:[#allocation8 + $0x36c] ss:$16 sps:$4 sm:$0xff]   ;;  %v11293_v63 = vsel %vm9084_vm5, 1, %v13225_v0 }
  0x4f   :  { %526 = vmatpush1.bf16.msra.mxu0 %v9973_v60  ;;  %v10057_v60 = vld [vmem:[#allocation8 + $0x384] ss:$16 sps:$4 sm:$0xff]  }
  0x50   :  { %527 = vmatprep.subr.bf16.mxu0 %v9975_v61  ;;  %567 = vmatpush1.bf16.msra.mxu1 %v9994_v3  ;;  %v10064_v61 = vld [vmem:[#allocation8 + $0x348] ss:$16 sps:$4 sm:$0xff]  }
  0x51   :  { %568 = vmatprep.subr.bf16.mxu1 %v9995_v4  ;;  %v10070_v3 = vld [vmem:[#allocation8 + $0x368] ss:$16 sps:$4 sm:$0xff]   ;;  %5802 = vperm.xlu0 %9892, %v11293_v63   ;;  %v10078_v4 = vld [vmem:[#allocation8 + $0x38c] ss:$16 sps:$4 sm:$0xff]  }
  0x53   :  { %528 = vmatpush1.bf16.msra.mxu0 %v9979_v1  ;;  %v10055_v1 = vld [vmem:[#allocation8 + $0x380] ss:$16 sps:$4 sm:$0xff]  }
  0x54   :  { %1038 = vmatprep.subr.bf16.mxu0 %v9987_v2  ;;  %569 = vmatpush1.bf16.msra.mxu1 %v10000_v8  ;;  %v10063_v2 = vld [vmem:[#allocation8 + $0x3a4] ss:$16 sps:$4 sm:$0xff]   ;;  %v10076_v8 = vld [vmem:[#allocation8 + $0x388] ss:$16 sps:$4 sm:$0xff]  }
  0x55   :  { %1079 = vmatprep.subr.bf16.mxu1 %v10006_v9  ;;  %v10083_v9 = vld [vmem:[#allocation8 + $0x3ac] ss:$16 sps:$4 sm:$0xff]  }
  0x56   :  { %530 = vmatmul.mubr.bf16.vlgmr.msra.gmra.mrb[0].mxu0 %v8660_v5 }
  0x57   :  { %1039 = vmatpush1.bf16.msra.mxu0 %v9985_v6  ;;  %571 = vmatmul.mubr.bf16.vlgmr.msra.gmra.mrb[0].mxu1 %v8660_v5  ;;  %v11298_v5 = vsel %vm8942_vm6, 1, %v13225_v0  ;;  %v10061_v6 = vld [vmem:[#allocation8 + $0x3a0] ss:$16 sps:$4 sm:$0xff]   ;;  %vm11187_vm6 = vmmov 0  }
  0x58   :  { %1040 = vmatprep.subr.bf16.mxu0 %v9993_v7  ;;  %1080 = vmatpush1.bf16.msra.mxu1 %v10004_v12  ;;  %v10069_v7 = vld [vmem:[#allocation8 + $0x3c4] ss:$16 sps:$4 sm:$0xff]   ;;  %v10081_v12 = vld [vmem:[#allocation8 + $0x3a8] ss:$16 sps:$4 sm:$0xff]  }
  0x59   :  { %1081 = vmatprep.subr.bf16.mxu1 %v10012_v13  ;;  %1070 = vmatprep.mubr.bf16.mxu0 %v8732_v42  ;;  %v10086_v13 = vld [vmem:[#allocation8 + $0x3cc] ss:$16 sps:$4 sm:$0xff]  }
  0x5a   :  { %1111 = vmatprep.mubr.bf16.mxu1 %v8732_v42  ;;  %6836 = vperm.xlu0 %9892, %v11298_v5   ;;  %v11037_v42 = vld [vmem:[#allocation8 + $0xc4] ss:$16 sps:$4 sm:$0xff]  }
  0x5b   :  { %1041 = vmatpush1.bf16.msra.mxu0 %v9991_v10  ;;  %v10067_v10 = vld [vmem:[#allocation8 + $0x3c0] ss:$16 sps:$4 sm:$0xff]  }
  0x5c   :  { %1042 = vmatprep.subr.bf16.mxu0 %v9999_v11  ;;  %1082 = vmatpush1.bf16.msra.mxu1 %v10010_v16  ;;  %v10075_v11 = vld [vmem:[#allocation8 + $0x3e4] ss:$16 sps:$4 sm:$0xff]   ;;  %v10089_v16 = vld [vmem:[#allocation8 + $0x3ec] ss:$16 sps:$4 sm:$0xff]  }
  0x5d   :  { %1083 = vmatprep.subr.bf16.mxu1 %v10018_v17  ;;  %v8731_v17 = vcombine.low %v11268_v40, %v11268_v40  ;;  %v11035_v40 = vld [vmem:[#allocation8 + $0xa0] ss:$16 sps:$4 sm:$0xff]  }
  0x5e   :  { %7870 = vperm.xlu0 %9892, %v11273_v43   ;;  %v11038_v43 = vld [vmem:[#allocation8 + $0xac] ss:$16 sps:$4 sm:$0xff]  }
  0x5f   :  { %1043 = vmatpush1.bf16.msra.mxu0 %v9997_v14  ;;  %v10073_v14 = vld [vmem:[#allocation8 + $0x3e0] ss:$16 sps:$4 sm:$0xff]  }
  0x60   :  { %1044 = vmatprep.subr.bf16.mxu0 %v10003_v15  ;;  %1084 = vmatpush1.bf16.msra.mxu1 %v10016_v20  ;;  %v10084_v15 = vld [vmem:[#allocation8 + $0x3c8] ss:$16 sps:$4 sm:$0xff]   ;;  %v11016_v20 = vld [vmem:[#allocation8] ss:$16 sps:$4 sm:$0xff]  }
  0x61   :  { %1085 = vmatprep.subr.bf16.mxu1 %v10024_v21  ;;  %v11017_v21 = vld [vmem:[#allocation8 + $0x24] ss:$16 sps:$4 sm:$0xff]  }
  0x63   :  { %1045 = vmatpush1.bf16.msra.mxu0 %v10001_v18  ;;  %v10087_v18 = vld [vmem:[#allocation8 + $0x3e8] ss:$16 sps:$4 sm:$0xff]  }
  0x64   :  { %1046 = vmatprep.subr.bf16.mxu0 %v10009_v19  ;;  %1086 = vmatpush1.bf16.msra.mxu1 %v10022_v24  ;;  %v11015_v19 = vld [vmem:[#allocation8 + $0x4] ss:$16 sps:$4 sm:$0xff]   ;;  %v11020_v24 = vld [vmem:[#allocation8 + $0x8] ss:$16 sps:$4 sm:$0xff]  }
  0x65   :  { %1087 = vmatprep.subr.bf16.mxu1 %v10030_v25  ;;  %v11021_v25 = vld [vmem:[#allocation8 + $0x44] ss:$16 sps:$4 sm:$0xff]  }
  0x67   :  { %1047 = vmatpush1.bf16.msra.mxu0 %v10007_v22  ;;  %v11018_v22 = vld [vmem:[#allocation8 + $0xc] ss:$16 sps:$4 sm:$0xff]  }
  0x68   :  { %1048 = vmatprep.subr.bf16.mxu0 %v10015_v23  ;;  %1088 = vmatpush1.bf16.msra.mxu1 %v10028_v29  ;;  %v11019_v23 = vld [vmem:[#allocation8 + $0x20] ss:$16 sps:$4 sm:$0xff]   ;;  %v11025_v29 = vld [vmem:[#allocation8 + $0x64] ss:$16 sps:$4 sm:$0xff]  }
  0x69   :  { %1089 = vmatprep.subr.bf16.mxu1 %v10036_v30  ;;  %v11026_v30 = vld [vmem:[#allocation8 + $0x4c] ss:$16 sps:$4 sm:$0xff]  }
  0x6b   :  { %1049 = vmatpush1.bf16.msra.mxu0 %v10013_v27  ;;  %v11023_v27 = vld [vmem:[#allocation8 + $0x40] ss:$16 sps:$4 sm:$0xff]  }
  0x6c   :  { %1050 = vmatprep.subr.bf16.mxu0 %v10021_v28  ;;  %1090 = vmatpush1.bf16.msra.mxu1 %v10034_v34  ;;  %v11024_v28 = vld [vmem:[#allocation8 + $0x28] ss:$16 sps:$4 sm:$0xff]   ;;  %v11030_v34 = vld [vmem:[#allocation8 + $0x6c] ss:$16 sps:$4 sm:$0xff]  }
  0x6d   :  { %1091 = vmatprep.subr.bf16.mxu1 %v10042_v35  ;;  %v11031_v35 = vld [vmem:[#allocation8 + $0x80] ss:$16 sps:$4 sm:$0xff]  }
  0x6f   :  { %1051 = vmatpush1.bf16.msra.mxu0 %v10019_v31  ;;  %v11027_v31 = vld [vmem:[#allocation8 + $0x60] ss:$16 sps:$4 sm:$0xff]  }
  0x70   :  { %1052 = vmatprep.subr.bf16.mxu0 %v10027_v32  ;;  %1092 = vmatpush1.bf16.msra.mxu1 %v10040_v39  ;;  %v11028_v32 = vld [vmem:[#allocation8 + $0x48] ss:$16 sps:$4 sm:$0xff]   ;;  %v11034_v39 = vld [vmem:[#allocation8 + $0x8c] ss:$16 sps:$4 sm:$0xff]  }
  0x71   :  { %1093 = vmatprep.subr.bf16.mxu1 %v10048_v41  ;;  %v11036_v41 = vld [vmem:[#allocation8 + $0x88] ss:$16 sps:$4 sm:$0xff]  }
  0x73   :  { %1053 = vmatpush1.bf16.msra.mxu0 %v10025_v37  ;;  %v11032_v37 = vld [vmem:[#allocation8 + $0x68] ss:$16 sps:$4 sm:$0xff]  }
  0x74   :  { %1054 = vmatprep.subr.bf16.mxu0 %v10033_v38  ;;  %1094 = vmatpush1.bf16.msra.mxu1 %v10046_v46  ;;  %v11033_v38 = vld [vmem:[#allocation8 + $0xa4] ss:$16 sps:$4 sm:$0xff]  }
  0x75   :  { %1095 = vmatprep.subr.bf16.mxu1 %v10054_v47  ;;  %v11041_v46 = vld [vmem:[#allocation8 + $0xe4] ss:$16 sps:$4 sm:$0xff]   ;;  %v11042_v47 = vld [vmem:[#allocation8 + $0xcc] ss:$16 sps:$4 sm:$0xff]  }
  0x77   :  { %1055 = vmatpush1.bf16.msra.mxu0 %v10031_v44  ;;  %v11039_v44 = vld [vmem:[#allocation8 + $0xc0] ss:$16 sps:$4 sm:$0xff]  }
  0x78   :  { %1056 = vmatprep.subr.bf16.mxu0 %v10039_v45  ;;  %1096 = vmatpush1.bf16.msra.mxu1 %v10052_v51  ;;  %v11040_v45 = vld [vmem:[#allocation8 + $0xa8] ss:$16 sps:$4 sm:$0xff]   ;;  %v11045_v51 = vld [vmem:[#allocation8 + $0x104] ss:$16 sps:$4 sm:$0xff]  }
  0x79   :  { %1097 = vmatprep.subr.bf16.mxu1 %v10060_v52  ;;  %v11046_v52 = vld [vmem:[#allocation8 + $0xec] ss:$16 sps:$4 sm:$0xff]  }
  0x7b   :  { %1057 = vmatpush1.bf16.msra.mxu0 %v10037_v49  ;;  %v11043_v49 = vld [vmem:[#allocation8 + $0xe0] ss:$16 sps:$4 sm:$0xff]  }
  0x7c   :  { %1058 = vmatprep.subr.bf16.mxu0 %v10045_v50  ;;  %1098 = vmatpush1.bf16.msra.mxu1 %v10058_v56  ;;  %v11044_v50 = vld [vmem:[#allocation8 + $0xc8] ss:$16 sps:$4 sm:$0xff]   ;;  %v11049_v56 = vld [vmem:[#allocation8 + $0x124] ss:$16 sps:$4 sm:$0xff]  }
  0x7d   :  { %1099 = vmatprep.subr.bf16.mxu1 %v10066_v57  ;;  %v11050_v57 = vld [vmem:[#allocation8 + $0x10c] ss:$16 sps:$4 sm:$0xff]  }
  0x7f   :  { %1059 = vmatpush1.bf16.msra.mxu0 %v10043_v54  ;;  %v11047_v54 = vld [vmem:[#allocation8 + $0x100] ss:$16 sps:$4 sm:$0xff]  }
  0x80   :  { %1060 = vmatprep.subr.bf16.mxu0 %v10051_v55  ;;  %1100 = vmatpush1.bf16.msra.mxu1 %v10064_v61  ;;  %v11048_v55 = vld [vmem:[#allocation8 + $0xe8] ss:$16 sps:$4 sm:$0xff]   ;;  %v11053_v61 = vld [vmem:[#allocation8 + $0x144] ss:$16 sps:$4 sm:$0xff]  }
  0x81   :  { %1101 = vmatprep.subr.bf16.mxu1 %v10072_v62  ;;  %v11054_v62 = vld [vmem:[#allocation8 + $0x12c] ss:$16 sps:$4 sm:$0xff]  }
  0x83   :  { %1061 = vmatpush1.bf16.msra.mxu0 %v10049_v59  ;;  %v11051_v59 = vld [vmem:[#allocation8 + $0x120] ss:$16 sps:$4 sm:$0xff]  }
  0x84   :  { %1062 = vmatprep.subr.bf16.mxu0 %v10057_v60  ;;  %1102 = vmatpush1.bf16.msra.mxu1 %v10070_v3  ;;  %v11052_v60 = vld [vmem:[#allocation8 + $0x108] ss:$16 sps:$4 sm:$0xff]   ;;  %v11057_v3 = vld [vmem:[#allocation8 + $0x164] ss:$16 sps:$4 sm:$0xff]  }
  0x85   :  { %1103 = vmatprep.subr.bf16.mxu1 %v10078_v4  ;;  %v8801_v4 = vld [vmem:[%s13216_s0 + $0x4] sm:$0xf] }
  0x86   :  { %1162 = vst [vmem:[#allocation2] sm:$0xf] %v8801_v4 }
  0x87   :  { %1063 = vmatpush1.bf16.msra.mxu0 %v10055_v1  ;;  %v11055_v1 = vld [vmem:[#allocation8 + $0x140] ss:$16 sps:$4 sm:$0xff]  }
  0x88   :  { %1064 = vmatprep.subr.bf16.mxu0 %v10063_v2  ;;  %1104 = vmatpush1.bf16.msra.mxu1 %v10076_v8  ;;  %v11056_v2 = vld [vmem:[#allocation8 + $0x128] ss:$16 sps:$4 sm:$0xff]  }
  0x89   :  { %1105 = vmatprep.subr.bf16.mxu1 %v10083_v9  ;;  %v11060_v8 = vld [vmem:[#allocation8 + $0x148] ss:$16 sps:$4 sm:$0xff]   ;;  %v11061_v9 = vld [vmem:[#allocation8 + $0x184] ss:$16 sps:$4 sm:$0xff]  }
  0x8b   :  { %1065 = vmatpush1.bf16.msra.mxu0 %v10061_v6  ;;  %v11058_v6 = vld [vmem:[#allocation8 + $0x14c] ss:$16 sps:$4 sm:$0xff]  }
  0x8c   :  { %1066 = vmatprep.subr.bf16.mxu0 %v10069_v7  ;;  %1106 = vmatpush1.bf16.msra.mxu1 %v10081_v12  ;;  %v11059_v7 = vld [vmem:[#allocation8 + $0x160] ss:$16 sps:$4 sm:$0xff]   ;;  %v11064_v12 = vld [vmem:[#allocation8 + $0x168] ss:$16 sps:$4 sm:$0xff]  }
  0x8d   :  { %1107 = vmatprep.subr.bf16.mxu1 %v10086_v13  ;;  %v11065_v13 = vld [vmem:[#allocation8 + $0x1a4] ss:$16 sps:$4 sm:$0xff]  }
  0x8f   :  { %1067 = vmatpush1.bf16.msra.mxu0 %v10067_v10  ;;  %v11062_v10 = vld [vmem:[#allocation8 + $0x16c] ss:$16 sps:$4 sm:$0xff]  }
  0x90   :  { %1068 = vmatprep.subr.bf16.mxu0 %v10075_v11  ;;  %1108 = vmatpush1.bf16.msra.mxu1 %v10084_v15  ;;  %v11063_v11 = vld [vmem:[#allocation8 + $0x180] ss:$16 sps:$4 sm:$0xff]  }
  0x91   :  { %1109 = vmatprep.subr.bf16.mxu1 %v10089_v16  ;;  %v11067_v15 = vld [vmem:[#allocation8 + $0x1a0] ss:$16 sps:$4 sm:$0xff]   ;;  %v11068_v16 = vld [vmem:[#allocation8 + $0x188] ss:$16 sps:$4 sm:$0xff]  }
  0x93   :  { %1069 = vmatpush1.bf16.msra.mxu0 %v10073_v14  ;;  %v11066_v14 = vld [vmem:[#allocation8 + $0x18c] ss:$16 sps:$4 sm:$0xff]  }
  0x94   :  { %1555 = vmatprep.subr.bf16.mxu0 %v11015_v19  ;;  %1110 = vmatpush1.bf16.msra.mxu1 %v10087_v18  ;;  %v11070_v18 = vld [vmem:[#allocation8 + $0x1ac] ss:$16 sps:$4 sm:$0xff]   ;;  %v11071_v19 = vld [vmem:[#allocation8 + $0x1c0] ss:$16 sps:$4 sm:$0xff]  }
  0x95   :  { %1596 = vmatprep.subr.bf16.mxu1 %v11018_v22  ;;  %v11074_v22 = vld [vmem:[#allocation8 + $0x1cc] ss:$16 sps:$4 sm:$0xff]  }
  0x96   :  { %1071 = vmatmul.mubr.bf16.vlgmr.msra.gmra.mrb[4].mxu0 %v8731_v17 }
  0x97   :  { %1556 = vmatpush1.bf16.msra.mxu0 %v11016_v20  ;;  %1112 = vmatmul.mubr.bf16.vlgmr.msra.gmra.mrb[4].mxu1 %v8731_v17  ;;  %v11069_v17 = vld [vmem:[#allocation8 + $0x1c4] ss:$16 sps:$4 sm:$0xff]   ;;  %v11072_v20 = vld [vmem:[#allocation8 + $0x1a8] ss:$16 sps:$4 sm:$0xff]  }
  0x98   :  { %1557 = vmatprep.subr.bf16.mxu0 %v11017_v21  ;;  %1597 = vmatpush1.bf16.msra.mxu1 %v11020_v24  ;;  %v11073_v21 = vld [vmem:[#allocation8 + $0x1e4] ss:$16 sps:$4 sm:$0xff]   ;;  %v11076_v24 = vld [vmem:[#allocation8 + $0x1c8] ss:$16 sps:$4 sm:$0xff]  }
  0x99   :  { %1598 = vmatprep.subr.bf16.mxu1 %v11022_v26  ;;  %v11078_v26 = vld [vmem:[#allocation8 + $0x1ec] ss:$16 sps:$4 sm:$0xff]  }
  0x9b   :  { %1558 = vmatpush1.bf16.msra.mxu0 %v11019_v23  ;;  %v11075_v23 = vld [vmem:[#allocation8 + $0x1e0] ss:$16 sps:$4 sm:$0xff]  }
  0x9c   :  { %1559 = vmatprep.subr.bf16.mxu0 %v11021_v25  ;;  %1599 = vmatpush1.bf16.msra.mxu1 %v11024_v28  ;;  %v11077_v25 = vld [vmem:[#allocation8 + $0x204] ss:$16 sps:$4 sm:$0xff]   ;;  %v11080_v28 = vld [vmem:[#allocation8 + $0x20c] ss:$16 sps:$4 sm:$0xff]  }
  0x9d   :  { %1600 = vmatprep.subr.bf16.mxu1 %v11026_v30  ;;  %v8872_v30 = vld [vmem:[%s13217_s1 + $0x18] sm:$0xf] }
  0x9e   :  { %1679 = vst [vmem:[#allocation3] sm:$0xf] %v8872_v30 }
  0x9f   :  { %1560 = vmatpush1.bf16.msra.mxu0 %v11023_v27  ;;  %v11079_v27 = vld [vmem:[#allocation8 + $0x1e8] ss:$16 sps:$4 sm:$0xff]  }
  0xa0   :  { %1561 = vmatprep.subr.bf16.mxu0 %v11025_v29  ;;  %1601 = vmatpush1.bf16.msra.mxu1 %v11028_v32  ;;  %v150_v29 = vlaneseq }
  0xa1   :  { %1602 = vmatprep.subr.bf16.mxu1 %v11030_v34 }
  0xa3   :  { %1562 = vmatpush1.bf16.msra.mxu0 %v11027_v31  ;;  %v11310_v31 = vshrl.u32 %v150_v29, 7 }
  0xa4   :  { %1563 = vmatprep.subr.bf16.mxu0 %v11029_v33  ;;  %1603 = vmatpush1.bf16.msra.mxu1 %v11032_v37  ;;  %v78_v33 = vld [vmem:[%s13220_s4] sm:$0xf] }
  0xa5   :  { %1604 = vmatprep.subr.bf16.mxu1 %v11034_v39  ;;  %v152_v32 = vsub.s32 0, %v11310_v31  ;;  %v156_v34 = vsub.s32 1, %v11310_v31  ;;  %v11081_v37 = vld [vmem:[%s13218_s2] sm:$0xff] }
  0xa6   :  { %vm8871_vm7 = vcmp.gt.s32.totalorder %v11081_v37, 1 }
  0xa7   :  { %1564 = vmatpush1.bf16.msra.mxu0 %v11031_v35  ;;  %v11319_v35 = vrot.slane %v78_v33, %v152_v32  ;;  %v1664_v39 = vsel %vm8871_vm7, 1, %v13225_v0  ;;  %v11536_v0 = vld [vmem:[#allocation8 + $0xa8] ss:$16 sps:$4 sm:$0xff]  }
  0xa8   :  { %1565 = vmatprep.subr.bf16.mxu0 %v11033_v38  ;;  %1605 = vmatpush1.bf16.msra.mxu1 %v11036_v41  ;;  %v11326_v38 = vrot.slane %v78_v33, %v156_v34  ;;  %13451 = vst [vmem:[#allocation34_spill] sm:$0xff] %v11536_v0 }
  0xa9   :  { %1606 = vmatprep.subr.bf16.mxu1 %v11038_v43  ;;  %13434 = vst [vmem:[#allocation17_spill] sm:$0xff] %v11319_v35  ;;  %1666 = vperm.xlu1 %9893, %v1664_v39  }
  0xab   :  { %1566 = vmatpush1.bf16.msra.mxu0 %v11035_v40  ;;  %v164_v40 = vsub.s32 3, %v11310_v31 }
  0xac   :  { %1567 = vmatprep.subr.bf16.mxu0 %v11037_v42  ;;  %1607 = vmatpush1.bf16.msra.mxu1 %v11040_v45 }
  0xad   :  { %1608 = vmatprep.subr.bf16.mxu1 %v11042_v47  ;;  %2183 = vperm.xlu1 %9893, %v11298_v5  }
  0xaf   :  { %1568 = vmatpush1.bf16.msra.mxu0 %v11039_v44 }
  0xb0   :  { %1569 = vmatprep.subr.bf16.mxu0 %v11041_v46  ;;  %1609 = vmatpush1.bf16.msra.mxu1 %v11044_v50 }
  0xb1   :  { %1610 = vmatprep.subr.bf16.mxu1 %v11046_v52  ;;  %3217 = vperm.xlu1 %9893, %v11293_v63  }
  0xb3   :  { %1570 = vmatpush1.bf16.msra.mxu0 %v11043_v49  ;;  %v11334_v49 = vrot.slane %v78_v33, %v164_v40 }
  0xb4   :  { %1571 = vmatprep.subr.bf16.mxu0 %v11045_v51  ;;  %1611 = vmatpush1.bf16.msra.mxu1 %v11048_v55  ;;  %v160_v51 = vsub.s32 2, %v11310_v31  ;;  %v11091_v31 = vld [vmem:[#allocation8 + $0x288] ss:$16 sps:$4 sm:$0xff]  }
  0xb5   :  { %1612 = vmatprep.subr.bf16.mxu1 %v11050_v57  ;;  %4251 = vperm.xlu1 %9893, %v11288_v58  }
  0xb6   :  { %v11342_v57 = vrot.slane %v78_v33, %v160_v51  ;;  %v10095_v33 = vld [vmem:[#allocation8 + $0x240] ss:$16 sps:$4 sm:$0xff]  }
  0xb7   :  { %1572 = vmatpush1.bf16.msra.mxu0 %v11047_v54 }
  0xb8   :  { %1573 = vmatprep.subr.bf16.mxu0 %v11049_v56  ;;  %1613 = vmatpush1.bf16.msra.mxu1 %v11052_v60 }
  0xb9   :  { %1614 = vmatprep.subr.bf16.mxu1 %v11054_v62  ;;  %5285 = vperm.xlu1 %9893, %v11283_v53  }
  0xbb   :  { %1574 = vmatpush1.bf16.msra.mxu0 %v11051_v59 }
  0xbc   :  { %1575 = vmatprep.subr.bf16.mxu0 %v11053_v61  ;;  %1615 = vmatpush1.bf16.msra.mxu1 %v11056_v2 }
  0xbd   :  { %1616 = vmatprep.subr.bf16.mxu1 %v11058_v6  ;;  %6319 = vperm.xlu1 %9893, %v11278_v48  }
  0xbf   :  { %1576 = vmatpush1.bf16.msra.mxu0 %v11055_v1 }
  0xc0   :  { %1577 = vmatprep.subr.bf16.mxu0 %v11057_v3  ;;  %1617 = vmatpush1.bf16.msra.mxu1 %v11060_v8  ;;  %v609_v8 = vpop.permute.xlu0 %608 }
  0xc1   :  { %1618 = vmatprep.subr.bf16.mxu1 %v11062_v10  ;;  %7353 = vperm.xlu1 %9893, %v1664_v39   ;;  %vm610_vm8 = vcmp.eq.s32.totalorder %v609_v8, 1  ;;  %v11392_v8 = vld [vmem:[#allocation8 + $0x2c0] ss:$16 sps:$4 sm:$0xff]  }
  0xc3   :  { %1578 = vmatpush1.bf16.msra.mxu0 %v11059_v7 }
  0xc4   :  { %1579 = vmatprep.subr.bf16.mxu0 %v11061_v9  ;;  %1619 = vmatpush1.bf16.msra.mxu1 %v11064_v12 }
  0xc5   :  { %1620 = vmatprep.subr.bf16.mxu1 %v11066_v14  ;;  %8385 = vperm.xlu1 %9893, %v11264_v36  }
  0xc7   :  { %1580 = vmatpush1.bf16.msra.mxu0 %v11063_v11 }
  0xc8   :  { %1581 = vmatprep.subr.bf16.mxu0 %v11065_v13  ;;  %1621 = vmatpush1.bf16.msra.mxu1 %v11068_v16 }
  0xc9   :  { %1622 = vmatprep.subr.bf16.mxu1 %v11070_v18  ;;  %v10094_v18 = vld [vmem:[#allocation8 + $0x224] ss:$16 sps:$4 sm:$0xff]  }
  0xcb   :  { %1582 = vmatpush1.bf16.msra.mxu0 %v11067_v15 }
  0xcc   :  { %1583 = vmatprep.subr.bf16.mxu0 %v11069_v17  ;;  %1623 = vmatpush1.bf16.msra.mxu1 %v11072_v20  ;;  %v8659_v17 = vld [vmem:[%s13220_s4 + $0x4] sm:$0xf]  ;;  %v11082_v20 = vld [vmem:[#allocation8 + $0x200] ss:$16 sps:$4 sm:$0xff]  }
  0xcd   :  { %1624 = vmatprep.subr.bf16.mxu1 %v11074_v22  ;;  %v11364_v22 = vrot.slane %v8659_v17, %v156_v34  ;;  %v11086_v34 = vld [vmem:[#allocation8 + $0x24c] ss:$16 sps:$4 sm:$0xff]  }
  0xcf   :  { %1584 = vmatpush1.bf16.msra.mxu0 %v11071_v19  ;;  %v11360_v19 = vrot.slane %v8659_v17, %v152_v32  ;;  %v11085_v32 = vld [vmem:[#allocation8 + $0x228] ss:$16 sps:$4 sm:$0xff]  }
  0xd0   :  { %1585 = vmatprep.subr.bf16.mxu0 %v11073_v21  ;;  %1625 = vmatpush1.bf16.msra.mxu1 %v11076_v24  ;;  %v11083_v21 = vld [vmem:[#allocation8 + $0x208] ss:$16 sps:$4 sm:$0xff]   ;;  %v11084_v24 = vld [vmem:[#allocation8 + $0x22c] ss:$16 sps:$4 sm:$0xff]  }
  0xd1   :  { %1626 = vmatprep.subr.bf16.mxu1 %v11078_v26 }
  0xd3   :  { %1586 = vmatpush1.bf16.msra.mxu0 %v11075_v23  ;;  %v10092_v23 = vld [vmem:[#allocation8 + $0x220] ss:$16 sps:$4 sm:$0xff]  }
  0xd4   :  { %2072 = vmatprep.subr.bf16.mxu0 %v11077_v25  ;;  %1627 = vmatpush1.bf16.msra.mxu1 %v11079_v27  ;;  %v10097_v25 = vld [vmem:[#allocation8 + $0x244] ss:$16 sps:$4 sm:$0xff]  }
  0xd5   :  { %2113 = vmatprep.subr.bf16.mxu1 %v11080_v28 }
 0x129   :  { %v531_v41 = vpop.f32.mrb[0].mxu0 }
 0x12a   :  { %v532_v42 = vadd.f32 %v531_v41, %v11319_v35  ;;  %v533_v43 = vpop.f32.mrb[1].mxu0  ;;  %v572_v52 = vpop.f32.mrb[0].mxu1  ;;  %v10100_v41 = vld [vmem:[#allocation8 + $0x264] ss:$16 sps:$4 sm:$0xff]  }
 0x12b   :  { %v534_v44 = vadd.f32 %v533_v43, %v11326_v38  ;;  %v535_v45 = vpop.f32.mrb[2].mxu0  ;;  %v574_v54 = vpop.f32.mrb[1].mxu1  ;;  %v573_v5 = vadd.f32 %v572_v52, %v11342_v57 }
 0x12c   :  { %v8726_v46 = vmul.f32 -1.442695, %v532_v42  ;;  %v536_v47 = vpop.f32.mrb[3].mxu0  ;;  %v575_v55 = vadd.f32 %v574_v54, %v11334_v49  ;;  %v576_v56 = vpop.f32.mrb[2].mxu1  ;;  %v11370_v42 = vrot.slane %v8659_v17, %v164_v40  ;;  %v11087_v45 = vld [vmem:[#allocation8 + $0x248] ss:$16 sps:$4 sm:$0xff]   ;;  %v11377_v40 = vrot.slane %v8659_v17, %v160_v51 }
 0x12d   :  { %v8727_v50 = vmul.f32 -1.442695, %v534_v44  ;;  %v577_v59 = vpop.f32.mrb[3].mxu1  ;;  %v11373_v54 = vld [vmem:[#allocation8 + $0x284] ss:$16 sps:$4 sm:$0xff]  }
 0x12e   :  { %10755 = vpow2.f32 %v8726_v46  ;;  %v8728_v60 = vmul.f32 -1.442695, %v575_v55  ;;  %v10098_v46 = vld [vmem:[#allocation8 + $0x260] ss:$16 sps:$4 sm:$0xff]   ;;  %v11089_v59 = vld [vmem:[#allocation8 + $0x268] ss:$16 sps:$4 sm:$0xff]  }
 0x12f   :  { %10757 = vpow2.f32 %v8727_v50  ;;  %v11088_v50 = vld [vmem:[#allocation8 + $0x26c] ss:$16 sps:$4 sm:$0xff]   ;;  %v11386_v51 = vld [vmem:[#allocation8 + $0x2a0] ss:$16 sps:$4 sm:$0xff]  }
 0x130   :  { %10759 = vpow2.f32 %v8728_v60  ;;  %v11379_v60 = vld [vmem:[#allocation8 + $0x280] ss:$16 sps:$4 sm:$0xff]  }
 0x131   :  { %10761 = vtanh.f32 %v573_v5  ;;  %v11404_v17 = vld [vmem:[#allocation8 + $0x300] ss:$16 sps:$4 sm:$0xff]  }
 0x138   :  { %v10756_v61 = vpop.eup %10755 }
 0x139   :  { %v10758_v62 = vpop.eup %10757  ;;  %v582_v1 = vadd.f32 1.0, %v10756_v61  ;;  %v11090_v61 = vld [vmem:[#allocation8 + $0x28c] ss:$16 sps:$4 sm:$0xff]  }
 0x13a   :  { %v588_v2 = vadd.f32 1.0, %v10758_v62  ;;  %v10760_v63 = vpop.eup %10759  ;;  %v11382_v62 = vld [vmem:[#allocation8 + $0x2a4] ss:$16 sps:$4 sm:$0xff]  }
 0x13b   :  { %10763 = vrcp.f32 %v582_v1  ;;  %v10762_v3 = vpop.eup %10761  ;;  %v595_v4 = vadd.f32 1.0, %v10760_v63  ;;  %v11092_v63 = vld [vmem:[#allocation8 + $0x2ac] ss:$16 sps:$4 sm:$0xff]  }
 0x13c   :  { %10765 = vrcp.f32 %v588_v2 }
 0x13d   :  { %10767 = vrcp.f32 %v595_v4 }
 0x145   :  { %v10764_v58 = vpop.eup %10763 }
 0x146   :  { %v10766_v6 = vpop.eup %10765  ;;  %v600_v7 = vmul.f32 %v10764_v58, %v10762_v3  ;;  %v11389_v3 = vld [vmem:[#allocation8 + $0x2c4] ss:$16 sps:$4 sm:$0xff]  }
 0x147   :  { %v599_v9 = vmul.f32 0.0, %v10766_v6  ;;  %v10768_v11 = vpop.eup %10767 }
 0x149   :  { %v601_v53 = vadd.f32 %v600_v7, %v599_v9  ;;  %v11093_v7 = vld [vmem:[#allocation8 + $0x2a8] ss:$16 sps:$4 sm:$0xff]   ;;  %v11094_v9 = vld [vmem:[#allocation8 + $0x2cc] ss:$16 sps:$4 sm:$0xff]  }
 0x14b   :  { %10769 = vtanh.f32 %v601_v53  ;;  %v11349_v10 = vsel %vm610_vm8, %v601_v53, 0.0  ;;  %v11395_v53 = vld [vmem:[#allocation8 + $0x2e4] ss:$16 sps:$4 sm:$0xff]  }
 0x155   :  { %v10770_v12 = vpop.eup %10769 }
 0x156   :  { %v603_v48 = vmul.f32 %v10770_v12, %v10768_v11  ;;  %v11095_v11 = vld [vmem:[#allocation8 + $0x2c8] ss:$16 sps:$4 sm:$0xff]   ;;  %v11398_v12 = vld [vmem:[#allocation8 + $0x2e0] ss:$16 sps:$4 sm:$0xff]  }
 0x158   :  { %v11351_v13 = vsel %vm610_vm8, %v603_v48, 0.0  ;;  %v11096_v48 = vld [vmem:[#allocation8 + $0x2ec] ss:$16 sps:$4 sm:$0xff]  }
 0x159   :  { %v616_v36 = vpack.c.bf16 %v11351_v13, %v11351_v13 }
 0x15b   :  { %617 = vst [vmem:[#allocation2 + $0x4] sm:$0xf] %v616_v36  ;;  %v11401_v36 = vld [vmem:[#allocation8 + $0x304] ss:$16 sps:$4 sm:$0xff]  }
 0x162   :  { %v1163_v14 = vld [vmem:[#allocation2] sm:$0xff] }
 0x163   :  { %v8803_v15 = vcombine.high %v1163_v14, %v1163_v14  ;;  %v8802_v16 = vcombine.low %v1163_v14, %v1163_v14 }
 0x165   :  { %1587 = vmatprep.mubr.bf16.mxu0 %v8803_v15  ;;  %1628 = vmatprep.mubr.bf16.mxu1 %v8803_v15 }
 0x166   :  { %1588 = vmatmul.mubr.bf16.vlgmr.msra.gmra.mrb[8].mxu0 %v8802_v16  ;;  %1629 = vmatmul.mubr.bf16.vlgmr.msra.gmra.mrb[8].mxu1 %v8802_v16  ;;  %v11097_v16 = vld [vmem:[#allocation8 + $0x2e8] ss:$16 sps:$4 sm:$0xff]  }
 0x167   :  { %2073 = vmatpush1.bf16.msra.mxu0 %v11082_v20  ;;  %2114 = vmatpush1.bf16.msra.mxu1 %v11083_v21  ;;  %v11407_v20 = vld [vmem:[#allocation8 + $0x324] ss:$16 sps:$4 sm:$0xff]  }
 0x168   :  { %2074 = vmatprep.subr.bf16.mxu0 %v10094_v18  ;;  %2115 = vmatprep.subr.bf16.mxu1 %v11084_v24  ;;  %v11098_v18 = vld [vmem:[#allocation8 + $0x30c] ss:$16 sps:$4 sm:$0xff]  }
 0x169   :  { %v1072_v26 = vpop.f32.mrb[4].mxu0 }
 0x16a   :  { %v1073_v27 = vadd.f32 %v1072_v26, %v11360_v19  ;;  %v1074_v28 = vpop.f32.mrb[5].mxu0  ;;  %v1113_v44 = vpop.f32.mrb[4].mxu1 }
 0x16b   :  { %v1075_v29 = vadd.f32 %v1074_v28, %v11364_v22  ;;  %v1076_v30 = vpop.f32.mrb[6].mxu0  ;;  %2075 = vmatpush1.bf16.msra.mxu0 %v10092_v23  ;;  %2116 = vmatpush1.bf16.msra.mxu1 %v11085_v32  ;;  %v1115_v47 = vpop.f32.mrb[5].mxu1  ;;  %v1114_v1 = vadd.f32 %v1113_v44, %v11377_v40  ;;  %v11410_v28 = vld [vmem:[#allocation8 + $0x320] ss:$16 sps:$4 sm:$0xff]   ;;  %v11103_v44 = vld [vmem:[#allocation8 + $0x348] ss:$16 sps:$4 sm:$0xff]  }
 0x16c   :  { %v8797_v37 = vmul.f32 -1.442695, %v1073_v27  ;;  %v1077_v39 = vpop.f32.mrb[7].mxu0  ;;  %2076 = vmatprep.subr.bf16.mxu0 %v10097_v25  ;;  %2117 = vmatprep.subr.bf16.mxu1 %v11086_v34  ;;  %v1116_v52 = vadd.f32 %v1115_v47, %v11370_v42  ;;  %v1117_v55 = vpop.f32.mrb[6].mxu1  ;;  %v11099_v27 = vld [vmem:[#allocation8 + $0x308] ss:$16 sps:$4 sm:$0xff]  }
 0x16d   :  { %v8798_v43 = vmul.f32 -1.442695, %v1075_v29  ;;  %v1118_v56 = vpop.f32.mrb[7].mxu1  ;;  %v11100_v29 = vld [vmem:[#allocation8 + $0x32c] ss:$16 sps:$4 sm:$0xff]   ;;  %v1150_v32 = vpop.permute.xlu0 %1149 }
 0x16e   :  { %10771 = vpow2.f32 %v8797_v37  ;;  %v8799_v5 = vmul.f32 -1.442695, %v1116_v52  ;;  %v11413_v30 = vld [vmem:[#allocation8 + $0x344] ss:$16 sps:$4 sm:$0xff]   ;;  %vm1151_vm9 = vcmp.eq.s32.totalorder %v1150_v32, 1 }
 0x16f   :  { %10773 = vpow2.f32 %v8798_v43  ;;  %2077 = vmatpush1.bf16.msra.mxu0 %v10095_v33  ;;  %2118 = vmatpush1.bf16.msra.mxu1 %v11087_v45  ;;  %v11101_v39 = vld [vmem:[#allocation8 + $0x328] ss:$16 sps:$4 sm:$0xff]   ;;  %v11419_v34 = vld [vmem:[#allocation8 + $0x340] ss:$16 sps:$4 sm:$0xff]   ;;  %v11422_v43 = vld [vmem:[#allocation8 + $0x364] ss:$16 sps:$4 sm:$0xff]  }
 0x170   :  { %2078 = vmatprep.subr.bf16.mxu0 %v10100_v41  ;;  %2119 = vmatprep.subr.bf16.mxu1 %v11088_v50  ;;  %10775 = vpow2.f32 %v8799_v5  ;;  %v11102_v41 = vld [vmem:[#allocation8 + $0x34c] ss:$16 sps:$4 sm:$0xff]   ;;  %v11425_v45 = vld [vmem:[#allocation8 + $0x360] ss:$16 sps:$4 sm:$0xff]   ;;  %v11428_v47 = vld [vmem:[#allocation8 + $0x384] ss:$16 sps:$4 sm:$0xff]  }
 0x171   :  { %10777 = vtanh.f32 %v1114_v1  ;;  %v11105_v52 = vld [vmem:[#allocation8 + $0x368] ss:$16 sps:$4 sm:$0xff]   ;;  %v11431_v55 = vld [vmem:[#allocation8 + $0x380] ss:$16 sps:$4 sm:$0xff]   ;;  %v11106_v56 = vld [vmem:[#allocation8 + $0x38c] ss:$16 sps:$4 sm:$0xff]  }
 0x172   :  { %v11107_v1 = vld [vmem:[#allocation8 + $0x388] ss:$16 sps:$4 sm:$0xff]   ;;  %v11484_v32 = vld [vmem:[#allocation8 + $0x2c] ss:$16 sps:$4 sm:$0xff]  }
 0x173   :  { %2079 = vmatpush1.bf16.msra.mxu0 %v10098_v46  ;;  %2120 = vmatpush1.bf16.msra.mxu1 %v11089_v59  ;;  %v11104_v46 = vld [vmem:[#allocation8 + $0x36c] ss:$16 sps:$4 sm:$0xff]   ;;  %v11434_v59 = vld [vmem:[#allocation8 + $0x3a4] ss:$16 sps:$4 sm:$0xff]  }
 0x174   :  { %2080 = vmatprep.subr.bf16.mxu0 %v11373_v54  ;;  %2121 = vmatprep.subr.bf16.mxu1 %v11090_v61 }
 0x177   :  { %2081 = vmatpush1.bf16.msra.mxu0 %v11379_v60  ;;  %2122 = vmatpush1.bf16.msra.mxu1 %v11091_v31  ;;  %v11437_v31 = vld [vmem:[#allocation8 + $0x3a0] ss:$16 sps:$4 sm:$0xff]  }
 0x178   :  { %v10772_v2 = vpop.eup %10771  ;;  %2082 = vmatprep.subr.bf16.mxu0 %v11382_v62  ;;  %2123 = vmatprep.subr.bf16.mxu1 %v11092_v63  ;;  %v11108_v63 = vld [vmem:[#allocation8 + $0x3ac] ss:$16 sps:$4 sm:$0xff]  }
 0x179   :  { %v10774_v58 = vpop.eup %10773  ;;  %v1123_v4 = vadd.f32 1.0, %v10772_v2 }
 0x17a   :  { %v1129_v6 = vadd.f32 1.0, %v10774_v58  ;;  %v10776_v14 = vpop.eup %10775  ;;  %v11443_v58 = vld [vmem:[#allocation8 + $0x3c4] ss:$16 sps:$4 sm:$0xff]  }
 0x17b   :  { %10779 = vrcp.f32 %v1123_v4  ;;  %2083 = vmatpush1.bf16.msra.mxu0 %v11386_v51  ;;  %2124 = vmatpush1.bf16.msra.mxu1 %v11093_v7  ;;  %v10778_v15 = vpop.eup %10777  ;;  %v1136_v23 = vadd.f32 1.0, %v10776_v14  ;;  %v11445_v4 = vld [vmem:[#allocation8 + $0x3cc] ss:$16 sps:$4 sm:$0xff]   ;;  %v11109_v7 = vld [vmem:[#allocation8 + $0x3a8] ss:$16 sps:$4 sm:$0xff]  }
 0x17c   :  { %10781 = vrcp.f32 %v1129_v6  ;;  %2084 = vmatprep.subr.bf16.mxu0 %v11389_v3  ;;  %2125 = vmatprep.subr.bf16.mxu1 %v11094_v9  ;;  %v11450_v9 = vld [vmem:[#allocation8 + $0x3c0] ss:$16 sps:$4 sm:$0xff]   ;;  %v11458_v14 = vld [vmem:[#allocation8 + $0x3ec] ss:$16 sps:$4 sm:$0xff]  }
 0x17d   :  { %10783 = vrcp.f32 %v1136_v23 }
 0x17f   :  { %2085 = vmatpush1.bf16.msra.mxu0 %v11392_v8  ;;  %2126 = vmatpush1.bf16.msra.mxu1 %v11095_v11  ;;  %v11452_v11 = vld [vmem:[#allocation8 + $0x3c8] ss:$16 sps:$4 sm:$0xff]  }
 0x180   :  { %2086 = vmatprep.subr.bf16.mxu0 %v11395_v53  ;;  %2127 = vmatprep.subr.bf16.mxu1 %v11096_v48  ;;  %v11456_v48 = vld [vmem:[#allocation8 + $0x3e4] ss:$16 sps:$4 sm:$0xff]  }
 0x183   :  { %2087 = vmatpush1.bf16.msra.mxu0 %v11398_v12  ;;  %2128 = vmatpush1.bf16.msra.mxu1 %v11097_v16  ;;  %v11464_v16 = vld [vmem:[#allocation8 + $0x3e8] ss:$16 sps:$4 sm:$0xff]  }
 0x184   :  { %2088 = vmatprep.subr.bf16.mxu0 %v11401_v36  ;;  %2129 = vmatprep.subr.bf16.mxu1 %v11098_v18  ;;  %v11468_v18 = vld [vmem:[#allocation8 + $0x4] ss:$16 sps:$4 sm:$0xff]  }
 0x185   :  { %v10780_v21 = vpop.eup %10779 }
 0x186   :  { %v10782_v24 = vpop.eup %10781  ;;  %v1141_v25 = vmul.f32 %v10780_v21, %v10778_v15  ;;  %v11462_v15 = vld [vmem:[#allocation8 + $0x3e0] ss:$16 sps:$4 sm:$0xff]   ;;  %v11470_v21 = vld [vmem:[#allocation8 + $0xc] ss:$16 sps:$4 sm:$0xff]  }
 0x187   :  { %v1140_v26 = vmul.f32 0.0, %v10782_v24  ;;  %2089 = vmatpush1.bf16.msra.mxu0 %v11404_v17  ;;  %2130 = vmatpush1.bf16.msra.mxu1 %v11099_v27  ;;  %v10784_v50 = vpop.eup %10783  ;;  %v11476_v27 = vld [vmem:[#allocation8 + $0x8] ss:$16 sps:$4 sm:$0xff]  }
 0x188   :  { %2090 = vmatprep.subr.bf16.mxu0 %v11407_v20  ;;  %2131 = vmatprep.subr.bf16.mxu1 %v11100_v29  ;;  %v11482_v29 = vld [vmem:[#allocation8 + $0x24] ss:$16 sps:$4 sm:$0xff]  }
 0x189   :  { %v1142_v33 = vadd.f32 %v1141_v25, %v1140_v26  ;;  %v11474_v26 = vld [vmem:[#allocation8] ss:$16 sps:$4 sm:$0xff]  }
 0x18b   :  { %10785 = vtanh.f32 %v1142_v33  ;;  %v11416_v37 = vsel %vm1151_vm9, %v1142_v33, 0.0  ;;  %2091 = vmatpush1.bf16.msra.mxu0 %v11410_v28  ;;  %2132 = vmatpush1.bf16.msra.mxu1 %v11101_v39  ;;  %v11486_v33 = vld [vmem:[#allocation8 + $0x20] ss:$16 sps:$4 sm:$0xff]   ;;  %v11488_v39 = vld [vmem:[#allocation8 + $0x28] ss:$16 sps:$4 sm:$0xff]  }
 0x18c   :  { %2092 = vmatprep.subr.bf16.mxu0 %v11413_v30  ;;  %2133 = vmatprep.subr.bf16.mxu1 %v11102_v41  ;;  %13435 = vst [vmem:[#allocation18_spill] sm:$0xff] %v11488_v39  ;;  %v11494_v41 = vld [vmem:[#allocation8 + $0x44] ss:$16 sps:$4 sm:$0xff]  }
 0x18d   :  { %13436 = vst [vmem:[#allocation19_spill] sm:$0xff] %v11494_v41 }
 0x18f   :  { %2093 = vmatpush1.bf16.msra.mxu0 %v11419_v34  ;;  %2134 = vmatpush1.bf16.msra.mxu1 %v11103_v44  ;;  %v11496_v44 = vld [vmem:[#allocation8 + $0x4c] ss:$16 sps:$4 sm:$0xff]  }
 0x190   :  { %2094 = vmatprep.subr.bf16.mxu0 %v11422_v43  ;;  %2135 = vmatprep.subr.bf16.mxu1 %v11104_v46  ;;  %13437 = vst [vmem:[#allocation20_spill] sm:$0xff] %v11496_v44  ;;  %v11498_v46 = vld [vmem:[#allocation8 + $0x40] ss:$16 sps:$4 sm:$0xff]  }
 0x191   :  { %13438 = vst [vmem:[#allocation21_spill] sm:$0xff] %v11498_v46 }
 0x193   :  { %2095 = vmatpush1.bf16.msra.mxu0 %v11425_v45  ;;  %2136 = vmatpush1.bf16.msra.mxu1 %v11105_v52  ;;  %v11506_v52 = vld [vmem:[#allocation8 + $0x64] ss:$16 sps:$4 sm:$0xff]  }
 0x194   :  { %2096 = vmatprep.subr.bf16.mxu0 %v11428_v47  ;;  %2137 = vmatprep.subr.bf16.mxu1 %v11106_v56  ;;  %13440 = vst [vmem:[#allocation23_spill] sm:$0xff] %v11506_v52  ;;  %v11508_v56 = vld [vmem:[#allocation8 + $0x6c] ss:$16 sps:$4 sm:$0xff]  }
 0x195   :  { %v10786_v5 = vpop.eup %10785  ;;  %13441 = vst [vmem:[#allocation24_spill] sm:$0xff] %v11508_v56 }
 0x196   :  { %v1144_v61 = vmul.f32 %v10786_v5, %v10784_v50  ;;  %v11500_v50 = vld [vmem:[#allocation8 + $0x48] ss:$16 sps:$4 sm:$0xff]   ;;  %v11510_v5 = vld [vmem:[#allocation8 + $0x60] ss:$16 sps:$4 sm:$0xff]  }
 0x197   :  { %2097 = vmatpush1.bf16.msra.mxu0 %v11431_v55  ;;  %2138 = vmatpush1.bf16.msra.mxu1 %v11107_v1  ;;  %13439 = vst [vmem:[#allocation22_spill] sm:$0xff] %v11500_v50  ;;  %13442 = vst [vmem:[#allocation25_spill] sm:$0xff] %v11510_v5  ;;  %v11518_v1 = vld [vmem:[#allocation8 + $0x84] ss:$16 sps:$4 sm:$0xff]  }
 0x198   :  { %v11440_v2 = vsel %vm1151_vm9, %v1144_v61, 0.0  ;;  %2098 = vmatprep.subr.bf16.mxu0 %v11434_v59  ;;  %2139 = vmatprep.subr.bf16.mxu1 %v11108_v63  ;;  %v11512_v61 = vld [vmem:[#allocation8 + $0x68] ss:$16 sps:$4 sm:$0xff]   ;;  %13444 = vst [vmem:[#allocation27_spill] sm:$0xff] %v11518_v1  ;;  %v11520_v63 = vld [vmem:[#allocation8 + $0x8c] ss:$16 sps:$4 sm:$0xff]  }
 0x199   :  { %v1157_v6 = vpack.c.bf16 %v11440_v2, %v11440_v2  ;;  %13443 = vst [vmem:[#allocation26_spill] sm:$0xff] %v11512_v61  ;;  %13445 = vst [vmem:[#allocation28_spill] sm:$0xff] %v11520_v63  ;;  %vm8613_vm9 = vcmask 48128  }
 0x19b   :  { %1158 = vst [vmem:[#allocation3 + $0x4] sm:$0xf] %v1157_v6  ;;  %2099 = vmatpush1.bf16.msra.mxu0 %v11437_v31  ;;  %2140 = vmatpush1.bf16.msra.mxu1 %v11109_v7  ;;  %v11522_v6 = vld [vmem:[#allocation8 + $0x80] ss:$16 sps:$4 sm:$0xff]   ;;  %v11524_v7 = vld [vmem:[#allocation8 + $0x88] ss:$16 sps:$4 sm:$0xff]  }
 0x19c   :  { %2100 = vmatprep.subr.bf16.mxu0 %v11443_v58  ;;  %2141 = vmatprep.subr.bf16.mxu1 %v11445_v4  ;;  %13446 = vst [vmem:[#allocation29_spill] sm:$0xff] %v11522_v6  ;;  %13447 = vst [vmem:[#allocation30_spill] sm:$0xff] %v11524_v7 }
 0x19f   :  { %2101 = vmatpush1.bf16.msra.mxu0 %v11450_v9  ;;  %2142 = vmatpush1.bf16.msra.mxu1 %v11452_v11 }
 0x1a0   :  { %2102 = vmatprep.subr.bf16.mxu0 %v11456_v48  ;;  %2143 = vmatprep.subr.bf16.mxu1 %v11458_v14 }
 0x1a2   :  { %v1680_v23 = vld [vmem:[#allocation3] sm:$0xff] }
 0x1a3   :  { %2103 = vmatpush1.bf16.msra.mxu0 %v11462_v15  ;;  %2144 = vmatpush1.bf16.msra.mxu1 %v11464_v16  ;;  %v8874_v24 = vcombine.high %v1680_v23, %v1680_v23  ;;  %v8873_v25 = vcombine.low %v1680_v23, %v1680_v23  ;;  %v11530_v23 = vld [vmem:[#allocation8 + $0xa4] ss:$16 sps:$4 sm:$0xff]  }
 0x1a4   :  { %2589 = vmatprep.subr.bf16.mxu0 %v11468_v18  ;;  %2630 = vmatprep.subr.bf16.mxu1 %v11470_v21  ;;  %13448 = vst [vmem:[#allocation31_spill] sm:$0xff] %v11530_v23 }
 0x1a5   :  { %2104 = vmatprep.mubr.bf16.mxu0 %v8874_v24  ;;  %2145 = vmatprep.mubr.bf16.mxu1 %v8874_v24  ;;  %v11532_v24 = vld [vmem:[#allocation8 + $0xac] ss:$16 sps:$4 sm:$0xff]  }
 0x1a6   :  { %2105 = vmatmul.mubr.bf16.vlgmr.msra.gmra.mrb[12].mxu0 %v8873_v25  ;;  %2146 = vmatmul.mubr.bf16.vlgmr.msra.gmra.mrb[12].mxu1 %v8873_v25  ;;  %13449 = vst [vmem:[#allocation32_spill] sm:$0xff] %v11532_v24  ;;  %v11534_v25 = vld [vmem:[#allocation8 + $0xa0] ss:$16 sps:$4 sm:$0xff]  }
 0x1a7   :  { %2590 = vmatpush1.bf16.msra.mxu0 %v11474_v26  ;;  %2631 = vmatpush1.bf16.msra.mxu1 %v11476_v27  ;;  %13450 = vst [vmem:[#allocation33_spill] sm:$0xff] %v11534_v25 }
 0x1a8   :  { %2591 = vmatprep.subr.bf16.mxu0 %v11482_v29  ;;  %2632 = vmatprep.subr.bf16.mxu1 %v11484_v32 }
 0x1ab   :  { %2592 = vmatpush1.bf16.msra.mxu0 %v11486_v33  ;;  %2633 = vmatpush1.bf16.msra.mxu1 %v11488_v39 }
 0x1ac   :  { %2593 = vmatprep.subr.bf16.mxu0 %v11494_v41  ;;  %2634 = vmatprep.subr.bf16.mxu1 %v11496_v44 }
 0x1af   :  { %2594 = vmatpush1.bf16.msra.mxu0 %v11498_v46  ;;  %2635 = vmatpush1.bf16.msra.mxu1 %v11500_v50 }
 0x1b0   :  { %2595 = vmatprep.subr.bf16.mxu0 %v11506_v52  ;;  %2636 = vmatprep.subr.bf16.mxu1 %v11508_v56 }
 0x1b3   :  { %2596 = vmatpush1.bf16.msra.mxu0 %v11510_v5  ;;  %2637 = vmatpush1.bf16.msra.mxu1 %v11512_v61  ;;  %v11636_v61 = vld [vmem:[#allocation8 + $0x1c0] ss:$16 sps:$4 sm:$0xff]  }
 0x1b4   :  { %2597 = vmatprep.subr.bf16.mxu0 %v11518_v1  ;;  %2638 = vmatprep.subr.bf16.mxu1 %v11520_v63  ;;  %v11542_v63 = vld [vmem:[#allocation8 + $0xc4] ss:$16 sps:$4 sm:$0xff]   ;;  %v11548_v1 = vld [vmem:[#allocation8 + $0xc8] ss:$16 sps:$4 sm:$0xff]   ;;  %13484 = vst [vmem:[#allocation67_spill] sm:$0xff] %v11636_v61 }
 0x1b5   :  { %13452 = vst [vmem:[#allocation35_spill] sm:$0xff] %v11542_v63  ;;  %13455 = vst [vmem:[#allocation38_spill] sm:$0xff] %v11548_v1 }
 0x1b7   :  { %2598 = vmatpush1.bf16.msra.mxu0 %v11522_v6  ;;  %2639 = vmatpush1.bf16.msra.mxu1 %v11524_v7  ;;  %v11544_v6 = vld [vmem:[#allocation8 + $0xcc] ss:$16 sps:$4 sm:$0xff]   ;;  %v11546_v7 = vld [vmem:[#allocation8 + $0xc0] ss:$16 sps:$4 sm:$0xff]  }
 0x1b8   :  { %2599 = vmatprep.subr.bf16.mxu0 %v11530_v23  ;;  %2640 = vmatprep.subr.bf16.mxu1 %v11532_v24  ;;  %13453 = vst [vmem:[#allocation36_spill] sm:$0xff] %v11544_v6  ;;  %13454 = vst [vmem:[#allocation37_spill] sm:$0xff] %v11546_v7  ;;  %v11554_v24 = vld [vmem:[#allocation8 + $0xe4] ss:$16 sps:$4 sm:$0xff]   ;;  %v11560_v23 = vld [vmem:[#allocation8 + $0xe8] ss:$16 sps:$4 sm:$0xff]  }
 0x1b9   :  { %13456 = vst [vmem:[#allocation39_spill] sm:$0xff] %v11554_v24  ;;  %13459 = vst [vmem:[#allocation42_spill] sm:$0xff] %v11560_v23 }
 0x1bb   :  { %2600 = vmatpush1.bf16.msra.mxu0 %v11534_v25  ;;  %2641 = vmatpush1.bf16.msra.mxu1 %v11536_v0  ;;  %v11556_v25 = vld [vmem:[#allocation8 + $0xec] ss:$16 sps:$4 sm:$0xff]   ;;  %v11558_v0 = vld [vmem:[#allocation8 + $0xe0] ss:$16 sps:$4 sm:$0xff]  }
 0x1bc   :  { %2601 = vmatprep.subr.bf16.mxu0 %v11542_v63  ;;  %2642 = vmatprep.subr.bf16.mxu1 %v11544_v6  ;;  %13457 = vst [vmem:[#allocation40_spill] sm:$0xff] %v11556_v25  ;;  %13458 = vst [vmem:[#allocation41_spill] sm:$0xff] %v11558_v0  ;;  %v11566_v6 = vld [vmem:[#allocation8 + $0x104] ss:$16 sps:$4 sm:$0xff]   ;;  %v11572_v63 = vld [vmem:[#allocation8 + $0x108] ss:$16 sps:$4 sm:$0xff]  }
 0x1bd   :  { %13460 = vst [vmem:[#allocation43_spill] sm:$0xff] %v11566_v6  ;;  %13463 = vst [vmem:[#allocation46_spill] sm:$0xff] %v11572_v63 }
 0x1bf   :  { %2602 = vmatpush1.bf16.msra.mxu0 %v11546_v7  ;;  %2643 = vmatpush1.bf16.msra.mxu1 %v11548_v1  ;;  %v11568_v7 = vld [vmem:[#allocation8 + $0x10c] ss:$16 sps:$4 sm:$0xff]   ;;  %v11570_v1 = vld [vmem:[#allocation8 + $0x100] ss:$16 sps:$4 sm:$0xff]  }
 0x1c0   :  { %2603 = vmatprep.subr.bf16.mxu0 %v11554_v24  ;;  %2644 = vmatprep.subr.bf16.mxu1 %v11556_v25  ;;  %13461 = vst [vmem:[#allocation44_spill] sm:$0xff] %v11568_v7  ;;  %13462 = vst [vmem:[#allocation45_spill] sm:$0xff] %v11570_v1  ;;  %v11578_v25 = vld [vmem:[#allocation8 + $0x124] ss:$16 sps:$4 sm:$0xff]   ;;  %v11584_v24 = vld [vmem:[#allocation8 + $0x128] ss:$16 sps:$4 sm:$0xff]  }
 0x1c1   :  { %13464 = vst [vmem:[#allocation47_spill] sm:$0xff] %v11578_v25  ;;  %13467 = vst [vmem:[#allocation50_spill] sm:$0xff] %v11584_v24 }
 0x1c3   :  { %2604 = vmatpush1.bf16.msra.mxu0 %v11558_v0  ;;  %2645 = vmatpush1.bf16.msra.mxu1 %v11560_v23  ;;  %v11580_v0 = vld [vmem:[#allocation8 + $0x12c] ss:$16 sps:$4 sm:$0xff]   ;;  %v11582_v23 = vld [vmem:[#allocation8 + $0x120] ss:$16 sps:$4 sm:$0xff]  }
 0x1c4   :  { %2605 = vmatprep.subr.bf16.mxu0 %v11566_v6  ;;  %2646 = vmatprep.subr.bf16.mxu1 %v11568_v7  ;;  %13465 = vst [vmem:[#allocation48_spill] sm:$0xff] %v11580_v0  ;;  %13466 = vst [vmem:[#allocation49_spill] sm:$0xff] %v11582_v23  ;;  %v11590_v7 = vld [vmem:[#allocation8 + $0x144] ss:$16 sps:$4 sm:$0xff]   ;;  %v11596_v6 = vld [vmem:[#allocation8 + $0x148] ss:$16 sps:$4 sm:$0xff]  }
 0x1c5   :  { %13468 = vst [vmem:[#allocation51_spill] sm:$0xff] %v11590_v7  ;;  %13471 = vst [vmem:[#allocation54_spill] sm:$0xff] %v11596_v6 }
 0x1c7   :  { %2606 = vmatpush1.bf16.msra.mxu0 %v11570_v1  ;;  %2647 = vmatpush1.bf16.msra.mxu1 %v11572_v63  ;;  %v11592_v1 = vld [vmem:[#allocation8 + $0x14c] ss:$16 sps:$4 sm:$0xff]   ;;  %v11594_v63 = vld [vmem:[#allocation8 + $0x140] ss:$16 sps:$4 sm:$0xff]  }
 0x1c8   :  { %2607 = vmatprep.subr.bf16.mxu0 %v11578_v25  ;;  %2648 = vmatprep.subr.bf16.mxu1 %v11580_v0  ;;  %13469 = vst [vmem:[#allocation52_spill] sm:$0xff] %v11592_v1  ;;  %13470 = vst [vmem:[#allocation53_spill] sm:$0xff] %v11594_v63  ;;  %v11602_v0 = vld [vmem:[#allocation8 + $0x164] ss:$16 sps:$4 sm:$0xff]   ;;  %v11608_v25 = vld [vmem:[#allocation8 + $0x168] ss:$16 sps:$4 sm:$0xff]  }
 0x1c9   :  { %13472 = vst [vmem:[#allocation55_spill] sm:$0xff] %v11602_v0  ;;  %13475 = vst [vmem:[#allocation58_spill] sm:$0xff] %v11608_v25 }
 0x1cb   :  { %2608 = vmatpush1.bf16.msra.mxu0 %v11582_v23  ;;  %2649 = vmatpush1.bf16.msra.mxu1 %v11584_v24  ;;  %v11604_v23 = vld [vmem:[#allocation8 + $0x16c] ss:$16 sps:$4 sm:$0xff]   ;;  %v11606_v24 = vld [vmem:[#allocation8 + $0x160] ss:$16 sps:$4 sm:$0xff]  }
 0x1cc   :  { %2609 = vmatprep.subr.bf16.mxu0 %v11590_v7  ;;  %2650 = vmatprep.subr.bf16.mxu1 %v11592_v1  ;;  %13473 = vst [vmem:[#allocation56_spill] sm:$0xff] %v11604_v23  ;;  %13474 = vst [vmem:[#allocation57_spill] sm:$0xff] %v11606_v24  ;;  %v11614_v1 = vld [vmem:[#allocation8 + $0x184] ss:$16 sps:$4 sm:$0xff]   ;;  %v11620_v7 = vld [vmem:[#allocation8 + $0x188] ss:$16 sps:$4 sm:$0xff]  }
 0x1cd   :  { %13476 = vst [vmem:[#allocation59_spill] sm:$0xff] %v11614_v1  ;;  %13479 = vst [vmem:[#allocation62_spill] sm:$0xff] %v11620_v7 }
 0x1cf   :  { %2610 = vmatpush1.bf16.msra.mxu0 %v11594_v63  ;;  %2651 = vmatpush1.bf16.msra.mxu1 %v11596_v6  ;;  %v11616_v63 = vld [vmem:[#allocation8 + $0x18c] ss:$16 sps:$4 sm:$0xff]   ;;  %v11618_v6 = vld [vmem:[#allocation8 + $0x180] ss:$16 sps:$4 sm:$0xff]  }
 0x1d0   :  { %2611 = vmatprep.subr.bf16.mxu0 %v11602_v0  ;;  %2652 = vmatprep.subr.bf16.mxu1 %v11604_v23  ;;  %13477 = vst [vmem:[#allocation60_spill] sm:$0xff] %v11616_v63  ;;  %13478 = vst [vmem:[#allocation61_spill] sm:$0xff] %v11618_v6  ;;  %v11626_v23 = vld [vmem:[#allocation8 + $0x1a4] ss:$16 sps:$4 sm:$0xff]   ;;  %v11633_v0 = vld [vmem:[#allocation8 + $0x1ac] ss:$16 sps:$4 sm:$0xff]  }
 0x1d1   :  { %13480 = vst [vmem:[#allocation63_spill] sm:$0xff] %v11626_v23  ;;  %13483 = vst [vmem:[#allocation66_spill] sm:$0xff] %v11633_v0 }
 0x1d3   :  { %2612 = vmatpush1.bf16.msra.mxu0 %v11606_v24  ;;  %2653 = vmatpush1.bf16.msra.mxu1 %v11608_v25  ;;  %v11628_v24 = vld [vmem:[#allocation8 + $0x1a0] ss:$16 sps:$4 sm:$0xff]   ;;  %v11631_v25 = vld [vmem:[#allocation8 + $0x1a8] ss:$16 sps:$4 sm:$0xff]  }
 0x1d4   :  { %2613 = vmatprep.subr.bf16.mxu0 %v11614_v1  ;;  %2654 = vmatprep.subr.bf16.mxu1 %v11616_v63  ;;  %13481 = vst [vmem:[#allocation64_spill] sm:$0xff] %v11628_v24  ;;  %13482 = vst [vmem:[#allocation65_spill] sm:$0xff] %v11631_v25  ;;  %v11638_v1 = vld [vmem:[#allocation8 + $0x1c4] ss:$16 sps:$4 sm:$0xff]   ;;  %v11640_v63 = vld [vmem:[#allocation8 + $0x1cc] ss:$16 sps:$4 sm:$0xff]  }
 0x1d5   :  { %13485 = vst [vmem:[#allocation68_spill] sm:$0xff] %v11638_v1  ;;  %13486 = vst [vmem:[#allocation69_spill] sm:$0xff] %v11640_v63 }
 0x1d7   :  { %2614 = vmatpush1.bf16.msra.mxu0 %v11618_v6  ;;  %2655 = vmatpush1.bf16.msra.mxu1 %v11620_v7  ;;  %v11643_v7 = vld [vmem:[#allocation8 + $0x1e4] ss:$16 sps:$4 sm:$0xff]   ;;  %v11653_v6 = vld [vmem:[#allocation8 + $0x1ec] ss:$16 sps:$4 sm:$0xff]  }
 0x1d8   :  { %2615 = vmatprep.subr.bf16.mxu0 %v11626_v23  ;;  %2656 = vmatprep.subr.bf16.mxu1 %v11633_v0  ;;  %13487 = vst [vmem:[#allocation70_spill] sm:$0xff] %v11643_v7  ;;  %v11647_v23 = vld [vmem:[#allocation8 + $0x1c8] ss:$16 sps:$4 sm:$0xff]   ;;  %13489 = vst [vmem:[#allocation72_spill] sm:$0xff] %v11653_v6  ;;  %v11656_v0 = vld [vmem:[#allocation8 + $0x1e0] ss:$16 sps:$4 sm:$0xff]  }
 0x1d9   :  { %13488 = vst [vmem:[#allocation71_spill] sm:$0xff] %v11647_v23  ;;  %13490 = vst [vmem:[#allocation73_spill] sm:$0xff] %v11656_v0 }
 0x1db   :  { %2616 = vmatpush1.bf16.msra.mxu0 %v11628_v24  ;;  %2657 = vmatpush1.bf16.msra.mxu1 %v11631_v25  ;;  %v8943_v24 = vld [vmem:[%s13216_s0 + $0x8] sm:$0xf]  ;;  %v11664_v25 = vld [vmem:[#allocation8 + $0x204] ss:$16 sps:$4 sm:$0xff]  }
 0x1dc   :  { %2617 = vmatprep.subr.bf16.mxu0 %v11638_v1  ;;  %2658 = vmatprep.subr.bf16.mxu1 %v11640_v63  ;;  %2196 = vst [vmem:[#allocation2] sm:$0xf] %v8943_v24  ;;  %v11660_v1 = vld [vmem:[#allocation8 + $0x1e8] ss:$16 sps:$4 sm:$0xff]   ;;  %13492 = vst [vmem:[#allocation75_spill] sm:$0xff] %v11664_v25 }
 0x1dd   :  { %13491 = vst [vmem:[#allocation74_spill] sm:$0xff] %v11660_v1  ;;  %v11666_v63 = vld [vmem:[#allocation8 + $0x20c] ss:$16 sps:$4 sm:$0xff]   ;;  %v9014_v24 = vld [vmem:[%s13217_s1 + $0x14] sm:$0xf] }
 0x1de   :  { %13493 = vst [vmem:[#allocation76_spill] sm:$0xff] %v11666_v63  ;;  %2713 = vst [vmem:[#allocation3] sm:$0xf] %v9014_v24 }
 0x1df   :  { %2618 = vmatpush1.bf16.msra.mxu0 %v11636_v61  ;;  %2659 = vmatpush1.bf16.msra.mxu1 %v11647_v23 }
 0x1e0   :  { %2619 = vmatprep.subr.bf16.mxu0 %v11643_v7  ;;  %2660 = vmatprep.subr.bf16.mxu1 %v11653_v6 }
 0x1e3   :  { %2620 = vmatpush1.bf16.msra.mxu0 %v11656_v0  ;;  %2661 = vmatpush1.bf16.msra.mxu1 %v11660_v1 }
 0x1e4   :  { %3106 = vmatprep.subr.bf16.mxu0 %v11664_v25  ;;  %3147 = vmatprep.subr.bf16.mxu1 %v11666_v63 }
 0x239   :  { %v1589_v7 = vpop.f32.mrb[8].mxu0  ;;  %v1630_v23 = vpop.f32.mrb[8].mxu1 }
 0x23a   :  { %v1590_v6 = vadd.f32 %v1589_v7, %v11319_v35  ;;  %v1591_v0 = vpop.f32.mrb[9].mxu0  ;;  %v1632_v61 = vpop.f32.mrb[9].mxu1  ;;  %v1631_v24 = vadd.f32 %v1630_v23, %v11342_v57 }
 0x23b   :  { %v1592_v5 = vadd.f32 %v1591_v0, %v11326_v38  ;;  %v1593_v56 = vpop.f32.mrb[10].mxu0  ;;  %v1634_v52 = vpop.f32.mrb[10].mxu1  ;;  %v1633_v63 = vadd.f32 %v1632_v61, %v11334_v49 }
 0x23c   :  { %v8868_v1 = vmul.f32 -1.442695, %v1590_v6  ;;  %v1594_v50 = vpop.f32.mrb[11].mxu0  ;;  %v1635_v25 = vpop.f32.mrb[11].mxu1 }
 0x23d   :  { %v8869_v46 = vmul.f32 -1.442695, %v1592_v5  ;;  %v8870_v44 = vmul.f32 -1.442695, %v1633_v63 }
 0x23e   :  { %10787 = vpow2.f32 %v8868_v1 }
 0x23f   :  { %10789 = vpow2.f32 %v8869_v46  ;;  %v1667_v46 = vpop.permute.xlu1 %1666 }
 0x240   :  { %10791 = vpow2.f32 %v8870_v44  ;;  %vm1668_vm10 = vcmp.eq.s32.totalorder %v1667_v46, 1 }
 0x241   :  { %10793 = vtanh.f32 %v1631_v24 }
 0x248   :  { %v10788_v41 = vpop.eup %10787 }
 0x249   :  { %v10790_v39 = vpop.eup %10789  ;;  %v1640_v7 = vadd.f32 1.0, %v10788_v41 }
 0x24a   :  { %v1646_v35 = vadd.f32 1.0, %v10790_v39  ;;  %v10792_v0 = vpop.eup %10791 }
 0x24b   :  { %10795 = vrcp.f32 %v1640_v7  ;;  %v10794_v52 = vpop.eup %10793  ;;  %v1653_v5 = vadd.f32 1.0, %v10792_v0  ;;  %v11687_v0 = vld [vmem:[#allocation8 + $0x200] ss:$16 sps:$4 sm:$0xff]  }
 0x24c   :  { %10797 = vrcp.f32 %v1646_v35  ;;  %13494 = vst [vmem:[#allocation77_spill] sm:$0xff] %v11687_v0 }
 0x24d   :  { %10799 = vrcp.f32 %v1653_v5  ;;  %v11703_v5 = vld [vmem:[#allocation8 + $0x244] ss:$16 sps:$4 sm:$0xff]  }
 0x255   :  { %v10796_v50 = vpop.eup %10795 }
 0x256   :  { %v10798_v56 = vpop.eup %10797  ;;  %v1658_v1 = vmul.f32 %v10796_v50, %v10794_v52  ;;  %v11689_v52 = vld [vmem:[#allocation8 + $0x208] ss:$16 sps:$4 sm:$0xff]   ;;  %v11691_v50 = vld [vmem:[#allocation8 + $0x224] ss:$16 sps:$4 sm:$0xff]  }
 0x257   :  { %v1657_v61 = vmul.f32 %v10798_v56, %v11349_v10  ;;  %v10800_v44 = vpop.eup %10799  ;;  %13495 = vst [vmem:[#allocation78_spill] sm:$0xff] %v11689_v52  ;;  %13496 = vst [vmem:[#allocation79_spill] sm:$0xff] %v11691_v50  ;;  %v11699_v56 = vld [vmem:[#allocation8 + $0x228] ss:$16 sps:$4 sm:$0xff]  }
 0x259   :  { %v1659_v63 = vadd.f32 %v1658_v1, %v1657_v61  ;;  %v11705_v1 = vld [vmem:[#allocation8 + $0x24c] ss:$16 sps:$4 sm:$0xff]  }
 0x25b   :  { %10801 = vtanh.f32 %v1659_v63  ;;  %v11680_v41 = vsel %vm1668_vm10, %v1659_v63, %v11349_v10  ;;  %v11693_v10 = vld [vmem:[#allocation8 + $0x22c] ss:$16 sps:$4 sm:$0xff]  }
 0x25c   :  { %13497 = vst [vmem:[#allocation80_spill] sm:$0xff] %v11693_v10 }
 0x265   :  { %v10802_v39 = vpop.eup %10801 }
 0x266   :  { %v1661_v6 = vmul.f32 %v10802_v39, %v10800_v44 }
 0x268   :  { %v11683_v35 = vsel %vm1668_vm10, %v1661_v6, %v11351_v13  ;;  %v11697_v13 = vld [vmem:[#allocation8 + $0x220] ss:$16 sps:$4 sm:$0xff]  }
 0x269   :  { %v1674_v23 = vpack.c.bf16 %v11683_v35, %v11683_v35  ;;  %v11708_v6 = vld [vmem:[#allocation8 + $0x240] ss:$16 sps:$4 sm:$0xff]  }
 0x26b   :  { %1675 = vst [vmem:[#allocation2 + $0x4] sm:$0xf] %v1674_v23 }
 0x272   :  { %v2197_v25 = vld [vmem:[#allocation2] sm:$0xff] }
 0x273   :  { %v8945_v24 = vcombine.high %v2197_v25, %v2197_v25  ;;  %v8944_v7 = vcombine.low %v2197_v25, %v2197_v25 }
 0x275   :  { %2621 = vmatprep.mubr.bf16.mxu0 %v8945_v24  ;;  %2662 = vmatprep.mubr.bf16.mxu1 %v8945_v24 }
 0x276   :  { %2622 = vmatmul.mubr.bf16.vlgmr.msra.gmra.mrb[16].mxu0 %v8944_v7  ;;  %2663 = vmatmul.mubr.bf16.vlgmr.msra.gmra.mrb[16].mxu1 %v8944_v7  ;;  %v11713_v7 = vld [vmem:[#allocation8 + $0x248] ss:$16 sps:$4 sm:$0xff]  }
 0x277   :  { %3107 = vmatpush1.bf16.msra.mxu0 %v11687_v0  ;;  %3148 = vmatpush1.bf16.msra.mxu1 %v11689_v52 }
 0x278   :  { %3108 = vmatprep.subr.bf16.mxu0 %v11691_v50  ;;  %3149 = vmatprep.subr.bf16.mxu1 %v11693_v10  ;;  %v11715_v10 = vld [vmem:[#allocation8 + $0x264] ss:$16 sps:$4 sm:$0xff]  }
 0x279   :  { %v2106_v46 = vpop.f32.mrb[12].mxu0  ;;  %v2147_v61 = vpop.f32.mrb[12].mxu1 }
 0x27a   :  { %v2107_v63 = vadd.f32 %v2106_v46, %v11360_v19  ;;  %v2108_v44 = vpop.f32.mrb[13].mxu0  ;;  %v2149_v39 = vpop.f32.mrb[13].mxu1  ;;  %v11719_v46 = vld [vmem:[#allocation8 + $0x26c] ss:$16 sps:$4 sm:$0xff]  }
 0x27b   :  { %v2109_v23 = vadd.f32 %v2108_v44, %v11364_v22  ;;  %v2110_v25 = vpop.f32.mrb[14].mxu0  ;;  %v2151_v24 = vpop.f32.mrb[14].mxu1  ;;  %3109 = vmatpush1.bf16.msra.mxu0 %v11697_v13  ;;  %3150 = vmatpush1.bf16.msra.mxu1 %v11699_v56 }
 0x27c   :  { %v8939_v50 = vmul.f32 -1.442695, %v2107_v63  ;;  %v2111_v52 = vpop.f32.mrb[15].mxu0  ;;  %v2152_v0 = vpop.f32.mrb[15].mxu1  ;;  %3110 = vmatprep.subr.bf16.mxu0 %v11703_v5  ;;  %3151 = vmatprep.subr.bf16.mxu1 %v11705_v1  ;;  %v11723_v25 = vld [vmem:[#allocation8 + $0x260] ss:$16 sps:$4 sm:$0xff]  }
 0x27d   :  { %v8940_v44 = vmul.f32 -1.442695, %v2109_v23  ;;  %13498 = vst [vmem:[#allocation81_spill] sm:$0xff] %v11723_v25  ;;  %v11725_v24 = vld [vmem:[#allocation8 + $0x268] ss:$16 sps:$4 sm:$0xff]   ;;  %v2150_v52 = vadd.f32 %v2149_v39, %v11370_v42 }
 0x27e   :  { %10803 = vpow2.f32 %v8939_v50  ;;  %13499 = vst [vmem:[#allocation82_spill] sm:$0xff] %v11725_v24  ;;  %v11729_v0 = vld [vmem:[#allocation8 + $0x28c] ss:$16 sps:$4 sm:$0xff]   ;;  %v11734_v50 = vld [vmem:[#allocation8 + $0x288] ss:$16 sps:$4 sm:$0xff]  }
 0x27f   :  { %10805 = vpow2.f32 %v8940_v44  ;;  %3111 = vmatpush1.bf16.msra.mxu0 %v11708_v6  ;;  %3152 = vmatpush1.bf16.msra.mxu1 %v11713_v7  ;;  %13500 = vst [vmem:[#allocation83_spill] sm:$0xff] %v11729_v0  ;;  %v11738_v63 = vld [vmem:[#allocation8 + $0x2ac] ss:$16 sps:$4 sm:$0xff]   ;;  %v8941_v23 = vmul.f32 -1.442695, %v2150_v52  ;;  %v2148_v44 = vadd.f32 %v2147_v61, %v11377_v40 }
 0x280   :  { %3112 = vmatprep.subr.bf16.mxu0 %v11715_v10  ;;  %3153 = vmatprep.subr.bf16.mxu1 %v11719_v46  ;;  %v11743_v39 = vld [vmem:[#allocation8 + $0x2a8] ss:$16 sps:$4 sm:$0xff]  }
 0x281   :  { %10807 = vpow2.f32 %v8941_v23  ;;  %v11759_v61 = vld [vmem:[#allocation8 + $0x2e8] ss:$16 sps:$4 sm:$0xff]  }
 0x282   :  { %10809 = vtanh.f32 %v2148_v44  ;;  %13501 = vst [vmem:[#allocation84_spill] sm:$0xff] %v11759_v61 }
 0x283   :  { %3113 = vmatpush1.bf16.msra.mxu0 %v11723_v25  ;;  %3154 = vmatpush1.bf16.msra.mxu1 %v11725_v24  ;;  %v11747_v24 = vld [vmem:[#allocation8 + $0x2cc] ss:$16 sps:$4 sm:$0xff]  }
 0x284   :  { %3114 = vmatprep.subr.bf16.mxu0 %v11373_v54  ;;  %3155 = vmatprep.subr.bf16.mxu1 %v11729_v0 }
 0x287   :  { %3115 = vmatpush1.bf16.msra.mxu0 %v11379_v60  ;;  %3156 = vmatpush1.bf16.msra.mxu1 %v11734_v50  ;;  %v11751_v60 = vld [vmem:[#allocation8 + $0x2c8] ss:$16 sps:$4 sm:$0xff]  }
 0x288   :  { %v10804_v25 = vpop.eup %10803  ;;  %3116 = vmatprep.subr.bf16.mxu0 %v11382_v62  ;;  %3157 = vmatprep.subr.bf16.mxu1 %v11738_v63  ;;  %v11755_v62 = vld [vmem:[#allocation8 + $0x2ec] ss:$16 sps:$4 sm:$0xff]  }
 0x289   :  { %v10806_v54 = vpop.eup %10805  ;;  %v2157_v0 = vadd.f32 1.0, %v10804_v25 }
 0x28a   :  { %v2163_v52 = vadd.f32 1.0, %v10806_v54 }
 0x28b   :  { %10811 = vrcp.f32 %v2157_v0  ;;  %3117 = vmatpush1.bf16.msra.mxu0 %v11386_v51  ;;  %3158 = vmatpush1.bf16.msra.mxu1 %v11743_v39  ;;  %v11763_v51 = vld [vmem:[#allocation8 + $0x30c] ss:$16 sps:$4 sm:$0xff]   ;;  %v10808_v25 = vpop.eup %10807 }
 0x28c   :  { %10813 = vrcp.f32 %v2163_v52  ;;  %3118 = vmatprep.subr.bf16.mxu0 %v11389_v3  ;;  %3159 = vmatprep.subr.bf16.mxu1 %v11747_v24  ;;  %13502 = vst [vmem:[#allocation85_spill] sm:$0xff] %v11763_v51  ;;  %v11767_v3 = vld [vmem:[#allocation8 + $0x308] ss:$16 sps:$4 sm:$0xff]   ;;  %v10810_v0 = vpop.eup %10809  ;;  %v2170_v54 = vadd.f32 1.0, %v10808_v25 }
 0x28e   :  { %10815 = vrcp.f32 %v2170_v54  ;;  %v13522_v54 = vld [vmem:[#allocation37_spill] sm:$0xff] }
 0x28f   :  { %3119 = vmatpush1.bf16.msra.mxu0 %v11392_v8  ;;  %3160 = vmatpush1.bf16.msra.mxu1 %v11751_v60  ;;  %v11771_v8 = vld [vmem:[#allocation8 + $0x32c] ss:$16 sps:$4 sm:$0xff]  }
 0x290   :  { %3120 = vmatprep.subr.bf16.mxu0 %v11395_v53  ;;  %3161 = vmatprep.subr.bf16.mxu1 %v11755_v62 }
 0x293   :  { %3121 = vmatpush1.bf16.msra.mxu0 %v11398_v12  ;;  %3162 = vmatpush1.bf16.msra.mxu1 %v11759_v61  ;;  %v11776_v12 = vld [vmem:[#allocation8 + $0x328] ss:$16 sps:$4 sm:$0xff]  }
 0x294   :  { %3122 = vmatprep.subr.bf16.mxu0 %v11401_v36  ;;  %3163 = vmatprep.subr.bf16.mxu1 %v11763_v51  ;;  %v11780_v36 = vld [vmem:[#allocation8 + $0x34c] ss:$16 sps:$4 sm:$0xff]   ;;  %v2184_v51 = vpop.permute.xlu1 %2183 }
 0x295   :  { %v10812_v23 = vpop.eup %10811  ;;  %vm2185_vm11 = vcmp.eq.s32.totalorder %v2184_v51, 1  ;;  %v13519_v51 = vld [vmem:[#allocation34_spill] sm:$0xff] }
 0x296   :  { %v10814_v53 = vpop.eup %10813  ;;  %v2175_v44 = vmul.f32 %v10812_v23, %v10810_v0  ;;  %v11796_v0 = vld [vmem:[#allocation8 + $0x368] ss:$16 sps:$4 sm:$0xff]  }
 0x297   :  { %v2174_v52 = vmul.f32 %v10814_v53, %v11416_v37  ;;  %3123 = vmatpush1.bf16.msra.mxu0 %v11404_v17  ;;  %3164 = vmatpush1.bf16.msra.mxu1 %v11767_v3  ;;  %v11784_v17 = vld [vmem:[#allocation8 + $0x348] ss:$16 sps:$4 sm:$0xff]   ;;  %v13520_v53 = vld [vmem:[#allocation35_spill] sm:$0xff] }
 0x298   :  { %3124 = vmatprep.subr.bf16.mxu0 %v11407_v20  ;;  %3165 = vmatprep.subr.bf16.mxu1 %v11771_v8  ;;  %v11792_v20 = vld [vmem:[#allocation8 + $0x36c] ss:$16 sps:$4 sm:$0xff]  }
 0x299   :  { %v2176_v61 = vadd.f32 %v2175_v44, %v2174_v52  ;;  %v13521_v44 = vld [vmem:[#allocation36_spill] sm:$0xff]  ;;  %v13523_v52 = vld [vmem:[#allocation38_spill] sm:$0xff] }
 0x29b   :  { %10817 = vtanh.f32 %v2176_v61  ;;  %3125 = vmatpush1.bf16.msra.mxu0 %v11410_v28  ;;  %3166 = vmatpush1.bf16.msra.mxu1 %v11776_v12  ;;  %v11788_v25 = vsel %vm2185_vm11, %v2176_v61, %v11416_v37  ;;  %v11800_v28 = vld [vmem:[#allocation8 + $0x38c] ss:$16 sps:$4 sm:$0xff]   ;;  %v10816_v37 = vpop.eup %10815 }
 0x29c   :  { %3126 = vmatprep.subr.bf16.mxu0 %v11413_v30  ;;  %3167 = vmatprep.subr.bf16.mxu1 %v11780_v36  ;;  %v11804_v30 = vld [vmem:[#allocation8 + $0x388] ss:$16 sps:$4 sm:$0xff]  }
 0x29f   :  { %3127 = vmatpush1.bf16.msra.mxu0 %v11419_v34  ;;  %3168 = vmatpush1.bf16.msra.mxu1 %v11784_v17  ;;  %v11808_v34 = vld [vmem:[#allocation8 + $0x3ac] ss:$16 sps:$4 sm:$0xff]  }
 0x2a0   :  { %3128 = vmatprep.subr.bf16.mxu0 %v11422_v43  ;;  %3169 = vmatprep.subr.bf16.mxu1 %v11792_v20  ;;  %v11812_v43 = vld [vmem:[#allocation8 + $0x3a8] ss:$16 sps:$4 sm:$0xff]  }
 0x2a3   :  { %3129 = vmatpush1.bf16.msra.mxu0 %v11425_v45  ;;  %3170 = vmatpush1.bf16.msra.mxu1 %v11796_v0 }
 0x2a4   :  { %3130 = vmatprep.subr.bf16.mxu0 %v11428_v47  ;;  %3171 = vmatprep.subr.bf16.mxu1 %v11800_v28 }
 0x2a5   :  { %v10818_v61 = vpop.eup %10817 }
 0x2a6   :  { %v2178_v23 = vmul.f32 %v10818_v61, %v10816_v37  ;;  %v13524_v37 = vld [vmem:[#allocation39_spill] sm:$0xff]  ;;  %v13525_v61 = vld [vmem:[#allocation40_spill] sm:$0xff] }
 0x2a7   :  { %3131 = vmatpush1.bf16.msra.mxu0 %v11431_v55  ;;  %3172 = vmatpush1.bf16.msra.mxu1 %v11804_v30 }
 0x2a8   :  { %v11816_v45 = vsel %vm2185_vm11, %v2178_v23, %v11440_v2  ;;  %3132 = vmatprep.subr.bf16.mxu0 %v11434_v59  ;;  %3173 = vmatprep.subr.bf16.mxu1 %v11808_v34  ;;  %v13503_v2 = vld [vmem:[#allocation18_spill] sm:$0xff]  ;;  %v13526_v23 = vld [vmem:[#allocation41_spill] sm:$0xff] }
 0x2a9   :  { %v2191_v47 = vpack.c.bf16 %v11816_v45, %v11816_v45 }
 0x2ab   :  { %2192 = vst [vmem:[#allocation3 + $0x4] sm:$0xf] %v2191_v47  ;;  %3133 = vmatpush1.bf16.msra.mxu0 %v11437_v31  ;;  %3174 = vmatpush1.bf16.msra.mxu1 %v11812_v43  ;;  %v13527_v47 = vld [vmem:[#allocation42_spill] sm:$0xff] }
 0x2ac   :  { %3134 = vmatprep.subr.bf16.mxu0 %v11443_v58  ;;  %3175 = vmatprep.subr.bf16.mxu1 %v11445_v4  ;;  %v13504_v58 = vld [vmem:[#allocation19_spill] sm:$0xff]  ;;  %v13505_v4 = vld [vmem:[#allocation20_spill] sm:$0xff] }
 0x2af   :  { %3135 = vmatpush1.bf16.msra.mxu0 %v11450_v9  ;;  %3176 = vmatpush1.bf16.msra.mxu1 %v11452_v11  ;;  %v13506_v9 = vld [vmem:[#allocation21_spill] sm:$0xff]  ;;  %v13507_v11 = vld [vmem:[#allocation22_spill] sm:$0xff] }
 0x2b0   :  { %3136 = vmatprep.subr.bf16.mxu0 %v11456_v48  ;;  %3177 = vmatprep.subr.bf16.mxu1 %v11458_v14  ;;  %v13508_v48 = vld [vmem:[#allocation23_spill] sm:$0xff]  ;;  %v13509_v14 = vld [vmem:[#allocation24_spill] sm:$0xff] }
 0x2b2   :  { %v2714_v55 = vld [vmem:[#allocation3] sm:$0xff] }
 0x2b3   :  { %3137 = vmatpush1.bf16.msra.mxu0 %v11462_v15  ;;  %3178 = vmatpush1.bf16.msra.mxu1 %v11464_v16  ;;  %v9016_v59 = vcombine.high %v2714_v55, %v2714_v55  ;;  %v9015_v31 = vcombine.low %v2714_v55, %v2714_v55  ;;  %v13510_v15 = vld [vmem:[#allocation25_spill] sm:$0xff]  ;;  %v13511_v16 = vld [vmem:[#allocation26_spill] sm:$0xff]  ;;  %v13528_v55 = vld [vmem:[#allocation43_spill] sm:$0xff] }
 0x2b4   :  { %3623 = vmatprep.subr.bf16.mxu0 %v11468_v18  ;;  %3664 = vmatprep.subr.bf16.mxu1 %v11470_v21  ;;  %v13512_v18 = vld [vmem:[#allocation27_spill] sm:$0xff]  ;;  %v13513_v21 = vld [vmem:[#allocation28_spill] sm:$0xff] }
 0x2b5   :  { %3138 = vmatprep.mubr.bf16.mxu0 %v9016_v59  ;;  %3179 = vmatprep.mubr.bf16.mxu1 %v9016_v59  ;;  %v13529_v59 = vld [vmem:[#allocation44_spill] sm:$0xff] }
 0x2b6   :  { %3139 = vmatmul.mubr.bf16.vlgmr.msra.gmra.mrb[20].mxu0 %v9015_v31  ;;  %3180 = vmatmul.mubr.bf16.vlgmr.msra.gmra.mrb[20].mxu1 %v9015_v31  ;;  %v13530_v31 = vld [vmem:[#allocation45_spill] sm:$0xff] }
 0x2b7   :  { %3624 = vmatpush1.bf16.msra.mxu0 %v11474_v26  ;;  %3665 = vmatpush1.bf16.msra.mxu1 %v11476_v27  ;;  %v13514_v26 = vld [vmem:[#allocation29_spill] sm:$0xff]  ;;  %v13515_v27 = vld [vmem:[#allocation30_spill] sm:$0xff] }
 0x2b8   :  { %3625 = vmatprep.subr.bf16.mxu0 %v11482_v29  ;;  %3666 = vmatprep.subr.bf16.mxu1 %v11484_v32  ;;  %v13516_v29 = vld [vmem:[#allocation31_spill] sm:$0xff]  ;;  %v13517_v32 = vld [vmem:[#allocation32_spill] sm:$0xff] }
 0x2bb   :  { %3626 = vmatpush1.bf16.msra.mxu0 %v11486_v33  ;;  %3667 = vmatpush1.bf16.msra.mxu1 %v13503_v2  ;;  %v13518_v33 = vld [vmem:[#allocation33_spill] sm:$0xff]  ;;  %v13531_v2 = vld [vmem:[#allocation46_spill] sm:$0xff] }
 0x2bc   :  { %3627 = vmatprep.subr.bf16.mxu0 %v13504_v58  ;;  %3668 = vmatprep.subr.bf16.mxu1 %v13505_v4  ;;  %v13532_v58 = vld [vmem:[#allocation47_spill] sm:$0xff]  ;;  %v13533_v4 = vld [vmem:[#allocation48_spill] sm:$0xff] }
 0x2bf   :  { %3628 = vmatpush1.bf16.msra.mxu0 %v13506_v9  ;;  %3669 = vmatpush1.bf16.msra.mxu1 %v13507_v11  ;;  %v13534_v9 = vld [vmem:[#allocation49_spill] sm:$0xff]  ;;  %v13535_v11 = vld [vmem:[#allocation50_spill] sm:$0xff] }
 0x2c0   :  { %3629 = vmatprep.subr.bf16.mxu0 %v13508_v48  ;;  %3670 = vmatprep.subr.bf16.mxu1 %v13509_v14  ;;  %v13536_v48 = vld [vmem:[#allocation51_spill] sm:$0xff]  ;;  %v13537_v14 = vld [vmem:[#allocation52_spill] sm:$0xff] }
 0x2c3   :  { %3630 = vmatpush1.bf16.msra.mxu0 %v13510_v15  ;;  %3671 = vmatpush1.bf16.msra.mxu1 %v13511_v16  ;;  %v13538_v15 = vld [vmem:[#allocation53_spill] sm:$0xff]  ;;  %v13539_v16 = vld [vmem:[#allocation54_spill] sm:$0xff] }
 0x2c4   :  { %3631 = vmatprep.subr.bf16.mxu0 %v13512_v18  ;;  %3672 = vmatprep.subr.bf16.mxu1 %v13513_v21  ;;  %v13540_v18 = vld [vmem:[#allocation55_spill] sm:$0xff]  ;;  %v13541_v21 = vld [vmem:[#allocation56_spill] sm:$0xff] }
 0x2c7   :  { %3632 = vmatpush1.bf16.msra.mxu0 %v13514_v26  ;;  %3673 = vmatpush1.bf16.msra.mxu1 %v13515_v27  ;;  %v13542_v26 = vld [vmem:[#allocation57_spill] sm:$0xff]  ;;  %v13543_v27 = vld [vmem:[#allocation58_spill] sm:$0xff] }
 0x2c8   :  { %3633 = vmatprep.subr.bf16.mxu0 %v13516_v29  ;;  %3674 = vmatprep.subr.bf16.mxu1 %v13517_v32  ;;  %v13544_v29 = vld [vmem:[#allocation59_spill] sm:$0xff]  ;;  %v13545_v32 = vld [vmem:[#allocation60_spill] sm:$0xff] }
 0x2cb   :  { %3634 = vmatpush1.bf16.msra.mxu0 %v13518_v33  ;;  %3675 = vmatpush1.bf16.msra.mxu1 %v13519_v51  ;;  %v13546_v33 = vld [vmem:[#allocation61_spill] sm:$0xff]  ;;  %v13547_v51 = vld [vmem:[#allocation62_spill] sm:$0xff] }
 0x2cc   :  { %3635 = vmatprep.subr.bf16.mxu0 %v13520_v53  ;;  %3676 = vmatprep.subr.bf16.mxu1 %v13521_v44  ;;  %v13548_v53 = vld [vmem:[#allocation63_spill] sm:$0xff]  ;;  %v13549_v44 = vld [vmem:[#allocation66_spill] sm:$0xff] }
 0x2cf   :  { %3636 = vmatpush1.bf16.msra.mxu0 %v13522_v54  ;;  %3677 = vmatpush1.bf16.msra.mxu1 %v13523_v52  ;;  %v13550_v54 = vld [vmem:[#allocation64_spill] sm:$0xff]  ;;  %v13551_v52 = vld [vmem:[#allocation65_spill] sm:$0xff] }
 0x2d0   :  { %3637 = vmatprep.subr.bf16.mxu0 %v13524_v37  ;;  %3678 = vmatprep.subr.bf16.mxu1 %v13525_v61  ;;  %v13552_v37 = vld [vmem:[#allocation68_spill] sm:$0xff]  ;;  %v13553_v61 = vld [vmem:[#allocation69_spill] sm:$0xff] }
 0x2d3   :  { %3638 = vmatpush1.bf16.msra.mxu0 %v13526_v23  ;;  %3679 = vmatpush1.bf16.msra.mxu1 %v13527_v47  ;;  %v13554_v23 = vld [vmem:[#allocation67_spill] sm:$0xff] }
 0x2d4   :  { %3639 = vmatprep.subr.bf16.mxu0 %v13528_v55  ;;  %3680 = vmatprep.subr.bf16.mxu1 %v13529_v59  ;;  %v13555_v47 = vld [vmem:[#allocation71_spill] sm:$0xff]  ;;  %v13556_v55 = vld [vmem:[#allocation70_spill] sm:$0xff]  ;;  %v13557_v59 = vld [vmem:[#allocation72_spill] sm:$0xff] }
 0x2d7   :  { %3640 = vmatpush1.bf16.msra.mxu0 %v13530_v31  ;;  %3681 = vmatpush1.bf16.msra.mxu1 %v13531_v2  ;;  %v13558_v31 = vld [vmem:[#allocation73_spill] sm:$0xff]  ;;  %v13559_v2 = vld [vmem:[#allocation74_spill] sm:$0xff] }
 0x2d8   :  { %3641 = vmatprep.subr.bf16.mxu0 %v13532_v58  ;;  %3682 = vmatprep.subr.bf16.mxu1 %v13533_v4  ;;  %v13560_v58 = vld [vmem:[#allocation75_spill] sm:$0xff]  ;;  %v13561_v4 = vld [vmem:[#allocation76_spill] sm:$0xff] }
 0x2db   :  { %3642 = vmatpush1.bf16.msra.mxu0 %v13534_v9  ;;  %3683 = vmatpush1.bf16.msra.mxu1 %v13535_v11  ;;  %v9085_v9 = vld [vmem:[%s13216_s0 + $0xc] sm:$0xf]  ;;  %v9156_v11 = vld [vmem:[%s13217_s1 + $0x10] sm:$0xf] }
 0x2dc   :  { %3643 = vmatprep.subr.bf16.mxu0 %v13536_v48  ;;  %3684 = vmatprep.subr.bf16.mxu1 %v13537_v14  ;;  %3230 = vst [vmem:[#allocation2] sm:$0xf] %v9085_v9  ;;  %3747 = vst [vmem:[#allocation3] sm:$0xf] %v9156_v11  ;;  %v2701_v11 = vpop.permute.xlu0 %2700 }
 0x2dd   :  { %vm2702_vm12 = vcmp.eq.s32.totalorder %v2701_v11, 1 }
 0x2df   :  { %3644 = vmatpush1.bf16.msra.mxu0 %v13538_v15  ;;  %3685 = vmatpush1.bf16.msra.mxu1 %v13539_v16  ;;  %v13562_v15 = vld [vmem:[#allocation17_spill] sm:$0xff] }
 0x2e0   :  { %3645 = vmatprep.subr.bf16.mxu0 %v13540_v18  ;;  %3686 = vmatprep.subr.bf16.mxu1 %v13541_v21 }
 0x2e3   :  { %3646 = vmatpush1.bf16.msra.mxu0 %v13542_v26  ;;  %3687 = vmatpush1.bf16.msra.mxu1 %v13543_v27 }
 0x2e4   :  { %3647 = vmatprep.subr.bf16.mxu0 %v13544_v29  ;;  %3688 = vmatprep.subr.bf16.mxu1 %v13545_v32 }
 0x2e7   :  { %3648 = vmatpush1.bf16.msra.mxu0 %v13546_v33  ;;  %3689 = vmatpush1.bf16.msra.mxu1 %v13547_v51 }
 0x2e8   :  { %3649 = vmatprep.subr.bf16.mxu0 %v13548_v53  ;;  %3690 = vmatprep.subr.bf16.mxu1 %v13549_v44 }
 0x2eb   :  { %3650 = vmatpush1.bf16.msra.mxu0 %v13550_v54  ;;  %3691 = vmatpush1.bf16.msra.mxu1 %v13551_v52 }
 0x2ec   :  { %3651 = vmatprep.subr.bf16.mxu0 %v13552_v37  ;;  %3692 = vmatprep.subr.bf16.mxu1 %v13553_v61 }
 0x2ef   :  { %3652 = vmatpush1.bf16.msra.mxu0 %v13554_v23  ;;  %3693 = vmatpush1.bf16.msra.mxu1 %v13555_v47 }
 0x2f0   :  { %3653 = vmatprep.subr.bf16.mxu0 %v13556_v55  ;;  %3694 = vmatprep.subr.bf16.mxu1 %v13557_v59 }
 0x2f3   :  { %3654 = vmatpush1.bf16.msra.mxu0 %v13558_v31  ;;  %3695 = vmatpush1.bf16.msra.mxu1 %v13559_v2 }
 0x2f4   :  { %4140 = vmatprep.subr.bf16.mxu0 %v13560_v58  ;;  %4181 = vmatprep.subr.bf16.mxu1 %v13561_v4 }
 0x349   :  { %v2623_v48 = vpop.f32.mrb[16].mxu0  ;;  %v2664_v14 = vpop.f32.mrb[16].mxu1 }
 0x34a   :  { %v2624_v16 = vadd.f32 %v2623_v48, %v13562_v15  ;;  %v2625_v18 = vpop.f32.mrb[17].mxu0  ;;  %v2666_v21 = vpop.f32.mrb[17].mxu1  ;;  %v2665_v52 = vadd.f32 %v2664_v14, %v11342_v57 }
 0x34b   :  { %v2626_v26 = vadd.f32 %v2625_v18, %v11326_v38  ;;  %v2627_v27 = vpop.f32.mrb[18].mxu0  ;;  %v2668_v29 = vpop.f32.mrb[18].mxu1  ;;  %v2667_v44 = vadd.f32 %v2666_v21, %v11334_v49 }
 0x34c   :  { %v9010_v32 = vmul.f32 -1.442695, %v2624_v16  ;;  %v2628_v33 = vpop.f32.mrb[19].mxu0  ;;  %v2669_v51 = vpop.f32.mrb[19].mxu1 }
 0x34d   :  { %v9011_v53 = vmul.f32 -1.442695, %v2626_v26  ;;  %v9012_v54 = vmul.f32 -1.442695, %v2667_v44  ;;  %v13563_v51 = vld [vmem:[#allocation77_spill] sm:$0xff]  ;;  %v13566_v44 = vld [vmem:[#allocation80_spill] sm:$0xff] }
 0x34e   :  { %10819 = vpow2.f32 %v9010_v32 }
 0x34f   :  { %10821 = vpow2.f32 %v9011_v53  ;;  %v13565_v53 = vld [vmem:[#allocation79_spill] sm:$0xff] }
 0x350   :  { %10823 = vpow2.f32 %v9012_v54 }
 0x351   :  { %10825 = vtanh.f32 %v2665_v52 }
 0x358   :  { %v10820_v37 = vpop.eup %10819 }
 0x359   :  { %v10822_v61 = vpop.eup %10821  ;;  %v2674_v23 = vadd.f32 1.0, %v10820_v37 }
 0x35a   :  { %v2680_v47 = vadd.f32 1.0, %v10822_v61  ;;  %v10824_v55 = vpop.eup %10823 }
 0x35b   :  { %10827 = vrcp.f32 %v2674_v23  ;;  %v10826_v59 = vpop.eup %10825  ;;  %v2687_v4 = vadd.f32 1.0, %v10824_v55 }
 0x35c   :  { %10829 = vrcp.f32 %v2680_v47 }
 0x35d   :  { %10831 = vrcp.f32 %v2687_v4  ;;  %v13567_v4 = vld [vmem:[#allocation81_spill] sm:$0xff] }
 0x365   :  { %v10828_v31 = vpop.eup %10827 }
 0x366   :  { %v10830_v2 = vpop.eup %10829  ;;  %v2692_v58 = vmul.f32 %v10828_v31, %v10826_v59 }
 0x367   :  { %v2691_v9 = vmul.f32 %v10830_v2, %v11680_v41  ;;  %v10832_v16 = vpop.eup %10831 }
 0x369   :  { %v2693_v48 = vadd.f32 %v2692_v58, %v2691_v9  ;;  %v13569_v9 = vld [vmem:[#allocation83_spill] sm:$0xff] }
 0x36b   :  { %10833 = vtanh.f32 %v2693_v48  ;;  %v11910_v14 = vsel %vm2702_vm12, %v2693_v48, %v11680_v41  ;;  %v13564_v41 = vld [vmem:[#allocation78_spill] sm:$0xff]  ;;  %v11949_v48 = vld [vmem:[#allocation8 + $0x2c4] ss:$16 sps:$4 sm:$0xff]  }
 0x375   :  { %v10834_v18 = vpop.eup %10833 }
 0x376   :  { %v2695_v21 = vmul.f32 %v10834_v18, %v10832_v16 }
 0x378   :  { %v11913_v26 = vsel %vm2702_vm12, %v2695_v21, %v11683_v35 }
 0x379   :  { %v2708_v27 = vpack.c.bf16 %v11913_v26, %v11913_v26 }
 0x37b   :  { %2709 = vst [vmem:[#allocation2 + $0x4] sm:$0xf] %v2708_v27  ;;  %v11961_v27 = vld [vmem:[#allocation8 + $0x2e0] ss:$16 sps:$4 sm:$0xff]  }
 0x382   :  { %v3231_v29 = vld [vmem:[#allocation2] sm:$0xff] }
 0x383   :  { %v9087_v32 = vcombine.high %v3231_v29, %v3231_v29  ;;  %v9086_v33 = vcombine.low %v3231_v29, %v3231_v29 }
 0x385   :  { %3655 = vmatprep.mubr.bf16.mxu0 %v9087_v32  ;;  %3696 = vmatprep.mubr.bf16.mxu1 %v9087_v32  ;;  %v13570_v32 = vld [vmem:[#allocation84_spill] sm:$0xff] }
 0x386   :  { %3656 = vmatmul.mubr.bf16.vlgmr.msra.gmra.mrb[24].mxu0 %v9086_v33  ;;  %3697 = vmatmul.mubr.bf16.vlgmr.msra.gmra.mrb[24].mxu1 %v9086_v33 }
 0x387   :  { %4141 = vmatpush1.bf16.msra.mxu0 %v13563_v51  ;;  %4182 = vmatpush1.bf16.msra.mxu1 %v13564_v41  ;;  %v13571_v51 = vld [vmem:[#allocation85_spill] sm:$0xff] }
 0x388   :  { %4142 = vmatprep.subr.bf16.mxu0 %v13565_v53  ;;  %4183 = vmatprep.subr.bf16.mxu1 %v13566_v44 }
 0x389   :  { %v3140_v35 = vpop.f32.mrb[20].mxu0  ;;  %v3181_v54 = vpop.f32.mrb[20].mxu1 }
 0x38a   :  { %v3141_v52 = vadd.f32 %v3140_v35, %v11360_v19  ;;  %v3142_v37 = vpop.f32.mrb[21].mxu0  ;;  %v3183_v61 = vpop.f32.mrb[21].mxu1 }
 0x38b   :  { %v3143_v23 = vadd.f32 %v3142_v37, %v11364_v22  ;;  %v3144_v47 = vpop.f32.mrb[22].mxu0  ;;  %v3185_v55 = vpop.f32.mrb[22].mxu1  ;;  %4143 = vmatpush1.bf16.msra.mxu0 %v11697_v13  ;;  %4184 = vmatpush1.bf16.msra.mxu1 %v11699_v56  ;;  %v11931_v13 = vld [vmem:[#allocation8 + $0x284] ss:$16 sps:$4 sm:$0xff]   ;;  %v3184_v56 = vadd.f32 %v3183_v61, %v11370_v42 }
 0x38c   :  { %v9081_v59 = vmul.f32 -1.442695, %v3141_v52  ;;  %v3145_v31 = vpop.f32.mrb[23].mxu0  ;;  %v3186_v2 = vpop.f32.mrb[23].mxu1  ;;  %4144 = vmatprep.subr.bf16.mxu0 %v11703_v5  ;;  %4185 = vmatprep.subr.bf16.mxu1 %v11705_v1  ;;  %v13568_v5 = vld [vmem:[#allocation82_spill] sm:$0xff] }
 0x38d   :  { %v9082_v58 = vmul.f32 -1.442695, %v3143_v23  ;;  %v11936_v1 = vld [vmem:[#allocation8 + $0x280] ss:$16 sps:$4 sm:$0xff]   ;;  %v11982_v52 = vld [vmem:[#allocation8 + $0x344] ss:$16 sps:$4 sm:$0xff]   ;;  %v3218_v37 = vpop.permute.xlu1 %3217 }
 0x38e   :  { %10835 = vpow2.f32 %v9081_v59  ;;  %vm3219_vm13 = vcmp.eq.s32.totalorder %v3218_v37, 1  ;;  %v11986_v23 = vld [vmem:[#allocation8 + $0x340] ss:$16 sps:$4 sm:$0xff]   ;;  %v12022_v31 = vld [vmem:[#allocation8 + $0x3c4] ss:$16 sps:$4 sm:$0xff]  }
 0x38f   :  { %10837 = vpow2.f32 %v9082_v58  ;;  %4145 = vmatpush1.bf16.msra.mxu0 %v11708_v6  ;;  %4186 = vmatpush1.bf16.msra.mxu1 %v11713_v7  ;;  %v11940_v6 = vld [vmem:[#allocation8 + $0x2a4] ss:$16 sps:$4 sm:$0xff]   ;;  %v9083_v7 = vmul.f32 -1.442695, %v3184_v56  ;;  %v11998_v47 = vld [vmem:[#allocation8 + $0x360] ss:$16 sps:$4 sm:$0xff]  }
 0x390   :  { %4146 = vmatprep.subr.bf16.mxu0 %v11715_v10  ;;  %4187 = vmatprep.subr.bf16.mxu1 %v11719_v46  ;;  %v3182_v10 = vadd.f32 %v3181_v54, %v11377_v40  ;;  %v11945_v46 = vld [vmem:[#allocation8 + $0x2a0] ss:$16 sps:$4 sm:$0xff]   ;;  %v12038_v58 = vld [vmem:[#allocation8 + $0x3ec] ss:$16 sps:$4 sm:$0xff]   ;;  %v12092_v37 = vld [vmem:[#allocation8 + $0x68] ss:$16 sps:$4 sm:$0xff]  }
 0x391   :  { %10839 = vpow2.f32 %v9083_v7  ;;  %v11978_v54 = vld [vmem:[#allocation8 + $0x320] ss:$16 sps:$4 sm:$0xff]   ;;  %13580 = vst [vmem:[#allocation26_spill] sm:$0xff] %v12092_v37 }
 0x392   :  { %10841 = vtanh.f32 %v3182_v10  ;;  %v12042_v56 = vld [vmem:[#allocation8 + $0x3e0] ss:$16 sps:$4 sm:$0xff]  }
 0x393   :  { %4147 = vmatpush1.bf16.msra.mxu0 %v13567_v4  ;;  %4188 = vmatpush1.bf16.msra.mxu1 %v13568_v5  ;;  %v12044_v4 = vld [vmem:[#allocation8 + $0x3e8] ss:$16 sps:$4 sm:$0xff]   ;;  %v12050_v5 = vld [vmem:[#allocation8 + $0xc] ss:$16 sps:$4 sm:$0xff]  }
 0x394   :  { %4148 = vmatprep.subr.bf16.mxu0 %v11931_v13  ;;  %4189 = vmatprep.subr.bf16.mxu1 %v13569_v9 }
 0x397   :  { %4149 = vmatpush1.bf16.msra.mxu0 %v11936_v1  ;;  %4190 = vmatpush1.bf16.msra.mxu1 %v11734_v50  ;;  %v11953_v50 = vld [vmem:[#allocation8 + $0x2c0] ss:$16 sps:$4 sm:$0xff]  }
 0x398   :  { %v10836_v11 = vpop.eup %10835  ;;  %4150 = vmatprep.subr.bf16.mxu0 %v11940_v6  ;;  %4191 = vmatprep.subr.bf16.mxu1 %v11738_v63  ;;  %v11957_v63 = vld [vmem:[#allocation8 + $0x2e4] ss:$16 sps:$4 sm:$0xff]  }
 0x399   :  { %v10838_v16 = vpop.eup %10837  ;;  %v3191_v18 = vadd.f32 1.0, %v10836_v11  ;;  %v12054_v11 = vld [vmem:[#allocation8] ss:$16 sps:$4 sm:$0xff]  }
 0x39a   :  { %v3197_v21 = vadd.f32 1.0, %v10838_v16  ;;  %v12056_v16 = vld [vmem:[#allocation8 + $0x8] ss:$16 sps:$4 sm:$0xff]  }
 0x39b   :  { %10843 = vrcp.f32 %v3191_v18  ;;  %4151 = vmatpush1.bf16.msra.mxu0 %v11945_v46  ;;  %4192 = vmatpush1.bf16.msra.mxu1 %v11743_v39  ;;  %v11965_v39 = vld [vmem:[#allocation8 + $0x304] ss:$16 sps:$4 sm:$0xff]   ;;  %v10840_v29 = vpop.eup %10839 }
 0x39c   :  { %10845 = vrcp.f32 %v3197_v21  ;;  %4152 = vmatprep.subr.bf16.mxu0 %v11949_v48  ;;  %4193 = vmatprep.subr.bf16.mxu1 %v11747_v24  ;;  %v11969_v24 = vld [vmem:[#allocation8 + $0x300] ss:$16 sps:$4 sm:$0xff]   ;;  %v10842_v33 = vpop.eup %10841  ;;  %v12062_v18 = vld [vmem:[#allocation8 + $0x24] ss:$16 sps:$4 sm:$0xff]   ;;  %v12064_v21 = vld [vmem:[#allocation8 + $0x2c] ss:$16 sps:$4 sm:$0xff]  }
 0x39f   :  { %4153 = vmatpush1.bf16.msra.mxu0 %v11953_v50  ;;  %4194 = vmatpush1.bf16.msra.mxu1 %v11751_v60  ;;  %v11973_v60 = vld [vmem:[#allocation8 + $0x324] ss:$16 sps:$4 sm:$0xff]  }
 0x3a0   :  { %4154 = vmatprep.subr.bf16.mxu0 %v11957_v63  ;;  %4195 = vmatprep.subr.bf16.mxu1 %v11755_v62  ;;  %v3204_v62 = vadd.f32 1.0, %v10840_v29  ;;  %v12066_v29 = vld [vmem:[#allocation8 + $0x20] ss:$16 sps:$4 sm:$0xff]  }
 0x3a2   :  { %10847 = vrcp.f32 %v3204_v62  ;;  %v12088_v62 = vld [vmem:[#allocation8 + $0x6c] ss:$16 sps:$4 sm:$0xff]  }
 0x3a3   :  { %4155 = vmatpush1.bf16.msra.mxu0 %v11961_v27  ;;  %4196 = vmatpush1.bf16.msra.mxu1 %v13570_v32  ;;  %v12068_v32 = vld [vmem:[#allocation8 + $0x28] ss:$16 sps:$4 sm:$0xff]   ;;  %13578 = vst [vmem:[#allocation24_spill] sm:$0xff] %v12088_v62 }
 0x3a4   :  { %4156 = vmatprep.subr.bf16.mxu0 %v11965_v39  ;;  %4197 = vmatprep.subr.bf16.mxu1 %v13571_v51  ;;  %13572 = vst [vmem:[#allocation18_spill] sm:$0xff] %v12068_v32  ;;  %v12076_v51 = vld [vmem:[#allocation8 + $0x4c] ss:$16 sps:$4 sm:$0xff]  }
 0x3a5   :  { %v10844_v41 = vpop.eup %10843  ;;  %13574 = vst [vmem:[#allocation20_spill] sm:$0xff] %v12076_v51 }
 0x3a6   :  { %v10846_v53 = vpop.eup %10845  ;;  %v3209_v44 = vmul.f32 %v10844_v41, %v10842_v33  ;;  %v12074_v33 = vld [vmem:[#allocation8 + $0x44] ss:$16 sps:$4 sm:$0xff]   ;;  %v12078_v41 = vld [vmem:[#allocation8 + $0x40] ss:$16 sps:$4 sm:$0xff]  }
 0x3a7   :  { %v3208_v35 = vmul.f32 %v10846_v53, %v11788_v25  ;;  %4157 = vmatpush1.bf16.msra.mxu0 %v11969_v24  ;;  %4198 = vmatpush1.bf16.msra.mxu1 %v11767_v3  ;;  %13573 = vst [vmem:[#allocation19_spill] sm:$0xff] %v12074_v33  ;;  %13575 = vst [vmem:[#allocation21_spill] sm:$0xff] %v12078_v41  ;;  %v12080_v53 = vld [vmem:[#allocation8 + $0x48] ss:$16 sps:$4 sm:$0xff]  }
 0x3a8   :  { %4158 = vmatprep.subr.bf16.mxu0 %v11973_v60  ;;  %4199 = vmatprep.subr.bf16.mxu1 %v11771_v8  ;;  %v11994_v8 = vld [vmem:[#allocation8 + $0x364] ss:$16 sps:$4 sm:$0xff]   ;;  %13576 = vst [vmem:[#allocation22_spill] sm:$0xff] %v12080_v53 }
 0x3a9   :  { %v3210_v61 = vadd.f32 %v3209_v44, %v3208_v35  ;;  %v12086_v44 = vld [vmem:[#allocation8 + $0x64] ss:$16 sps:$4 sm:$0xff]   ;;  %v12090_v35 = vld [vmem:[#allocation8 + $0x60] ss:$16 sps:$4 sm:$0xff]  }
 0x3aa   :  { %13577 = vst [vmem:[#allocation23_spill] sm:$0xff] %v12086_v44  ;;  %13579 = vst [vmem:[#allocation25_spill] sm:$0xff] %v12090_v35 }
 0x3ab   :  { %10849 = vtanh.f32 %v3210_v61  ;;  %4159 = vmatpush1.bf16.msra.mxu0 %v11978_v54  ;;  %4200 = vmatpush1.bf16.msra.mxu1 %v11776_v12  ;;  %v11990_v3 = vsel %vm3219_vm13, %v3210_v61, %v11788_v25  ;;  %v12002_v12 = vld [vmem:[#allocation8 + $0x384] ss:$16 sps:$4 sm:$0xff]   ;;  %v12006_v25 = vld [vmem:[#allocation8 + $0x380] ss:$16 sps:$4 sm:$0xff]  }
 0x3ac   :  { %4160 = vmatprep.subr.bf16.mxu0 %v11982_v52  ;;  %4201 = vmatprep.subr.bf16.mxu1 %v11780_v36  ;;  %v10848_v36 = vpop.eup %10847  ;;  %v12098_v61 = vld [vmem:[#allocation8 + $0x84] ss:$16 sps:$4 sm:$0xff]  }
 0x3ad   :  { %13581 = vst [vmem:[#allocation27_spill] sm:$0xff] %v12098_v61 }
 0x3af   :  { %4161 = vmatpush1.bf16.msra.mxu0 %v11986_v23  ;;  %4202 = vmatpush1.bf16.msra.mxu1 %v11784_v17  ;;  %v12010_v17 = vld [vmem:[#allocation8 + $0x3a4] ss:$16 sps:$4 sm:$0xff]  }
 0x3b0   :  { %4162 = vmatprep.subr.bf16.mxu0 %v11994_v8  ;;  %4203 = vmatprep.subr.bf16.mxu1 %v11792_v20  ;;  %v12014_v20 = vld [vmem:[#allocation8 + $0x3a0] ss:$16 sps:$4 sm:$0xff]  }
 0x3b3   :  { %4163 = vmatpush1.bf16.msra.mxu0 %v11998_v47  ;;  %4204 = vmatpush1.bf16.msra.mxu1 %v11796_v0 }
 0x3b4   :  { %4164 = vmatprep.subr.bf16.mxu0 %v12002_v12  ;;  %4205 = vmatprep.subr.bf16.mxu1 %v11800_v28  ;;  %v12024_v28 = vld [vmem:[#allocation8 + $0x3cc] ss:$16 sps:$4 sm:$0xff]  }
 0x3b5   :  { %v10850_v55 = vpop.eup %10849 }
 0x3b6   :  { %v3212_v59 = vmul.f32 %v10850_v55, %v10848_v36  ;;  %v12100_v36 = vld [vmem:[#allocation8 + $0x8c] ss:$16 sps:$4 sm:$0xff]   ;;  %v12102_v55 = vld [vmem:[#allocation8 + $0x80] ss:$16 sps:$4 sm:$0xff]  }
 0x3b7   :  { %4165 = vmatpush1.bf16.msra.mxu0 %v12006_v25  ;;  %4206 = vmatpush1.bf16.msra.mxu1 %v11804_v30  ;;  %v12030_v30 = vld [vmem:[#allocation8 + $0x3c0] ss:$16 sps:$4 sm:$0xff]   ;;  %13582 = vst [vmem:[#allocation28_spill] sm:$0xff] %v12100_v36  ;;  %13583 = vst [vmem:[#allocation29_spill] sm:$0xff] %v12102_v55 }
 0x3b8   :  { %v12018_v0 = vsel %vm3219_vm13, %v3212_v59, %v11816_v45  ;;  %4166 = vmatprep.subr.bf16.mxu0 %v12010_v17  ;;  %4207 = vmatprep.subr.bf16.mxu1 %v11808_v34  ;;  %v12032_v45 = vld [vmem:[#allocation8 + $0x3c8] ss:$16 sps:$4 sm:$0xff]   ;;  %v12036_v34 = vld [vmem:[#allocation8 + $0x3e4] ss:$16 sps:$4 sm:$0xff]  }
 0x3b9   :  { %v3225_v2 = vpack.c.bf16 %v12018_v0, %v12018_v0  ;;  %v12104_v59 = vld [vmem:[#allocation8 + $0x88] ss:$16 sps:$4 sm:$0xff]  }
 0x3ba   :  { %13584 = vst [vmem:[#allocation30_spill] sm:$0xff] %v12104_v59 }
 0x3bb   :  { %3226 = vst [vmem:[#allocation3 + $0x4] sm:$0xf] %v3225_v2  ;;  %4167 = vmatpush1.bf16.msra.mxu0 %v12014_v20  ;;  %4208 = vmatpush1.bf16.msra.mxu1 %v11812_v43  ;;  %v12048_v43 = vld [vmem:[#allocation8 + $0x4] ss:$16 sps:$4 sm:$0xff]  }
 0x3bc   :  { %4168 = vmatprep.subr.bf16.mxu0 %v12022_v31  ;;  %4209 = vmatprep.subr.bf16.mxu1 %v12024_v28  ;;  %v12110_v2 = vld [vmem:[#allocation8 + $0xa4] ss:$16 sps:$4 sm:$0xff]  }
 0x3bd   :  { %13585 = vst [vmem:[#allocation31_spill] sm:$0xff] %v12110_v2 }
 0x3bf   :  { %4169 = vmatpush1.bf16.msra.mxu0 %v12030_v30  ;;  %4210 = vmatpush1.bf16.msra.mxu1 %v12032_v45 }
 0x3c0   :  { %4170 = vmatprep.subr.bf16.mxu0 %v12036_v34  ;;  %4211 = vmatprep.subr.bf16.mxu1 %v12038_v58 }
 0x3c2   :  { %v3748_v9 = vld [vmem:[#allocation3] sm:$0xff] }
 0x3c3   :  { %4171 = vmatpush1.bf16.msra.mxu0 %v12042_v56  ;;  %4212 = vmatpush1.bf16.msra.mxu1 %v12044_v4  ;;  %v9158_v7 = vcombine.high %v3748_v9, %v3748_v9  ;;  %v9157_v10 = vcombine.low %v3748_v9, %v3748_v9  ;;  %v12112_v9 = vld [vmem:[#allocation8 + $0xac] ss:$16 sps:$4 sm:$0xff]  }
 0x3c4   :  { %4657 = vmatprep.subr.bf16.mxu0 %v12048_v43  ;;  %4698 = vmatprep.subr.bf16.mxu1 %v12050_v5  ;;  %13586 = vst [vmem:[#allocation32_spill] sm:$0xff] %v12112_v9 }
 0x3c5   :  { %4172 = vmatprep.mubr.bf16.mxu0 %v9158_v7  ;;  %4213 = vmatprep.mubr.bf16.mxu1 %v9158_v7  ;;  %v12114_v7 = vld [vmem:[#allocation8 + $0xa0] ss:$16 sps:$4 sm:$0xff]  }
 0x3c6   :  { %4173 = vmatmul.mubr.bf16.vlgmr.msra.gmra.mrb[28].mxu0 %v9157_v10  ;;  %4214 = vmatmul.mubr.bf16.vlgmr.msra.gmra.mrb[28].mxu1 %v9157_v10  ;;  %13587 = vst [vmem:[#allocation33_spill] sm:$0xff] %v12114_v7  ;;  %v12116_v10 = vld [vmem:[#allocation8 + $0xa8] ss:$16 sps:$4 sm:$0xff]  }
 0x3c7   :  { %4658 = vmatpush1.bf16.msra.mxu0 %v12054_v11  ;;  %4699 = vmatpush1.bf16.msra.mxu1 %v12056_v16  ;;  %13588 = vst [vmem:[#allocation34_spill] sm:$0xff] %v12116_v10 }
 0x3c8   :  { %4659 = vmatprep.subr.bf16.mxu0 %v12062_v18  ;;  %4700 = vmatprep.subr.bf16.mxu1 %v12064_v21 }
 0x3cb   :  { %4660 = vmatpush1.bf16.msra.mxu0 %v12066_v29  ;;  %4701 = vmatpush1.bf16.msra.mxu1 %v12068_v32 }
 0x3cc   :  { %4661 = vmatprep.subr.bf16.mxu0 %v12074_v33  ;;  %4702 = vmatprep.subr.bf16.mxu1 %v12076_v51 }
 0x3cf   :  { %4662 = vmatpush1.bf16.msra.mxu0 %v12078_v41  ;;  %4703 = vmatpush1.bf16.msra.mxu1 %v12080_v53 }
 0x3d0   :  { %4663 = vmatprep.subr.bf16.mxu0 %v12086_v44  ;;  %4704 = vmatprep.subr.bf16.mxu1 %v12088_v62 }
 0x3d3   :  { %4664 = vmatpush1.bf16.msra.mxu0 %v12090_v35  ;;  %4705 = vmatpush1.bf16.msra.mxu1 %v12092_v37  ;;  %v12216_v37 = vld [vmem:[#allocation8 + $0x1c4] ss:$16 sps:$4 sm:$0xff]   ;;  %v12229_v35 = vld [vmem:[#allocation8 + $0x1ec] ss:$16 sps:$4 sm:$0xff]  }
 0x3d4   :  { %4665 = vmatprep.subr.bf16.mxu0 %v12098_v61  ;;  %4706 = vmatprep.subr.bf16.mxu1 %v12100_v36  ;;  %v12122_v36 = vld [vmem:[#allocation8 + $0xc4] ss:$16 sps:$4 sm:$0xff]   ;;  %v12128_v61 = vld [vmem:[#allocation8 + $0xc8] ss:$16 sps:$4 sm:$0xff]   ;;  %13621 = vst [vmem:[#allocation68_spill] sm:$0xff] %v12216_v37  ;;  %13626 = vst [vmem:[#allocation72_spill] sm:$0xff] %v12229_v35 }
 0x3d5   :  { %13589 = vst [vmem:[#allocation35_spill] sm:$0xff] %v12122_v36  ;;  %13592 = vst [vmem:[#allocation38_spill] sm:$0xff] %v12128_v61 }
 0x3d7   :  { %4666 = vmatpush1.bf16.msra.mxu0 %v12102_v55  ;;  %4707 = vmatpush1.bf16.msra.mxu1 %v12104_v59  ;;  %v12124_v55 = vld [vmem:[#allocation8 + $0xcc] ss:$16 sps:$4 sm:$0xff]   ;;  %v12126_v59 = vld [vmem:[#allocation8 + $0xc0] ss:$16 sps:$4 sm:$0xff]  }
 0x3d8   :  { %4667 = vmatprep.subr.bf16.mxu0 %v12110_v2  ;;  %4708 = vmatprep.subr.bf16.mxu1 %v12112_v9  ;;  %13590 = vst [vmem:[#allocation36_spill] sm:$0xff] %v12124_v55  ;;  %13591 = vst [vmem:[#allocation37_spill] sm:$0xff] %v12126_v59  ;;  %v12134_v9 = vld [vmem:[#allocation8 + $0xe4] ss:$16 sps:$4 sm:$0xff]   ;;  %v12140_v2 = vld [vmem:[#allocation8 + $0xe8] ss:$16 sps:$4 sm:$0xff]  }
 0x3d9   :  { %13593 = vst [vmem:[#allocation39_spill] sm:$0xff] %v12134_v9  ;;  %13596 = vst [vmem:[#allocation42_spill] sm:$0xff] %v12140_v2 }
 0x3db   :  { %4668 = vmatpush1.bf16.msra.mxu0 %v12114_v7  ;;  %4709 = vmatpush1.bf16.msra.mxu1 %v12116_v10  ;;  %v12136_v7 = vld [vmem:[#allocation8 + $0xec] ss:$16 sps:$4 sm:$0xff]   ;;  %v12138_v10 = vld [vmem:[#allocation8 + $0xe0] ss:$16 sps:$4 sm:$0xff]  }
 0x3dc   :  { %4669 = vmatprep.subr.bf16.mxu0 %v12122_v36  ;;  %4710 = vmatprep.subr.bf16.mxu1 %v12124_v55  ;;  %13594 = vst [vmem:[#allocation40_spill] sm:$0xff] %v12136_v7  ;;  %13595 = vst [vmem:[#allocation41_spill] sm:$0xff] %v12138_v10  ;;  %v12146_v55 = vld [vmem:[#allocation8 + $0x104] ss:$16 sps:$4 sm:$0xff]   ;;  %v12152_v36 = vld [vmem:[#allocation8 + $0x108] ss:$16 sps:$4 sm:$0xff]  }
 0x3dd   :  { %13597 = vst [vmem:[#allocation43_spill] sm:$0xff] %v12146_v55  ;;  %13600 = vst [vmem:[#allocation46_spill] sm:$0xff] %v12152_v36 }
 0x3df   :  { %4670 = vmatpush1.bf16.msra.mxu0 %v12126_v59  ;;  %4711 = vmatpush1.bf16.msra.mxu1 %v12128_v61  ;;  %v12148_v59 = vld [vmem:[#allocation8 + $0x10c] ss:$16 sps:$4 sm:$0xff]   ;;  %v12150_v61 = vld [vmem:[#allocation8 + $0x100] ss:$16 sps:$4 sm:$0xff]  }
 0x3e0   :  { %4671 = vmatprep.subr.bf16.mxu0 %v12134_v9  ;;  %4712 = vmatprep.subr.bf16.mxu1 %v12136_v7  ;;  %13598 = vst [vmem:[#allocation44_spill] sm:$0xff] %v12148_v59  ;;  %13599 = vst [vmem:[#allocation45_spill] sm:$0xff] %v12150_v61  ;;  %v12158_v7 = vld [vmem:[#allocation8 + $0x124] ss:$16 sps:$4 sm:$0xff]   ;;  %v12164_v9 = vld [vmem:[#allocation8 + $0x128] ss:$16 sps:$4 sm:$0xff]  }
 0x3e1   :  { %13601 = vst [vmem:[#allocation47_spill] sm:$0xff] %v12158_v7  ;;  %13604 = vst [vmem:[#allocation50_spill] sm:$0xff] %v12164_v9 }
 0x3e3   :  { %4672 = vmatpush1.bf16.msra.mxu0 %v12138_v10  ;;  %4713 = vmatpush1.bf16.msra.mxu1 %v12140_v2  ;;  %v12160_v10 = vld [vmem:[#allocation8 + $0x12c] ss:$16 sps:$4 sm:$0xff]   ;;  %v12162_v2 = vld [vmem:[#allocation8 + $0x120] ss:$16 sps:$4 sm:$0xff]  }
 0x3e4   :  { %4673 = vmatprep.subr.bf16.mxu0 %v12146_v55  ;;  %4714 = vmatprep.subr.bf16.mxu1 %v12148_v59  ;;  %13602 = vst [vmem:[#allocation48_spill] sm:$0xff] %v12160_v10  ;;  %13603 = vst [vmem:[#allocation49_spill] sm:$0xff] %v12162_v2  ;;  %v12170_v59 = vld [vmem:[#allocation8 + $0x144] ss:$16 sps:$4 sm:$0xff]   ;;  %v12176_v55 = vld [vmem:[#allocation8 + $0x148] ss:$16 sps:$4 sm:$0xff]  }
 0x3e5   :  { %13605 = vst [vmem:[#allocation51_spill] sm:$0xff] %v12170_v59  ;;  %13608 = vst [vmem:[#allocation54_spill] sm:$0xff] %v12176_v55 }
 0x3e7   :  { %4674 = vmatpush1.bf16.msra.mxu0 %v12150_v61  ;;  %4715 = vmatpush1.bf16.msra.mxu1 %v12152_v36  ;;  %v12172_v61 = vld [vmem:[#allocation8 + $0x14c] ss:$16 sps:$4 sm:$0xff]   ;;  %v12174_v36 = vld [vmem:[#allocation8 + $0x140] ss:$16 sps:$4 sm:$0xff]  }
 0x3e8   :  { %4675 = vmatprep.subr.bf16.mxu0 %v12158_v7  ;;  %4716 = vmatprep.subr.bf16.mxu1 %v12160_v10  ;;  %13606 = vst [vmem:[#allocation52_spill] sm:$0xff] %v12172_v61  ;;  %13607 = vst [vmem:[#allocation53_spill] sm:$0xff] %v12174_v36  ;;  %v12182_v10 = vld [vmem:[#allocation8 + $0x164] ss:$16 sps:$4 sm:$0xff]   ;;  %v12188_v7 = vld [vmem:[#allocation8 + $0x168] ss:$16 sps:$4 sm:$0xff]  }
 0x3e9   :  { %13609 = vst [vmem:[#allocation55_spill] sm:$0xff] %v12182_v10  ;;  %13612 = vst [vmem:[#allocation58_spill] sm:$0xff] %v12188_v7 }
 0x3eb   :  { %4676 = vmatpush1.bf16.msra.mxu0 %v12162_v2  ;;  %4717 = vmatpush1.bf16.msra.mxu1 %v12164_v9  ;;  %v12184_v2 = vld [vmem:[#allocation8 + $0x16c] ss:$16 sps:$4 sm:$0xff]   ;;  %v12186_v9 = vld [vmem:[#allocation8 + $0x160] ss:$16 sps:$4 sm:$0xff]  }
 0x3ec   :  { %4677 = vmatprep.subr.bf16.mxu0 %v12170_v59  ;;  %4718 = vmatprep.subr.bf16.mxu1 %v12172_v61  ;;  %13610 = vst [vmem:[#allocation56_spill] sm:$0xff] %v12184_v2  ;;  %13611 = vst [vmem:[#allocation57_spill] sm:$0xff] %v12186_v9  ;;  %v12194_v61 = vld [vmem:[#allocation8 + $0x184] ss:$16 sps:$4 sm:$0xff]   ;;  %v12200_v59 = vld [vmem:[#allocation8 + $0x188] ss:$16 sps:$4 sm:$0xff]  }
 0x3ed   :  { %13613 = vst [vmem:[#allocation59_spill] sm:$0xff] %v12194_v61  ;;  %13616 = vst [vmem:[#allocation62_spill] sm:$0xff] %v12200_v59 }
 0x3ef   :  { %4678 = vmatpush1.bf16.msra.mxu0 %v12174_v36  ;;  %4719 = vmatpush1.bf16.msra.mxu1 %v12176_v55  ;;  %v12196_v36 = vld [vmem:[#allocation8 + $0x18c] ss:$16 sps:$4 sm:$0xff]   ;;  %v12198_v55 = vld [vmem:[#allocation8 + $0x180] ss:$16 sps:$4 sm:$0xff]  }
 0x3f0   :  { %4679 = vmatprep.subr.bf16.mxu0 %v12182_v10  ;;  %4720 = vmatprep.subr.bf16.mxu1 %v12184_v2  ;;  %13614 = vst [vmem:[#allocation60_spill] sm:$0xff] %v12196_v36  ;;  %13615 = vst [vmem:[#allocation61_spill] sm:$0xff] %v12198_v55  ;;  %v12206_v2 = vld [vmem:[#allocation8 + $0x1a4] ss:$16 sps:$4 sm:$0xff]   ;;  %v12212_v10 = vld [vmem:[#allocation8 + $0x1a8] ss:$16 sps:$4 sm:$0xff]  }
 0x3f1   :  { %13617 = vst [vmem:[#allocation63_spill] sm:$0xff] %v12206_v2  ;;  %13620 = vst [vmem:[#allocation65_spill] sm:$0xff] %v12212_v10 }
 0x3f3   :  { %4680 = vmatpush1.bf16.msra.mxu0 %v12186_v9  ;;  %4721 = vmatpush1.bf16.msra.mxu1 %v12188_v7  ;;  %v12208_v9 = vld [vmem:[#allocation8 + $0x1ac] ss:$16 sps:$4 sm:$0xff]   ;;  %v12210_v7 = vld [vmem:[#allocation8 + $0x1a0] ss:$16 sps:$4 sm:$0xff]  }
 0x3f4   :  { %4681 = vmatprep.subr.bf16.mxu0 %v12194_v61  ;;  %4722 = vmatprep.subr.bf16.mxu1 %v12196_v36  ;;  %13618 = vst [vmem:[#allocation66_spill] sm:$0xff] %v12208_v9  ;;  %13619 = vst [vmem:[#allocation64_spill] sm:$0xff] %v12210_v7  ;;  %v12224_v36 = vld [vmem:[#allocation8 + $0x1cc] ss:$16 sps:$4 sm:$0xff]   ;;  %v12227_v61 = vld [vmem:[#allocation8 + $0x1e4] ss:$16 sps:$4 sm:$0xff]  }
 0x3f5   :  { %13624 = vst [vmem:[#allocation71_spill] sm:$0xff] %v12224_v36  ;;  %13625 = vst [vmem:[#allocation70_spill] sm:$0xff] %v12227_v61 }
 0x3f7   :  { %4682 = vmatpush1.bf16.msra.mxu0 %v12198_v55  ;;  %4723 = vmatpush1.bf16.msra.mxu1 %v12200_v59  ;;  %v12220_v55 = vld [vmem:[#allocation8 + $0x1c0] ss:$16 sps:$4 sm:$0xff]   ;;  %v12222_v59 = vld [vmem:[#allocation8 + $0x1c8] ss:$16 sps:$4 sm:$0xff]  }
 0x3f8   :  { %4683 = vmatprep.subr.bf16.mxu0 %v12206_v2  ;;  %4724 = vmatprep.subr.bf16.mxu1 %v12208_v9  ;;  %13622 = vst [vmem:[#allocation69_spill] sm:$0xff] %v12220_v55  ;;  %13623 = vst [vmem:[#allocation67_spill] sm:$0xff] %v12222_v59  ;;  %v9227_v9 = vld [vmem:[%s13216_s0 + $0x10] sm:$0xf] }
 0x3f9   :  { %4264 = vst [vmem:[#allocation2] sm:$0xf] %v9227_v9  ;;  %v9298_v9 = vld [vmem:[%s13217_s1 + $0xc] sm:$0xf] }
 0x3fa   :  { %4781 = vst [vmem:[#allocation3] sm:$0xf] %v9298_v9 }
 0x3fb   :  { %4684 = vmatpush1.bf16.msra.mxu0 %v12210_v7  ;;  %4725 = vmatpush1.bf16.msra.mxu1 %v12212_v10  ;;  %v12237_v10 = vld [vmem:[#allocation8 + $0x1e0] ss:$16 sps:$4 sm:$0xff]   ;;  %v12239_v7 = vld [vmem:[#allocation8 + $0x1e8] ss:$16 sps:$4 sm:$0xff]  }
 0x3fc   :  { %4685 = vmatprep.subr.bf16.mxu0 %v12216_v37  ;;  %4726 = vmatprep.subr.bf16.mxu1 %v12224_v36  ;;  %13627 = vst [vmem:[#allocation73_spill] sm:$0xff] %v12237_v10  ;;  %13628 = vst [vmem:[#allocation74_spill] sm:$0xff] %v12239_v7  ;;  %v12245_v37 = vld [vmem:[#allocation8 + $0x204] ss:$16 sps:$4 sm:$0xff]   ;;  %v12247_v36 = vld [vmem:[#allocation8 + $0x20c] ss:$16 sps:$4 sm:$0xff]  }
 0x3fd   :  { %13629 = vst [vmem:[#allocation75_spill] sm:$0xff] %v12245_v37  ;;  %13630 = vst [vmem:[#allocation76_spill] sm:$0xff] %v12247_v36 }
 0x3ff   :  { %4686 = vmatpush1.bf16.msra.mxu0 %v12220_v55  ;;  %4727 = vmatpush1.bf16.msra.mxu1 %v12222_v59 }
 0x400   :  { %4687 = vmatprep.subr.bf16.mxu0 %v12227_v61  ;;  %4728 = vmatprep.subr.bf16.mxu1 %v12229_v35 }
 0x403   :  { %4688 = vmatpush1.bf16.msra.mxu0 %v12237_v10  ;;  %4729 = vmatpush1.bf16.msra.mxu1 %v12239_v7 }
 0x404   :  { %5174 = vmatprep.subr.bf16.mxu0 %v12245_v37  ;;  %5215 = vmatprep.subr.bf16.mxu1 %v12247_v36 }
 0x459   :  { %v3657_v61 = vpop.f32.mrb[24].mxu0  ;;  %v3698_v59 = vpop.f32.mrb[24].mxu1 }
 0x45a   :  { %v3658_v35 = vadd.f32 %v3657_v61, %v13562_v15  ;;  %v3659_v10 = vpop.f32.mrb[25].mxu0  ;;  %v3700_v55 = vpop.f32.mrb[25].mxu1  ;;  %v3699_v9 = vadd.f32 %v3698_v59, %v11342_v57 }
 0x45b   :  { %v3660_v7 = vadd.f32 %v3659_v10, %v11326_v38  ;;  %v3661_v2 = vpop.f32.mrb[26].mxu0  ;;  %v3702_v62 = vpop.f32.mrb[26].mxu1  ;;  %v3701_v36 = vadd.f32 %v3700_v55, %v11334_v49  ;;  %v9369_v10 = vld [vmem:[%s13216_s0 + $0x14] sm:$0xf] }
 0x45c   :  { %v9152_v44 = vmul.f32 -1.442695, %v3658_v35  ;;  %v3662_v53 = vpop.f32.mrb[27].mxu0  ;;  %v3703_v37 = vpop.f32.mrb[27].mxu1 }
 0x45d   :  { %v9153_v41 = vmul.f32 -1.442695, %v3660_v7  ;;  %v9154_v51 = vmul.f32 -1.442695, %v3701_v36  ;;  %v3735_v55 = vpop.permute.xlu0 %3734 }
 0x45e   :  { %10851 = vpow2.f32 %v9152_v44  ;;  %vm3736_vm14 = vcmp.eq.s32.totalorder %v3735_v55, 1 }
 0x45f   :  { %10853 = vpow2.f32 %v9153_v41 }
 0x460   :  { %10855 = vpow2.f32 %v9154_v51 }
 0x461   :  { %10857 = vtanh.f32 %v3699_v9 }
 0x468   :  { %v10852_v33 = vpop.eup %10851 }
 0x469   :  { %v10854_v32 = vpop.eup %10853  ;;  %v3708_v61 = vadd.f32 1.0, %v10852_v33 }
 0x46a   :  { %v3714_v15 = vadd.f32 1.0, %v10854_v32  ;;  %v10856_v62 = vpop.eup %10855 }
 0x46b   :  { %10859 = vrcp.f32 %v3708_v61  ;;  %v10858_v35 = vpop.eup %10857  ;;  %v3721_v44 = vadd.f32 1.0, %v10856_v62 }
 0x46c   :  { %10861 = vrcp.f32 %v3714_v15 }
 0x46d   :  { %10863 = vrcp.f32 %v3721_v44  ;;  %v12286_v44 = vld [vmem:[#allocation8 + $0x244] ss:$16 sps:$4 sm:$0xff]  }
 0x475   :  { %v10860_v53 = vpop.eup %10859 }
 0x476   :  { %v10862_v37 = vpop.eup %10861  ;;  %v3726_v2 = vmul.f32 %v10860_v53, %v10858_v35  ;;  %v12272_v35 = vld [vmem:[#allocation8 + $0x208] ss:$16 sps:$4 sm:$0xff]   ;;  %v12274_v53 = vld [vmem:[#allocation8 + $0x224] ss:$16 sps:$4 sm:$0xff]  }
 0x477   :  { %v3725_v41 = vmul.f32 %v10862_v37, %v11910_v14  ;;  %v10864_v51 = vpop.eup %10863  ;;  %13632 = vst [vmem:[#allocation78_spill] sm:$0xff] %v12272_v35  ;;  %13633 = vst [vmem:[#allocation79_spill] sm:$0xff] %v12274_v53  ;;  %v12280_v37 = vld [vmem:[#allocation8 + $0x220] ss:$16 sps:$4 sm:$0xff]  }
 0x479   :  { %v3727_v36 = vadd.f32 %v3726_v2, %v3725_v41  ;;  %v12282_v2 = vld [vmem:[#allocation8 + $0x228] ss:$16 sps:$4 sm:$0xff]   ;;  %v12288_v41 = vld [vmem:[#allocation8 + $0x24c] ss:$16 sps:$4 sm:$0xff]  }
 0x47b   :  { %10865 = vtanh.f32 %v3727_v36  ;;  %v12260_v33 = vsel %vm3736_vm14, %v3727_v36, %v11910_v14  ;;  %v12270_v14 = vld [vmem:[#allocation8 + $0x200] ss:$16 sps:$4 sm:$0xff]  }
 0x47c   :  { %13631 = vst [vmem:[#allocation77_spill] sm:$0xff] %v12270_v14 }
 0x485   :  { %v10866_v32 = vpop.eup %10865 }
 0x486   :  { %v3729_v59 = vmul.f32 %v10866_v32, %v10864_v51 }
 0x488   :  { %v12263_v15 = vsel %vm3736_vm14, %v3729_v59, %v11913_v26  ;;  %v12276_v26 = vld [vmem:[#allocation8 + $0x22c] ss:$16 sps:$4 sm:$0xff]  }
 0x489   :  { %v3742_v7 = vpack.c.bf16 %v12263_v15, %v12263_v15  ;;  %13634 = vst [vmem:[#allocation80_spill] sm:$0xff] %v12276_v26 }
 0x48b   :  { %3743 = vst [vmem:[#allocation2 + $0x4] sm:$0xf] %v3742_v7  ;;  %v12291_v7 = vld [vmem:[#allocation8 + $0x240] ss:$16 sps:$4 sm:$0xff]  }
 0x492   :  { %v4265_v9 = vld [vmem:[#allocation2] sm:$0xff] }
 0x493   :  { %v9229_v61 = vcombine.high %v4265_v9, %v4265_v9  ;;  %5298 = vst [vmem:[#allocation2] sm:$0xf] %v9369_v10  ;;  %v9228_v62 = vcombine.low %v4265_v9, %v4265_v9 }
 0x495   :  { %4689 = vmatprep.mubr.bf16.mxu0 %v9229_v61  ;;  %4730 = vmatprep.mubr.bf16.mxu1 %v9229_v61 }
 0x496   :  { %4690 = vmatmul.mubr.bf16.vlgmr.msra.gmra.mrb[32].mxu0 %v9228_v62  ;;  %4731 = vmatmul.mubr.bf16.vlgmr.msra.gmra.mrb[32].mxu1 %v9228_v62  ;;  %v12296_v62 = vld [vmem:[#allocation8 + $0x248] ss:$16 sps:$4 sm:$0xff]  }
 0x497   :  { %5175 = vmatpush1.bf16.msra.mxu0 %v12270_v14  ;;  %5216 = vmatpush1.bf16.msra.mxu1 %v12272_v35 }
 0x498   :  { %5176 = vmatprep.subr.bf16.mxu0 %v12274_v53  ;;  %5217 = vmatprep.subr.bf16.mxu1 %v12276_v26  ;;  %v12298_v26 = vld [vmem:[#allocation8 + $0x264] ss:$16 sps:$4 sm:$0xff]  }
 0x499   :  { %v4174_v55 = vpop.f32.mrb[28].mxu0  ;;  %v4215_v36 = vpop.f32.mrb[28].mxu1 }
 0x49a   :  { %v4175_v51 = vadd.f32 %v4174_v55, %v11360_v19  ;;  %v4176_v32 = vpop.f32.mrb[29].mxu0  ;;  %v4217_v59 = vpop.f32.mrb[29].mxu1  ;;  %v12302_v55 = vld [vmem:[#allocation8 + $0x26c] ss:$16 sps:$4 sm:$0xff]  }
 0x49b   :  { %v4177_v10 = vadd.f32 %v4176_v32, %v11364_v22  ;;  %v4178_v9 = vpop.f32.mrb[30].mxu0  ;;  %v4219_v61 = vpop.f32.mrb[30].mxu1  ;;  %5177 = vmatpush1.bf16.msra.mxu0 %v12280_v37  ;;  %5218 = vmatpush1.bf16.msra.mxu1 %v12282_v2 }
 0x49c   :  { %v9223_v53 = vmul.f32 -1.442695, %v4175_v51  ;;  %v4179_v35 = vpop.f32.mrb[31].mxu0  ;;  %v4220_v14 = vpop.f32.mrb[31].mxu1  ;;  %5178 = vmatprep.subr.bf16.mxu0 %v12286_v44  ;;  %5219 = vmatprep.subr.bf16.mxu1 %v12288_v41  ;;  %v12306_v9 = vld [vmem:[#allocation8 + $0x260] ss:$16 sps:$4 sm:$0xff]  }
 0x49d   :  { %v9224_v32 = vmul.f32 -1.442695, %v4177_v10  ;;  %13635 = vst [vmem:[#allocation81_spill] sm:$0xff] %v12306_v9  ;;  %v12308_v61 = vld [vmem:[#allocation8 + $0x268] ss:$16 sps:$4 sm:$0xff]   ;;  %v4218_v35 = vadd.f32 %v4217_v59, %v11370_v42 }
 0x49e   :  { %10867 = vpow2.f32 %v9223_v53  ;;  %13636 = vst [vmem:[#allocation82_spill] sm:$0xff] %v12308_v61  ;;  %v12312_v14 = vld [vmem:[#allocation8 + $0x28c] ss:$16 sps:$4 sm:$0xff]   ;;  %v12317_v53 = vld [vmem:[#allocation8 + $0x288] ss:$16 sps:$4 sm:$0xff]  }
 0x49f   :  { %10869 = vpow2.f32 %v9224_v32  ;;  %5179 = vmatpush1.bf16.msra.mxu0 %v12291_v7  ;;  %5220 = vmatpush1.bf16.msra.mxu1 %v12296_v62  ;;  %13637 = vst [vmem:[#allocation83_spill] sm:$0xff] %v12312_v14  ;;  %v12321_v51 = vld [vmem:[#allocation8 + $0x2ac] ss:$16 sps:$4 sm:$0xff]   ;;  %v9225_v10 = vmul.f32 -1.442695, %v4218_v35  ;;  %v4216_v32 = vadd.f32 %v4215_v36, %v11377_v40 }
 0x4a0   :  { %5180 = vmatprep.subr.bf16.mxu0 %v12298_v26  ;;  %5221 = vmatprep.subr.bf16.mxu1 %v12302_v55  ;;  %v12326_v59 = vld [vmem:[#allocation8 + $0x2a8] ss:$16 sps:$4 sm:$0xff]  }
 0x4a1   :  { %10871 = vpow2.f32 %v9225_v10  ;;  %v12342_v36 = vld [vmem:[#allocation8 + $0x2e8] ss:$16 sps:$4 sm:$0xff]  }
 0x4a2   :  { %10873 = vtanh.f32 %v4216_v32  ;;  %13638 = vst [vmem:[#allocation84_spill] sm:$0xff] %v12342_v36 }
 0x4a3   :  { %5181 = vmatpush1.bf16.msra.mxu0 %v12306_v9  ;;  %5222 = vmatpush1.bf16.msra.mxu1 %v12308_v61  ;;  %v12330_v61 = vld [vmem:[#allocation8 + $0x2cc] ss:$16 sps:$4 sm:$0xff]  }
 0x4a4   :  { %5182 = vmatprep.subr.bf16.mxu0 %v11931_v13  ;;  %5223 = vmatprep.subr.bf16.mxu1 %v12312_v14 }
 0x4a7   :  { %5183 = vmatpush1.bf16.msra.mxu0 %v11936_v1  ;;  %5224 = vmatpush1.bf16.msra.mxu1 %v12317_v53  ;;  %v12334_v1 = vld [vmem:[#allocation8 + $0x2c8] ss:$16 sps:$4 sm:$0xff]  }
 0x4a8   :  { %v10868_v9 = vpop.eup %10867  ;;  %5184 = vmatprep.subr.bf16.mxu0 %v11940_v6  ;;  %5225 = vmatprep.subr.bf16.mxu1 %v12321_v51  ;;  %v12338_v6 = vld [vmem:[#allocation8 + $0x2ec] ss:$16 sps:$4 sm:$0xff]  }
 0x4a9   :  { %v10870_v13 = vpop.eup %10869  ;;  %v4225_v14 = vadd.f32 1.0, %v10868_v9 }
 0x4aa   :  { %v4231_v35 = vadd.f32 1.0, %v10870_v13 }
 0x4ab   :  { %10875 = vrcp.f32 %v4225_v14  ;;  %5185 = vmatpush1.bf16.msra.mxu0 %v11945_v46  ;;  %5226 = vmatpush1.bf16.msra.mxu1 %v12326_v59  ;;  %v12346_v46 = vld [vmem:[#allocation8 + $0x30c] ss:$16 sps:$4 sm:$0xff]   ;;  %v10872_v9 = vpop.eup %10871 }
 0x4ac   :  { %10877 = vrcp.f32 %v4231_v35  ;;  %5186 = vmatprep.subr.bf16.mxu0 %v11949_v48  ;;  %5227 = vmatprep.subr.bf16.mxu1 %v12330_v61  ;;  %13639 = vst [vmem:[#allocation85_spill] sm:$0xff] %v12346_v46  ;;  %v12350_v48 = vld [vmem:[#allocation8 + $0x308] ss:$16 sps:$4 sm:$0xff]   ;;  %v10874_v14 = vpop.eup %10873  ;;  %v4238_v13 = vadd.f32 1.0, %v10872_v9 }
 0x4ae   :  { %10879 = vrcp.f32 %v4238_v13  ;;  %v13658_v13 = vld [vmem:[#allocation36_spill] sm:$0xff] }
 0x4af   :  { %5187 = vmatpush1.bf16.msra.mxu0 %v11953_v50  ;;  %5228 = vmatpush1.bf16.msra.mxu1 %v12334_v1  ;;  %v12354_v50 = vld [vmem:[#allocation8 + $0x32c] ss:$16 sps:$4 sm:$0xff]  }
 0x4b0   :  { %5188 = vmatprep.subr.bf16.mxu0 %v11957_v63  ;;  %5229 = vmatprep.subr.bf16.mxu1 %v12338_v6 }
 0x4b3   :  { %5189 = vmatpush1.bf16.msra.mxu0 %v11961_v27  ;;  %5230 = vmatpush1.bf16.msra.mxu1 %v12342_v36  ;;  %v12359_v27 = vld [vmem:[#allocation8 + $0x328] ss:$16 sps:$4 sm:$0xff]  }
 0x4b4   :  { %5190 = vmatprep.subr.bf16.mxu0 %v11965_v39  ;;  %5231 = vmatprep.subr.bf16.mxu1 %v12346_v46  ;;  %v12363_v39 = vld [vmem:[#allocation8 + $0x34c] ss:$16 sps:$4 sm:$0xff]   ;;  %v4252_v46 = vpop.permute.xlu1 %4251 }
 0x4b5   :  { %v10876_v10 = vpop.eup %10875  ;;  %vm4253_vm15 = vcmp.eq.s32.totalorder %v4252_v46, 1  ;;  %v13655_v46 = vld [vmem:[#allocation33_spill] sm:$0xff] }
 0x4b6   :  { %v10878_v63 = vpop.eup %10877  ;;  %v4243_v32 = vmul.f32 %v10876_v10, %v10874_v14  ;;  %v12379_v14 = vld [vmem:[#allocation8 + $0x368] ss:$16 sps:$4 sm:$0xff]  }
 0x4b7   :  { %v4242_v35 = vmul.f32 %v10878_v63, %v11990_v3  ;;  %5191 = vmatpush1.bf16.msra.mxu0 %v11969_v24  ;;  %5232 = vmatpush1.bf16.msra.mxu1 %v12350_v48  ;;  %v12367_v24 = vld [vmem:[#allocation8 + $0x348] ss:$16 sps:$4 sm:$0xff]  }
 0x4b8   :  { %5192 = vmatprep.subr.bf16.mxu0 %v11973_v60  ;;  %5233 = vmatprep.subr.bf16.mxu1 %v12354_v50  ;;  %v12375_v60 = vld [vmem:[#allocation8 + $0x36c] ss:$16 sps:$4 sm:$0xff]  }
 0x4b9   :  { %v4244_v36 = vadd.f32 %v4243_v32, %v4242_v35  ;;  %v13656_v63 = vld [vmem:[#allocation34_spill] sm:$0xff]  ;;  %v13657_v32 = vld [vmem:[#allocation35_spill] sm:$0xff]  ;;  %v13659_v35 = vld [vmem:[#allocation37_spill] sm:$0xff] }
 0x4bb   :  { %10881 = vtanh.f32 %v4244_v36  ;;  %5193 = vmatpush1.bf16.msra.mxu0 %v11978_v54  ;;  %5234 = vmatpush1.bf16.msra.mxu1 %v12359_v27  ;;  %v12371_v9 = vsel %vm4253_vm15, %v4244_v36, %v11990_v3  ;;  %v12383_v54 = vld [vmem:[#allocation8 + $0x38c] ss:$16 sps:$4 sm:$0xff]   ;;  %v10880_v3 = vpop.eup %10879 }
 0x4bc   :  { %5194 = vmatprep.subr.bf16.mxu0 %v11982_v52  ;;  %5235 = vmatprep.subr.bf16.mxu1 %v12363_v39  ;;  %v12387_v52 = vld [vmem:[#allocation8 + $0x388] ss:$16 sps:$4 sm:$0xff]  }
 0x4bf   :  { %5195 = vmatpush1.bf16.msra.mxu0 %v11986_v23  ;;  %5236 = vmatpush1.bf16.msra.mxu1 %v12367_v24  ;;  %v12391_v23 = vld [vmem:[#allocation8 + $0x3ac] ss:$16 sps:$4 sm:$0xff]  }
 0x4c0   :  { %5196 = vmatprep.subr.bf16.mxu0 %v11994_v8  ;;  %5237 = vmatprep.subr.bf16.mxu1 %v12375_v60  ;;  %v12395_v8 = vld [vmem:[#allocation8 + $0x3a8] ss:$16 sps:$4 sm:$0xff]  }
 0x4c3   :  { %5197 = vmatpush1.bf16.msra.mxu0 %v11998_v47  ;;  %5238 = vmatpush1.bf16.msra.mxu1 %v12379_v14 }
 0x4c4   :  { %5198 = vmatprep.subr.bf16.mxu0 %v12002_v12  ;;  %5239 = vmatprep.subr.bf16.mxu1 %v12383_v54 }
 0x4c5   :  { %v10882_v36 = vpop.eup %10881 }
 0x4c6   :  { %v4246_v10 = vmul.f32 %v10882_v36, %v10880_v3  ;;  %v13660_v3 = vld [vmem:[#allocation38_spill] sm:$0xff]  ;;  %v13661_v36 = vld [vmem:[#allocation39_spill] sm:$0xff] }
 0x4c7   :  { %5199 = vmatpush1.bf16.msra.mxu0 %v12006_v25  ;;  %5240 = vmatpush1.bf16.msra.mxu1 %v12387_v52  ;;  %v9440_v25 = vld [vmem:[%s13217_s1 + $0x8] sm:$0xf] }
 0x4c8   :  { %v12399_v47 = vsel %vm4253_vm15, %v4246_v10, %v12018_v0  ;;  %5200 = vmatprep.subr.bf16.mxu0 %v12010_v17  ;;  %5241 = vmatprep.subr.bf16.mxu1 %v12391_v23  ;;  %v13662_v10 = vld [vmem:[#allocation40_spill] sm:$0xff] }
 0x4c9   :  { %v4259_v12 = vpack.c.bf16 %v12399_v47, %v12399_v47 }
 0x4cb   :  { %4260 = vst [vmem:[#allocation3 + $0x4] sm:$0xf] %v4259_v12  ;;  %5201 = vmatpush1.bf16.msra.mxu0 %v12014_v20  ;;  %5242 = vmatpush1.bf16.msra.mxu1 %v12395_v8  ;;  %v13663_v12 = vld [vmem:[#allocation41_spill] sm:$0xff] }
 0x4cc   :  { %5202 = vmatprep.subr.bf16.mxu0 %v12022_v31  ;;  %5243 = vmatprep.subr.bf16.mxu1 %v12024_v28  ;;  %v13640_v31 = vld [vmem:[#allocation18_spill] sm:$0xff]  ;;  %v13641_v28 = vld [vmem:[#allocation19_spill] sm:$0xff] }
 0x4cf   :  { %5203 = vmatpush1.bf16.msra.mxu0 %v12030_v30  ;;  %5244 = vmatpush1.bf16.msra.mxu1 %v12032_v45  ;;  %v13642_v30 = vld [vmem:[#allocation20_spill] sm:$0xff]  ;;  %v13643_v45 = vld [vmem:[#allocation21_spill] sm:$0xff] }
 0x4d0   :  { %5204 = vmatprep.subr.bf16.mxu0 %v12036_v34  ;;  %5245 = vmatprep.subr.bf16.mxu1 %v12038_v58  ;;  %v13644_v34 = vld [vmem:[#allocation22_spill] sm:$0xff]  ;;  %v13645_v58 = vld [vmem:[#allocation23_spill] sm:$0xff] }
 0x4d2   :  { %v4782_v17 = vld [vmem:[#allocation3] sm:$0xff] }
 0x4d3   :  { %5205 = vmatpush1.bf16.msra.mxu0 %v12042_v56  ;;  %5246 = vmatpush1.bf16.msra.mxu1 %v12044_v4  ;;  %v9300_v20 = vcombine.high %v4782_v17, %v4782_v17  ;;  %5815 = vst [vmem:[#allocation3] sm:$0xf] %v9440_v25  ;;  %v9299_v0 = vcombine.low %v4782_v17, %v4782_v17  ;;  %v13646_v56 = vld [vmem:[#allocation24_spill] sm:$0xff]  ;;  %v13647_v4 = vld [vmem:[#allocation25_spill] sm:$0xff]  ;;  %v13664_v25 = vld [vmem:[#allocation42_spill] sm:$0xff] }
 0x4d4   :  { %5691 = vmatprep.subr.bf16.mxu0 %v12048_v43  ;;  %5732 = vmatprep.subr.bf16.mxu1 %v12050_v5  ;;  %v13648_v43 = vld [vmem:[#allocation26_spill] sm:$0xff]  ;;  %v13649_v5 = vld [vmem:[#allocation27_spill] sm:$0xff] }
 0x4d5   :  { %5206 = vmatprep.mubr.bf16.mxu0 %v9300_v20  ;;  %5247 = vmatprep.mubr.bf16.mxu1 %v9300_v20  ;;  %v13665_v17 = vld [vmem:[#allocation43_spill] sm:$0xff]  ;;  %v13666_v20 = vld [vmem:[#allocation44_spill] sm:$0xff] }
 0x4d6   :  { %5207 = vmatmul.mubr.bf16.vlgmr.msra.gmra.mrb[36].mxu0 %v9299_v0  ;;  %5248 = vmatmul.mubr.bf16.vlgmr.msra.gmra.mrb[36].mxu1 %v9299_v0  ;;  %v13667_v0 = vld [vmem:[#allocation45_spill] sm:$0xff] }
 0x4d7   :  { %5692 = vmatpush1.bf16.msra.mxu0 %v12054_v11  ;;  %5733 = vmatpush1.bf16.msra.mxu1 %v12056_v16  ;;  %v13650_v11 = vld [vmem:[#allocation28_spill] sm:$0xff]  ;;  %v13651_v16 = vld [vmem:[#allocation29_spill] sm:$0xff] }
 0x4d8   :  { %5693 = vmatprep.subr.bf16.mxu0 %v12062_v18  ;;  %5734 = vmatprep.subr.bf16.mxu1 %v12064_v21  ;;  %v13652_v18 = vld [vmem:[#allocation30_spill] sm:$0xff]  ;;  %v13653_v21 = vld [vmem:[#allocation31_spill] sm:$0xff] }
 0x4db   :  { %5694 = vmatpush1.bf16.msra.mxu0 %v12066_v29  ;;  %5735 = vmatpush1.bf16.msra.mxu1 %v13640_v31  ;;  %v13654_v29 = vld [vmem:[#allocation32_spill] sm:$0xff]  ;;  %v13668_v31 = vld [vmem:[#allocation46_spill] sm:$0xff] }
 0x4dc   :  { %5695 = vmatprep.subr.bf16.mxu0 %v13641_v28  ;;  %5736 = vmatprep.subr.bf16.mxu1 %v13642_v30  ;;  %v13669_v28 = vld [vmem:[#allocation47_spill] sm:$0xff]  ;;  %v13670_v30 = vld [vmem:[#allocation48_spill] sm:$0xff] }
 0x4df   :  { %5696 = vmatpush1.bf16.msra.mxu0 %v13643_v45  ;;  %5737 = vmatpush1.bf16.msra.mxu1 %v13644_v34  ;;  %v13671_v45 = vld [vmem:[#allocation49_spill] sm:$0xff]  ;;  %v13672_v34 = vld [vmem:[#allocation50_spill] sm:$0xff] }
 0x4e0   :  { %5697 = vmatprep.subr.bf16.mxu0 %v13645_v58  ;;  %5738 = vmatprep.subr.bf16.mxu1 %v13646_v56  ;;  %v13673_v58 = vld [vmem:[#allocation51_spill] sm:$0xff]  ;;  %v13674_v56 = vld [vmem:[#allocation52_spill] sm:$0xff] }
 0x4e3   :  { %5698 = vmatpush1.bf16.msra.mxu0 %v13647_v4  ;;  %5739 = vmatpush1.bf16.msra.mxu1 %v13648_v43  ;;  %v13675_v4 = vld [vmem:[#allocation53_spill] sm:$0xff]  ;;  %v13676_v43 = vld [vmem:[#allocation54_spill] sm:$0xff] }
 0x4e4   :  { %5699 = vmatprep.subr.bf16.mxu0 %v13649_v5  ;;  %5740 = vmatprep.subr.bf16.mxu1 %v13650_v11  ;;  %v13677_v5 = vld [vmem:[#allocation55_spill] sm:$0xff]  ;;  %v13678_v11 = vld [vmem:[#allocation56_spill] sm:$0xff] }
 0x4e7   :  { %5700 = vmatpush1.bf16.msra.mxu0 %v13651_v16  ;;  %5741 = vmatpush1.bf16.msra.mxu1 %v13652_v18  ;;  %v13679_v16 = vld [vmem:[#allocation57_spill] sm:$0xff]  ;;  %v13680_v18 = vld [vmem:[#allocation58_spill] sm:$0xff] }
 0x4e8   :  { %5701 = vmatprep.subr.bf16.mxu0 %v13653_v21  ;;  %5742 = vmatprep.subr.bf16.mxu1 %v13654_v29  ;;  %v13681_v21 = vld [vmem:[#allocation59_spill] sm:$0xff]  ;;  %v13682_v29 = vld [vmem:[#allocation60_spill] sm:$0xff] }
 0x4eb   :  { %5702 = vmatpush1.bf16.msra.mxu0 %v13655_v46  ;;  %5743 = vmatpush1.bf16.msra.mxu1 %v13656_v63  ;;  %v13683_v46 = vld [vmem:[#allocation61_spill] sm:$0xff]  ;;  %v13684_v63 = vld [vmem:[#allocation62_spill] sm:$0xff] }
 0x4ec   :  { %5703 = vmatprep.subr.bf16.mxu0 %v13657_v32  ;;  %5744 = vmatprep.subr.bf16.mxu1 %v13658_v13  ;;  %v13685_v32 = vld [vmem:[#allocation63_spill] sm:$0xff]  ;;  %v13686_v13 = vld [vmem:[#allocation66_spill] sm:$0xff] }
 0x4ef   :  { %5704 = vmatpush1.bf16.msra.mxu0 %v13659_v35  ;;  %5745 = vmatpush1.bf16.msra.mxu1 %v13660_v3  ;;  %v13687_v35 = vld [vmem:[#allocation64_spill] sm:$0xff]  ;;  %v13688_v3 = vld [vmem:[#allocation65_spill] sm:$0xff] }
 0x4f0   :  { %5705 = vmatprep.subr.bf16.mxu0 %v13661_v36  ;;  %5746 = vmatprep.subr.bf16.mxu1 %v13662_v10  ;;  %v13689_v36 = vld [vmem:[#allocation68_spill] sm:$0xff]  ;;  %v13690_v10 = vld [vmem:[#allocation71_spill] sm:$0xff] }
 0x4f3   :  { %5706 = vmatpush1.bf16.msra.mxu0 %v13663_v12  ;;  %5747 = vmatpush1.bf16.msra.mxu1 %v13664_v25  ;;  %v13691_v12 = vld [vmem:[#allocation69_spill] sm:$0xff]  ;;  %v13692_v25 = vld [vmem:[#allocation67_spill] sm:$0xff] }
 0x4f4   :  { %5707 = vmatprep.subr.bf16.mxu0 %v13665_v17  ;;  %5748 = vmatprep.subr.bf16.mxu1 %v13666_v20  ;;  %v13693_v17 = vld [vmem:[#allocation70_spill] sm:$0xff]  ;;  %v13694_v20 = vld [vmem:[#allocation72_spill] sm:$0xff] }
 0x4f7   :  { %5708 = vmatpush1.bf16.msra.mxu0 %v13667_v0  ;;  %5749 = vmatpush1.bf16.msra.mxu1 %v13668_v31  ;;  %v13695_v0 = vld [vmem:[#allocation73_spill] sm:$0xff]  ;;  %v13696_v31 = vld [vmem:[#allocation74_spill] sm:$0xff] }
 0x4f8   :  { %5709 = vmatprep.subr.bf16.mxu0 %v13669_v28  ;;  %5750 = vmatprep.subr.bf16.mxu1 %v13670_v30  ;;  %v13697_v28 = vld [vmem:[#allocation75_spill] sm:$0xff]  ;;  %v13698_v30 = vld [vmem:[#allocation76_spill] sm:$0xff] }
 0x4fb   :  { %5710 = vmatpush1.bf16.msra.mxu0 %v13671_v45  ;;  %5751 = vmatpush1.bf16.msra.mxu1 %v13672_v34 }
 0x4fc   :  { %5711 = vmatprep.subr.bf16.mxu0 %v13673_v58  ;;  %5752 = vmatprep.subr.bf16.mxu1 %v13674_v56  ;;  %v13699_v58 = vld [vmem:[#allocation17_spill] sm:$0xff] }
 0x4ff   :  { %5712 = vmatpush1.bf16.msra.mxu0 %v13675_v4  ;;  %5753 = vmatpush1.bf16.msra.mxu1 %v13676_v43 }
 0x500   :  { %5713 = vmatprep.subr.bf16.mxu0 %v13677_v5  ;;  %5754 = vmatprep.subr.bf16.mxu1 %v13678_v11 }
 0x503   :  { %5714 = vmatpush1.bf16.msra.mxu0 %v13679_v16  ;;  %5755 = vmatpush1.bf16.msra.mxu1 %v13680_v18 }
 0x504   :  { %5715 = vmatprep.subr.bf16.mxu0 %v13681_v21  ;;  %5756 = vmatprep.subr.bf16.mxu1 %v13682_v29 }
 0x507   :  { %5716 = vmatpush1.bf16.msra.mxu0 %v13683_v46  ;;  %5757 = vmatpush1.bf16.msra.mxu1 %v13684_v63 }
 0x508   :  { %5717 = vmatprep.subr.bf16.mxu0 %v13685_v32  ;;  %5758 = vmatprep.subr.bf16.mxu1 %v13686_v13 }
 0x50b   :  { %5718 = vmatpush1.bf16.msra.mxu0 %v13687_v35  ;;  %5759 = vmatpush1.bf16.msra.mxu1 %v13688_v3 }
 0x50c   :  { %5719 = vmatprep.subr.bf16.mxu0 %v13689_v36  ;;  %5760 = vmatprep.subr.bf16.mxu1 %v13690_v10 }
 0x50f   :  { %5720 = vmatpush1.bf16.msra.mxu0 %v13691_v12  ;;  %5761 = vmatpush1.bf16.msra.mxu1 %v13692_v25 }
 0x510   :  { %5721 = vmatprep.subr.bf16.mxu0 %v13693_v17  ;;  %5762 = vmatprep.subr.bf16.mxu1 %v13694_v20 }
 0x513   :  { %5722 = vmatpush1.bf16.msra.mxu0 %v13695_v0  ;;  %5763 = vmatpush1.bf16.msra.mxu1 %v13696_v31 }
 0x514   :  { %6208 = vmatprep.subr.bf16.mxu0 %v13697_v28  ;;  %6249 = vmatprep.subr.bf16.mxu1 %v13698_v30  ;;  %v4769_v30 = vpop.permute.xlu0 %4768 }
 0x515   :  { %vm4770_vm0 = vcmp.eq.s32.totalorder %v4769_v30, 1  ;;  %v13706_v30 = vld [vmem:[#allocation83_spill] sm:$0xff] }
 0x569   :  { %v4691_v45 = vpop.f32.mrb[32].mxu0  ;;  %v4732_v34 = vpop.f32.mrb[32].mxu1 }
 0x56a   :  { %v4692_v56 = vadd.f32 %v4691_v45, %v13699_v58  ;;  %v4693_v4 = vpop.f32.mrb[33].mxu0  ;;  %v4734_v43 = vpop.f32.mrb[33].mxu1  ;;  %v4733_v13 = vadd.f32 %v4732_v34, %v11342_v57 }
 0x56b   :  { %v4694_v5 = vadd.f32 %v4693_v4, %v11326_v38  ;;  %v4695_v11 = vpop.f32.mrb[34].mxu0  ;;  %v4736_v16 = vpop.f32.mrb[34].mxu1  ;;  %v4735_v63 = vadd.f32 %v4734_v43, %v11334_v49 }
 0x56c   :  { %v9294_v18 = vmul.f32 -1.442695, %v4692_v56  ;;  %v4696_v21 = vpop.f32.mrb[35].mxu0  ;;  %v4737_v29 = vpop.f32.mrb[35].mxu1  ;;  %v9511_v16 = vld [vmem:[%s13216_s0 + $0x18] sm:$0xf] }
 0x56d   :  { %v9295_v46 = vmul.f32 -1.442695, %v4694_v5  ;;  %v9296_v32 = vmul.f32 -1.442695, %v4735_v63  ;;  %v13703_v63 = vld [vmem:[#allocation80_spill] sm:$0xff] }
 0x56e   :  { %10883 = vpow2.f32 %v9294_v18 }
 0x56f   :  { %10885 = vpow2.f32 %v9295_v46  ;;  %v13702_v46 = vld [vmem:[#allocation79_spill] sm:$0xff] }
 0x570   :  { %10887 = vpow2.f32 %v9296_v32 }
 0x571   :  { %10889 = vtanh.f32 %v4733_v13 }
 0x578   :  { %v10884_v35 = vpop.eup %10883 }
 0x579   :  { %v10886_v3 = vpop.eup %10885  ;;  %v4742_v36 = vadd.f32 1.0, %v10884_v35 }
 0x57a   :  { %v4748_v10 = vadd.f32 1.0, %v10886_v3  ;;  %v10888_v12 = vpop.eup %10887 }
 0x57b   :  { %10891 = vrcp.f32 %v4742_v36  ;;  %v10890_v25 = vpop.eup %10889  ;;  %v4755_v31 = vadd.f32 1.0, %v10888_v12 }
 0x57c   :  { %10893 = vrcp.f32 %v4748_v10 }
 0x57d   :  { %10895 = vrcp.f32 %v4755_v31 }
 0x585   :  { %v10892_v17 = vpop.eup %10891 }
 0x586   :  { %v10894_v20 = vpop.eup %10893  ;;  %v4760_v0 = vmul.f32 %v10892_v17, %v10890_v25 }
 0x587   :  { %v4759_v28 = vmul.f32 %v10894_v20, %v12260_v33  ;;  %v10896_v56 = vpop.eup %10895 }
 0x589   :  { %v4761_v45 = vadd.f32 %v4760_v0, %v4759_v28  ;;  %v13704_v28 = vld [vmem:[#allocation81_spill] sm:$0xff] }
 0x58b   :  { %10897 = vtanh.f32 %v4761_v45  ;;  %v12490_v34 = vsel %vm4770_vm0, %v4761_v45, %v12260_v33  ;;  %v13700_v33 = vld [vmem:[#allocation77_spill] sm:$0xff] }
 0x595   :  { %v10898_v4 = vpop.eup %10897 }
 0x596   :  { %v4763_v43 = vmul.f32 %v10898_v4, %v10896_v56  ;;  %v12532_v56 = vld [vmem:[#allocation8 + $0x2c4] ss:$16 sps:$4 sm:$0xff]  }
 0x598   :  { %v12493_v5 = vsel %vm4770_vm0, %v4763_v43, %v12263_v15  ;;  %v13701_v15 = vld [vmem:[#allocation78_spill] sm:$0xff] }
 0x599   :  { %v4776_v11 = vpack.c.bf16 %v12493_v5, %v12493_v5 }
 0x59b   :  { %4777 = vst [vmem:[#allocation2 + $0x4] sm:$0xf] %v4776_v11 }
 0x5a2   :  { %v5299_v18 = vld [vmem:[#allocation2] sm:$0xff] }
 0x5a3   :  { %v9371_v21 = vcombine.high %v5299_v18, %v5299_v18  ;;  %6332 = vst [vmem:[#allocation2] sm:$0xf] %v9511_v16  ;;  %v9370_v29 = vcombine.low %v5299_v18, %v5299_v18  ;;  %v12544_v16 = vld [vmem:[#allocation8 + $0x2e0] ss:$16 sps:$4 sm:$0xff]  }
 0x5a5   :  { %5723 = vmatprep.mubr.bf16.mxu0 %v9371_v21  ;;  %5764 = vmatprep.mubr.bf16.mxu1 %v9371_v21  ;;  %v13707_v21 = vld [vmem:[#allocation84_spill] sm:$0xff] }
 0x5a6   :  { %5724 = vmatmul.mubr.bf16.vlgmr.msra.gmra.mrb[40].mxu0 %v9370_v29  ;;  %5765 = vmatmul.mubr.bf16.vlgmr.msra.gmra.mrb[40].mxu1 %v9370_v29 }
 0x5a7   :  { %6209 = vmatpush1.bf16.msra.mxu0 %v13700_v33  ;;  %6250 = vmatpush1.bf16.msra.mxu1 %v13701_v15  ;;  %v13708_v33 = vld [vmem:[#allocation85_spill] sm:$0xff] }
 0x5a8   :  { %6210 = vmatprep.subr.bf16.mxu0 %v13702_v46  ;;  %6251 = vmatprep.subr.bf16.mxu1 %v13703_v63 }
 0x5a9   :  { %v5208_v32 = vpop.f32.mrb[36].mxu0  ;;  %v5249_v13 = vpop.f32.mrb[36].mxu1 }
 0x5aa   :  { %v5209_v35 = vadd.f32 %v5208_v32, %v11360_v19  ;;  %v5210_v3 = vpop.f32.mrb[37].mxu0  ;;  %v5251_v36 = vpop.f32.mrb[37].mxu1 }
 0x5ab   :  { %v5211_v10 = vadd.f32 %v5210_v3, %v11364_v22  ;;  %v5212_v12 = vpop.f32.mrb[38].mxu0  ;;  %v5253_v25 = vpop.f32.mrb[38].mxu1  ;;  %6211 = vmatpush1.bf16.msra.mxu0 %v12280_v37  ;;  %6252 = vmatpush1.bf16.msra.mxu1 %v12282_v2  ;;  %v12514_v37 = vld [vmem:[#allocation8 + $0x284] ss:$16 sps:$4 sm:$0xff]   ;;  %v5252_v2 = vadd.f32 %v5251_v36, %v11370_v42 }
 0x5ac   :  { %v9365_v17 = vmul.f32 -1.442695, %v5209_v35  ;;  %v5213_v20 = vpop.f32.mrb[39].mxu0  ;;  %v5254_v0 = vpop.f32.mrb[39].mxu1  ;;  %6212 = vmatprep.subr.bf16.mxu0 %v12286_v44  ;;  %6253 = vmatprep.subr.bf16.mxu1 %v12288_v41  ;;  %v13705_v44 = vld [vmem:[#allocation82_spill] sm:$0xff] }
 0x5ad   :  { %v9366_v31 = vmul.f32 -1.442695, %v5211_v10  ;;  %v12519_v41 = vld [vmem:[#allocation8 + $0x280] ss:$16 sps:$4 sm:$0xff]   ;;  %v12565_v35 = vld [vmem:[#allocation8 + $0x344] ss:$16 sps:$4 sm:$0xff]   ;;  %v5286_v3 = vpop.permute.xlu1 %5285 }
 0x5ae   :  { %10899 = vpow2.f32 %v9365_v17  ;;  %vm5287_vm1 = vcmp.eq.s32.totalorder %v5286_v3, 1  ;;  %v12569_v10 = vld [vmem:[#allocation8 + $0x340] ss:$16 sps:$4 sm:$0xff]   ;;  %v12605_v20 = vld [vmem:[#allocation8 + $0x3c4] ss:$16 sps:$4 sm:$0xff]  }
 0x5af   :  { %10901 = vpow2.f32 %v9366_v31  ;;  %6213 = vmatpush1.bf16.msra.mxu0 %v12291_v7  ;;  %6254 = vmatpush1.bf16.msra.mxu1 %v12296_v62  ;;  %v12523_v7 = vld [vmem:[#allocation8 + $0x2a4] ss:$16 sps:$4 sm:$0xff]   ;;  %v9367_v62 = vmul.f32 -1.442695, %v5252_v2  ;;  %v12581_v12 = vld [vmem:[#allocation8 + $0x360] ss:$16 sps:$4 sm:$0xff]  }
 0x5b0   :  { %6214 = vmatprep.subr.bf16.mxu0 %v12298_v26  ;;  %6255 = vmatprep.subr.bf16.mxu1 %v12302_v55  ;;  %v5250_v26 = vadd.f32 %v5249_v13, %v11377_v40  ;;  %v12528_v55 = vld [vmem:[#allocation8 + $0x2a0] ss:$16 sps:$4 sm:$0xff]   ;;  %v12621_v31 = vld [vmem:[#allocation8 + $0x3ec] ss:$16 sps:$4 sm:$0xff]  }
 0x5b1   :  { %10903 = vpow2.f32 %v9367_v62  ;;  %v12561_v13 = vld [vmem:[#allocation8 + $0x320] ss:$16 sps:$4 sm:$0xff]  }
 0x5b2   :  { %10905 = vtanh.f32 %v5250_v26  ;;  %v12625_v2 = vld [vmem:[#allocation8 + $0x3e0] ss:$16 sps:$4 sm:$0xff]  }
 0x5b3   :  { %6215 = vmatpush1.bf16.msra.mxu0 %v13704_v28  ;;  %6256 = vmatpush1.bf16.msra.mxu1 %v13705_v44  ;;  %v12627_v28 = vld [vmem:[#allocation8 + $0x3e8] ss:$16 sps:$4 sm:$0xff]   ;;  %v12634_v44 = vld [vmem:[#allocation8 + $0x4] ss:$16 sps:$4 sm:$0xff]   ;;  %v12676_v3 = vld [vmem:[#allocation8 + $0x60] ss:$16 sps:$4 sm:$0xff]  }
 0x5b4   :  { %6216 = vmatprep.subr.bf16.mxu0 %v12514_v37  ;;  %6257 = vmatprep.subr.bf16.mxu1 %v13706_v30  ;;  %v12636_v30 = vld [vmem:[#allocation8 + $0xc] ss:$16 sps:$4 sm:$0xff]   ;;  %13716 = vst [vmem:[#allocation25_spill] sm:$0xff] %v12676_v3 }
 0x5b7   :  { %6217 = vmatpush1.bf16.msra.mxu0 %v12519_v41  ;;  %6258 = vmatpush1.bf16.msra.mxu1 %v12317_v53  ;;  %v12536_v53 = vld [vmem:[#allocation8 + $0x2c0] ss:$16 sps:$4 sm:$0xff]  }
 0x5b8   :  { %v10900_v45 = vpop.eup %10899  ;;  %6218 = vmatprep.subr.bf16.mxu0 %v12523_v7  ;;  %6259 = vmatprep.subr.bf16.mxu1 %v12321_v51  ;;  %v12540_v51 = vld [vmem:[#allocation8 + $0x2e4] ss:$16 sps:$4 sm:$0xff]  }
 0x5b9   :  { %v10902_v4 = vpop.eup %10901  ;;  %v5259_v43 = vadd.f32 1.0, %v10900_v45 }
 0x5ba   :  { %v5265_v11 = vadd.f32 1.0, %v10902_v4  ;;  %v12640_v4 = vld [vmem:[#allocation8] ss:$16 sps:$4 sm:$0xff]  }
 0x5bb   :  { %10907 = vrcp.f32 %v5259_v43  ;;  %6219 = vmatpush1.bf16.msra.mxu0 %v12528_v55  ;;  %6260 = vmatpush1.bf16.msra.mxu1 %v12326_v59  ;;  %v12548_v59 = vld [vmem:[#allocation8 + $0x304] ss:$16 sps:$4 sm:$0xff]   ;;  %v10904_v18 = vpop.eup %10903  ;;  %v12642_v43 = vld [vmem:[#allocation8 + $0x8] ss:$16 sps:$4 sm:$0xff]  }
 0x5bc   :  { %10909 = vrcp.f32 %v5265_v11  ;;  %6220 = vmatprep.subr.bf16.mxu0 %v12532_v56  ;;  %6261 = vmatprep.subr.bf16.mxu1 %v12330_v61  ;;  %v12552_v61 = vld [vmem:[#allocation8 + $0x300] ss:$16 sps:$4 sm:$0xff]   ;;  %v10906_v29 = vpop.eup %10905  ;;  %v12648_v11 = vld [vmem:[#allocation8 + $0x24] ss:$16 sps:$4 sm:$0xff]  }
 0x5bf   :  { %6221 = vmatpush1.bf16.msra.mxu0 %v12536_v53  ;;  %6262 = vmatpush1.bf16.msra.mxu1 %v12334_v1  ;;  %v12556_v1 = vld [vmem:[#allocation8 + $0x324] ss:$16 sps:$4 sm:$0xff]  }
 0x5c0   :  { %6222 = vmatprep.subr.bf16.mxu0 %v12540_v51  ;;  %6263 = vmatprep.subr.bf16.mxu1 %v12338_v6  ;;  %v5272_v6 = vadd.f32 1.0, %v10904_v18  ;;  %v12650_v18 = vld [vmem:[#allocation8 + $0x2c] ss:$16 sps:$4 sm:$0xff]  }
 0x5c2   :  { %10911 = vrcp.f32 %v5272_v6  ;;  %v12672_v6 = vld [vmem:[#allocation8 + $0x64] ss:$16 sps:$4 sm:$0xff]  }
 0x5c3   :  { %6223 = vmatpush1.bf16.msra.mxu0 %v12544_v16  ;;  %6264 = vmatpush1.bf16.msra.mxu1 %v13707_v21  ;;  %v12652_v21 = vld [vmem:[#allocation8 + $0x20] ss:$16 sps:$4 sm:$0xff]   ;;  %13714 = vst [vmem:[#allocation23_spill] sm:$0xff] %v12672_v6 }
 0x5c4   :  { %6224 = vmatprep.subr.bf16.mxu0 %v12548_v59  ;;  %6265 = vmatprep.subr.bf16.mxu1 %v13708_v33  ;;  %v12660_v33 = vld [vmem:[#allocation8 + $0x44] ss:$16 sps:$4 sm:$0xff]  }
 0x5c5   :  { %v10908_v15 = vpop.eup %10907  ;;  %13710 = vst [vmem:[#allocation19_spill] sm:$0xff] %v12660_v33 }
 0x5c6   :  { %v10910_v46 = vpop.eup %10909  ;;  %v5277_v63 = vmul.f32 %v10908_v15, %v10906_v29  ;;  %v12654_v29 = vld [vmem:[#allocation8 + $0x28] ss:$16 sps:$4 sm:$0xff]   ;;  %v12662_v15 = vld [vmem:[#allocation8 + $0x4c] ss:$16 sps:$4 sm:$0xff]  }
 0x5c7   :  { %v5276_v32 = vmul.f32 %v10910_v46, %v12371_v9  ;;  %6225 = vmatpush1.bf16.msra.mxu0 %v12552_v61  ;;  %6266 = vmatpush1.bf16.msra.mxu1 %v12350_v48  ;;  %13709 = vst [vmem:[#allocation18_spill] sm:$0xff] %v12654_v29  ;;  %13711 = vst [vmem:[#allocation20_spill] sm:$0xff] %v12662_v15  ;;  %v12664_v46 = vld [vmem:[#allocation8 + $0x40] ss:$16 sps:$4 sm:$0xff]  }
 0x5c8   :  { %6226 = vmatprep.subr.bf16.mxu0 %v12556_v1  ;;  %6267 = vmatprep.subr.bf16.mxu1 %v12354_v50  ;;  %v12577_v50 = vld [vmem:[#allocation8 + $0x364] ss:$16 sps:$4 sm:$0xff]   ;;  %13712 = vst [vmem:[#allocation21_spill] sm:$0xff] %v12664_v46 }
 0x5c9   :  { %v5278_v36 = vadd.f32 %v5277_v63, %v5276_v32  ;;  %v12666_v63 = vld [vmem:[#allocation8 + $0x48] ss:$16 sps:$4 sm:$0xff]   ;;  %v12674_v32 = vld [vmem:[#allocation8 + $0x6c] ss:$16 sps:$4 sm:$0xff]  }
 0x5ca   :  { %13713 = vst [vmem:[#allocation22_spill] sm:$0xff] %v12666_v63  ;;  %13715 = vst [vmem:[#allocation24_spill] sm:$0xff] %v12674_v32 }
 0x5cb   :  { %10913 = vtanh.f32 %v5278_v36  ;;  %6227 = vmatpush1.bf16.msra.mxu0 %v12561_v13  ;;  %6268 = vmatpush1.bf16.msra.mxu1 %v12359_v27  ;;  %v12573_v48 = vsel %vm5287_vm1, %v5278_v36, %v12371_v9  ;;  %v12585_v27 = vld [vmem:[#allocation8 + $0x384] ss:$16 sps:$4 sm:$0xff]   ;;  %v12589_v9 = vld [vmem:[#allocation8 + $0x380] ss:$16 sps:$4 sm:$0xff]   ;;  %v12678_v36 = vld [vmem:[#allocation8 + $0x68] ss:$16 sps:$4 sm:$0xff]  }
 0x5cc   :  { %6228 = vmatprep.subr.bf16.mxu0 %v12565_v35  ;;  %6269 = vmatprep.subr.bf16.mxu1 %v12363_v39  ;;  %v10912_v39 = vpop.eup %10911  ;;  %13717 = vst [vmem:[#allocation26_spill] sm:$0xff] %v12678_v36 }
 0x5cf   :  { %6229 = vmatpush1.bf16.msra.mxu0 %v12569_v10  ;;  %6270 = vmatpush1.bf16.msra.mxu1 %v12367_v24  ;;  %v12593_v24 = vld [vmem:[#allocation8 + $0x3a4] ss:$16 sps:$4 sm:$0xff]  }
 0x5d0   :  { %6230 = vmatprep.subr.bf16.mxu0 %v12577_v50  ;;  %6271 = vmatprep.subr.bf16.mxu1 %v12375_v60  ;;  %v12597_v60 = vld [vmem:[#allocation8 + $0x3a0] ss:$16 sps:$4 sm:$0xff]  }
 0x5d3   :  { %6231 = vmatpush1.bf16.msra.mxu0 %v12581_v12  ;;  %6272 = vmatpush1.bf16.msra.mxu1 %v12379_v14 }
 0x5d4   :  { %6232 = vmatprep.subr.bf16.mxu0 %v12585_v27  ;;  %6273 = vmatprep.subr.bf16.mxu1 %v12383_v54  ;;  %v12607_v54 = vld [vmem:[#allocation8 + $0x3cc] ss:$16 sps:$4 sm:$0xff]  }
 0x5d5   :  { %v10914_v25 = vpop.eup %10913 }
 0x5d6   :  { %v5280_v17 = vmul.f32 %v10914_v25, %v10912_v39  ;;  %v12684_v39 = vld [vmem:[#allocation8 + $0x84] ss:$16 sps:$4 sm:$0xff]   ;;  %v12686_v25 = vld [vmem:[#allocation8 + $0x8c] ss:$16 sps:$4 sm:$0xff]  }
 0x5d7   :  { %6233 = vmatpush1.bf16.msra.mxu0 %v12589_v9  ;;  %6274 = vmatpush1.bf16.msra.mxu1 %v12387_v52  ;;  %v12613_v52 = vld [vmem:[#allocation8 + $0x3c0] ss:$16 sps:$4 sm:$0xff]   ;;  %13718 = vst [vmem:[#allocation27_spill] sm:$0xff] %v12684_v39  ;;  %13719 = vst [vmem:[#allocation28_spill] sm:$0xff] %v12686_v25 }
 0x5d8   :  { %v12601_v14 = vsel %vm5287_vm1, %v5280_v17, %v12399_v47  ;;  %6234 = vmatprep.subr.bf16.mxu0 %v12593_v24  ;;  %6275 = vmatprep.subr.bf16.mxu1 %v12391_v23  ;;  %v12615_v47 = vld [vmem:[#allocation8 + $0x3c8] ss:$16 sps:$4 sm:$0xff]   ;;  %v12619_v23 = vld [vmem:[#allocation8 + $0x3e4] ss:$16 sps:$4 sm:$0xff]   ;;  %v12688_v17 = vld [vmem:[#allocation8 + $0x80] ss:$16 sps:$4 sm:$0xff]  }
 0x5d9   :  { %v5293_v0 = vpack.c.bf16 %v12601_v14, %v12601_v14  ;;  %13720 = vst [vmem:[#allocation29_spill] sm:$0xff] %v12688_v17 }
 0x5db   :  { %5294 = vst [vmem:[#allocation3 + $0x4] sm:$0xf] %v5293_v0  ;;  %6235 = vmatpush1.bf16.msra.mxu0 %v12597_v60  ;;  %6276 = vmatpush1.bf16.msra.mxu1 %v12395_v8  ;;  %v9582_v8 = vld [vmem:[%s13217_s1 + $0x4] sm:$0xf]  ;;  %v12690_v0 = vld [vmem:[#allocation8 + $0x88] ss:$16 sps:$4 sm:$0xff]  }
 0x5dc   :  { %6236 = vmatprep.subr.bf16.mxu0 %v12605_v20  ;;  %6277 = vmatprep.subr.bf16.mxu1 %v12607_v54  ;;  %13721 = vst [vmem:[#allocation30_spill] sm:$0xff] %v12690_v0 }
 0x5df   :  { %6237 = vmatpush1.bf16.msra.mxu0 %v12613_v52  ;;  %6278 = vmatpush1.bf16.msra.mxu1 %v12615_v47 }
 0x5e0   :  { %6238 = vmatprep.subr.bf16.mxu0 %v12619_v23  ;;  %6279 = vmatprep.subr.bf16.mxu1 %v12621_v31 }
 0x5e2   :  { %v5816_v62 = vld [vmem:[#allocation3] sm:$0xff] }
 0x5e3   :  { %6239 = vmatpush1.bf16.msra.mxu0 %v12625_v2  ;;  %6280 = vmatpush1.bf16.msra.mxu1 %v12627_v28  ;;  %v9442_v26 = vcombine.high %v5816_v62, %v5816_v62  ;;  %6849 = vst [vmem:[#allocation3] sm:$0xf] %v9582_v8  ;;  %v9441_v45 = vcombine.low %v5816_v62, %v5816_v62  ;;  %v12696_v8 = vld [vmem:[#allocation8 + $0xa4] ss:$16 sps:$4 sm:$0xff]   ;;  %v12698_v62 = vld [vmem:[#allocation8 + $0xac] ss:$16 sps:$4 sm:$0xff]  }
 0x5e4   :  { %6725 = vmatprep.subr.bf16.mxu0 %v12634_v44  ;;  %6766 = vmatprep.subr.bf16.mxu1 %v12636_v30  ;;  %13722 = vst [vmem:[#allocation31_spill] sm:$0xff] %v12696_v8  ;;  %13723 = vst [vmem:[#allocation32_spill] sm:$0xff] %v12698_v62 }
 0x5e5   :  { %6240 = vmatprep.mubr.bf16.mxu0 %v9442_v26  ;;  %6281 = vmatprep.mubr.bf16.mxu1 %v9442_v26  ;;  %v12700_v26 = vld [vmem:[#allocation8 + $0xa0] ss:$16 sps:$4 sm:$0xff]  }
 0x5e6   :  { %6241 = vmatmul.mubr.bf16.vlgmr.msra.gmra.mrb[44].mxu0 %v9441_v45  ;;  %6282 = vmatmul.mubr.bf16.vlgmr.msra.gmra.mrb[44].mxu1 %v9441_v45  ;;  %13724 = vst [vmem:[#allocation33_spill] sm:$0xff] %v12700_v26  ;;  %v12702_v45 = vld [vmem:[#allocation8 + $0xa8] ss:$16 sps:$4 sm:$0xff]  }
 0x5e7   :  { %6726 = vmatpush1.bf16.msra.mxu0 %v12640_v4  ;;  %6767 = vmatpush1.bf16.msra.mxu1 %v12642_v43  ;;  %13725 = vst [vmem:[#allocation34_spill] sm:$0xff] %v12702_v45 }
 0x5e8   :  { %6727 = vmatprep.subr.bf16.mxu0 %v12648_v11  ;;  %6768 = vmatprep.subr.bf16.mxu1 %v12650_v18 }
 0x5eb   :  { %6728 = vmatpush1.bf16.msra.mxu0 %v12652_v21  ;;  %6769 = vmatpush1.bf16.msra.mxu1 %v12654_v29 }
 0x5ec   :  { %6729 = vmatprep.subr.bf16.mxu0 %v12660_v33  ;;  %6770 = vmatprep.subr.bf16.mxu1 %v12662_v15 }
 0x5ef   :  { %6730 = vmatpush1.bf16.msra.mxu0 %v12664_v46  ;;  %6771 = vmatpush1.bf16.msra.mxu1 %v12666_v63 }
 0x5f0   :  { %6731 = vmatprep.subr.bf16.mxu0 %v12672_v6  ;;  %6772 = vmatprep.subr.bf16.mxu1 %v12674_v32 }
 0x5f3   :  { %6732 = vmatpush1.bf16.msra.mxu0 %v12676_v3  ;;  %6773 = vmatpush1.bf16.msra.mxu1 %v12678_v36  ;;  %v12802_v36 = vld [vmem:[#allocation8 + $0x1c4] ss:$16 sps:$4 sm:$0xff]   ;;  %v12815_v3 = vld [vmem:[#allocation8 + $0x1ec] ss:$16 sps:$4 sm:$0xff]  }
 0x5f4   :  { %6733 = vmatprep.subr.bf16.mxu0 %v12684_v39  ;;  %6774 = vmatprep.subr.bf16.mxu1 %v12686_v25  ;;  %v12708_v25 = vld [vmem:[#allocation8 + $0xc4] ss:$16 sps:$4 sm:$0xff]   ;;  %v12714_v39 = vld [vmem:[#allocation8 + $0xc8] ss:$16 sps:$4 sm:$0xff]   ;;  %13758 = vst [vmem:[#allocation68_spill] sm:$0xff] %v12802_v36  ;;  %13763 = vst [vmem:[#allocation72_spill] sm:$0xff] %v12815_v3 }
 0x5f5   :  { %13726 = vst [vmem:[#allocation35_spill] sm:$0xff] %v12708_v25  ;;  %13729 = vst [vmem:[#allocation38_spill] sm:$0xff] %v12714_v39 }
 0x5f7   :  { %6734 = vmatpush1.bf16.msra.mxu0 %v12688_v17  ;;  %6775 = vmatpush1.bf16.msra.mxu1 %v12690_v0  ;;  %v12710_v17 = vld [vmem:[#allocation8 + $0xcc] ss:$16 sps:$4 sm:$0xff]   ;;  %v12712_v0 = vld [vmem:[#allocation8 + $0xc0] ss:$16 sps:$4 sm:$0xff]  }
 0x5f8   :  { %6735 = vmatprep.subr.bf16.mxu0 %v12696_v8  ;;  %6776 = vmatprep.subr.bf16.mxu1 %v12698_v62  ;;  %13727 = vst [vmem:[#allocation36_spill] sm:$0xff] %v12710_v17  ;;  %13728 = vst [vmem:[#allocation37_spill] sm:$0xff] %v12712_v0  ;;  %v12720_v62 = vld [vmem:[#allocation8 + $0xe4] ss:$16 sps:$4 sm:$0xff]   ;;  %v12726_v8 = vld [vmem:[#allocation8 + $0xe8] ss:$16 sps:$4 sm:$0xff]  }
 0x5f9   :  { %13730 = vst [vmem:[#allocation39_spill] sm:$0xff] %v12720_v62  ;;  %13733 = vst [vmem:[#allocation42_spill] sm:$0xff] %v12726_v8 }
 0x5fb   :  { %6736 = vmatpush1.bf16.msra.mxu0 %v12700_v26  ;;  %6777 = vmatpush1.bf16.msra.mxu1 %v12702_v45  ;;  %v12722_v26 = vld [vmem:[#allocation8 + $0xec] ss:$16 sps:$4 sm:$0xff]   ;;  %v12724_v45 = vld [vmem:[#allocation8 + $0xe0] ss:$16 sps:$4 sm:$0xff]  }
 0x5fc   :  { %6737 = vmatprep.subr.bf16.mxu0 %v12708_v25  ;;  %6778 = vmatprep.subr.bf16.mxu1 %v12710_v17  ;;  %13731 = vst [vmem:[#allocation40_spill] sm:$0xff] %v12722_v26  ;;  %13732 = vst [vmem:[#allocation41_spill] sm:$0xff] %v12724_v45  ;;  %v12732_v17 = vld [vmem:[#allocation8 + $0x104] ss:$16 sps:$4 sm:$0xff]   ;;  %v12738_v25 = vld [vmem:[#allocation8 + $0x108] ss:$16 sps:$4 sm:$0xff]  }
 0x5fd   :  { %13734 = vst [vmem:[#allocation43_spill] sm:$0xff] %v12732_v17  ;;  %13737 = vst [vmem:[#allocation46_spill] sm:$0xff] %v12738_v25 }
 0x5ff   :  { %6738 = vmatpush1.bf16.msra.mxu0 %v12712_v0  ;;  %6779 = vmatpush1.bf16.msra.mxu1 %v12714_v39  ;;  %v12734_v0 = vld [vmem:[#allocation8 + $0x10c] ss:$16 sps:$4 sm:$0xff]   ;;  %v12736_v39 = vld [vmem:[#allocation8 + $0x100] ss:$16 sps:$4 sm:$0xff]  }
 0x600   :  { %6739 = vmatprep.subr.bf16.mxu0 %v12720_v62  ;;  %6780 = vmatprep.subr.bf16.mxu1 %v12722_v26  ;;  %13735 = vst [vmem:[#allocation44_spill] sm:$0xff] %v12734_v0  ;;  %13736 = vst [vmem:[#allocation45_spill] sm:$0xff] %v12736_v39  ;;  %v12744_v26 = vld [vmem:[#allocation8 + $0x124] ss:$16 sps:$4 sm:$0xff]   ;;  %v12750_v62 = vld [vmem:[#allocation8 + $0x128] ss:$16 sps:$4 sm:$0xff]  }
 0x601   :  { %13738 = vst [vmem:[#allocation47_spill] sm:$0xff] %v12744_v26  ;;  %13741 = vst [vmem:[#allocation50_spill] sm:$0xff] %v12750_v62 }
 0x603   :  { %6740 = vmatpush1.bf16.msra.mxu0 %v12724_v45  ;;  %6781 = vmatpush1.bf16.msra.mxu1 %v12726_v8  ;;  %v12746_v45 = vld [vmem:[#allocation8 + $0x12c] ss:$16 sps:$4 sm:$0xff]   ;;  %v12748_v8 = vld [vmem:[#allocation8 + $0x120] ss:$16 sps:$4 sm:$0xff]  }
 0x604   :  { %6741 = vmatprep.subr.bf16.mxu0 %v12732_v17  ;;  %6782 = vmatprep.subr.bf16.mxu1 %v12734_v0  ;;  %13739 = vst [vmem:[#allocation48_spill] sm:$0xff] %v12746_v45  ;;  %13740 = vst [vmem:[#allocation49_spill] sm:$0xff] %v12748_v8  ;;  %v12756_v0 = vld [vmem:[#allocation8 + $0x144] ss:$16 sps:$4 sm:$0xff]   ;;  %v12762_v17 = vld [vmem:[#allocation8 + $0x148] ss:$16 sps:$4 sm:$0xff]  }
 0x605   :  { %13742 = vst [vmem:[#allocation51_spill] sm:$0xff] %v12756_v0  ;;  %13745 = vst [vmem:[#allocation54_spill] sm:$0xff] %v12762_v17 }
 0x607   :  { %6742 = vmatpush1.bf16.msra.mxu0 %v12736_v39  ;;  %6783 = vmatpush1.bf16.msra.mxu1 %v12738_v25  ;;  %v12758_v39 = vld [vmem:[#allocation8 + $0x14c] ss:$16 sps:$4 sm:$0xff]   ;;  %v12760_v25 = vld [vmem:[#allocation8 + $0x140] ss:$16 sps:$4 sm:$0xff]  }
 0x608   :  { %6743 = vmatprep.subr.bf16.mxu0 %v12744_v26  ;;  %6784 = vmatprep.subr.bf16.mxu1 %v12746_v45  ;;  %13743 = vst [vmem:[#allocation52_spill] sm:$0xff] %v12758_v39  ;;  %13744 = vst [vmem:[#allocation53_spill] sm:$0xff] %v12760_v25  ;;  %v12768_v45 = vld [vmem:[#allocation8 + $0x164] ss:$16 sps:$4 sm:$0xff]   ;;  %v12774_v26 = vld [vmem:[#allocation8 + $0x168] ss:$16 sps:$4 sm:$0xff]  }
 0x609   :  { %13746 = vst [vmem:[#allocation55_spill] sm:$0xff] %v12768_v45  ;;  %13749 = vst [vmem:[#allocation58_spill] sm:$0xff] %v12774_v26 }
 0x60b   :  { %6744 = vmatpush1.bf16.msra.mxu0 %v12748_v8  ;;  %6785 = vmatpush1.bf16.msra.mxu1 %v12750_v62  ;;  %v12770_v8 = vld [vmem:[#allocation8 + $0x16c] ss:$16 sps:$4 sm:$0xff]   ;;  %v12772_v62 = vld [vmem:[#allocation8 + $0x160] ss:$16 sps:$4 sm:$0xff]  }
 0x60c   :  { %6745 = vmatprep.subr.bf16.mxu0 %v12756_v0  ;;  %6786 = vmatprep.subr.bf16.mxu1 %v12758_v39  ;;  %13747 = vst [vmem:[#allocation56_spill] sm:$0xff] %v12770_v8  ;;  %13748 = vst [vmem:[#allocation57_spill] sm:$0xff] %v12772_v62  ;;  %v12780_v39 = vld [vmem:[#allocation8 + $0x184] ss:$16 sps:$4 sm:$0xff]   ;;  %v12786_v0 = vld [vmem:[#allocation8 + $0x188] ss:$16 sps:$4 sm:$0xff]  }
 0x60d   :  { %13750 = vst [vmem:[#allocation59_spill] sm:$0xff] %v12780_v39  ;;  %13753 = vst [vmem:[#allocation62_spill] sm:$0xff] %v12786_v0 }
 0x60f   :  { %6746 = vmatpush1.bf16.msra.mxu0 %v12760_v25  ;;  %6787 = vmatpush1.bf16.msra.mxu1 %v12762_v17  ;;  %v12782_v25 = vld [vmem:[#allocation8 + $0x18c] ss:$16 sps:$4 sm:$0xff]   ;;  %v12784_v17 = vld [vmem:[#allocation8 + $0x180] ss:$16 sps:$4 sm:$0xff]  }
 0x610   :  { %6747 = vmatprep.subr.bf16.mxu0 %v12768_v45  ;;  %6788 = vmatprep.subr.bf16.mxu1 %v12770_v8  ;;  %13751 = vst [vmem:[#allocation60_spill] sm:$0xff] %v12782_v25  ;;  %13752 = vst [vmem:[#allocation61_spill] sm:$0xff] %v12784_v17  ;;  %v12792_v8 = vld [vmem:[#allocation8 + $0x1a4] ss:$16 sps:$4 sm:$0xff]   ;;  %v12798_v45 = vld [vmem:[#allocation8 + $0x1a8] ss:$16 sps:$4 sm:$0xff]  }
 0x611   :  { %13754 = vst [vmem:[#allocation63_spill] sm:$0xff] %v12792_v8  ;;  %13757 = vst [vmem:[#allocation65_spill] sm:$0xff] %v12798_v45 }
 0x613   :  { %6748 = vmatpush1.bf16.msra.mxu0 %v12772_v62  ;;  %6789 = vmatpush1.bf16.msra.mxu1 %v12774_v26  ;;  %v12794_v62 = vld [vmem:[#allocation8 + $0x1ac] ss:$16 sps:$4 sm:$0xff]   ;;  %v12796_v26 = vld [vmem:[#allocation8 + $0x1a0] ss:$16 sps:$4 sm:$0xff]  }
 0x614   :  { %6749 = vmatprep.subr.bf16.mxu0 %v12780_v39  ;;  %6790 = vmatprep.subr.bf16.mxu1 %v12782_v25  ;;  %13755 = vst [vmem:[#allocation66_spill] sm:$0xff] %v12794_v62  ;;  %13756 = vst [vmem:[#allocation64_spill] sm:$0xff] %v12796_v26  ;;  %v12810_v25 = vld [vmem:[#allocation8 + $0x1cc] ss:$16 sps:$4 sm:$0xff]   ;;  %v12813_v39 = vld [vmem:[#allocation8 + $0x1e4] ss:$16 sps:$4 sm:$0xff]  }
 0x615   :  { %13761 = vst [vmem:[#allocation67_spill] sm:$0xff] %v12810_v25  ;;  %13762 = vst [vmem:[#allocation70_spill] sm:$0xff] %v12813_v39 }
 0x617   :  { %6750 = vmatpush1.bf16.msra.mxu0 %v12784_v17  ;;  %6791 = vmatpush1.bf16.msra.mxu1 %v12786_v0  ;;  %v12806_v17 = vld [vmem:[#allocation8 + $0x1c0] ss:$16 sps:$4 sm:$0xff]   ;;  %v12808_v0 = vld [vmem:[#allocation8 + $0x1c8] ss:$16 sps:$4 sm:$0xff]  }
 0x618   :  { %6751 = vmatprep.subr.bf16.mxu0 %v12792_v8  ;;  %6792 = vmatprep.subr.bf16.mxu1 %v12794_v62  ;;  %13759 = vst [vmem:[#allocation71_spill] sm:$0xff] %v12806_v17  ;;  %13760 = vst [vmem:[#allocation69_spill] sm:$0xff] %v12808_v0  ;;  %v12830_v62 = vld [vmem:[#allocation8 + $0x20c] ss:$16 sps:$4 sm:$0xff]  }
 0x619   :  { %13767 = vst [vmem:[#allocation76_spill] sm:$0xff] %v12830_v62 }
 0x61b   :  { %6752 = vmatpush1.bf16.msra.mxu0 %v12796_v26  ;;  %6793 = vmatpush1.bf16.msra.mxu1 %v12798_v45  ;;  %v12820_v26 = vld [vmem:[#allocation8 + $0x1e0] ss:$16 sps:$4 sm:$0xff]   ;;  %v12822_v45 = vld [vmem:[#allocation8 + $0x1e8] ss:$16 sps:$4 sm:$0xff]  }
 0x61c   :  { %6753 = vmatprep.subr.bf16.mxu0 %v12802_v36  ;;  %6794 = vmatprep.subr.bf16.mxu1 %v12810_v25  ;;  %13764 = vst [vmem:[#allocation73_spill] sm:$0xff] %v12820_v26  ;;  %13765 = vst [vmem:[#allocation74_spill] sm:$0xff] %v12822_v45  ;;  %v12828_v36 = vld [vmem:[#allocation8 + $0x204] ss:$16 sps:$4 sm:$0xff]  }
 0x61d   :  { %13766 = vst [vmem:[#allocation75_spill] sm:$0xff] %v12828_v36 }
 0x61f   :  { %6754 = vmatpush1.bf16.msra.mxu0 %v12806_v17  ;;  %6795 = vmatpush1.bf16.msra.mxu1 %v12808_v0 }
 0x620   :  { %6755 = vmatprep.subr.bf16.mxu0 %v12813_v39  ;;  %6796 = vmatprep.subr.bf16.mxu1 %v12815_v3 }
 0x623   :  { %6756 = vmatpush1.bf16.msra.mxu0 %v12820_v26  ;;  %6797 = vmatpush1.bf16.msra.mxu1 %v12822_v45 }
 0x624   :  { %7242 = vmatprep.subr.bf16.mxu0 %v12828_v36  ;;  %7283 = vmatprep.subr.bf16.mxu1 %v12830_v62 }
 0x679   :  { %v5725_v0 = vpop.f32.mrb[40].mxu0  ;;  %v5766_v17 = vpop.f32.mrb[40].mxu1 }
 0x67a   :  { %v5726_v25 = vadd.f32 %v5725_v0, %v13699_v58  ;;  %v5727_v8 = vpop.f32.mrb[41].mxu0  ;;  %v5768_v39 = vpop.f32.mrb[41].mxu1  ;;  %v5767_v62 = vadd.f32 %v5766_v17, %v11342_v57 }
 0x67b   :  { %v5728_v3 = vadd.f32 %v5727_v8, %v11326_v38  ;;  %v5729_v32 = vpop.f32.mrb[42].mxu0  ;;  %v5770_v26 = vpop.f32.mrb[42].mxu1  ;;  %v5769_v36 = vadd.f32 %v5768_v39, %v11334_v49 }
 0x67c   :  { %v9436_v6 = vmul.f32 -1.442695, %v5726_v25  ;;  %v5730_v45 = vpop.f32.mrb[43].mxu0  ;;  %v5771_v63 = vpop.f32.mrb[43].mxu1  ;;  %v9653_v26 = vld [vmem:[%s13216_s0 + $0x1c] sm:$0xf] }
 0x67d   :  { %v9437_v46 = vmul.f32 -1.442695, %v5728_v3  ;;  %v9438_v15 = vmul.f32 -1.442695, %v5769_v36  ;;  %v5803_v39 = vpop.permute.xlu0 %5802 }
 0x67e   :  { %10915 = vpow2.f32 %v9436_v6  ;;  %vm5804_vm2 = vcmp.eq.s32.totalorder %v5803_v39, 1 }
 0x67f   :  { %10917 = vpow2.f32 %v9437_v46 }
 0x680   :  { %10919 = vpow2.f32 %v9438_v15 }
 0x681   :  { %10921 = vtanh.f32 %v5767_v62 }
 0x688   :  { %v10916_v33 = vpop.eup %10915 }
 0x689   :  { %v10918_v29 = vpop.eup %10917  ;;  %v5776_v0 = vadd.f32 1.0, %v10916_v33 }
 0x68a   :  { %v5782_v58 = vadd.f32 1.0, %v10918_v29  ;;  %v10920_v32 = vpop.eup %10919 }
 0x68b   :  { %10923 = vrcp.f32 %v5776_v0  ;;  %v10922_v25 = vpop.eup %10921  ;;  %v5789_v6 = vadd.f32 1.0, %v10920_v32 }
 0x68c   :  { %10925 = vrcp.f32 %v5782_v58 }
 0x68d   :  { %10927 = vrcp.f32 %v5789_v6  ;;  %v12866_v6 = vld [vmem:[#allocation8 + $0x244] ss:$16 sps:$4 sm:$0xff]  }
 0x695   :  { %v10924_v8 = vpop.eup %10923 }
 0x696   :  { %v10926_v63 = vpop.eup %10925  ;;  %v5794_v3 = vmul.f32 %v10924_v8, %v10922_v25  ;;  %v12852_v25 = vld [vmem:[#allocation8 + $0x208] ss:$16 sps:$4 sm:$0xff]   ;;  %v12854_v8 = vld [vmem:[#allocation8 + $0x224] ss:$16 sps:$4 sm:$0xff]  }
 0x697   :  { %v5793_v46 = vmul.f32 %v10926_v63, %v12490_v34  ;;  %v10928_v15 = vpop.eup %10927  ;;  %13769 = vst [vmem:[#allocation78_spill] sm:$0xff] %v12852_v25  ;;  %13770 = vst [vmem:[#allocation79_spill] sm:$0xff] %v12854_v8  ;;  %v12860_v63 = vld [vmem:[#allocation8 + $0x220] ss:$16 sps:$4 sm:$0xff]  }
 0x699   :  { %v5795_v36 = vadd.f32 %v5794_v3, %v5793_v46  ;;  %v12862_v3 = vld [vmem:[#allocation8 + $0x228] ss:$16 sps:$4 sm:$0xff]   ;;  %v12868_v46 = vld [vmem:[#allocation8 + $0x24c] ss:$16 sps:$4 sm:$0xff]  }
 0x69b   :  { %10929 = vtanh.f32 %v5795_v36  ;;  %v12840_v33 = vsel %vm5804_vm2, %v5795_v36, %v12490_v34  ;;  %v12850_v34 = vld [vmem:[#allocation8 + $0x200] ss:$16 sps:$4 sm:$0xff]  }
 0x69c   :  { %13768 = vst [vmem:[#allocation77_spill] sm:$0xff] %v12850_v34 }
 0x6a5   :  { %v10930_v29 = vpop.eup %10929 }
 0x6a6   :  { %v5797_v17 = vmul.f32 %v10930_v29, %v10928_v15 }
 0x6a8   :  { %v12843_v58 = vsel %vm5804_vm2, %v5797_v17, %v12493_v5  ;;  %v12856_v5 = vld [vmem:[#allocation8 + $0x22c] ss:$16 sps:$4 sm:$0xff]  }
 0x6a9   :  { %v5810_v62 = vpack.c.bf16 %v12843_v58, %v12843_v58  ;;  %13771 = vst [vmem:[#allocation80_spill] sm:$0xff] %v12856_v5 }
 0x6ab   :  { %5811 = vst [vmem:[#allocation2 + $0x4] sm:$0xf] %v5810_v62  ;;  %v12871_v62 = vld [vmem:[#allocation8 + $0x240] ss:$16 sps:$4 sm:$0xff]  }
 0x6b2   :  { %v6333_v45 = vld [vmem:[#allocation2] sm:$0xff] }
 0x6b3   :  { %v9513_v0 = vcombine.high %v6333_v45, %v6333_v45  ;;  %7366 = vst [vmem:[#allocation2] sm:$0xf] %v9653_v26  ;;  %v9512_v32 = vcombine.low %v6333_v45, %v6333_v45 }
 0x6b5   :  { %6757 = vmatprep.mubr.bf16.mxu0 %v9513_v0  ;;  %6798 = vmatprep.mubr.bf16.mxu1 %v9513_v0 }
 0x6b6   :  { %6758 = vmatmul.mubr.bf16.vlgmr.msra.gmra.mrb[48].mxu0 %v9512_v32  ;;  %6799 = vmatmul.mubr.bf16.vlgmr.msra.gmra.mrb[48].mxu1 %v9512_v32  ;;  %v12876_v32 = vld [vmem:[#allocation8 + $0x248] ss:$16 sps:$4 sm:$0xff]  }
 0x6b7   :  { %7243 = vmatpush1.bf16.msra.mxu0 %v12850_v34  ;;  %7284 = vmatpush1.bf16.msra.mxu1 %v12852_v25 }
 0x6b8   :  { %7244 = vmatprep.subr.bf16.mxu0 %v12854_v8  ;;  %7285 = vmatprep.subr.bf16.mxu1 %v12856_v5  ;;  %v12878_v5 = vld [vmem:[#allocation8 + $0x264] ss:$16 sps:$4 sm:$0xff]  }
 0x6b9   :  { %v6242_v39 = vpop.f32.mrb[44].mxu0  ;;  %v6283_v36 = vpop.f32.mrb[44].mxu1 }
 0x6ba   :  { %v6243_v15 = vadd.f32 %v6242_v39, %v11360_v19  ;;  %v6244_v29 = vpop.f32.mrb[45].mxu0  ;;  %v6285_v17 = vpop.f32.mrb[45].mxu1  ;;  %v12882_v39 = vld [vmem:[#allocation8 + $0x26c] ss:$16 sps:$4 sm:$0xff]  }
 0x6bb   :  { %v6245_v26 = vadd.f32 %v6244_v29, %v11364_v22  ;;  %v6246_v45 = vpop.f32.mrb[46].mxu0  ;;  %v6287_v0 = vpop.f32.mrb[46].mxu1  ;;  %7245 = vmatpush1.bf16.msra.mxu0 %v12860_v63  ;;  %7286 = vmatpush1.bf16.msra.mxu1 %v12862_v3 }
 0x6bc   :  { %v9507_v8 = vmul.f32 -1.442695, %v6243_v15  ;;  %v6247_v25 = vpop.f32.mrb[47].mxu0  ;;  %v6288_v34 = vpop.f32.mrb[47].mxu1  ;;  %7246 = vmatprep.subr.bf16.mxu0 %v12866_v6  ;;  %7287 = vmatprep.subr.bf16.mxu1 %v12868_v46  ;;  %v12886_v45 = vld [vmem:[#allocation8 + $0x260] ss:$16 sps:$4 sm:$0xff]  }
 0x6bd   :  { %v9508_v29 = vmul.f32 -1.442695, %v6245_v26  ;;  %13772 = vst [vmem:[#allocation81_spill] sm:$0xff] %v12886_v45  ;;  %v12888_v0 = vld [vmem:[#allocation8 + $0x268] ss:$16 sps:$4 sm:$0xff]   ;;  %v6286_v25 = vadd.f32 %v6285_v17, %v11370_v42 }
 0x6be   :  { %10931 = vpow2.f32 %v9507_v8  ;;  %13773 = vst [vmem:[#allocation82_spill] sm:$0xff] %v12888_v0  ;;  %v12892_v34 = vld [vmem:[#allocation8 + $0x28c] ss:$16 sps:$4 sm:$0xff]   ;;  %v12897_v8 = vld [vmem:[#allocation8 + $0x288] ss:$16 sps:$4 sm:$0xff]  }
 0x6bf   :  { %10933 = vpow2.f32 %v9508_v29  ;;  %7247 = vmatpush1.bf16.msra.mxu0 %v12871_v62  ;;  %7288 = vmatpush1.bf16.msra.mxu1 %v12876_v32  ;;  %13774 = vst [vmem:[#allocation83_spill] sm:$0xff] %v12892_v34  ;;  %v12901_v15 = vld [vmem:[#allocation8 + $0x2ac] ss:$16 sps:$4 sm:$0xff]   ;;  %v9509_v26 = vmul.f32 -1.442695, %v6286_v25  ;;  %v6284_v29 = vadd.f32 %v6283_v36, %v11377_v40 }
 0x6c0   :  { %7248 = vmatprep.subr.bf16.mxu0 %v12878_v5  ;;  %7289 = vmatprep.subr.bf16.mxu1 %v12882_v39  ;;  %v12906_v17 = vld [vmem:[#allocation8 + $0x2a8] ss:$16 sps:$4 sm:$0xff]  }
 0x6c1   :  { %10935 = vpow2.f32 %v9509_v26  ;;  %v12922_v36 = vld [vmem:[#allocation8 + $0x2e8] ss:$16 sps:$4 sm:$0xff]  }
 0x6c2   :  { %10937 = vtanh.f32 %v6284_v29  ;;  %13775 = vst [vmem:[#allocation84_spill] sm:$0xff] %v12922_v36 }
 0x6c3   :  { %7249 = vmatpush1.bf16.msra.mxu0 %v12886_v45  ;;  %7290 = vmatpush1.bf16.msra.mxu1 %v12888_v0  ;;  %v12910_v0 = vld [vmem:[#allocation8 + $0x2cc] ss:$16 sps:$4 sm:$0xff]  }
 0x6c4   :  { %7250 = vmatprep.subr.bf16.mxu0 %v12514_v37  ;;  %7291 = vmatprep.subr.bf16.mxu1 %v12892_v34 }
 0x6c7   :  { %7251 = vmatpush1.bf16.msra.mxu0 %v12519_v41  ;;  %7292 = vmatpush1.bf16.msra.mxu1 %v12897_v8  ;;  %v12914_v41 = vld [vmem:[#allocation8 + $0x2c8] ss:$16 sps:$4 sm:$0xff]  }
 0x6c8   :  { %v10932_v45 = vpop.eup %10931  ;;  %7252 = vmatprep.subr.bf16.mxu0 %v12523_v7  ;;  %7293 = vmatprep.subr.bf16.mxu1 %v12901_v15  ;;  %v12918_v7 = vld [vmem:[#allocation8 + $0x2ec] ss:$16 sps:$4 sm:$0xff]  }
 0x6c9   :  { %v10934_v37 = vpop.eup %10933  ;;  %v6293_v34 = vadd.f32 1.0, %v10932_v45 }
 0x6ca   :  { %v6299_v25 = vadd.f32 1.0, %v10934_v37 }
 0x6cb   :  { %10939 = vrcp.f32 %v6293_v34  ;;  %7253 = vmatpush1.bf16.msra.mxu0 %v12528_v55  ;;  %7294 = vmatpush1.bf16.msra.mxu1 %v12906_v17  ;;  %v12926_v55 = vld [vmem:[#allocation8 + $0x30c] ss:$16 sps:$4 sm:$0xff]   ;;  %v10936_v45 = vpop.eup %10935 }
 0x6cc   :  { %10941 = vrcp.f32 %v6299_v25  ;;  %7254 = vmatprep.subr.bf16.mxu0 %v12532_v56  ;;  %7295 = vmatprep.subr.bf16.mxu1 %v12910_v0  ;;  %13776 = vst [vmem:[#allocation85_spill] sm:$0xff] %v12926_v55  ;;  %v12930_v56 = vld [vmem:[#allocation8 + $0x308] ss:$16 sps:$4 sm:$0xff]   ;;  %v10938_v34 = vpop.eup %10937  ;;  %v6306_v37 = vadd.f32 1.0, %v10936_v45 }
 0x6ce   :  { %10943 = vrcp.f32 %v6306_v37  ;;  %v13795_v37 = vld [vmem:[#allocation36_spill] sm:$0xff] }
 0x6cf   :  { %7255 = vmatpush1.bf16.msra.mxu0 %v12536_v53  ;;  %7296 = vmatpush1.bf16.msra.mxu1 %v12914_v41  ;;  %v12934_v53 = vld [vmem:[#allocation8 + $0x32c] ss:$16 sps:$4 sm:$0xff]  }
 0x6d0   :  { %7256 = vmatprep.subr.bf16.mxu0 %v12540_v51  ;;  %7297 = vmatprep.subr.bf16.mxu1 %v12918_v7 }
 0x6d3   :  { %7257 = vmatpush1.bf16.msra.mxu0 %v12544_v16  ;;  %7298 = vmatpush1.bf16.msra.mxu1 %v12922_v36  ;;  %v12939_v16 = vld [vmem:[#allocation8 + $0x328] ss:$16 sps:$4 sm:$0xff]  }
 0x6d4   :  { %7258 = vmatprep.subr.bf16.mxu0 %v12548_v59  ;;  %7299 = vmatprep.subr.bf16.mxu1 %v12926_v55  ;;  %v12943_v59 = vld [vmem:[#allocation8 + $0x34c] ss:$16 sps:$4 sm:$0xff]   ;;  %v6320_v55 = vpop.permute.xlu1 %6319 }
 0x6d5   :  { %v10940_v26 = vpop.eup %10939  ;;  %vm6321_vm3 = vcmp.eq.s32.totalorder %v6320_v55, 1  ;;  %v13792_v55 = vld [vmem:[#allocation33_spill] sm:$0xff] }
 0x6d6   :  { %v10942_v51 = vpop.eup %10941  ;;  %v6311_v29 = vmul.f32 %v10940_v26, %v10938_v34  ;;  %v12959_v34 = vld [vmem:[#allocation8 + $0x368] ss:$16 sps:$4 sm:$0xff]  }
 0x6d7   :  { %v6310_v25 = vmul.f32 %v10942_v51, %v12573_v48  ;;  %7259 = vmatpush1.bf16.msra.mxu0 %v12552_v61  ;;  %7300 = vmatpush1.bf16.msra.mxu1 %v12930_v56  ;;  %v12947_v61 = vld [vmem:[#allocation8 + $0x348] ss:$16 sps:$4 sm:$0xff]  }
 0x6d8   :  { %7260 = vmatprep.subr.bf16.mxu0 %v12556_v1  ;;  %7301 = vmatprep.subr.bf16.mxu1 %v12934_v53  ;;  %v12955_v1 = vld [vmem:[#allocation8 + $0x36c] ss:$16 sps:$4 sm:$0xff]  }
 0x6d9   :  { %v6312_v36 = vadd.f32 %v6311_v29, %v6310_v25  ;;  %v13793_v51 = vld [vmem:[#allocation34_spill] sm:$0xff]  ;;  %v13794_v29 = vld [vmem:[#allocation35_spill] sm:$0xff]  ;;  %v13796_v25 = vld [vmem:[#allocation37_spill] sm:$0xff] }
 0x6db   :  { %10945 = vtanh.f32 %v6312_v36  ;;  %7261 = vmatpush1.bf16.msra.mxu0 %v12561_v13  ;;  %7302 = vmatpush1.bf16.msra.mxu1 %v12939_v16  ;;  %v12951_v45 = vsel %vm6321_vm3, %v6312_v36, %v12573_v48  ;;  %v12963_v13 = vld [vmem:[#allocation8 + $0x38c] ss:$16 sps:$4 sm:$0xff]   ;;  %v10944_v48 = vpop.eup %10943 }
 0x6dc   :  { %7262 = vmatprep.subr.bf16.mxu0 %v12565_v35  ;;  %7303 = vmatprep.subr.bf16.mxu1 %v12943_v59  ;;  %v12967_v35 = vld [vmem:[#allocation8 + $0x388] ss:$16 sps:$4 sm:$0xff]  }
 0x6df   :  { %7263 = vmatpush1.bf16.msra.mxu0 %v12569_v10  ;;  %7304 = vmatpush1.bf16.msra.mxu1 %v12947_v61  ;;  %v12971_v10 = vld [vmem:[#allocation8 + $0x3ac] ss:$16 sps:$4 sm:$0xff]  }
 0x6e0   :  { %7264 = vmatprep.subr.bf16.mxu0 %v12577_v50  ;;  %7305 = vmatprep.subr.bf16.mxu1 %v12955_v1  ;;  %v12975_v50 = vld [vmem:[#allocation8 + $0x3a8] ss:$16 sps:$4 sm:$0xff]  }
 0x6e3   :  { %7265 = vmatpush1.bf16.msra.mxu0 %v12581_v12  ;;  %7306 = vmatpush1.bf16.msra.mxu1 %v12959_v34 }
 0x6e4   :  { %7266 = vmatprep.subr.bf16.mxu0 %v12585_v27  ;;  %7307 = vmatprep.subr.bf16.mxu1 %v12963_v13 }
 0x6e5   :  { %v10946_v36 = vpop.eup %10945 }
 0x6e6   :  { %v6314_v26 = vmul.f32 %v10946_v36, %v10944_v48  ;;  %v13797_v48 = vld [vmem:[#allocation38_spill] sm:$0xff]  ;;  %v13798_v36 = vld [vmem:[#allocation39_spill] sm:$0xff] }
 0x6e7   :  { %7267 = vmatpush1.bf16.msra.mxu0 %v12589_v9  ;;  %7308 = vmatpush1.bf16.msra.mxu1 %v12967_v35  ;;  %v7880_v9 = vld [vmem:[%s13217_s1] sm:$0xf] }
 0x6e8   :  { %v12979_v12 = vsel %vm6321_vm3, %v6314_v26, %v12601_v14  ;;  %7268 = vmatprep.subr.bf16.mxu0 %v12593_v24  ;;  %7309 = vmatprep.subr.bf16.mxu1 %v12971_v10  ;;  %v13799_v26 = vld [vmem:[#allocation40_spill] sm:$0xff] }
 0x6e9   :  { %v6327_v27 = vpack.c.bf16 %v12979_v12, %v12979_v12 }
 0x6eb   :  { %6328 = vst [vmem:[#allocation3 + $0x4] sm:$0xf] %v6327_v27  ;;  %7269 = vmatpush1.bf16.msra.mxu0 %v12597_v60  ;;  %7310 = vmatpush1.bf16.msra.mxu1 %v12975_v50  ;;  %v13800_v27 = vld [vmem:[#allocation41_spill] sm:$0xff] }
 0x6ec   :  { %7270 = vmatprep.subr.bf16.mxu0 %v12605_v20  ;;  %7311 = vmatprep.subr.bf16.mxu1 %v12607_v54  ;;  %v13777_v20 = vld [vmem:[#allocation18_spill] sm:$0xff]  ;;  %v13778_v54 = vld [vmem:[#allocation19_spill] sm:$0xff] }
 0x6ef   :  { %7271 = vmatpush1.bf16.msra.mxu0 %v12613_v52  ;;  %7312 = vmatpush1.bf16.msra.mxu1 %v12615_v47  ;;  %v13779_v52 = vld [vmem:[#allocation20_spill] sm:$0xff]  ;;  %v13780_v47 = vld [vmem:[#allocation21_spill] sm:$0xff] }
 0x6f0   :  { %7272 = vmatprep.subr.bf16.mxu0 %v12619_v23  ;;  %7313 = vmatprep.subr.bf16.mxu1 %v12621_v31  ;;  %v13781_v23 = vld [vmem:[#allocation22_spill] sm:$0xff]  ;;  %v13782_v31 = vld [vmem:[#allocation23_spill] sm:$0xff] }
 0x6f2   :  { %v6850_v24 = vld [vmem:[#allocation3] sm:$0xff] }
 0x6f3   :  { %7273 = vmatpush1.bf16.msra.mxu0 %v12625_v2  ;;  %7314 = vmatpush1.bf16.msra.mxu1 %v12627_v28  ;;  %v9584_v60 = vcombine.high %v6850_v24, %v6850_v24  ;;  %7881 = vst [vmem:[#allocation3] sm:$0xf] %v7880_v9  ;;  %v9583_v14 = vcombine.low %v6850_v24, %v6850_v24  ;;  %v13783_v2 = vld [vmem:[#allocation24_spill] sm:$0xff]  ;;  %v13784_v28 = vld [vmem:[#allocation25_spill] sm:$0xff]  ;;  %v13801_v9 = vld [vmem:[#allocation42_spill] sm:$0xff] }
 0x6f4   :  { %7759 = vmatprep.subr.bf16.mxu0 %v12634_v44  ;;  %7800 = vmatprep.subr.bf16.mxu1 %v12636_v30  ;;  %v13785_v44 = vld [vmem:[#allocation26_spill] sm:$0xff]  ;;  %v13786_v30 = vld [vmem:[#allocation27_spill] sm:$0xff] }
 0x6f5   :  { %7274 = vmatprep.mubr.bf16.mxu0 %v9584_v60  ;;  %7315 = vmatprep.mubr.bf16.mxu1 %v9584_v60  ;;  %v13802_v24 = vld [vmem:[#allocation43_spill] sm:$0xff]  ;;  %v13803_v60 = vld [vmem:[#allocation44_spill] sm:$0xff] }
 0x6f6   :  { %7275 = vmatmul.mubr.bf16.vlgmr.msra.gmra.mrb[52].mxu0 %v9583_v14  ;;  %7316 = vmatmul.mubr.bf16.vlgmr.msra.gmra.mrb[52].mxu1 %v9583_v14  ;;  %v13804_v14 = vld [vmem:[#allocation45_spill] sm:$0xff] }
 0x6f7   :  { %7760 = vmatpush1.bf16.msra.mxu0 %v12640_v4  ;;  %7801 = vmatpush1.bf16.msra.mxu1 %v12642_v43  ;;  %v13787_v4 = vld [vmem:[#allocation28_spill] sm:$0xff]  ;;  %v13788_v43 = vld [vmem:[#allocation29_spill] sm:$0xff] }
 0x6f8   :  { %7761 = vmatprep.subr.bf16.mxu0 %v12648_v11  ;;  %7802 = vmatprep.subr.bf16.mxu1 %v12650_v18  ;;  %v13789_v11 = vld [vmem:[#allocation30_spill] sm:$0xff]  ;;  %v13790_v18 = vld [vmem:[#allocation31_spill] sm:$0xff] }
 0x6fb   :  { %7762 = vmatpush1.bf16.msra.mxu0 %v12652_v21  ;;  %7803 = vmatpush1.bf16.msra.mxu1 %v13777_v20  ;;  %v13791_v21 = vld [vmem:[#allocation32_spill] sm:$0xff]  ;;  %v13805_v20 = vld [vmem:[#allocation46_spill] sm:$0xff] }
 0x6fc   :  { %7763 = vmatprep.subr.bf16.mxu0 %v13778_v54  ;;  %7804 = vmatprep.subr.bf16.mxu1 %v13779_v52  ;;  %v13806_v54 = vld [vmem:[#allocation47_spill] sm:$0xff]  ;;  %v13807_v52 = vld [vmem:[#allocation48_spill] sm:$0xff] }
 0x6ff   :  { %7764 = vmatpush1.bf16.msra.mxu0 %v13780_v47  ;;  %7805 = vmatpush1.bf16.msra.mxu1 %v13781_v23  ;;  %v13808_v47 = vld [vmem:[#allocation49_spill] sm:$0xff]  ;;  %v13809_v23 = vld [vmem:[#allocation50_spill] sm:$0xff] }
 0x700   :  { %7765 = vmatprep.subr.bf16.mxu0 %v13782_v31  ;;  %7806 = vmatprep.subr.bf16.mxu1 %v13783_v2  ;;  %v13810_v31 = vld [vmem:[#allocation51_spill] sm:$0xff]  ;;  %v13811_v2 = vld [vmem:[#allocation52_spill] sm:$0xff] }
 0x703   :  { %7766 = vmatpush1.bf16.msra.mxu0 %v13784_v28  ;;  %7807 = vmatpush1.bf16.msra.mxu1 %v13785_v44  ;;  %v13812_v28 = vld [vmem:[#allocation53_spill] sm:$0xff]  ;;  %v13813_v44 = vld [vmem:[#allocation54_spill] sm:$0xff] }
 0x704   :  { %7767 = vmatprep.subr.bf16.mxu0 %v13786_v30  ;;  %7808 = vmatprep.subr.bf16.mxu1 %v13787_v4  ;;  %v13814_v30 = vld [vmem:[#allocation55_spill] sm:$0xff]  ;;  %v13815_v4 = vld [vmem:[#allocation56_spill] sm:$0xff] }
 0x707   :  { %7768 = vmatpush1.bf16.msra.mxu0 %v13788_v43  ;;  %7809 = vmatpush1.bf16.msra.mxu1 %v13789_v11  ;;  %v13816_v43 = vld [vmem:[#allocation57_spill] sm:$0xff]  ;;  %v13817_v11 = vld [vmem:[#allocation58_spill] sm:$0xff] }
 0x708   :  { %7769 = vmatprep.subr.bf16.mxu0 %v13790_v18  ;;  %7810 = vmatprep.subr.bf16.mxu1 %v13791_v21  ;;  %v13818_v18 = vld [vmem:[#allocation59_spill] sm:$0xff]  ;;  %v13819_v21 = vld [vmem:[#allocation60_spill] sm:$0xff] }
 0x70b   :  { %7770 = vmatpush1.bf16.msra.mxu0 %v13792_v55  ;;  %7811 = vmatpush1.bf16.msra.mxu1 %v13793_v51  ;;  %v13820_v55 = vld [vmem:[#allocation61_spill] sm:$0xff]  ;;  %v13821_v51 = vld [vmem:[#allocation62_spill] sm:$0xff] }
 0x70c   :  { %7771 = vmatprep.subr.bf16.mxu0 %v13794_v29  ;;  %7812 = vmatprep.subr.bf16.mxu1 %v13795_v37  ;;  %v13822_v29 = vld [vmem:[#allocation63_spill] sm:$0xff]  ;;  %v13823_v37 = vld [vmem:[#allocation66_spill] sm:$0xff] }
 0x70f   :  { %7772 = vmatpush1.bf16.msra.mxu0 %v13796_v25  ;;  %7813 = vmatpush1.bf16.msra.mxu1 %v13797_v48  ;;  %v13824_v25 = vld [vmem:[#allocation64_spill] sm:$0xff]  ;;  %v13825_v48 = vld [vmem:[#allocation65_spill] sm:$0xff] }
 0x710   :  { %7773 = vmatprep.subr.bf16.mxu0 %v13798_v36  ;;  %7814 = vmatprep.subr.bf16.mxu1 %v13799_v26  ;;  %v13826_v36 = vld [vmem:[#allocation68_spill] sm:$0xff]  ;;  %v13827_v26 = vld [vmem:[#allocation67_spill] sm:$0xff] }
 0x713   :  { %7774 = vmatpush1.bf16.msra.mxu0 %v13800_v27  ;;  %7815 = vmatpush1.bf16.msra.mxu1 %v13801_v9  ;;  %v13828_v27 = vld [vmem:[#allocation71_spill] sm:$0xff]  ;;  %v13829_v9 = vld [vmem:[#allocation69_spill] sm:$0xff] }
 0x714   :  { %7775 = vmatprep.subr.bf16.mxu0 %v13802_v24  ;;  %7816 = vmatprep.subr.bf16.mxu1 %v13803_v60  ;;  %v13830_v24 = vld [vmem:[#allocation70_spill] sm:$0xff]  ;;  %v13831_v60 = vld [vmem:[#allocation72_spill] sm:$0xff] }
 0x717   :  { %7776 = vmatpush1.bf16.msra.mxu0 %v13804_v14  ;;  %7817 = vmatpush1.bf16.msra.mxu1 %v13805_v20  ;;  %v13832_v14 = vld [vmem:[#allocation73_spill] sm:$0xff]  ;;  %v13833_v20 = vld [vmem:[#allocation74_spill] sm:$0xff] }
 0x718   :  { %7777 = vmatprep.subr.bf16.mxu0 %v13806_v54  ;;  %7818 = vmatprep.subr.bf16.mxu1 %v13807_v52  ;;  %v13834_v54 = vld [vmem:[#allocation75_spill] sm:$0xff]  ;;  %v13835_v52 = vld [vmem:[#allocation76_spill] sm:$0xff] }
 0x71b   :  { %7778 = vmatpush1.bf16.msra.mxu0 %v13808_v47  ;;  %7819 = vmatpush1.bf16.msra.mxu1 %v13809_v23 }
 0x71c   :  { %7779 = vmatprep.subr.bf16.mxu0 %v13810_v31  ;;  %7820 = vmatprep.subr.bf16.mxu1 %v13811_v2  ;;  %v13836_v31 = vld [vmem:[#allocation17_spill] sm:$0xff] }
 0x71f   :  { %7780 = vmatpush1.bf16.msra.mxu0 %v13812_v28  ;;  %7821 = vmatpush1.bf16.msra.mxu1 %v13813_v44 }
 0x720   :  { %7781 = vmatprep.subr.bf16.mxu0 %v13814_v30  ;;  %7822 = vmatprep.subr.bf16.mxu1 %v13815_v4 }
 0x723   :  { %7782 = vmatpush1.bf16.msra.mxu0 %v13816_v43  ;;  %7823 = vmatpush1.bf16.msra.mxu1 %v13817_v11 }
 0x724   :  { %7783 = vmatprep.subr.bf16.mxu0 %v13818_v18  ;;  %7824 = vmatprep.subr.bf16.mxu1 %v13819_v21 }
 0x727   :  { %7784 = vmatpush1.bf16.msra.mxu0 %v13820_v55  ;;  %7825 = vmatpush1.bf16.msra.mxu1 %v13821_v51 }
 0x728   :  { %7785 = vmatprep.subr.bf16.mxu0 %v13822_v29  ;;  %7826 = vmatprep.subr.bf16.mxu1 %v13823_v37 }
 0x72b   :  { %7786 = vmatpush1.bf16.msra.mxu0 %v13824_v25  ;;  %7827 = vmatpush1.bf16.msra.mxu1 %v13825_v48 }
 0x72c   :  { %7787 = vmatprep.subr.bf16.mxu0 %v13826_v36  ;;  %7828 = vmatprep.subr.bf16.mxu1 %v13827_v26 }
 0x72f   :  { %7788 = vmatpush1.bf16.msra.mxu0 %v13828_v27  ;;  %7829 = vmatpush1.bf16.msra.mxu1 %v13829_v9 }
 0x730   :  { %7789 = vmatprep.subr.bf16.mxu0 %v13830_v24  ;;  %7830 = vmatprep.subr.bf16.mxu1 %v13831_v60 }
 0x733   :  { %7790 = vmatpush1.bf16.msra.mxu0 %v13832_v14  ;;  %7831 = vmatpush1.bf16.msra.mxu1 %v13833_v20 }
 0x734   :  { %8274 = vmatprep.subr.bf16.mxu0 %v13834_v54  ;;  %8315 = vmatprep.subr.bf16.mxu1 %v13835_v52  ;;  %v6837_v52 = vpop.permute.xlu0 %6836 }
 0x735   :  { %vm6838_vm4 = vcmp.eq.s32.totalorder %v6837_v52, 1  ;;  %v10700_v52 = vld [vmem:[#allocation8 + $0x2a4] ss:$16 sps:$4 sm:$0xff]  }
 0x789   :  { %v6759_v47 = vpop.f32.mrb[48].mxu0  ;;  %v6800_v23 = vpop.f32.mrb[48].mxu1 }
 0x78a   :  { %v6760_v2 = vadd.f32 %v6759_v47, %v13836_v31  ;;  %v6761_v28 = vpop.f32.mrb[49].mxu0  ;;  %v6802_v44 = vpop.f32.mrb[49].mxu1  ;;  %v6801_v37 = vadd.f32 %v6800_v23, %v11342_v57 }
 0x78b   :  { %v6762_v30 = vadd.f32 %v6761_v28, %v11326_v38  ;;  %v6763_v4 = vpop.f32.mrb[50].mxu0  ;;  %v6804_v43 = vpop.f32.mrb[50].mxu1  ;;  %v6803_v51 = vadd.f32 %v6802_v44, %v11334_v49 }
 0x78c   :  { %v9578_v11 = vmul.f32 -1.442695, %v6760_v2  ;;  %v6764_v18 = vpop.f32.mrb[51].mxu0  ;;  %v6805_v21 = vpop.f32.mrb[51].mxu1 }
 0x78d   :  { %v9579_v55 = vmul.f32 -1.442695, %v6762_v30  ;;  %v9580_v29 = vmul.f32 -1.442695, %v6803_v51  ;;  %v13837_v21 = vld [vmem:[#allocation77_spill] sm:$0xff]  ;;  %v13840_v51 = vld [vmem:[#allocation80_spill] sm:$0xff] }
 0x78e   :  { %10947 = vpow2.f32 %v9578_v11 }
 0x78f   :  { %10949 = vpow2.f32 %v9579_v55  ;;  %v13839_v55 = vld [vmem:[#allocation79_spill] sm:$0xff] }
 0x790   :  { %10951 = vpow2.f32 %v9580_v29 }
 0x791   :  { %10953 = vtanh.f32 %v6801_v37 }
 0x798   :  { %v10948_v25 = vpop.eup %10947 }
 0x799   :  { %v10950_v48 = vpop.eup %10949  ;;  %v6810_v36 = vadd.f32 1.0, %v10948_v25 }
 0x79a   :  { %v6816_v26 = vadd.f32 1.0, %v10950_v48  ;;  %v10952_v27 = vpop.eup %10951 }
 0x79b   :  { %10955 = vrcp.f32 %v6810_v36  ;;  %v10954_v9 = vpop.eup %10953  ;;  %v6823_v20 = vadd.f32 1.0, %v10952_v27 }
 0x79c   :  { %10957 = vrcp.f32 %v6816_v26 }
 0x79d   :  { %10959 = vrcp.f32 %v6823_v20  ;;  %v13841_v20 = vld [vmem:[#allocation81_spill] sm:$0xff] }
 0x7a5   :  { %v10956_v24 = vpop.eup %10955 }
 0x7a6   :  { %v10958_v60 = vpop.eup %10957  ;;  %v6828_v14 = vmul.f32 %v10956_v24, %v10954_v9 }
 0x7a7   :  { %v6827_v54 = vmul.f32 %v10958_v60, %v12840_v33  ;;  %v10960_v2 = vpop.eup %10959 }
 0x7a9   :  { %v6829_v47 = vadd.f32 %v6828_v14, %v6827_v54  ;;  %v13842_v54 = vld [vmem:[#allocation82_spill] sm:$0xff] }
 0x7ab   :  { %10961 = vtanh.f32 %v6829_v47  ;;  %v13070_v23 = vsel %vm6838_vm4, %v6829_v47, %v12840_v33  ;;  %v13838_v33 = vld [vmem:[#allocation78_spill] sm:$0xff] }
 0x7b5   :  { %v10962_v28 = vpop.eup %10961 }
 0x7b6   :  { %v6831_v44 = vmul.f32 %v10962_v28, %v10960_v2 }
 0x7b8   :  { %v13073_v30 = vsel %vm6838_vm4, %v6831_v44, %v12843_v58 }
 0x7b9   :  { %v6844_v4 = vpack.c.bf16 %v13073_v30, %v13073_v30 }
 0x7bb   :  { %6845 = vst [vmem:[#allocation2 + $0x4] sm:$0xf] %v6844_v4  ;;  %v10701_v4 = vld [vmem:[#allocation8 + $0x2c0] ss:$16 sps:$4 sm:$0xff]  }
 0x7c2   :  { %v7367_v43 = vld [vmem:[#allocation2] sm:$0xff] }
 0x7c3   :  { %v9655_v11 = vcombine.high %v7367_v43, %v7367_v43  ;;  %v9654_v18 = vcombine.low %v7367_v43, %v7367_v43  ;;  %v10709_v43 = vld [vmem:[#allocation8 + $0x304] ss:$16 sps:$4 sm:$0xff]  }
 0x7c5   :  { %7791 = vmatprep.mubr.bf16.mxu0 %v9655_v11  ;;  %7832 = vmatprep.mubr.bf16.mxu1 %v9655_v11 }
 0x7c6   :  { %7792 = vmatmul.mubr.bf16.vlgmr.msra.gmra.mrb[56].mxu0 %v9654_v18  ;;  %7833 = vmatmul.mubr.bf16.vlgmr.msra.gmra.mrb[56].mxu1 %v9654_v18  ;;  %v13844_v18 = vld [vmem:[#allocation84_spill] sm:$0xff] }
 0x7c7   :  { %8275 = vmatpush1.bf16.msra.mxu0 %v13837_v21  ;;  %8316 = vmatpush1.bf16.msra.mxu1 %v13838_v33  ;;  %v10707_v21 = vld [vmem:[#allocation8 + $0x300] ss:$16 sps:$4 sm:$0xff]  }
 0x7c8   :  { %8276 = vmatprep.subr.bf16.mxu0 %v13839_v55  ;;  %8317 = vmatprep.subr.bf16.mxu1 %v13840_v51  ;;  %v13845_v33 = vld [vmem:[#allocation85_spill] sm:$0xff] }
 0x7c9   :  { %v7276_v58 = vpop.f32.mrb[52].mxu0  ;;  %v7317_v29 = vpop.f32.mrb[52].mxu1  ;;  %v10712_v55 = vld [vmem:[#allocation8 + $0x324] ss:$16 sps:$4 sm:$0xff]  }
 0x7ca   :  { %v7277_v37 = vadd.f32 %v7276_v58, %v11360_v19  ;;  %v7278_v25 = vpop.f32.mrb[53].mxu0  ;;  %v7319_v48 = vpop.f32.mrb[53].mxu1 }
 0x7cb   :  { %v7279_v36 = vadd.f32 %v7278_v25, %v11364_v22  ;;  %v7280_v26 = vpop.f32.mrb[54].mxu0  ;;  %v7321_v27 = vpop.f32.mrb[54].mxu1  ;;  %8277 = vmatpush1.bf16.msra.mxu0 %v12860_v63  ;;  %8318 = vmatpush1.bf16.msra.mxu1 %v12862_v3  ;;  %v10697_v63 = vld [vmem:[#allocation8 + $0x284] ss:$16 sps:$4 sm:$0xff]   ;;  %v7320_v3 = vadd.f32 %v7319_v48, %v11370_v42 }
 0x7cc   :  { %v9649_v9 = vmul.f32 -1.442695, %v7277_v37  ;;  %v7281_v24 = vpop.f32.mrb[55].mxu0  ;;  %v7322_v60 = vpop.f32.mrb[55].mxu1  ;;  %8278 = vmatprep.subr.bf16.mxu0 %v12866_v6  ;;  %8319 = vmatprep.subr.bf16.mxu1 %v12868_v46  ;;  %v10695_v6 = vld [vmem:[#allocation8 + $0x280] ss:$16 sps:$4 sm:$0xff]  }
 0x7cd   :  { %v9650_v14 = vmul.f32 -1.442695, %v7279_v36  ;;  %v13843_v46 = vld [vmem:[#allocation83_spill] sm:$0xff]  ;;  %v9651_v47 = vmul.f32 -1.442695, %v7320_v3  ;;  %v7354_v25 = vpop.permute.xlu1 %7353 }
 0x7ce   :  { %10963 = vpow2.f32 %v9649_v9  ;;  %v10715_v37 = vld [vmem:[#allocation8 + $0x344] ss:$16 sps:$4 sm:$0xff]   ;;  %vm7355_vm5 = vcmp.eq.s32.totalorder %v7354_v25, 1  ;;  %v10713_v36 = vld [vmem:[#allocation8 + $0x340] ss:$16 sps:$4 sm:$0xff]  }
 0x7cf   :  { %10965 = vpow2.f32 %v9650_v14  ;;  %8279 = vmatpush1.bf16.msra.mxu0 %v12871_v62  ;;  %8320 = vmatpush1.bf16.msra.mxu1 %v12876_v32  ;;  %v7318_v62 = vadd.f32 %v7317_v29, %v11377_v40  ;;  %v10721_v27 = vld [vmem:[#allocation8 + $0x384] ss:$16 sps:$4 sm:$0xff]   ;;  %v10736_v3 = vld [vmem:[#allocation8 + $0x3ec] ss:$16 sps:$4 sm:$0xff]  }
 0x7d0   :  { %8280 = vmatprep.subr.bf16.mxu0 %v12878_v5  ;;  %8321 = vmatprep.subr.bf16.mxu1 %v12882_v39  ;;  %v10698_v5 = vld [vmem:[#allocation8 + $0x2a0] ss:$16 sps:$4 sm:$0xff]   ;;  %v10703_v39 = vld [vmem:[#allocation8 + $0x2c4] ss:$16 sps:$4 sm:$0xff]   ;;  %10967 = vpow2.f32 %v9651_v47 }
 0x7d1   :  { %10969 = vtanh.f32 %v7318_v62  ;;  %v10741_v47 = vld [vmem:[%s13221_s5 + $0x10] sm:$0xff]   ;;  %v10742_v62 = vld [vmem:[%s13221_s5 + $0x18] sm:$0xff]  }
 0x7d3   :  { %8281 = vmatpush1.bf16.msra.mxu0 %v13841_v20  ;;  %8322 = vmatpush1.bf16.msra.mxu1 %v13842_v54  ;;  %v10734_v20 = vld [vmem:[#allocation8 + $0x3e8] ss:$16 sps:$4 sm:$0xff]  }
 0x7d4   :  { %8282 = vmatprep.subr.bf16.mxu0 %v10697_v63  ;;  %8323 = vmatprep.subr.bf16.mxu1 %v13843_v46  ;;  %v10728_v63 = vld [vmem:[#allocation8 + $0x3c8] ss:$16 sps:$4 sm:$0xff]   ;;  %v11186_v46 = vmov 0.0  }
 0x7d7   :  { %8283 = vmatpush1.bf16.msra.mxu0 %v10695_v6  ;;  %8324 = vmatpush1.bf16.msra.mxu1 %v12897_v8  ;;  %v10706_v8 = vld [vmem:[#allocation8 + $0x2e4] ss:$16 sps:$4 sm:$0xff]  }
 0x7d8   :  { %v10964_v32 = vpop.eup %10963  ;;  %8284 = vmatprep.subr.bf16.mxu0 %v10700_v52  ;;  %8325 = vmatprep.subr.bf16.mxu1 %v12901_v15  ;;  %v10704_v15 = vld [vmem:[#allocation8 + $0x2e0] ss:$16 sps:$4 sm:$0xff]   ;;  %v10740_v52 = vld [vmem:[%s13221_s5 + $0x8] sm:$0xff]  }
 0x7d9   :  { %v10966_v2 = vpop.eup %10965  ;;  %v7327_v28 = vadd.f32 1.0, %v10964_v32  ;;  %v10744_v32 = vld [vmem:[%s13221_s5 + $0x28] sm:$0xff]  }
 0x7da   :  { %v7333_v44 = vadd.f32 1.0, %v10966_v2  ;;  %v10968_v11 = vpop.eup %10967  ;;  %v10746_v2 = vld [vmem:[%s13221_s5 + $0x38] sm:$0xff]  }
 0x7db   :  { %10971 = vrcp.f32 %v7327_v28  ;;  %8285 = vmatpush1.bf16.msra.mxu0 %v10698_v5  ;;  %8326 = vmatpush1.bf16.msra.mxu1 %v12906_v17  ;;  %v10970_v17 = vpop.eup %10969  ;;  %v7340_v29 = vadd.f32 1.0, %v10968_v11  ;;  %v10743_v5 = vld [vmem:[%s13221_s5 + $0x20] sm:$0xff]   ;;  %v10753_v11 = vld [vmem:[%s13221_s5 + $0x70] sm:$0xff]  }
 0x7dc   :  { %10973 = vrcp.f32 %v7333_v44  ;;  %8286 = vmatprep.subr.bf16.mxu0 %v10703_v39  ;;  %8327 = vmatprep.subr.bf16.mxu1 %v12910_v0  ;;  %v10745_v39 = vld [vmem:[%s13221_s5 + $0x30] sm:$0xff]   ;;  %v10747_v28 = vld [vmem:[%s13221_s5 + $0x40] sm:$0xff]   ;;  %v10748_v44 = vld [vmem:[%s13221_s5 + $0x48] sm:$0xff]  }
 0x7dd   :  { %10975 = vrcp.f32 %v7340_v29 }
 0x7df   :  { %8287 = vmatpush1.bf16.msra.mxu0 %v10701_v4  ;;  %8328 = vmatpush1.bf16.msra.mxu1 %v12914_v41  ;;  %v10749_v4 = vld [vmem:[%s13221_s5 + $0x50] sm:$0xff]  }
 0x7e0   :  { %8288 = vmatprep.subr.bf16.mxu0 %v10706_v8  ;;  %8329 = vmatprep.subr.bf16.mxu1 %v12918_v7  ;;  %v10710_v7 = vld [vmem:[#allocation8 + $0x320] ss:$16 sps:$4 sm:$0xff]   ;;  %v10750_v8 = vld [vmem:[%s13221_s5 + $0x58] sm:$0xff]  }
 0x7e3   :  { %8289 = vmatpush1.bf16.msra.mxu0 %v10704_v15  ;;  %8330 = vmatpush1.bf16.msra.mxu1 %v13844_v18  ;;  %v10751_v15 = vld [vmem:[%s13221_s5 + $0x60] sm:$0xff]   ;;  %v10754_v18 = vld [vmem:[%s13221_s5 + $0x78] sm:$0xff]  }
 0x7e4   :  { %8290 = vmatprep.subr.bf16.mxu0 %v10709_v43  ;;  %8331 = vmatprep.subr.bf16.mxu1 %v13845_v33  ;;  %v10752_v43 = vld [vmem:[%s13221_s5 + $0x68] sm:$0xff]  }
 0x7e5   :  { %v10972_v0 = vpop.eup %10971 }
 0x7e6   :  { %v10974_v51 = vpop.eup %10973  ;;  %v7345_v58 = vmul.f32 %v10972_v0, %v10970_v17 }
 0x7e7   :  { %v7344_v41 = vmul.f32 %v10974_v51, %v12951_v45  ;;  %8291 = vmatpush1.bf16.msra.mxu0 %v10707_v21  ;;  %8332 = vmatpush1.bf16.msra.mxu1 %v12930_v56  ;;  %v10718_v56 = vld [vmem:[#allocation8 + $0x364] ss:$16 sps:$4 sm:$0xff]   ;;  %v10976_v9 = vpop.eup %10975 }
 0x7e8   :  { %8292 = vmatprep.subr.bf16.mxu0 %v10712_v55  ;;  %8333 = vmatprep.subr.bf16.mxu1 %v12934_v53  ;;  %v10716_v53 = vld [vmem:[#allocation8 + $0x360] ss:$16 sps:$4 sm:$0xff]  }
 0x7e9   :  { %v7346_v48 = vadd.f32 %v7345_v58, %v7344_v41 }
 0x7eb   :  { %10977 = vtanh.f32 %v7346_v48  ;;  %8293 = vmatpush1.bf16.msra.mxu0 %v10710_v7  ;;  %8334 = vmatpush1.bf16.msra.mxu1 %v12939_v16  ;;  %v13110_v26 = vsel %vm7355_vm5, %v7346_v48, %v12951_v45  ;;  %v10719_v16 = vld [vmem:[#allocation8 + $0x380] ss:$16 sps:$4 sm:$0xff]   ;;  %v10724_v45 = vld [vmem:[#allocation8 + $0x3a4] ss:$16 sps:$4 sm:$0xff]  }
 0x7ec   :  { %8294 = vmatprep.subr.bf16.mxu0 %v10715_v37  ;;  %8335 = vmatprep.subr.bf16.mxu1 %v12943_v59 }
 0x7ef   :  { %8295 = vmatpush1.bf16.msra.mxu0 %v10713_v36  ;;  %8336 = vmatpush1.bf16.msra.mxu1 %v12947_v61  ;;  %v10722_v61 = vld [vmem:[#allocation8 + $0x3a0] ss:$16 sps:$4 sm:$0xff]  }
 0x7f0   :  { %8296 = vmatprep.subr.bf16.mxu0 %v10718_v56  ;;  %8337 = vmatprep.subr.bf16.mxu1 %v12955_v1  ;;  %v10727_v1 = vld [vmem:[#allocation8 + $0x3c4] ss:$16 sps:$4 sm:$0xff]  }
 0x7f3   :  { %8297 = vmatpush1.bf16.msra.mxu0 %v10716_v53  ;;  %8338 = vmatpush1.bf16.msra.mxu1 %v12959_v34  ;;  %v10730_v34 = vld [vmem:[#allocation8 + $0x3cc] ss:$16 sps:$4 sm:$0xff]  }
 0x7f4   :  { %8298 = vmatprep.subr.bf16.mxu0 %v10721_v27  ;;  %8339 = vmatprep.subr.bf16.mxu1 %v12963_v13  ;;  %v10725_v13 = vld [vmem:[#allocation8 + $0x3c0] ss:$16 sps:$4 sm:$0xff]  }
 0x7f5   :  { %v10978_v24 = vpop.eup %10977 }
 0x7f6   :  { %v7348_v59 = vmul.f32 %v10978_v24, %v10976_v9 }
 0x7f7   :  { %8299 = vmatpush1.bf16.msra.mxu0 %v10719_v16  ;;  %8340 = vmatpush1.bf16.msra.mxu1 %v12967_v35  ;;  %v10733_v35 = vld [vmem:[#allocation8 + $0x3e4] ss:$16 sps:$4 sm:$0xff]  }
 0x7f8   :  { %v13120_v60 = vsel %vm7355_vm5, %v7348_v59, %v12979_v12  ;;  %8300 = vmatprep.subr.bf16.mxu0 %v10724_v45  ;;  %8341 = vmatprep.subr.bf16.mxu1 %v12971_v10  ;;  %v10731_v12 = vld [vmem:[#allocation8 + $0x3e0] ss:$16 sps:$4 sm:$0xff]  }
 0x7f9   :  { %v7361_v14 = vpack.c.bf16 %v13120_v60, %v13120_v60 }
 0x7fb   :  { %7362 = vst [vmem:[#allocation3 + $0x4] sm:$0xf] %v7361_v14  ;;  %8301 = vmatpush1.bf16.msra.mxu0 %v10722_v61  ;;  %8342 = vmatpush1.bf16.msra.mxu1 %v12975_v50  ;;  %v10739_v50 = vld [vmem:[%s13221_s5] sm:$0xff]  }
 0x7fc   :  { %8302 = vmatprep.subr.bf16.mxu0 %v10727_v1  ;;  %8343 = vmatprep.subr.bf16.mxu1 %v10730_v34  ;;  %v7871_v34 = vpop.permute.xlu0 %7870 }
 0x7fd   :  { %vm7872_vm7 = vcmp.eq.s32.totalorder %v7871_v34, 1 }
 0x7ff   :  { %8303 = vmatpush1.bf16.msra.mxu0 %v10725_v13  ;;  %8344 = vmatpush1.bf16.msra.mxu1 %v10728_v63 }
 0x800   :  { %8304 = vmatprep.subr.bf16.mxu0 %v10733_v35  ;;  %8345 = vmatprep.subr.bf16.mxu1 %v10736_v3 }
 0x802   :  { %v7882_v10 = vld [vmem:[#allocation3] sm:$0xff] }
 0x803   :  { %8305 = vmatpush1.bf16.msra.mxu0 %v10731_v12  ;;  %8346 = vmatpush1.bf16.msra.mxu1 %v10734_v20  ;;  %v9725_v54 = vcombine.high %v7882_v10, %v7882_v10  ;;  %v9724_v6 = vcombine.low %v7882_v10, %v7882_v10 }
 0x804   :  { %9865 = vmatprep.subr.bf16.mxu1 %v11186_v46  ;;  %9846 = vmatprep.subr.bf16.mxu0 %v11186_v46 }
 0x805   :  { %8306 = vmatprep.mubr.bf16.mxu0 %v9725_v54  ;;  %8347 = vmatprep.mubr.bf16.mxu1 %v9725_v54 }
 0x806   :  { %8307 = vmatmul.mubr.bf16.vlgmr.msra.gmra.mrb[60].mxu0 %v9724_v6  ;;  %8348 = vmatmul.mubr.bf16.vlgmr.msra.gmra.mrb[60].mxu1 %v9724_v6 }
 0x807   :  { %9866 = vmatpush3.bf16.msra.mxu1 %v10739_v50  ;;  %9881 = vmatprep.mubr.msk.f32.mxu1 %vm11187_vm6, %v11186_v46 }
 0x808   :  { %9867 = vmatprep.subr.bf16.mxu1 %v11186_v46  ;;  %9862 = vmatprep.mubr.msk.f32.mxu0 %vm11187_vm6, %v11186_v46 }
 0x809   :  { %9847 = vmatpush3.bf16.msra.mxu0 %v10747_v28 }
 0x80a   :  { %9848 = vmatprep.subr.bf16.mxu0 %v11186_v46 }
 0x80b   :  { %9868 = vmatpush3.bf16.msra.mxu1 %v10740_v52 }
 0x80c   :  { %9869 = vmatprep.subr.bf16.mxu1 %v11186_v46 }
 0x80d   :  { %9849 = vmatpush3.bf16.msra.mxu0 %v10748_v44 }
 0x80e   :  { %9850 = vmatprep.subr.bf16.mxu0 %v11186_v46 }
 0x80f   :  { %9870 = vmatpush3.bf16.msra.mxu1 %v10741_v47 }
 0x810   :  { %9871 = vmatprep.subr.bf16.mxu1 %v11186_v46 }
 0x811   :  { %9851 = vmatpush3.bf16.msra.mxu0 %v10749_v4 }
 0x812   :  { %9852 = vmatprep.subr.bf16.mxu0 %v11186_v46 }
 0x813   :  { %9872 = vmatpush3.bf16.msra.mxu1 %v10742_v62 }
 0x814   :  { %9873 = vmatprep.subr.bf16.mxu1 %v11186_v46 }
 0x815   :  { %9853 = vmatpush3.bf16.msra.mxu0 %v10750_v8 }
 0x816   :  { %9854 = vmatprep.subr.bf16.mxu0 %v11186_v46 }
 0x817   :  { %9874 = vmatpush3.bf16.msra.mxu1 %v10743_v5 }
 0x818   :  { %9875 = vmatprep.subr.bf16.mxu1 %v11186_v46 }
 0x819   :  { %9855 = vmatpush3.bf16.msra.mxu0 %v10751_v15 }
 0x81a   :  { %9856 = vmatprep.subr.bf16.mxu0 %v11186_v46 }
 0x81b   :  { %9876 = vmatpush3.bf16.msra.mxu1 %v10744_v32 }
 0x81c   :  { %9877 = vmatprep.subr.bf16.mxu1 %v11186_v46 }
 0x81d   :  { %9857 = vmatpush3.bf16.msra.mxu0 %v10752_v43 }
 0x81e   :  { %9858 = vmatprep.subr.bf16.mxu0 %v11186_v46 }
 0x81f   :  { %9878 = vmatpush3.bf16.msra.mxu1 %v10745_v39 }
 0x820   :  { %9879 = vmatprep.subr.bf16.mxu1 %v11186_v46 }
 0x821   :  { %9859 = vmatpush3.bf16.msra.mxu0 %v10753_v11 }
 0x822   :  { %9860 = vmatprep.subr.bf16.mxu0 %v11186_v46 }
 0x823   :  { %9880 = vmatpush3.bf16.msra.mxu1 %v10746_v2 }
 0x825   :  { %9861 = vmatpush3.bf16.msra.mxu0 %v10754_v18  ;;  %v8386_v18 = vpop.permute.xlu1 %8385 }
 0x826   :  { %vm8387_vm8 = vcmp.eq.s32.totalorder %v8386_v18, 1 }
 0x899   :  { %v7793_v21 = vpop.f32.mrb[56].mxu0  ;;  %v7834_v17 = vpop.f32.mrb[56].mxu1 }
 0x89a   :  { %v7794_v33 = vadd.f32 %v7793_v21, %v13836_v31  ;;  %v7795_v55 = vpop.f32.mrb[57].mxu0  ;;  %v7836_v0 = vpop.f32.mrb[57].mxu1  ;;  %v7835_v56 = vadd.f32 %v7834_v17, %v11342_v57 }
 0x89b   :  { %v7796_v51 = vadd.f32 %v7795_v55, %v11326_v38  ;;  %v7797_v58 = vpop.f32.mrb[58].mxu0  ;;  %v7838_v29 = vpop.f32.mrb[58].mxu1  ;;  %v7837_v48 = vadd.f32 %v7836_v0, %v11334_v49 }
 0x89c   :  { %v9720_v41 = vmul.f32 -1.442695, %v7794_v33  ;;  %v7798_v7 = vpop.f32.mrb[59].mxu0  ;;  %v7839_v37 = vpop.f32.mrb[59].mxu1 }
 0x89d   :  { %v9721_v25 = vmul.f32 -1.442695, %v7796_v51  ;;  %v9722_v36 = vmul.f32 -1.442695, %v7837_v48 }
 0x89e   :  { %10979 = vpow2.f32 %v9720_v41 }
 0x89f   :  { %10981 = vpow2.f32 %v9721_v25 }
 0x8a0   :  { %10983 = vpow2.f32 %v9722_v36 }
 0x8a1   :  { %10985 = vtanh.f32 %v7835_v56 }
 0x8a8   :  { %v10980_v53 = vpop.eup %10979 }
 0x8a9   :  { %v10982_v27 = vpop.eup %10981  ;;  %v7844_v31 = vadd.f32 1.0, %v10980_v53 }
 0x8aa   :  { %v7850_v16 = vadd.f32 1.0, %v10982_v27  ;;  %v10984_v38 = vpop.eup %10983 }
 0x8ab   :  { %10987 = vrcp.f32 %v7844_v31  ;;  %v10986_v9 = vpop.eup %10985  ;;  %v7857_v61 = vadd.f32 1.0, %v10984_v38 }
 0x8ac   :  { %10989 = vrcp.f32 %v7850_v16 }
 0x8ad   :  { %10991 = vrcp.f32 %v7857_v61 }
 0x8b5   :  { %v10988_v45 = vpop.eup %10987 }
 0x8b6   :  { %v10990_v24 = vpop.eup %10989  ;;  %v7862_v59 = vmul.f32 %v10988_v45, %v10986_v9 }
 0x8b7   :  { %v7861_v1 = vmul.f32 %v10990_v24, %v13070_v23  ;;  %v10992_v57 = vpop.eup %10991 }
 0x8b9   :  { %v7863_v49 = vadd.f32 %v7862_v59, %v7861_v1 }
 0x8bb   :  { %10993 = vtanh.f32 %v7863_v49 }
 0x8c5   :  { %v10994_v14 = vpop.eup %10993 }
 0x8c6   :  { %v7865_v13 = vmul.f32 %v10994_v14, %v10992_v57 }
 0x8c8   :  { %v7876_v63 = vsel %vm7872_vm7, %v7865_v13, %v13073_v30 }
 0x8c9   :  { %v7878_v35 = vpack.c.bf16 %v7876_v63, %v7876_v63  ;;  %9882 = vmatmul.mubr.f32.vlgmr.msra.gmra.mrb[64].mxu1 %v7876_v63 }
 0x8cb   :  { %7879 = vst [vmem:[#allocation2 + $0x4] sm:$0xf] %v7878_v35 }
 0x8d9   :  { %v8308_v3 = vpop.f32.mrb[60].mxu0  ;;  %v8349_v12 = vpop.f32.mrb[60].mxu1 }
 0x8da   :  { %v8309_v20 = vadd.f32 %v8308_v3, %v11360_v19  ;;  %v8310_v10 = vpop.f32.mrb[61].mxu0  ;;  %v8351_v54 = vpop.f32.mrb[61].mxu1  ;;  %v8350_v32 = vadd.f32 %v8349_v12, %v11377_v40 }
 0x8db   :  { %v8311_v23 = vadd.f32 %v8310_v10, %v11364_v22  ;;  %v8312_v6 = vpop.f32.mrb[62].mxu0  ;;  %v8353_v50 = vpop.f32.mrb[62].mxu1  ;;  %v8352_v30 = vadd.f32 %v8351_v54, %v11370_v42 }
 0x8dc   :  { %v9790_v46 = vmul.f32 -1.442695, %v8309_v20  ;;  %v8313_v52 = vpop.f32.mrb[63].mxu0  ;;  %v8354_v47 = vpop.f32.mrb[63].mxu1 }
 0x8dd   :  { %v9791_v62 = vmul.f32 -1.442695, %v8311_v23  ;;  %v9792_v5 = vmul.f32 -1.442695, %v8352_v30 }
 0x8de   :  { %10995 = vpow2.f32 %v9790_v46 }
 0x8df   :  { %10997 = vpow2.f32 %v9791_v62 }
 0x8e0   :  { %10999 = vpow2.f32 %v9792_v5 }
 0x8e1   :  { %11001 = vtanh.f32 %v8350_v32 }
 0x8e8   :  { %v10996_v39 = vpop.eup %10995 }
 0x8e9   :  { %v10998_v2 = vpop.eup %10997  ;;  %v8359_v19 = vadd.f32 1.0, %v10996_v39 }
 0x8ea   :  { %v8365_v28 = vadd.f32 1.0, %v10998_v2  ;;  %v11000_v22 = vpop.eup %10999 }
 0x8eb   :  { %11003 = vrcp.f32 %v8359_v19  ;;  %v11002_v44 = vpop.eup %11001  ;;  %v8372_v43 = vadd.f32 1.0, %v11000_v22 }
 0x8ec   :  { %11005 = vrcp.f32 %v8365_v28 }
 0x8ed   :  { %11007 = vrcp.f32 %v8372_v43 }
 0x8f5   :  { %v11004_v4 = vpop.eup %11003 }
 0x8f6   :  { %v11006_v8 = vpop.eup %11005  ;;  %v8377_v15 = vmul.f32 %v11004_v4, %v11002_v44 }
 0x8f7   :  { %v8376_v11 = vmul.f32 %v11006_v8, %v13110_v26  ;;  %v11008_v40 = vpop.eup %11007  ;;  %v9826_v26 = vld [vmem:[%s13222_s6] ss:$0 sm:$0xff] }
 0x8f9   :  { %v8378_v42 = vadd.f32 %v8377_v15, %v8376_v11 }
 0x8fb   :  { %11009 = vtanh.f32 %v8378_v42 }
 0x905   :  { %v11010_v21 = vpop.eup %11009 }
 0x906   :  { %v8380_v17 = vmul.f32 %v11010_v21, %v11008_v40 }
 0x908   :  { %v8391_v33 = vsel %vm8387_vm8, %v8380_v17, %v13120_v60 }
 0x909   :  { %v8393_v55 = vpack.c.bf16 %v8391_v33, %v8391_v33  ;;  %9863 = vmatmul.mubr.f32.vlgmr.msra.gmra.mrb[64].mxu0 %v8391_v33 }
 0x90b   :  { %8394 = vst [vmem:[#allocation3 + $0x4] sm:$0xf] %v8393_v55 }
 0x99c   :  { %v8601_v0 = vpop.f32.mrb[64].mxu1 }
 0x99d   :  { %v9883_v51 = vpop.f32.mrb[65].mxu1 }
 0x9dc   :  { %v8515_v58 = vpop.f32.mrb[64].mxu0 }
 0x9dd   :  { %v8602_v29 = vadd.f32 %v8601_v0, %v8515_v58  ;;  %v9864_v41 = vpop.f32.mrb[65].mxu0 }
 0x9df   :  { %v8612_v7 = vadd.f32 %v9826_v26, %v8602_v29 }
 0x9e1   :  { %v9827_v37 = vmul.f32 -1.442695, %v8612_v7  ;;  %8614 = vst.msk [vmem:[#allocation11] sm:$0xff] %vm8613_vm9, %v8612_v7 }
 0x9e2   :  { %11143 = shalt.err (!%p11140_p12)
}
 0x9e3   :  { %s11144_s6 = scalar_lea.hbm %s13223_s7, 128 }
 0x9e4   :  { %p11145_p13 = scmp.ne.s32.totalorder %s13223_s7, %s11144_s6  ;;  %p11148_p0 = scmp.lt.u32.totalorder %s11144_s6, %s13223_s7 }
 0x9e6   :  { %p11150_p1 = pnand %p11148_p0, %p11145_p13 }
 0x9e8   :  { %11153 = shalt.err (!%p11150_p1)
}
 0x9e9   :  { %8633 = dma.vmem_to_hbm [thread:$0]  %s8631_s14, 128, %s13223_s7, [#allocation10]   ;;  %11011 = vpow2.f32 %v9827_v37  ;;  %v13846_v36 = vmov 0  }
 0x9ea   :  { %s11189_s23 = smov [#allocation12]  }
 0x9eb   :  { %s8640_s24 = sshll.u32 %s11189_s23, 4  ;;  %s8641_s24 = int_to_ptr.vmem [resolvable:$true] %s8640_s24 }
 0x9ec   :  { %s11154_s25 = scalar_lea.vmem %s8641_s24, 128  ;;  %p11159_p3 = scmp.lt.s32.totalorder %s8641_s24, %s8641_s24 }
 0x9ed   :  { %p11155_p2 = scmp.ne.s32.totalorder %s8641_s24, %s11154_s25  ;;  %p11160_p4 = scmp.lt.s32.totalorder %s11154_s25, %s11154_s25 }
 0x9ef   :  { %p11161_p5 = por %p11160_p4, %p11159_p3 }
 0x9f1   :  { %p11162_p6 = pnand %p11161_p5, %p11155_p2 }
 0x9f3   :  { %v11012_v60 = vpop.eup %11011 }
 0x9f4   :  { %v8618_v25 = vadd.f32 1.0, %v11012_v60 }
 0x9f6   :  { %11013 = vrcp.f32 %v8618_v25 }
 0xa00   :  { %v11014_v48 = vpop.eup %11013 }
 0xa01   :  { %vm8621_vm10 = vcmp.gt.f32.partialorder %v11014_v48, 0.5 }
 0xa02   :  { %v8622_v56 = vsel %vm8621_vm10, 1, %v13846_v36 }
 0xa03   :  { %8623 = vst.msk [vmem:[#allocation12] sm:$0xff] %vm8613_vm9, %v8622_v56 }
 0xa04   :  { %11165 = shalt.err (!%p11162_p6)
}
 0xa05   :  { %s11166_s27 = scalar_lea.hbm %s13224_s8, 128 }
 0xa06   :  { %p11167_p7 = scmp.ne.s32.totalorder %s13224_s8, %s11166_s27  ;;  %p11170_p8 = scmp.lt.u32.totalorder %s11166_s27, %s13224_s8 }
 0xa08   :  { %p11172_p9 = pnand %p11170_p8, %p11167_p7 }
 0xa0a   :  { %11175 = shalt.err (!%p11172_p9)
}
 0xa0b   :  { %8643 = dma.vmem_to_hbm [thread:$0]  %s8641_s24, 128, %s13224_s8, [#allocation13]  }
 0xa0c   :  { %11178 = dma.done.wait [#allocation10], 128  }
 0xa0d   :  { %11179 = vsyncadd [#allocation10], 4294967168 }
 0xa0e   :  { %11180 = dma.done.wait [#allocation13], 128  }
 0xa0f   :  { %11181 = vsyncadd [#allocation13], 4294967168 }
 0xa10   :  { %8650 = vsyncpa [#allocation9], 1 }
 0xa11   :  { %8651 = vsyncpa [#allocation10], 1 }
 0xa12   :  { %8652 = vsyncpa [#allocation13], 1 }

</bundles_post_ra>
